<compile_context>
chip_gen: v7x
topology: tpu7x:2x2x1
jax: 0.10.0
libtpu: 0.0.40
codegen_flags: <defaults>
</compile_context>

<pallas_src>
import functools

import jax
import jax.numpy as jnp
from jax import lax
from jax.experimental import pallas as pl
from jax.experimental.pallas import tpu as pltpu  # noqa: F401  (kept for TPU-specific tuning hooks)


# ----------------------------------------------------------------------------
# Pallas kernel: fused prior prediction + all routing rounds, all capsules
# ----------------------------------------------------------------------------
def _routing_kernel(x_ref, w_ref, out_ref, *, num_rounds):
    """x_ref: (B, I, R)   w_ref: (J, O, I, R)   out_ref: (J, B, O).

    Route axis R sits on the 128-lane axis everywhere, so every routing
    reduction is a dense lane reduction; J*B occupies the leading/sublane dims.
    """
    B, I, R = x_ref.shape
    J, O = w_ref.shape[0], w_ref.shape[1]

    # u_hat: priors[j, b, o, r] = sum_i x[b, i, r] * W[j, o, i, r]
    # Tiny static contraction over I=8 -> unrolled VPU multiply-add (no MXU).
    priors = jnp.zeros((J, B, O, R), jnp.float32)
    for i in range(I):
        xi = x_ref[:, i, :]                       # (B, R)
        wi = w_ref[:, :, i, :]                    # (J, O, R)
        priors = priors + xi[None, :, None, :] * wi[:, None, :, :]

    # NOTE(assumption): in the PyTorch module b_ij is zero-initialized and its
    # update (priors * v).sum(-1) is constant along the output-channel axis O,
    # so a (J, B, R) logit tensor is exactly equivalent to the reference's
    # (J, B, R, 1, O) one.  This breaks if the logit init or update ever
    # becomes O-dependent.
    logits = jnp.zeros((J, B, R), jnp.float32)
    v = jnp.zeros((J, B, O), jnp.float32)

    for rnd in range(num_rounds):
        # softmax over routes (lane-axis reduction); denominator on the EUP.
        m = jnp.max(logits, axis=-1, keepdims=True)
        e = jnp.exp(logits - m)
        probs = e * pl.reciprocal(jnp.sum(e, axis=-1, keepdims=True), approx=True)

        # s_j = sum_r c_ij * u_hat_{j|i}
        s = jnp.sum(probs[:, :, None, :] * priors, axis=-1)         # (J, B, O)

        # squash along the output-capsule axis O.
        # (No epsilon -> NaN if s == 0 exactly, same as the PyTorch module.)
        s_norm = jnp.sum(s * s, axis=-1, keepdims=True)              # (J, B, 1)
        v = (s_norm / (1.0 + s_norm)) * s * lax.rsqrt(s_norm)        # (J, B, O)

        if rnd != num_rounds - 1:
            # b_ij += <u_hat_{j|i}, v_j>   (reduction over O, the sublane axis)
            logits = logits + jnp.sum(priors * v[:, :, :, None], axis=2)

    # Single full-slab store at the very end (one writeback, no per-step vst).
    out_ref[...] = v.astype(out_ref.dtype)


# ----------------------------------------------------------------------------
# Wrappers
# ----------------------------------------------------------------------------
def prepare_weights(W):
    """One-time layout prep (call OUTSIDE jit): (J, R, I, O) -> (J, O, I, R)."""
    return jnp.transpose(W, (0, 3, 2, 1))


def capsule_layer_forward(w_t, x, *, num_rounds=3):
    """Routing CapsuleLayer forward.

    w_t: (J, O, I, R) pre-transposed weights; x: (B, R, I) input capsules.
    Returns (J, B, 1, 1, O) — same shape as the PyTorch module's output.
    """
    B, R, I = x.shape
    J, O = w_t.shape[0], w_t.shape[1]
    x_t = jnp.transpose(x, (0, 2, 1))             # (B, I, R): routes on lanes

    # Single invocation (grid=()): whole problem (<1 MB) fits VMEM on all gens.
    out = pl.pallas_call(
        functools.partial(_routing_kernel, num_rounds=num_rounds),
        out_shape=jax.ShapeDtypeStruct((J, B, O), jnp.float32),
    )(x_t, w_t)
    return out[:, :, None, None, :]


# ----------------------------------------------------------------------------
# Pure-JAX reference matching the PyTorch forward (routing branch)
# ----------------------------------------------------------------------------
def capsule_layer_reference(W, x, num_rounds=3):
    def squash(t, axis=-1):
        s_norm = jnp.sum(t * t, axis=axis, keepdims=True)
        return (s_norm / (1.0 + s_norm)) * t / jnp.sqrt(s_norm)

    # priors: (J, B, R, 1, O)  ==  x[None,:,:,None,:] @ W[:,None,:,:,:]
    priors = jnp.einsum("bri,jrio->jbro", x, W)[:, :, :, None, :]
    logits = jnp.zeros(priors.shape, jnp.float32)
    outps = None
    for i in range(num_rounds):
        probs = jax.nn.softmax(logits, axis=2)
        outps = squash(jnp.sum(probs * priors, axis=2, keepdims=True))
        if i != num_rounds - 1:
            del_logits = jnp.sum(priors * outps, axis=-1, keepdims=True)
            logits = logits + del_logits
    return outps                                   # (J, B, 1, 1, O)


if __name__ == "__main__":
    # Small shapes consistent with the DigitCaps use of the module:
    #   CapsuleLayer(num_caps=10, num_routes=128, in_channels=8, out_channels=16)
    num_caps, num_routes, in_ch, out_ch = 10, 128, 8, 16
    batch, num_rounds = 2, 3

    key = jax.random.PRNGKey(0)
    kw, kx = jax.random.split(key)
    W = jax.random.normal(kw, (num_caps, num_routes, in_ch, out_ch), jnp.float32)
    x = jax.random.normal(kx, (batch, num_routes, in_ch), jnp.float32)

    w_t = prepare_weights(W)                       # layout prep once, outside jit
    fwd = jax.jit(capsule_layer_forward, static_argnames=("num_rounds",))
    out = jax.block_until_ready(fwd(w_t, x, num_rounds=num_rounds))

    assert out.shape == (num_caps, batch, 1, 1, out_ch), out.shape
    ref = capsule_layer_reference(W, x, num_rounds)
    max_err = float(jnp.max(jnp.abs(out - ref)))
    # Tolerance leaves headroom for the EUP approx-reciprocal softmax denominator.
    assert max_err < 2e-3, f"max abs error vs reference: {max_err}"

    print("KERNEL_OK")
</pallas_src>

<mosaic_0001>
module attributes {stable_mosaic.version = 11 : i64} {
  func.func @_routing_kernel(%arg0: memref<2x8x128xf32, #tpu.memory_space<vmem>>, %arg1: memref<10x16x8x128xf32, #tpu.memory_space<vmem>>, %arg2: memref<10x2x16xf32, #tpu.memory_space<vmem>>) attributes {dimension_semantics = [], scalar_prefetch = 0 : i64, scratch_operands = 0 : i64, tpu.core_type = #tpu.core_type<tc>} {
    %cst = arith.constant 0.000000e+00 : f32
    %0 = vector.broadcast %cst : f32 to vector<10x2x16x128xf32>
    %c0 = arith.constant 0 : index
    %c0_0 = arith.constant 0 : index
    %c0_1 = arith.constant 0 : index
    %1 = vector.load %arg0[%c0, %c0_0, %c0_1] : memref<2x8x128xf32, #tpu.memory_space<vmem>>, vector<2x1x128xf32>
    %2 = vector.shape_cast %1 : vector<2x1x128xf32> to vector<2x128xf32>
    %c0_2 = arith.constant 0 : index
    %c0_3 = arith.constant 0 : index
    %c0_4 = arith.constant 0 : index
    %c0_5 = arith.constant 0 : index
    %3 = vector.load %arg1[%c0_2, %c0_3, %c0_4, %c0_5] : memref<10x16x8x128xf32, #tpu.memory_space<vmem>>, vector<10x16x1x128xf32>
    %4 = vector.shape_cast %3 : vector<10x16x1x128xf32> to vector<10x16x128xf32>
    %5 = vector.shape_cast %2 : vector<2x128xf32> to vector<1x2x1x128xf32>
    %6 = vector.shape_cast %4 : vector<10x16x128xf32> to vector<10x1x16x128xf32>
    %7 = vector.broadcast %5 : vector<1x2x1x128xf32> to vector<10x2x16x128xf32>
    %8 = vector.broadcast %6 : vector<10x1x16x128xf32> to vector<10x2x16x128xf32>
    %9 = arith.mulf %7, %8 : vector<10x2x16x128xf32>
    %10 = arith.addf %0, %9 : vector<10x2x16x128xf32>
    %c0_6 = arith.constant 0 : index
    %c1 = arith.constant 1 : index
    %c0_7 = arith.constant 0 : index
    %11 = vector.load %arg0[%c0_6, %c1, %c0_7] : memref<2x8x128xf32, #tpu.memory_space<vmem>>, vector<2x1x128xf32>
    %12 = vector.shape_cast %11 : vector<2x1x128xf32> to vector<2x128xf32>
    %c0_8 = arith.constant 0 : index
    %c0_9 = arith.constant 0 : index
    %c1_10 = arith.constant 1 : index
    %c0_11 = arith.constant 0 : index
    %13 = vector.load %arg1[%c0_8, %c0_9, %c1_10, %c0_11] : memref<10x16x8x128xf32, #tpu.memory_space<vmem>>, vector<10x16x1x128xf32>
    %14 = vector.shape_cast %13 : vector<10x16x1x128xf32> to vector<10x16x128xf32>
    %15 = vector.shape_cast %12 : vector<2x128xf32> to vector<1x2x1x128xf32>
    %16 = vector.shape_cast %14 : vector<10x16x128xf32> to vector<10x1x16x128xf32>
    %17 = vector.broadcast %15 : vector<1x2x1x128xf32> to vector<10x2x16x128xf32>
    %18 = vector.broadcast %16 : vector<10x1x16x128xf32> to vector<10x2x16x128xf32>
    %19 = arith.mulf %17, %18 : vector<10x2x16x128xf32>
    %20 = arith.addf %10, %19 : vector<10x2x16x128xf32>
    %c0_12 = arith.constant 0 : index
    %c2 = arith.constant 2 : index
    %c0_13 = arith.constant 0 : index
    %21 = vector.load %arg0[%c0_12, %c2, %c0_13] : memref<2x8x128xf32, #tpu.memory_space<vmem>>, vector<2x1x128xf32>
    %22 = vector.shape_cast %21 : vector<2x1x128xf32> to vector<2x128xf32>
    %c0_14 = arith.constant 0 : index
    %c0_15 = arith.constant 0 : index
    %c2_16 = arith.constant 2 : index
    %c0_17 = arith.constant 0 : index
    %23 = vector.load %arg1[%c0_14, %c0_15, %c2_16, %c0_17] : memref<10x16x8x128xf32, #tpu.memory_space<vmem>>, vector<10x16x1x128xf32>
    %24 = vector.shape_cast %23 : vector<10x16x1x128xf32> to vector<10x16x128xf32>
    %25 = vector.shape_cast %22 : vector<2x128xf32> to vector<1x2x1x128xf32>
    %26 = vector.shape_cast %24 : vector<10x16x128xf32> to vector<10x1x16x128xf32>
    %27 = vector.broadcast %25 : vector<1x2x1x128xf32> to vector<10x2x16x128xf32>
    %28 = vector.broadcast %26 : vector<10x1x16x128xf32> to vector<10x2x16x128xf32>
    %29 = arith.mulf %27, %28 : vector<10x2x16x128xf32>
    %30 = arith.addf %20, %29 : vector<10x2x16x128xf32>
    %c0_18 = arith.constant 0 : index
    %c3 = arith.constant 3 : index
    %c0_19 = arith.constant 0 : index
    %31 = vector.load %arg0[%c0_18, %c3, %c0_19] : memref<2x8x128xf32, #tpu.memory_space<vmem>>, vector<2x1x128xf32>
    %32 = vector.shape_cast %31 : vector<2x1x128xf32> to vector<2x128xf32>
    %c0_20 = arith.constant 0 : index
    %c0_21 = arith.constant 0 : index
    %c3_22 = arith.constant 3 : index
    %c0_23 = arith.constant 0 : index
    %33 = vector.load %arg1[%c0_20, %c0_21, %c3_22, %c0_23] : memref<10x16x8x128xf32, #tpu.memory_space<vmem>>, vector<10x16x1x128xf32>
    %34 = vector.shape_cast %33 : vector<10x16x1x128xf32> to vector<10x16x128xf32>
    %35 = vector.shape_cast %32 : vector<2x128xf32> to vector<1x2x1x128xf32>
    %36 = vector.shape_cast %34 : vector<10x16x128xf32> to vector<10x1x16x128xf32>
    %37 = vector.broadcast %35 : vector<1x2x1x128xf32> to vector<10x2x16x128xf32>
    %38 = vector.broadcast %36 : vector<10x1x16x128xf32> to vector<10x2x16x128xf32>
    %39 = arith.mulf %37, %38 : vector<10x2x16x128xf32>
    %40 = arith.addf %30, %39 : vector<10x2x16x128xf32>
    %c0_24 = arith.constant 0 : index
    %c4 = arith.constant 4 : index
    %c0_25 = arith.constant 0 : index
    %41 = vector.load %arg0[%c0_24, %c4, %c0_25] : memref<2x8x128xf32, #tpu.memory_space<vmem>>, vector<2x1x128xf32>
    %42 = vector.shape_cast %41 : vector<2x1x128xf32> to vector<2x128xf32>
    %c0_26 = arith.constant 0 : index
    %c0_27 = arith.constant 0 : index
    %c4_28 = arith.constant 4 : index
    %c0_29 = arith.constant 0 : index
    %43 = vector.load %arg1[%c0_26, %c0_27, %c4_28, %c0_29] : memref<10x16x8x128xf32, #tpu.memory_space<vmem>>, vector<10x16x1x128xf32>
    %44 = vector.shape_cast %43 : vector<10x16x1x128xf32> to vector<10x16x128xf32>
    %45 = vector.shape_cast %42 : vector<2x128xf32> to vector<1x2x1x128xf32>
    %46 = vector.shape_cast %44 : vector<10x16x128xf32> to vector<10x1x16x128xf32>
    %47 = vector.broadcast %45 : vector<1x2x1x128xf32> to vector<10x2x16x128xf32>
    %48 = vector.broadcast %46 : vector<10x1x16x128xf32> to vector<10x2x16x128xf32>
    %49 = arith.mulf %47, %48 : vector<10x2x16x128xf32>
    %50 = arith.addf %40, %49 : vector<10x2x16x128xf32>
    %c0_30 = arith.constant 0 : index
    %c5 = arith.constant 5 : index
    %c0_31 = arith.constant 0 : index
    %51 = vector.load %arg0[%c0_30, %c5, %c0_31] : memref<2x8x128xf32, #tpu.memory_space<vmem>>, vector<2x1x128xf32>
    %52 = vector.shape_cast %51 : vector<2x1x128xf32> to vector<2x128xf32>
    %c0_32 = arith.constant 0 : index
    %c0_33 = arith.constant 0 : index
    %c5_34 = arith.constant 5 : index
    %c0_35 = arith.constant 0 : index
    %53 = vector.load %arg1[%c0_32, %c0_33, %c5_34, %c0_35] : memref<10x16x8x128xf32, #tpu.memory_space<vmem>>, vector<10x16x1x128xf32>
    %54 = vector.shape_cast %53 : vector<10x16x1x128xf32> to vector<10x16x128xf32>
    %55 = vector.shape_cast %52 : vector<2x128xf32> to vector<1x2x1x128xf32>
    %56 = vector.shape_cast %54 : vector<10x16x128xf32> to vector<10x1x16x128xf32>
    %57 = vector.broadcast %55 : vector<1x2x1x128xf32> to vector<10x2x16x128xf32>
    %58 = vector.broadcast %56 : vector<10x1x16x128xf32> to vector<10x2x16x128xf32>
    %59 = arith.mulf %57, %58 : vector<10x2x16x128xf32>
    %60 = arith.addf %50, %59 : vector<10x2x16x128xf32>
    %c0_36 = arith.constant 0 : index
    %c6 = arith.constant 6 : index
    %c0_37 = arith.constant 0 : index
    %61 = vector.load %arg0[%c0_36, %c6, %c0_37] : memref<2x8x128xf32, #tpu.memory_space<vmem>>, vector<2x1x128xf32>
    %62 = vector.shape_cast %61 : vector<2x1x128xf32> to vector<2x128xf32>
    %c0_38 = arith.constant 0 : index
    %c0_39 = arith.constant 0 : index
    %c6_40 = arith.constant 6 : index
    %c0_41 = arith.constant 0 : index
    %63 = vector.load %arg1[%c0_38, %c0_39, %c6_40, %c0_41] : memref<10x16x8x128xf32, #tpu.memory_space<vmem>>, vector<10x16x1x128xf32>
    %64 = vector.shape_cast %63 : vector<10x16x1x128xf32> to vector<10x16x128xf32>
    %65 = vector.shape_cast %62 : vector<2x128xf32> to vector<1x2x1x128xf32>
    %66 = vector.shape_cast %64 : vector<10x16x128xf32> to vector<10x1x16x128xf32>
    %67 = vector.broadcast %65 : vector<1x2x1x128xf32> to vector<10x2x16x128xf32>
    %68 = vector.broadcast %66 : vector<10x1x16x128xf32> to vector<10x2x16x128xf32>
    %69 = arith.mulf %67, %68 : vector<10x2x16x128xf32>
    %70 = arith.addf %60, %69 : vector<10x2x16x128xf32>
    %c0_42 = arith.constant 0 : index
    %c7 = arith.constant 7 : index
    %c0_43 = arith.constant 0 : index
    %71 = vector.load %arg0[%c0_42, %c7, %c0_43] : memref<2x8x128xf32, #tpu.memory_space<vmem>>, vector<2x1x128xf32>
    %72 = vector.shape_cast %71 : vector<2x1x128xf32> to vector<2x128xf32>
    %c0_44 = arith.constant 0 : index
    %c0_45 = arith.constant 0 : index
    %c7_46 = arith.constant 7 : index
    %c0_47 = arith.constant 0 : index
    %73 = vector.load %arg1[%c0_44, %c0_45, %c7_46, %c0_47] : memref<10x16x8x128xf32, #tpu.memory_space<vmem>>, vector<10x16x1x128xf32>
    %74 = vector.shape_cast %73 : vector<10x16x1x128xf32> to vector<10x16x128xf32>
    %75 = vector.shape_cast %72 : vector<2x128xf32> to vector<1x2x1x128xf32>
    %76 = vector.shape_cast %74 : vector<10x16x128xf32> to vector<10x1x16x128xf32>
    %77 = vector.broadcast %75 : vector<1x2x1x128xf32> to vector<10x2x16x128xf32>
    %78 = vector.broadcast %76 : vector<10x1x16x128xf32> to vector<10x2x16x128xf32>
    %79 = arith.mulf %77, %78 : vector<10x2x16x128xf32>
    %80 = arith.addf %70, %79 : vector<10x2x16x128xf32>
    %cst_48 = arith.constant 0.000000e+00 : f32
    %81 = vector.broadcast %cst_48 : f32 to vector<10x2x128xf32>
    %cst_49 = arith.constant dense<0xFF800000> : vector<10x2xf32>
    %82 = vector.multi_reduction <maximumf>, %81, %cst_49 [2] : vector<10x2x128xf32> to vector<10x2xf32>
    %83 = vector.shape_cast %82 : vector<10x2xf32> to vector<10x2x1xf32>
    %84 = vector.broadcast %83 : vector<10x2x1xf32> to vector<10x2x128xf32>
    %85 = arith.subf %81, %84 : vector<10x2x128xf32>
    %86 = math.exp %85 : vector<10x2x128xf32>
    %cst_50 = arith.constant dense<0.000000e+00> : vector<10x2xf32>
    %87 = vector.multi_reduction <add>, %86, %cst_50 [2] : vector<10x2x128xf32> to vector<10x2xf32>
    %88 = vector.shape_cast %87 : vector<10x2xf32> to vector<10x2x1xf32>
    %89 = tpu.reciprocal %88 {approx = true} : vector<10x2x1xf32> -> vector<10x2x1xf32>
    %90 = vector.broadcast %89 : vector<10x2x1xf32> to vector<10x2x128xf32>
    %91 = arith.mulf %86, %90 : vector<10x2x128xf32>
    %92 = vector.shape_cast %91 : vector<10x2x128xf32> to vector<10x2x1x128xf32>
    %93 = vector.broadcast %92 : vector<10x2x1x128xf32> to vector<10x2x16x128xf32>
    %94 = arith.mulf %93, %80 : vector<10x2x16x128xf32>
    %cst_51 = arith.constant dense<0.000000e+00> : vector<10x2x16xf32>
    %95 = vector.multi_reduction <add>, %94, %cst_51 [3] : vector<10x2x16x128xf32> to vector<10x2x16xf32>
    %96 = arith.mulf %95, %95 : vector<10x2x16xf32>
    %cst_52 = arith.constant dense<0.000000e+00> : vector<10x2xf32>
    %97 = vector.multi_reduction <add>, %96, %cst_52 [2] : vector<10x2x16xf32> to vector<10x2xf32>
    %98 = vector.shape_cast %97 : vector<10x2xf32> to vector<10x2x1xf32>
    %cst_53 = arith.constant 1.000000e+00 : f32
    %99 = vector.broadcast %cst_53 : f32 to vector<10x2x1xf32>
    %100 = arith.addf %99, %98 : vector<10x2x1xf32>
    %101 = arith.divf %98, %100 : vector<10x2x1xf32>
    %102 = vector.broadcast %101 : vector<10x2x1xf32> to vector<10x2x16xf32>
    %103 = arith.mulf %102, %95 : vector<10x2x16xf32>
    %104 = math.rsqrt %98 : vector<10x2x1xf32>
    %105 = vector.broadcast %104 : vector<10x2x1xf32> to vector<10x2x16xf32>
    %106 = arith.mulf %103, %105 : vector<10x2x16xf32>
    %107 = vector.shape_cast %106 : vector<10x2x16xf32> to vector<10x2x16x1xf32>
    %108 = vector.broadcast %107 : vector<10x2x16x1xf32> to vector<10x2x16x128xf32>
    %109 = arith.mulf %80, %108 : vector<10x2x16x128xf32>
    %cst_54 = arith.constant dense<0.000000e+00> : vector<10x2x128xf32>
    %110 = vector.multi_reduction <add>, %109, %cst_54 [2] : vector<10x2x16x128xf32> to vector<10x2x128xf32>
    %111 = arith.addf %81, %110 : vector<10x2x128xf32>
    %cst_55 = arith.constant dense<0xFF800000> : vector<10x2xf32>
    %112 = vector.multi_reduction <maximumf>, %111, %cst_55 [2] : vector<10x2x128xf32> to vector<10x2xf32>
    %113 = vector.shape_cast %112 : vector<10x2xf32> to vector<10x2x1xf32>
    %114 = vector.broadcast %113 : vector<10x2x1xf32> to vector<10x2x128xf32>
    %115 = arith.subf %111, %114 : vector<10x2x128xf32>
    %116 = math.exp %115 : vector<10x2x128xf32>
    %cst_56 = arith.constant dense<0.000000e+00> : vector<10x2xf32>
    %117 = vector.multi_reduction <add>, %116, %cst_56 [2] : vector<10x2x128xf32> to vector<10x2xf32>
    %118 = vector.shape_cast %117 : vector<10x2xf32> to vector<10x2x1xf32>
    %119 = tpu.reciprocal %118 {approx = true} : vector<10x2x1xf32> -> vector<10x2x1xf32>
    %120 = vector.broadcast %119 : vector<10x2x1xf32> to vector<10x2x128xf32>
    %121 = arith.mulf %116, %120 : vector<10x2x128xf32>
    %122 = vector.shape_cast %121 : vector<10x2x128xf32> to vector<10x2x1x128xf32>
    %123 = vector.broadcast %122 : vector<10x2x1x128xf32> to vector<10x2x16x128xf32>
    %124 = arith.mulf %123, %80 : vector<10x2x16x128xf32>
    %cst_57 = arith.constant dense<0.000000e+00> : vector<10x2x16xf32>
    %125 = vector.multi_reduction <add>, %124, %cst_57 [3] : vector<10x2x16x128xf32> to vector<10x2x16xf32>
    %126 = arith.mulf %125, %125 : vector<10x2x16xf32>
    %cst_58 = arith.constant dense<0.000000e+00> : vector<10x2xf32>
    %127 = vector.multi_reduction <add>, %126, %cst_58 [2] : vector<10x2x16xf32> to vector<10x2xf32>
    %128 = vector.shape_cast %127 : vector<10x2xf32> to vector<10x2x1xf32>
    %cst_59 = arith.constant 1.000000e+00 : f32
    %129 = vector.broadcast %cst_59 : f32 to vector<10x2x1xf32>
    %130 = arith.addf %129, %128 : vector<10x2x1xf32>
    %131 = arith.divf %128, %130 : vector<10x2x1xf32>
    %132 = vector.broadcast %131 : vector<10x2x1xf32> to vector<10x2x16xf32>
    %133 = arith.mulf %132, %125 : vector<10x2x16xf32>
    %134 = math.rsqrt %128 : vector<10x2x1xf32>
    %135 = vector.broadcast %134 : vector<10x2x1xf32> to vector<10x2x16xf32>
    %136 = arith.mulf %133, %135 : vector<10x2x16xf32>
    %137 = vector.shape_cast %136 : vector<10x2x16xf32> to vector<10x2x16x1xf32>
    %138 = vector.broadcast %137 : vector<10x2x16x1xf32> to vector<10x2x16x128xf32>
    %139 = arith.mulf %80, %138 : vector<10x2x16x128xf32>
    %cst_60 = arith.constant dense<0.000000e+00> : vector<10x2x128xf32>
    %140 = vector.multi_reduction <add>, %139, %cst_60 [2] : vector<10x2x16x128xf32> to vector<10x2x128xf32>
    %141 = arith.addf %111, %140 : vector<10x2x128xf32>
    %cst_61 = arith.constant dense<0xFF800000> : vector<10x2xf32>
    %142 = vector.multi_reduction <maximumf>, %141, %cst_61 [2] : vector<10x2x128xf32> to vector<10x2xf32>
    %143 = vector.shape_cast %142 : vector<10x2xf32> to vector<10x2x1xf32>
    %144 = vector.broadcast %143 : vector<10x2x1xf32> to vector<10x2x128xf32>
    %145 = arith.subf %141, %144 : vector<10x2x128xf32>
    %146 = math.exp %145 : vector<10x2x128xf32>
    %cst_62 = arith.constant dense<0.000000e+00> : vector<10x2xf32>
    %147 = vector.multi_reduction <add>, %146, %cst_62 [2] : vector<10x2x128xf32> to vector<10x2xf32>
    %148 = vector.shape_cast %147 : vector<10x2xf32> to vector<10x2x1xf32>
    %149 = tpu.reciprocal %148 {approx = true} : vector<10x2x1xf32> -> vector<10x2x1xf32>
    %150 = vector.broadcast %149 : vector<10x2x1xf32> to vector<10x2x128xf32>
    %151 = arith.mulf %146, %150 : vector<10x2x128xf32>
    %152 = vector.shape_cast %151 : vector<10x2x128xf32> to vector<10x2x1x128xf32>
    %153 = vector.broadcast %152 : vector<10x2x1x128xf32> to vector<10x2x16x128xf32>
    %154 = arith.mulf %153, %80 : vector<10x2x16x128xf32>
    %cst_63 = arith.constant dense<0.000000e+00> : vector<10x2x16xf32>
    %155 = vector.multi_reduction <add>, %154, %cst_63 [3] : vector<10x2x16x128xf32> to vector<10x2x16xf32>
    %156 = arith.mulf %155, %155 : vector<10x2x16xf32>
    %cst_64 = arith.constant dense<0.000000e+00> : vector<10x2xf32>
    %157 = vector.multi_reduction <add>, %156, %cst_64 [2] : vector<10x2x16xf32> to vector<10x2xf32>
    %158 = vector.shape_cast %157 : vector<10x2xf32> to vector<10x2x1xf32>
    %cst_65 = arith.constant 1.000000e+00 : f32
    %159 = vector.broadcast %cst_65 : f32 to vector<10x2x1xf32>
    %160 = arith.addf %159, %158 : vector<10x2x1xf32>
    %161 = arith.divf %158, %160 : vector<10x2x1xf32>
    %162 = vector.broadcast %161 : vector<10x2x1xf32> to vector<10x2x16xf32>
    %163 = arith.mulf %162, %155 : vector<10x2x16xf32>
    %164 = math.rsqrt %158 : vector<10x2x1xf32>
    %165 = vector.broadcast %164 : vector<10x2x1xf32> to vector<10x2x16xf32>
    %166 = arith.mulf %163, %165 : vector<10x2x16xf32>
    %c0_66 = arith.constant 0 : index
    %c0_67 = arith.constant 0 : index
    %c0_68 = arith.constant 0 : index
    %167 = vector.load %arg2[%c0_66, %c0_67, %c0_68] : memref<10x2x16xf32, #tpu.memory_space<vmem>>, vector<10x2x16xf32>
    tpu.vector_store %arg2[%c0_66, %c0_67, %c0_68], %166 {strides = array<i32>} : memref<10x2x16xf32, #tpu.memory_space<vmem>>, vector<10x2x16xf32>,
    return
  }
}

</mosaic_0001>

<bundles_post_ra>
// kernel: capsule_layer_forward.1
= control target key start
LH: loop header
LB: loop body
LE: loop exit
PB: predicated region body
PF: predicated region fallthrough
CT: control target
= control target key end

     0   :  { %7 = vsyncpa [#allocation3], 0  ;;  %s14154_s0 = inlined_call_operand.hbm [shape: f32[2,8,128], index: 0, kind: input, shape index: {}]   ;;  %s14155_s1 = inlined_call_operand.hbm [shape: f32[10,16,8,128], index: 1, kind: input, shape index: {}]   ;;  %s14156_s2 = inlined_call_operand.hbm [shape: f32[10,2,16], index: 2, kind: output, shape index: {}]  }
   0x1   :  { %8 = vsyncpa [#allocation6], 0 }
   0x2   :  { %9 = vsyncpa [#allocation4], 0  ;;  %s10012_s9 = smov [#allocation2]   ;;  %s9940_s13 = scalar_lea.hbm %s14154_s0, 256 }
   0x3   :  { %s15_s10 = sshll.u32 %s10012_s9, 4  ;;  %p9941_p0 = scmp.ne.s32.totalorder %s14154_s0, %s9940_s13  ;;  %s16_s10 = int_to_ptr.vmem [resolvable:$true] %s15_s10 }
   0x4   :  { %p9944_p1 = scmp.lt.u32.totalorder %s9940_s13, %s14154_s0 }
   0x6   :  { %p9946_p2 = pnand %p9944_p1, %p9941_p0 }
   0x8   :  { %9949 = shalt.err (!%p9946_p2)
}
   0x9   :  { %s9950_s18 = scalar_lea.vmem %s16_s10, 256  ;;  %p9955_p4 = scmp.lt.s32.totalorder %s16_s10, %s16_s10 }
   0xa   :  { %p9951_p3 = scmp.ne.s32.totalorder %s16_s10, %s9950_s18  ;;  %p9956_p5 = scmp.lt.s32.totalorder %s9950_s18, %s9950_s18 }
   0xc   :  { %p9957_p6 = por %p9956_p5, %p9955_p4 }
   0xe   :  { %p9958_p7 = pnand %p9957_p6, %p9951_p3 }
  0x10   :  { %9961 = shalt.err (!%p9958_p7)
}
  0x11   :  { %s10013_s19 = smov 128   ;;  %s10014_s20 = smov 8  }
  0x12   :  { %21 = dma.hbm_to_vmem [thread:$0]  %s14154_s0, 256, %s16_s10, [#allocation3], %s10013_s19, %s10013_s19, %s10014_s20  }
  0x13   :  { %s10015_s23 = smov [#allocation5]   ;;  %s9962_s27 = scalar_lea.hbm %s14155_s1, 20480 }
  0x14   :  { %s27_s24 = sshll.u32 %s10015_s23, 4  ;;  %p9963_p8 = scmp.ne.s32.totalorder %s14155_s1, %s9962_s27  ;;  %s28_s24 = int_to_ptr.vmem [resolvable:$true] %s27_s24 }
  0x15   :  { %p9966_p9 = scmp.lt.u32.totalorder %s9962_s27, %s14155_s1 }
  0x17   :  { %p9968_p10 = pnand %p9966_p9, %p9963_p8 }
  0x19   :  { %9971 = shalt.err (!%p9968_p10)
}
  0x1a   :  { %s9972_s4 = scalar_lea.vmem %s28_s24, 20480  ;;  %p9977_p12 = scmp.lt.s32.totalorder %s28_s24, %s28_s24 }
  0x1b   :  { %p9973_p11 = scmp.ne.s32.totalorder %s28_s24, %s9972_s4  ;;  %p9978_p13 = scmp.lt.s32.totalorder %s9972_s4, %s9972_s4 }
  0x1d   :  { %p9979_p0 = por %p9978_p13, %p9977_p12 }
  0x1f   :  { %p9980_p1 = pnand %p9979_p0, %p9973_p11 }
  0x21   :  { %9983 = shalt.err (!%p9980_p1)
}
  0x22   :  { %33 = dma.hbm_to_vmem [thread:$0]  %s14155_s1, 20480, %s28_s24, [#allocation6], %s10013_s19, %s10013_s19, %s10014_s20  }
  0x23   :  { %10006 = dma.done.wait [#allocation3], 256  }
  0x24   :  { %10007 = vsyncadd [#allocation3], 4294967040 }
  0x25   :  { %10008 = dma.done.wait [#allocation6], 20480  }
  0x26   :  { %10009 = vsyncadd [#allocation6], 4294946816  ;;  %v10016_v0 = vmov 1.0   ;;  %v51_v1 = vld [vmem:[#allocation5 + $0x48] sm:$0x1]  ;;  %vm371_vm0 = vcmask 1041409  }
  0x27   :  { %5727 = vadd.xlane.f32.xlu0 %v10016_v0  ;;  %v52_v2 = vld [vmem:[#allocation5 + $0x50] sm:$0x1]  ;;  %vm374_vm1 = vcmask 1042434   ;;  %v53_v3 = vld [vmem:[#allocation5 + $0x58] sm:$0x1]  ;;  %vm377_vm2 = vcmask 1043459  }
  0x28   :  { %v54_v4 = vld [vmem:[#allocation5 + $0x60] sm:$0x1]  ;;  %v55_v5 = vld [vmem:[#allocation5 + $0x68] sm:$0x1]  ;;  %v56_v7 = vld [vmem:[#allocation5 + $0x70] sm:$0x1] }
  0x29   :  { %v50_v6 = vld [vmem:[#allocation5 + $0x40] sm:$0x1]  ;;  %vm380_vm3 = vcmask 1044484   ;;  %vm383_vm4 = vcmask 1045509   ;;  %vm386_vm5 = vcmask 1046534   ;;  %v391_v8 = vrot.slane %v51_v1, 7 }
  0x2a   :  { %v393_v9 = vrot.slane %v52_v2, 6  ;;  %v57_v10 = vld [vmem:[#allocation5 + $0x78] sm:$0x1]  ;;  %v395_v11 = vrot.slane %v53_v3, 5  ;;  %v397_v12 = vrot.slane %v54_v4, 4  ;;  %v399_v13 = vrot.slane %v55_v5, 3 }
  0x2b   :  { %v401_v14 = vrot.slane %v56_v7, 2  ;;  %v392_v15 = vsel %vm371_vm0, %v391_v8, %v50_v6  ;;  %v767_v16 = vld [vmem:[#allocation5 + $0x41] sm:$0x1]  ;;  %v768_v17 = vld [vmem:[#allocation5 + $0x49] sm:$0x1]  ;;  %v403_v24 = vrot.slane %v57_v10, 1 }
  0x2c   :  { %v769_v18 = vld [vmem:[#allocation5 + $0x51] sm:$0x1]  ;;  %v394_v19 = vsel %vm374_vm1, %v393_v9, %v392_v15  ;;  %v770_v20 = vld [vmem:[#allocation5 + $0x59] sm:$0x1]  ;;  %v771_v21 = vld [vmem:[#allocation5 + $0x61] sm:$0x1] }
  0x2d   :  { %v772_v22 = vld [vmem:[#allocation5 + $0x69] sm:$0x1]  ;;  %v396_v23 = vsel %vm377_vm2, %v395_v11, %v394_v19  ;;  %v773_v25 = vld [vmem:[#allocation5 + $0x71] sm:$0x1]  ;;  %v1101_v26 = vrot.slane %v768_v17, 7  ;;  %v1103_v27 = vrot.slane %v769_v18, 6 }
  0x2e   :  { %vm389_vm6 = vcmask 1047559   ;;  %v398_v28 = vsel %vm380_vm3, %v397_v12, %v396_v23  ;;  %v774_v29 = vld [vmem:[#allocation5 + $0x79] sm:$0x1]  ;;  %v1105_v30 = vrot.slane %v770_v20, 5  ;;  %v1107_v31 = vrot.slane %v771_v21, 4  ;;  %s10017_s1 = smov [#allocation7]  }
  0x2f   :  { %v10063_v32 = vld [vmem:[#allocation2] ss:$0 sm:$0xff]  ;;  %v400_v33 = vsel %vm383_vm4, %v399_v13, %v398_v28  ;;  %v1102_v34 = vsel %vm371_vm0, %v1101_v26, %v767_v16  ;;  %v1109_v35 = vrot.slane %v772_v22, 3  ;;  %v1111_v36 = vrot.slane %v773_v25, 2  ;;  %v1478_v37 = vld [vmem:[#allocation5 + $0x4a] sm:$0x1] }
  0x30   :  { %v402_v38 = vsel %vm386_vm5, %v401_v14, %v400_v33  ;;  %v1104_v39 = vsel %vm374_vm1, %v1103_v27, %v1102_v34  ;;  %v1479_v40 = vld [vmem:[#allocation5 + $0x52] sm:$0x1]  ;;  %v1480_v41 = vld [vmem:[#allocation5 + $0x5a] sm:$0x1]  ;;  %v1481_v42 = vld [vmem:[#allocation5 + $0x62] sm:$0x1] }
  0x31   :  { %v10070_v43 = vsel %vm389_vm6, %v403_v24, %v402_v38  ;;  %v10072_v44 = vld [vmem:[#allocation2 + $0x1] ss:$0 sm:$0xff]  ;;  %v1106_v45 = vsel %vm377_vm2, %v1105_v30, %v1104_v39  ;;  %v1113_v46 = vrot.slane %v774_v29, 1  ;;  %v1477_v47 = vld [vmem:[#allocation5 + $0x42] sm:$0x1]  ;;  %v1811_v52 = vrot.slane %v1478_v37, 7 }
  0x32   :  { %v1482_v48 = vld [vmem:[#allocation5 + $0x6a] sm:$0x1]  ;;  %v1108_v49 = vsel %vm380_vm3, %v1107_v31, %v1106_v45  ;;  %v1483_v50 = vld [vmem:[#allocation5 + $0x72] sm:$0x1]  ;;  %v1484_v51 = vld [vmem:[#allocation5 + $0x7a] sm:$0x1]  ;;  %v678_v59 = vmul.f32 %v10063_v32, %v10070_v43 }
  0x33   :  { %v1813_v53 = vrot.slane %v1479_v40, 6  ;;  %v1110_v54 = vsel %vm383_vm4, %v1109_v35, %v1108_v49  ;;  %v1815_v55 = vrot.slane %v1480_v41, 5  ;;  %v1817_v56 = vrot.slane %v1481_v42, 4  ;;  %v2187_v57 = vld [vmem:[#allocation5 + $0x43] sm:$0x1]  ;;  %s9581_s6 = sshll.u32 %s10017_s1, 4  ;;  %s9582_s6 = int_to_ptr.vmem [resolvable:$true] %s9581_s6 }
  0x34   :  { %v2188_v58 = vld [vmem:[#allocation5 + $0x4b] sm:$0x1]  ;;  %v1112_v60 = vsel %vm386_vm5, %v1111_v36, %v1110_v54  ;;  %v1812_v61 = vsel %vm371_vm0, %v1811_v52, %v1477_v47  ;;  %v1819_v62 = vrot.slane %v1482_v48, 3  ;;  %v2189_v63 = vld [vmem:[#allocation5 + $0x53] sm:$0x1]  ;;  %v1821_v3 = vrot.slane %v1483_v50, 2  ;;  %p9989_p3 = scmp.lt.s32.totalorder %s9582_s6, %s9582_s6 }
  0x35   :  { %v2190_v0 = vld [vmem:[#allocation5 + $0x5b] sm:$0x1]  ;;  %v10082_v1 = vsel %vm389_vm6, %v1113_v46, %v1112_v60  ;;  %v1814_v2 = vsel %vm374_vm1, %v1813_v53, %v1812_v61  ;;  %v1823_v4 = vrot.slane %v1484_v51, 1  ;;  %v2191_v5 = vld [vmem:[#allocation5 + $0x63] sm:$0x1]  ;;  %v2521_v11 = vrot.slane %v2188_v58, 7 }
  0x36   :  { %v2192_v6 = vld [vmem:[#allocation5 + $0x6b] sm:$0x1]  ;;  %v1388_v7 = vmul.f32 %v10072_v44, %v10082_v1  ;;  %v10087_v8 = vld [vmem:[#allocation2 + $0x2] ss:$0 sm:$0xff]  ;;  %v1816_v9 = vsel %vm377_vm2, %v1815_v55, %v1814_v2  ;;  %v2193_v10 = vld [vmem:[#allocation5 + $0x73] sm:$0x1] }
  0x37   :  { %v2523_v12 = vrot.slane %v2189_v63, 6  ;;  %v1818_v13 = vsel %vm380_vm3, %v1817_v56, %v1816_v9  ;;  %v2194_v14 = vld [vmem:[#allocation5 + $0x7b] sm:$0x1]  ;;  %v2525_v15 = vrot.slane %v2190_v0, 5  ;;  %v2527_v16 = vrot.slane %v2191_v5, 4  ;;  %s9984_s7 = scalar_lea.vmem %s9582_s6, 320 }
  0x38   :  { %v2529_v17 = vrot.slane %v2192_v6, 3  ;;  %v1428_v18 = vadd.f32 %v1388_v7, %v678_v59  ;;  %v1820_v19 = vsel %vm383_vm4, %v1819_v62, %v1818_v13  ;;  %v2522_v20 = vsel %vm371_vm0, %v2521_v11, %v2187_v57  ;;  %v2897_v21 = vld [vmem:[#allocation5 + $0x44] sm:$0x1]  ;;  %v2898_v22 = vld [vmem:[#allocation5 + $0x4c] sm:$0x1]  ;;  %p9985_p2 = scmp.ne.s32.totalorder %s9582_s6, %s9984_s7  ;;  %p9990_p4 = scmp.lt.s32.totalorder %s9984_s7, %s9984_s7 }
  0x39   :  { %v2899_v23 = vld [vmem:[#allocation5 + $0x54] sm:$0x1]  ;;  %v1822_v24 = vsel %vm386_vm5, %v1821_v3, %v1820_v19  ;;  %v2524_v25 = vsel %vm374_vm1, %v2523_v12, %v2522_v20  ;;  %v2531_v26 = vrot.slane %v2193_v10, 2  ;;  %v2900_v27 = vld [vmem:[#allocation5 + $0x5c] sm:$0x1]  ;;  %v3231_v29 = vrot.slane %v2898_v22, 7 }
  0x3a   :  { %v2901_v28 = vld [vmem:[#allocation5 + $0x64] sm:$0x1]  ;;  %v10096_v30 = vsel %vm389_vm6, %v1823_v4, %v1822_v24  ;;  %v10098_v31 = vld [vmem:[#allocation2 + $0x3] ss:$0 sm:$0xff]  ;;  %v2526_v33 = vsel %vm377_vm2, %v2525_v15, %v2524_v25  ;;  %v2533_v34 = vrot.slane %v2194_v14, 1  ;;  %v3233_v41 = vrot.slane %v2899_v23, 6  ;;  %p9991_p5 = por %p9990_p4, %p9989_p3 }
  0x3b   :  { %v2902_v35 = vld [vmem:[#allocation5 + $0x6c] sm:$0x1]  ;;  %v2903_v36 = vld [vmem:[#allocation5 + $0x74] sm:$0x1]  ;;  %v2098_v37 = vmul.f32 %v10087_v8, %v10096_v30  ;;  %v2528_v38 = vsel %vm380_vm3, %v2527_v16, %v2526_v33  ;;  %v2904_v39 = vld [vmem:[#allocation5 + $0x7c] sm:$0x1]  ;;  %v3232_v40 = vsel %vm371_vm0, %v3231_v29, %v2897_v21 }
  0x3c   :  { %v3607_v42 = vld [vmem:[#allocation5 + $0x45] sm:$0x1]  ;;  %v2530_v45 = vsel %vm383_vm4, %v2529_v17, %v2528_v38  ;;  %v3235_v46 = vrot.slane %v2900_v27, 5  ;;  %v3237_v47 = vrot.slane %v2901_v28, 4  ;;  %v3239_v48 = vrot.slane %v2902_v35, 3  ;;  %p9992_p6 = pnand %p9991_p5, %p9985_p2 }
  0x3d   :  { %v3608_v49 = vld [vmem:[#allocation5 + $0x4d] sm:$0x1]  ;;  %v2138_v50 = vadd.f32 %v2098_v37, %v1428_v18  ;;  %v2532_v51 = vsel %vm386_vm5, %v2531_v26, %v2530_v45  ;;  %v3234_v52 = vsel %vm374_vm1, %v3233_v41, %v3232_v40  ;;  %v3241_v53 = vrot.slane %v2903_v36, 2  ;;  %v3609_v54 = vld [vmem:[#allocation5 + $0x55] sm:$0x1] }
  0x3e   :  { %v3610_v55 = vld [vmem:[#allocation5 + $0x5d] sm:$0x1]  ;;  %v10109_v56 = vsel %vm389_vm6, %v2533_v34, %v2532_v51  ;;  %v3236_v57 = vsel %vm377_vm2, %v3235_v46, %v3234_v52  ;;  %v3243_v58 = vrot.slane %v2904_v39, 1  ;;  %v3611_v59 = vld [vmem:[#allocation5 + $0x65] sm:$0x1]  ;;  %v3941_v61 = vrot.slane %v3608_v49, 7 }
  0x3f   :  { %v3612_v60 = vld [vmem:[#allocation5 + $0x6d] sm:$0x1]  ;;  %v2808_v62 = vmul.f32 %v10098_v31, %v10109_v56  ;;  %v3238_v63 = vsel %vm380_vm3, %v3237_v47, %v3236_v57  ;;  %v3613_v0 = vld [vmem:[#allocation5 + $0x75] sm:$0x1]  ;;  %v3614_v2 = vld [vmem:[#allocation5 + $0x7d] sm:$0x1] }
  0x40   :  { %v3943_v3 = vrot.slane %v3609_v54, 6  ;;  %v3945_v4 = vrot.slane %v3610_v55, 5  ;;  %v10115_v5 = vld [vmem:[#allocation2 + $0x4] ss:$0 sm:$0xff]  ;;  %v3240_v6 = vsel %vm383_vm4, %v3239_v48, %v3238_v63  ;;  %v3942_v7 = vsel %vm371_vm0, %v3941_v61, %v3607_v42  ;;  %v4317_v11 = vld [vmem:[#allocation5 + $0x46] sm:$0x1] }
  0x41   :  { %v3947_v9 = vrot.slane %v3611_v59, 4  ;;  %v3949_v10 = vrot.slane %v3612_v60, 3  ;;  %v2848_v12 = vadd.f32 %v2808_v62, %v2138_v50  ;;  %v3242_v13 = vsel %vm386_vm5, %v3241_v53, %v3240_v6  ;;  %v4318_v16 = vld [vmem:[#allocation5 + $0x4e] sm:$0x1]  ;;  %v4319_v17 = vld [vmem:[#allocation5 + $0x56] sm:$0x1] }
  0x42   :  { %v3944_v14 = vsel %vm374_vm1, %v3943_v3, %v3942_v7  ;;  %v3951_v15 = vrot.slane %v3613_v0, 2  ;;  %v10122_v18 = vsel %vm389_vm6, %v3243_v58, %v3242_v13  ;;  %v3953_v20 = vrot.slane %v3614_v2, 1  ;;  %v4320_v21 = vld [vmem:[#allocation5 + $0x5e] sm:$0x1]  ;;  %v4321_v22 = vld [vmem:[#allocation5 + $0x66] sm:$0x1] }
  0x43   :  { %v3946_v19 = vsel %vm377_vm2, %v3945_v4, %v3944_v14  ;;  %v4651_v23 = vrot.slane %v4318_v16, 7  ;;  %v3518_v24 = vmul.f32 %v10115_v5, %v10122_v18  ;;  %v4322_v26 = vld [vmem:[#allocation5 + $0x6e] sm:$0x1]  ;;  %v4323_v27 = vld [vmem:[#allocation5 + $0x76] sm:$0x1]  ;;  %v4653_v35 = vrot.slane %v4319_v17, 6 }
  0x44   :  { %v3948_v25 = vsel %vm380_vm3, %v3947_v9, %v3946_v19  ;;  %v4324_v28 = vld [vmem:[#allocation5 + $0x7e] sm:$0x1]  ;;  %v10128_v29 = vld [vmem:[#allocation2 + $0x5] ss:$0 sm:$0xff]  ;;  %v4655_v36 = vrot.slane %v4320_v21, 5  ;;  %v4657_v39 = vrot.slane %v4321_v22, 4 }
  0x45   :  { %v3950_v33 = vsel %vm383_vm4, %v3949_v10, %v3948_v25  ;;  %v4652_v34 = vsel %vm371_vm0, %v4651_v23, %v4317_v11  ;;  %v3558_v37 = vadd.f32 %v3518_v24, %v2848_v12  ;;  %v4659_v40 = vrot.slane %v4322_v26, 3  ;;  %v5027_v41 = vld [vmem:[#allocation5 + $0x47] sm:$0x1]  ;;  %v5028_v42 = vld [vmem:[#allocation5 + $0x4f] sm:$0x1] }
  0x46   :  { %v3952_v38 = vsel %vm386_vm5, %v3951_v15, %v3950_v33  ;;  %v5029_v45 = vld [vmem:[#allocation5 + $0x57] sm:$0x1]  ;;  %v4654_v47 = vsel %vm374_vm1, %v4653_v35, %v4652_v34  ;;  %v4661_v48 = vrot.slane %v4323_v27, 2  ;;  %v4663_v49 = vrot.slane %v4324_v28, 1  ;;  %v5030_v50 = vld [vmem:[#allocation5 + $0x5f] sm:$0x1] }
  0x47   :  { %v10134_v46 = vsel %vm389_vm6, %v3953_v20, %v3952_v38  ;;  %v5031_v51 = vld [vmem:[#allocation5 + $0x67] sm:$0x1]  ;;  %v4656_v53 = vsel %vm377_vm2, %v4655_v36, %v4654_v47  ;;  %v5032_v54 = vld [vmem:[#allocation5 + $0x6f] sm:$0x1]  ;;  %v5033_v55 = vld [vmem:[#allocation5 + $0x77] sm:$0x1] }
  0x48   :  { %v4228_v52 = vmul.f32 %v10128_v29, %v10134_v46  ;;  %v5034_v57 = vld [vmem:[#allocation5 + $0x7f] sm:$0x1]  ;;  %v10140_v58 = vld [vmem:[#allocation2 + $0x6] ss:$0 sm:$0xff]  ;;  %v4658_v59 = vsel %vm380_vm3, %v4657_v39, %v4656_v53  ;;  %v5361_v60 = vrot.slane %v5028_v42, 7  ;;  %v5363_v61 = vrot.slane %v5029_v45, 6 }
  0x49   :  { %v5365_v62 = vrot.slane %v5030_v50, 5  ;;  %v4660_v0 = vsel %vm383_vm4, %v4659_v40, %v4658_v59  ;;  %v5367_v2 = vrot.slane %v5031_v51, 4  ;;  %v5369_v3 = vrot.slane %v5032_v54, 3  ;;  %v42_v4 = vld [vmem:[#allocation5] sm:$0x1] }
  0x4a   :  { %v4268_v63 = vadd.f32 %v4228_v52, %v3558_v37  ;;  %v43_v6 = vld [vmem:[#allocation5 + $0x8] sm:$0x1]  ;;  %v44_v7 = vld [vmem:[#allocation5 + $0x10] sm:$0x1]  ;;  %v4662_v9 = vsel %vm386_vm5, %v4661_v48, %v4660_v0  ;;  %v5362_v10 = vsel %vm371_vm0, %v5361_v60, %v5027_v41  ;;  %v5371_v11 = vrot.slane %v5033_v55, 2 }
  0x4b   :  { %v5373_v12 = vrot.slane %v5034_v57, 1  ;;  %v45_v13 = vld [vmem:[#allocation5 + $0x18] sm:$0x1]  ;;  %v46_v14 = vld [vmem:[#allocation5 + $0x20] sm:$0x1]  ;;  %v10147_v15 = vsel %vm389_vm6, %v4663_v49, %v4662_v9  ;;  %v5364_v16 = vsel %vm374_vm1, %v5363_v61, %v5362_v10  ;;  %v370_v24 = vrot.slane %v43_v6, 7 }
  0x4c   :  { %v47_v17 = vld [vmem:[#allocation5 + $0x28] sm:$0x1]  ;;  %v48_v19 = vld [vmem:[#allocation5 + $0x30] sm:$0x1]  ;;  %v49_v20 = vld [vmem:[#allocation5 + $0x38] sm:$0x1]  ;;  %v4938_v21 = vmul.f32 %v10140_v58, %v10147_v15  ;;  %v5366_v23 = vsel %vm377_vm2, %v5365_v62, %v5364_v16 }
  0x4d   :  { %v10152_v22 = vld [vmem:[#allocation2 + $0x7] ss:$0 sm:$0xff]  ;;  %v373_v25 = vrot.slane %v44_v7, 6  ;;  %v759_v26 = vld [vmem:[#allocation5 + $0x1] sm:$0x1]  ;;  %v5368_v28 = vsel %vm380_vm3, %v5367_v2, %v5366_v23  ;;  %v376_v33 = vrot.slane %v45_v13, 5  ;;  %v372_v39 = vsel %vm371_vm0, %v370_v24, %v42_v4 }
  0x4e   :  { %v760_v27 = vld [vmem:[#allocation5 + $0x9] sm:$0x1]  ;;  %v379_v34 = vrot.slane %v46_v14, 4  ;;  %v382_v35 = vrot.slane %v47_v17, 3  ;;  %v761_v36 = vld [vmem:[#allocation5 + $0x11] sm:$0x1]  ;;  %v4978_v37 = vadd.f32 %v4938_v21, %v4268_v63  ;;  %v5370_v38 = vsel %vm383_vm4, %v5369_v3, %v5368_v28 }
  0x4f   :  { %v385_v40 = vrot.slane %v48_v19, 2  ;;  %v762_v41 = vld [vmem:[#allocation5 + $0x19] sm:$0x1]  ;;  %v763_v42 = vld [vmem:[#allocation5 + $0x21] sm:$0x1]  ;;  %v5372_v45 = vsel %vm386_vm5, %v5371_v11, %v5370_v38  ;;  %v375_v47 = vsel %vm374_vm1, %v373_v25, %v372_v39  ;;  %v388_v48 = vrot.slane %v49_v20, 1 }
  0x50   :  { %v764_v49 = vld [vmem:[#allocation5 + $0x29] sm:$0x1]  ;;  %v765_v50 = vld [vmem:[#allocation5 + $0x31] sm:$0x1]  ;;  %v1087_v51 = vrot.slane %v760_v27, 7  ;;  %v10161_v52 = vsel %vm389_vm6, %v5373_v12, %v5372_v45  ;;  %v378_v53 = vsel %vm377_vm2, %v376_v33, %v375_v47  ;;  %v1089_v55 = vrot.slane %v761_v36, 6 }
  0x51   :  { %v766_v54 = vld [vmem:[#allocation5 + $0x39] sm:$0x1]  ;;  %v1091_v57 = vrot.slane %v762_v41, 5  ;;  %v5648_v59 = vmul.f32 %v10152_v22, %v10161_v52  ;;  %v381_v60 = vsel %vm380_vm3, %v379_v34, %v378_v53  ;;  %v1093_v62 = vrot.slane %v763_v42, 4  ;;  %v1469_v63 = vld [vmem:[#allocation5 + $0x2] sm:$0x1] }
  0x52   :  { %v1088_v61 = vsel %vm371_vm0, %v1087_v51, %v759_v26  ;;  %v1470_v0 = vld [vmem:[#allocation5 + $0xa] sm:$0x1]  ;;  %v1471_v2 = vld [vmem:[#allocation5 + $0x12] sm:$0x1]  ;;  %v384_v3 = vsel %vm383_vm4, %v382_v35, %v381_v60  ;;  %v1095_v6 = vrot.slane %v764_v49, 3  ;;  %v1097_v7 = vrot.slane %v765_v50, 2 }
  0x53   :  { %v1090_v4 = vsel %vm374_vm1, %v1089_v55, %v1088_v61  ;;  %v1472_v9 = vld [vmem:[#allocation5 + $0x1a] sm:$0x1]  ;;  %v1473_v10 = vld [vmem:[#allocation5 + $0x22] sm:$0x1]  ;;  %v10170_v11 = vadd.f32 %v5648_v59, %v4978_v37  ;;  %v387_v12 = vsel %vm386_vm5, %v385_v40, %v384_v3  ;;  %v1099_v14 = vrot.slane %v766_v54, 1 }
  0x54   :  { %v1092_v13 = vsel %vm377_vm2, %v1091_v57, %v1090_v4  ;;  %v1474_v16 = vld [vmem:[#allocation5 + $0x2a] sm:$0x1]  ;;  %v1475_v17 = vld [vmem:[#allocation5 + $0x32] sm:$0x1]  ;;  %v10175_v19 = vsel %vm389_vm6, %v388_v48, %v387_v12  ;;  %v1476_v21 = vld [vmem:[#allocation5 + $0x3a] sm:$0x1] }
  0x55   :  { %14292 = vst [vmem:[#allocation11_spill] sm:$0xff] %v10170_v11  ;;  %v1094_v20 = vsel %vm380_vm3, %v1093_v62, %v1092_v13  ;;  %v1797_v23 = vrot.slane %v1470_v0, 7  ;;  %v1799_v24 = vrot.slane %v1471_v2, 6  ;;  %v2179_v25 = vld [vmem:[#allocation5 + $0x3] sm:$0x1]  ;;  %v677_v26 = vmul.f32 %v10063_v32, %v10175_v19 }
  0x56   :  { %v1096_v27 = vsel %vm383_vm4, %v1095_v6, %v1094_v20  ;;  %v1801_v28 = vrot.slane %v1472_v9, 5  ;;  %v1803_v33 = vrot.slane %v1473_v10, 4  ;;  %v2180_v34 = vld [vmem:[#allocation5 + $0xb] sm:$0x1]  ;;  %v2181_v35 = vld [vmem:[#allocation5 + $0x13] sm:$0x1] }
  0x57   :  { %v1098_v36 = vsel %vm386_vm5, %v1097_v7, %v1096_v27  ;;  %v1798_v37 = vsel %vm371_vm0, %v1797_v23, %v1469_v63  ;;  %v1805_v38 = vrot.slane %v1474_v16, 3  ;;  %v1807_v39 = vrot.slane %v1475_v17, 2  ;;  %v2182_v40 = vld [vmem:[#allocation5 + $0x1b] sm:$0x1]  ;;  %v2183_v41 = vld [vmem:[#allocation5 + $0x23] sm:$0x1] }
  0x58   :  { %v10184_v42 = vsel %vm389_vm6, %v1099_v14, %v1098_v36  ;;  %v1800_v45 = vsel %vm374_vm1, %v1799_v24, %v1798_v37  ;;  %v1809_v47 = vrot.slane %v1476_v21, 1  ;;  %v2184_v48 = vld [vmem:[#allocation5 + $0x2b] sm:$0x1]  ;;  %v2185_v49 = vld [vmem:[#allocation5 + $0x33] sm:$0x1]  ;;  %v2507_v50 = vrot.slane %v2180_v34, 7 }
  0x59   :  { %v1387_v51 = vmul.f32 %v10072_v44, %v10184_v42  ;;  %v1802_v53 = vsel %vm377_vm2, %v1801_v28, %v1800_v45  ;;  %v2186_v54 = vld [vmem:[#allocation5 + $0x3b] sm:$0x1]  ;;  %v2509_v55 = vrot.slane %v2181_v35, 6  ;;  %v2511_v57 = vrot.slane %v2182_v40, 5  ;;  %v2889_v59 = vld [vmem:[#allocation5 + $0x4] sm:$0x1] }
  0x5a   :  { %v1804_v60 = vsel %vm380_vm3, %v1803_v33, %v1802_v53  ;;  %v2508_v61 = vsel %vm371_vm0, %v2507_v50, %v2179_v25  ;;  %v2513_v62 = vrot.slane %v2183_v41, 4  ;;  %v2515_v63 = vrot.slane %v2184_v48, 3  ;;  %v2890_v0 = vld [vmem:[#allocation5 + $0xc] sm:$0x1]  ;;  %v2891_v2 = vld [vmem:[#allocation5 + $0x14] sm:$0x1] }
  0x5b   :  { %v1427_v3 = vadd.f32 %v1387_v51, %v677_v26  ;;  %v1806_v4 = vsel %vm383_vm4, %v1805_v38, %v1804_v60  ;;  %v2510_v6 = vsel %vm374_vm1, %v2509_v55, %v2508_v61  ;;  %v2517_v7 = vrot.slane %v2185_v49, 2  ;;  %v2892_v9 = vld [vmem:[#allocation5 + $0x1c] sm:$0x1]  ;;  %v2893_v10 = vld [vmem:[#allocation5 + $0x24] sm:$0x1] }
  0x5c   :  { %v1808_v12 = vsel %vm386_vm5, %v1807_v39, %v1806_v4  ;;  %v2512_v13 = vsel %vm377_vm2, %v2511_v57, %v2510_v6  ;;  %v2519_v14 = vrot.slane %v2186_v54, 1  ;;  %v2894_v16 = vld [vmem:[#allocation5 + $0x2c] sm:$0x1]  ;;  %v2895_v17 = vld [vmem:[#allocation5 + $0x34] sm:$0x1]  ;;  %v3217_v20 = vrot.slane %v2890_v0, 7 }
  0x5d   :  { %v10197_v21 = vsel %vm389_vm6, %v1809_v47, %v1808_v12  ;;  %v2514_v23 = vsel %vm380_vm3, %v2513_v62, %v2512_v13  ;;  %v2896_v24 = vld [vmem:[#allocation5 + $0x3c] sm:$0x1]  ;;  %v3219_v25 = vrot.slane %v2891_v2, 6  ;;  %v3221_v26 = vrot.slane %v2892_v9, 5  ;;  %v3599_v35 = vld [vmem:[#allocation5 + $0x5] sm:$0x1] }
  0x5e   :  { %v2097_v27 = vmul.f32 %v10087_v8, %v10197_v21  ;;  %v2516_v28 = vsel %vm383_vm4, %v2515_v63, %v2514_v23  ;;  %v3218_v33 = vsel %vm371_vm0, %v3217_v20, %v2889_v59  ;;  %v3223_v34 = vrot.slane %v2893_v10, 4  ;;  %v3600_v36 = vld [vmem:[#allocation5 + $0xd] sm:$0x1]  ;;  %v3601_v37 = vld [vmem:[#allocation5 + $0x15] sm:$0x1] }
  0x5f   :  { %v2518_v38 = vsel %vm386_vm5, %v2517_v7, %v2516_v28  ;;  %v3220_v39 = vsel %vm374_vm1, %v3219_v25, %v3218_v33  ;;  %v3225_v40 = vrot.slane %v2894_v16, 3  ;;  %v3227_v41 = vrot.slane %v2895_v17, 2  ;;  %v3602_v45 = vld [vmem:[#allocation5 + $0x1d] sm:$0x1]  ;;  %v3603_v47 = vld [vmem:[#allocation5 + $0x25] sm:$0x1] }
  0x60   :  { %v2137_v48 = vadd.f32 %v2097_v27, %v1427_v3  ;;  %v10207_v49 = vsel %vm389_vm6, %v2519_v14, %v2518_v38  ;;  %v3222_v50 = vsel %vm377_vm2, %v3221_v26, %v3220_v39  ;;  %v3229_v51 = vrot.slane %v2896_v24, 1  ;;  %v3604_v53 = vld [vmem:[#allocation5 + $0x2d] sm:$0x1]  ;;  %v3605_v54 = vld [vmem:[#allocation5 + $0x35] sm:$0x1] }
  0x61   :  { %v2807_v55 = vmul.f32 %v10098_v31, %v10207_v49  ;;  %v3224_v57 = vsel %vm380_vm3, %v3223_v34, %v3222_v50  ;;  %v3606_v59 = vld [vmem:[#allocation5 + $0x3d] sm:$0x1]  ;;  %v3927_v60 = vrot.slane %v3600_v36, 7  ;;  %v3929_v61 = vrot.slane %v3601_v37, 6  ;;  %v4309_v62 = vld [vmem:[#allocation5 + $0x6] sm:$0x1] }
  0x62   :  { %v3226_v63 = vsel %vm383_vm4, %v3225_v40, %v3224_v57  ;;  %v3931_v0 = vrot.slane %v3602_v45, 5  ;;  %v3933_v2 = vrot.slane %v3603_v47, 4  ;;  %v3935_v3 = vrot.slane %v3604_v53, 3  ;;  %v4310_v4 = vld [vmem:[#allocation5 + $0xe] sm:$0x1] }
  0x63   :  { %v2847_v6 = vadd.f32 %v2807_v55, %v2137_v48  ;;  %v3228_v7 = vsel %vm386_vm5, %v3227_v41, %v3226_v63  ;;  %v3928_v9 = vsel %vm371_vm0, %v3927_v60, %v3599_v35  ;;  %v3937_v10 = vrot.slane %v3605_v54, 2  ;;  %v4311_v12 = vld [vmem:[#allocation5 + $0x16] sm:$0x1]  ;;  %v4312_v13 = vld [vmem:[#allocation5 + $0x1e] sm:$0x1] }
  0x64   :  { %v3230_v14 = vsel %vm389_vm6, %v3229_v51, %v3228_v7  ;;  %v3930_v16 = vsel %vm374_vm1, %v3929_v61, %v3928_v9  ;;  %v3939_v17 = vrot.slane %v3606_v59, 1  ;;  %v4313_v20 = vld [vmem:[#allocation5 + $0x26] sm:$0x1]  ;;  %v4314_v23 = vld [vmem:[#allocation5 + $0x2e] sm:$0x1]  ;;  %v4637_v24 = vrot.slane %v4310_v4, 7 }
  0x65   :  { %v3517_v25 = vmul.f32 %v10115_v5, %v3230_v14  ;;  %v3932_v26 = vsel %vm377_vm2, %v3931_v0, %v3930_v16  ;;  %v4315_v27 = vld [vmem:[#allocation5 + $0x36] sm:$0x1]  ;;  %v4316_v28 = vld [vmem:[#allocation5 + $0x3e] sm:$0x1]  ;;  %v4639_v33 = vrot.slane %v4311_v12, 6  ;;  %v4641_v34 = vrot.slane %v4312_v13, 5 }
  0x66   :  { %v3934_v35 = vsel %vm380_vm3, %v3933_v2, %v3932_v26  ;;  %v4638_v36 = vsel %vm371_vm0, %v4637_v24, %v4309_v62  ;;  %v4643_v37 = vrot.slane %v4313_v20, 4  ;;  %v4645_v38 = vrot.slane %v4314_v23, 3  ;;  %v5019_v39 = vld [vmem:[#allocation5 + $0x7] sm:$0x1]  ;;  %v5020_v40 = vld [vmem:[#allocation5 + $0xf] sm:$0x1] }
  0x67   :  { %v3557_v41 = vadd.f32 %v3517_v25, %v2847_v6  ;;  %v3936_v45 = vsel %vm383_vm4, %v3935_v3, %v3934_v35  ;;  %v4640_v47 = vsel %vm374_vm1, %v4639_v33, %v4638_v36  ;;  %v4647_v48 = vrot.slane %v4315_v27, 2  ;;  %v5021_v50 = vld [vmem:[#allocation5 + $0x17] sm:$0x1]  ;;  %v5022_v51 = vld [vmem:[#allocation5 + $0x1f] sm:$0x1] }
  0x68   :  { %v3938_v53 = vsel %vm386_vm5, %v3937_v10, %v3936_v45  ;;  %v4642_v54 = vsel %vm377_vm2, %v4641_v34, %v4640_v47  ;;  %v4649_v55 = vrot.slane %v4316_v28, 1  ;;  %v5023_v57 = vld [vmem:[#allocation5 + $0x27] sm:$0x1]  ;;  %v5024_v59 = vld [vmem:[#allocation5 + $0x2f] sm:$0x1]  ;;  %v5347_v60 = vrot.slane %v5020_v40, 7 }
  0x69   :  { %v3940_v61 = vsel %vm389_vm6, %v3939_v17, %v3938_v53  ;;  %v4644_v62 = vsel %vm380_vm3, %v4643_v37, %v4642_v54  ;;  %v5025_v63 = vld [vmem:[#allocation5 + $0x37] sm:$0x1]  ;;  %v5026_v0 = vld [vmem:[#allocation5 + $0x3f] sm:$0x1]  ;;  %v5349_v2 = vrot.slane %v5021_v50, 6  ;;  %v5351_v3 = vrot.slane %v5022_v51, 5 }
  0x6a   :  { %v4227_v4 = vmul.f32 %v10128_v29, %v3940_v61  ;;  %v4646_v6 = vsel %vm383_vm4, %v4645_v38, %v4644_v62  ;;  %v5348_v7 = vsel %vm371_vm0, %v5347_v60, %v5019_v39  ;;  %v5353_v9 = vrot.slane %v5023_v57, 4  ;;  %v10231_v10 = vld [vmem:[#allocation2 + $0x8] ss:$0 sm:$0xff]  ;;  %v10233_v12 = vld [vmem:[#allocation2 + $0x9] ss:$0 sm:$0xff] }
  0x6b   :  { %v4648_v13 = vsel %vm386_vm5, %v4647_v48, %v4646_v6  ;;  %v5350_v16 = vsel %vm374_vm1, %v5349_v2, %v5348_v7  ;;  %v5355_v17 = vrot.slane %v5024_v59, 3  ;;  %v5357_v20 = vrot.slane %v5025_v63, 2  ;;  %v10237_v23 = vld [vmem:[#allocation2 + $0xa] ss:$0 sm:$0xff]  ;;  %v10239_v24 = vld [vmem:[#allocation2 + $0xb] ss:$0 sm:$0xff] }
  0x6c   :  { %v4267_v25 = vadd.f32 %v4227_v4, %v3557_v41  ;;  %v4650_v26 = vsel %vm389_vm6, %v4649_v55, %v4648_v13  ;;  %v5352_v27 = vsel %vm377_vm2, %v5351_v3, %v5350_v16  ;;  %v5359_v28 = vrot.slane %v5026_v0, 1  ;;  %v10243_v33 = vld [vmem:[#allocation2 + $0xc] ss:$0 sm:$0xff]  ;;  %v10245_v34 = vld [vmem:[#allocation2 + $0xd] ss:$0 sm:$0xff] }
  0x6d   :  { %v4937_v35 = vmul.f32 %v10140_v58, %v4650_v26  ;;  %v5354_v36 = vsel %vm380_vm3, %v5353_v9, %v5352_v27  ;;  %v679_v37 = vmul.f32 %v10231_v10, %v10175_v19  ;;  %v1389_v38 = vmul.f32 %v10233_v12, %v10184_v42  ;;  %v10253_v39 = vld [vmem:[#allocation2 + $0xe] ss:$0 sm:$0xff]  ;;  %v10261_v48 = vld [vmem:[#allocation2 + $0xf] ss:$0 sm:$0xff]  ;;  %v59_v55 = vld [vmem:[#allocation5 + $0x88] sm:$0x1] }
  0x6e   :  { %v5356_v40 = vsel %vm383_vm4, %v5355_v17, %v5354_v36  ;;  %v2099_v41 = vmul.f32 %v10237_v23, %v10197_v21  ;;  %v2809_v45 = vmul.f32 %v10239_v24, %v10207_v49  ;;  %v3519_v47 = vmul.f32 %v10243_v33, %v3230_v14  ;;  %v60_v62 = vld [vmem:[#allocation5 + $0x90] sm:$0x1]  ;;  %v61_v63 = vld [vmem:[#allocation5 + $0x98] sm:$0x1]  ;;  %v62_v0 = vld [vmem:[#allocation5 + $0xa0] sm:$0x1] }
  0x6f   :  { %v4977_v50 = vadd.f32 %v4937_v35, %v4267_v25  ;;  %v5358_v19 = vsel %vm386_vm5, %v5357_v20, %v5356_v40  ;;  %v1429_v51 = vadd.f32 %v1389_v38, %v679_v37  ;;  %v4229_v42 = vmul.f32 %v10245_v34, %v3940_v61  ;;  %v58_v61 = vld [vmem:[#allocation5 + $0x80] sm:$0x1]  ;;  %v63_v4 = vld [vmem:[#allocation5 + $0xa8] sm:$0x1]  ;;  %v64_v6 = vld [vmem:[#allocation5 + $0xb0] sm:$0x1] }
  0x70   :  { %v5360_v53 = vsel %vm389_vm6, %v5359_v28, %v5358_v19  ;;  %v4939_v54 = vmul.f32 %v10253_v39, %v4650_v26  ;;  %v680_v21 = vmul.f32 %v10231_v10, %v10070_v43  ;;  %v1390_v49 = vmul.f32 %v10233_v12, %v10082_v1  ;;  %v65_v7 = vld [vmem:[#allocation5 + $0xb8] sm:$0x1]  ;;  %v775_v17 = vld [vmem:[#allocation5 + $0x81] sm:$0x1]  ;;  %v777_v20 = vld [vmem:[#allocation5 + $0x91] sm:$0x1] }
  0x71   :  { %v5647_v14 = vmul.f32 %v10152_v22, %v5360_v53  ;;  %v2139_v57 = vadd.f32 %v2099_v41, %v1429_v51  ;;  %v5649_v59 = vmul.f32 %v10261_v48, %v5360_v53  ;;  %v2100_v60 = vmul.f32 %v10237_v23, %v10096_v30  ;;  %v779_v38 = vld [vmem:[#allocation5 + $0xa1] sm:$0x1]  ;;  %v781_v51 = vld [vmem:[#allocation5 + $0xb1] sm:$0x1] }
  0x72   :  { %v1430_v2 = vadd.f32 %v1390_v49, %v680_v21  ;;  %v2810_v43 = vmul.f32 %v10239_v24, %v10109_v56  ;;  %v3520_v1 = vmul.f32 %v10243_v33, %v10122_v18  ;;  %v4230_v3 = vmul.f32 %v10245_v34, %v10134_v46  ;;  %v776_v56 = vld [vmem:[#allocation5 + $0x89] sm:$0x1]  ;;  %v778_v46 = vld [vmem:[#allocation5 + $0x99] sm:$0x1] }
  0x73   :  { %v10281_v9 = vadd.f32 %v5647_v14, %v4977_v50  ;;  %v2849_v30 = vadd.f32 %v2809_v45, %v2139_v57  ;;  %v4940_v13 = vmul.f32 %v10253_v39, %v10147_v15  ;;  %v5650_v16 = vmul.f32 %v10261_v48, %v10161_v52  ;;  %v780_v45 = vld [vmem:[#allocation5 + $0xa9] sm:$0x1] }
  0x74   :  { %v2140_v25 = vadd.f32 %v2100_v60, %v1430_v2  ;;  %v405_v18 = vrot.slane %v59_v55, 7  ;;  %v407_v26 = vrot.slane %v60_v62, 6  ;;  %v409_v27 = vrot.slane %v61_v63, 5  ;;  %v1487_v2 = vld [vmem:[#allocation5 + $0x92] sm:$0x1] }
  0x75   :  { %14293 = vst [vmem:[#allocation12_spill] sm:$0xff] %v10281_v9  ;;  %v3559_v28 = vadd.f32 %v3519_v47, %v2849_v30  ;;  %v411_v35 = vrot.slane %v62_v0, 4  ;;  %v413_v36 = vrot.slane %v63_v4, 3  ;;  %v415_v37 = vrot.slane %v64_v6, 2  ;;  %v782_v47 = vld [vmem:[#allocation5 + $0xb9] sm:$0x1] }
  0x76   :  { %v2850_v40 = vadd.f32 %v2810_v43, %v2140_v25  ;;  %v406_v41 = vsel %vm371_vm0, %v405_v18, %v58_v61  ;;  %v417_v15 = vrot.slane %v65_v7, 1  ;;  %v1115_v50 = vrot.slane %v776_v56, 7  ;;  %v1485_v0 = vld [vmem:[#allocation5 + $0x82] sm:$0x1]  ;;  %v1488_v7 = vld [vmem:[#allocation5 + $0x9a] sm:$0x1] }
  0x77   :  { %v4269_v52 = vadd.f32 %v4229_v42, %v3559_v28  ;;  %v408_v19 = vsel %vm374_vm1, %v407_v26, %v406_v41  ;;  %v1117_v53 = vrot.slane %v777_v20, 6  ;;  %v1119_v21 = vrot.slane %v778_v46, 5  ;;  %v1486_v42 = vld [vmem:[#allocation5 + $0x8a] sm:$0x1]  ;;  %v1489_v30 = vld [vmem:[#allocation5 + $0xa2] sm:$0x1] }
  0x78   :  { %v3560_v49 = vadd.f32 %v3520_v1, %v2850_v40  ;;  %v410_v55 = vsel %vm377_vm2, %v409_v27, %v408_v19  ;;  %v1116_v14 = vsel %vm371_vm0, %v1115_v50, %v775_v17  ;;  %v1121_v57 = vrot.slane %v779_v38, 4  ;;  %v1490_v25 = vld [vmem:[#allocation5 + $0xaa] sm:$0x1]  ;;  %v1491_v18 = vld [vmem:[#allocation5 + $0xb2] sm:$0x1] }
  0x79   :  { %v4979_v60 = vadd.f32 %v4939_v54, %v4269_v52  ;;  %v412_v62 = vsel %vm380_vm3, %v411_v35, %v410_v55  ;;  %v1118_v61 = vsel %vm374_vm1, %v1117_v53, %v1116_v14  ;;  %v1123_v63 = vrot.slane %v780_v45, 3  ;;  %v1492_v46 = vld [vmem:[#allocation5 + $0xba] sm:$0x1]  ;;  %v2196_v35 = vld [vmem:[#allocation5 + $0x8b] sm:$0x1] }
  0x7a   :  { %v4270_v43 = vadd.f32 %v4230_v3, %v3560_v49  ;;  %v414_v4 = vsel %vm383_vm4, %v413_v36, %v412_v62  ;;  %v1120_v1 = vsel %vm377_vm2, %v1119_v21, %v1118_v61  ;;  %v1125_v6 = vrot.slane %v781_v51, 2  ;;  %v2195_v40 = vld [vmem:[#allocation5 + $0x83] sm:$0x1]  ;;  %v2197_v41 = vld [vmem:[#allocation5 + $0x93] sm:$0x1] }
  0x7b   :  { %v10295_v56 = vadd.f32 %v5649_v59, %v4979_v60  ;;  %v416_v54 = vsel %vm386_vm5, %v415_v37, %v414_v4  ;;  %v1122_v17 = vsel %vm380_vm3, %v1121_v57, %v1120_v1  ;;  %v1127_v20 = vrot.slane %v782_v47, 1  ;;  %v2198_v45 = vld [vmem:[#allocation5 + $0x9b] sm:$0x1]  ;;  %v2199_v19 = vld [vmem:[#allocation5 + $0xa3] sm:$0x1] }
  0x7c   :  { %v4980_v26 = vadd.f32 %v4940_v13, %v4270_v43  ;;  %v10300_v27 = vsel %vm389_vm6, %v417_v15, %v416_v54  ;;  %v1124_v3 = vsel %vm383_vm4, %v1123_v63, %v1122_v17  ;;  %v1825_v28 = vrot.slane %v1486_v42, 7  ;;  %v2200_v51 = vld [vmem:[#allocation5 + $0xab] sm:$0x1]  ;;  %v2201_v55 = vld [vmem:[#allocation5 + $0xb3] sm:$0x1] }
  0x7d   :  { %14294 = vst [vmem:[#allocation13_spill] sm:$0xff] %v10295_v56  ;;  %v681_v59 = vmul.f32 %v10063_v32, %v10300_v27  ;;  %v1126_v36 = vsel %vm386_vm5, %v1125_v6, %v1124_v3  ;;  %v1827_v37 = vrot.slane %v1487_v2, 6  ;;  %v1829_v38 = vrot.slane %v1488_v7, 5  ;;  %v2202_v47 = vld [vmem:[#allocation5 + $0xbb] sm:$0x1] }
  0x7e   :  { %v10306_v50 = vadd.f32 %v5650_v16, %v4980_v26  ;;  %v10309_v13 = vsel %vm389_vm6, %v1127_v20, %v1126_v36  ;;  %v1826_v15 = vsel %vm371_vm0, %v1825_v28, %v1485_v0  ;;  %v1831_v52 = vrot.slane %v1489_v30, 4  ;;  %v2906_v62 = vld [vmem:[#allocation5 + $0x8c] sm:$0x1]  ;;  %v2907_v2 = vld [vmem:[#allocation5 + $0x94] sm:$0x1] }
  0x7f   :  { %v1391_v32 = vmul.f32 %v10072_v44, %v10309_v13  ;;  %v1828_v53 = vsel %vm374_vm1, %v1827_v37, %v1826_v15  ;;  %v1833_v21 = vrot.slane %v1490_v25, 3  ;;  %v1835_v49 = vrot.slane %v1491_v18, 2  ;;  %v2908_v43 = vld [vmem:[#allocation5 + $0x9c] sm:$0x1]  ;;  %v2905_v7 = vld [vmem:[#allocation5 + $0x84] sm:$0x1] }
  0x80   :  { %14295 = vst [vmem:[#allocation14_spill] sm:$0xff] %v10306_v50  ;;  %v1830_v16 = vsel %vm377_vm2, %v1829_v38, %v1828_v53  ;;  %v1837_v14 = vrot.slane %v1492_v46, 1  ;;  %v2535_v57 = vrot.slane %v2196_v35, 7  ;;  %v2537_v60 = vrot.slane %v2197_v41, 6  ;;  %v2909_v30 = vld [vmem:[#allocation5 + $0xa4] sm:$0x1] }
  0x81   :  { %v1431_v61 = vadd.f32 %v1391_v32, %v681_v59  ;;  %v1832_v63 = vsel %vm380_vm3, %v1831_v52, %v1830_v16  ;;  %v2539_v0 = vrot.slane %v2198_v45, 5  ;;  %v2541_v42 = vrot.slane %v2199_v19, 4  ;;  %v2910_v25 = vld [vmem:[#allocation5 + $0xac] sm:$0x1]  ;;  %v2911_v18 = vld [vmem:[#allocation5 + $0xb4] sm:$0x1] }
  0x82   :  { %v1834_v44 = vsel %vm383_vm4, %v1833_v21, %v1832_v63  ;;  %v2536_v4 = vsel %vm371_vm0, %v2535_v57, %v2195_v40  ;;  %v2543_v1 = vrot.slane %v2200_v51, 3  ;;  %v2545_v6 = vrot.slane %v2201_v55, 2  ;;  %v2912_v28 = vld [vmem:[#allocation5 + $0xbc] sm:$0x1]  ;;  %v3615_v41 = vld [vmem:[#allocation5 + $0x85] sm:$0x1] }
  0x83   :  { %v1836_v54 = vsel %vm386_vm5, %v1835_v49, %v1834_v44  ;;  %v2538_v17 = vsel %vm374_vm1, %v2537_v60, %v2536_v4  ;;  %v2547_v20 = vrot.slane %v2202_v47, 1  ;;  %v3245_v26 = vrot.slane %v2906_v62, 7  ;;  %v3616_v45 = vld [vmem:[#allocation5 + $0x8d] sm:$0x1]  ;;  %v3617_v15 = vld [vmem:[#allocation5 + $0x95] sm:$0x1] }
  0x84   :  { %v10322_v3 = vsel %vm389_vm6, %v1837_v14, %v1836_v54  ;;  %v2540_v46 = vsel %vm377_vm2, %v2539_v0, %v2538_v17  ;;  %v3247_v35 = vrot.slane %v2907_v2, 6  ;;  %v3249_v59 = vrot.slane %v2908_v43, 5  ;;  %v3618_v53 = vld [vmem:[#allocation5 + $0x9d] sm:$0x1]  ;;  %v3619_v21 = vld [vmem:[#allocation5 + $0xa5] sm:$0x1] }
  0x85   :  { %v2101_v36 = vmul.f32 %v10087_v8, %v10322_v3  ;;  %v2542_v37 = vsel %vm380_vm3, %v2541_v42, %v2540_v46  ;;  %v3246_v38 = vsel %vm371_vm0, %v3245_v26, %v2905_v7  ;;  %v3251_v40 = vrot.slane %v2909_v30, 4  ;;  %v3620_v16 = vld [vmem:[#allocation5 + $0xad] sm:$0x1]  ;;  %v3621_v14 = vld [vmem:[#allocation5 + $0xb5] sm:$0x1] }
  0x86   :  { %v2544_v52 = vsel %vm383_vm4, %v2543_v1, %v2542_v37  ;;  %v3248_v19 = vsel %vm374_vm1, %v3247_v35, %v3246_v38  ;;  %v3253_v51 = vrot.slane %v2910_v25, 3  ;;  %v3255_v32 = vrot.slane %v2911_v18, 2  ;;  %v3622_v62 = vld [vmem:[#allocation5 + $0xbd] sm:$0x1]  ;;  %v4326_v42 = vld [vmem:[#allocation5 + $0x8e] sm:$0x1] }
  0x87   :  { %v2141_v49 = vadd.f32 %v2101_v36, %v1431_v61  ;;  %v2546_v55 = vsel %vm386_vm5, %v2545_v6, %v2544_v52  ;;  %v3250_v8 = vsel %vm377_vm2, %v3249_v59, %v3248_v19  ;;  %v3257_v47 = vrot.slane %v2912_v28, 1  ;;  %v4325_v4 = vld [vmem:[#allocation5 + $0x86] sm:$0x1]  ;;  %v4327_v1 = vld [vmem:[#allocation5 + $0x96] sm:$0x1] }
  0x88   :  { %v10334_v57 = vsel %vm389_vm6, %v2547_v20, %v2546_v55  ;;  %v3252_v60 = vsel %vm380_vm3, %v3251_v40, %v3250_v8  ;;  %v3955_v63 = vrot.slane %v3616_v45, 7  ;;  %v3957_v0 = vrot.slane %v3617_v15, 6  ;;  %v4328_v6 = vld [vmem:[#allocation5 + $0x9e] sm:$0x1]  ;;  %v4329_v20 = vld [vmem:[#allocation5 + $0xa6] sm:$0x1] }
  0x89   :  { %v2811_v2 = vmul.f32 %v10098_v31, %v10334_v57  ;;  %v3254_v61 = vsel %vm383_vm4, %v3253_v51, %v3252_v60  ;;  %v3959_v43 = vrot.slane %v3618_v53, 5  ;;  %v3961_v44 = vrot.slane %v3619_v21, 4  ;;  %v4330_v25 = vld [vmem:[#allocation5 + $0xae] sm:$0x1]  ;;  %v4331_v28 = vld [vmem:[#allocation5 + $0xb6] sm:$0x1] }
  0x8a   :  { %v3256_v7 = vsel %vm386_vm5, %v3255_v32, %v3254_v61  ;;  %v3956_v30 = vsel %vm371_vm0, %v3955_v63, %v3615_v41  ;;  %v3963_v54 = vrot.slane %v3620_v16, 3  ;;  %v3965_v17 = vrot.slane %v3621_v14, 2  ;;  %v4332_v35 = vld [vmem:[#allocation5 + $0xbe] sm:$0x1]  ;;  %v5036_v40 = vld [vmem:[#allocation5 + $0x8f] sm:$0x1] }
  0x8b   :  { %v2851_v18 = vadd.f32 %v2811_v2, %v2141_v49  ;;  %v10343_v26 = vsel %vm389_vm6, %v3257_v47, %v3256_v7  ;;  %v3958_v31 = vsel %vm374_vm1, %v3957_v0, %v3956_v30  ;;  %v3967_v46 = vrot.slane %v3622_v62, 1  ;;  %v5037_v41 = vld [vmem:[#allocation5 + $0x97] sm:$0x1]  ;;  %v5038_v51 = vld [vmem:[#allocation5 + $0x9f] sm:$0x1] }
  0x8c   :  { %v3521_v59 = vmul.f32 %v10115_v5, %v10343_v26  ;;  %v3960_v36 = vsel %vm377_vm2, %v3959_v43, %v3958_v31  ;;  %v4665_v37 = vrot.slane %v4326_v42, 7  ;;  %v4667_v38 = vrot.slane %v4327_v1, 6  ;;  %v5035_v55 = vld [vmem:[#allocation5 + $0x87] sm:$0x1]  ;;  %v5040_v14 = vld [vmem:[#allocation5 + $0xaf] sm:$0x1] }
  0x8d   :  { %v3962_v45 = vsel %vm380_vm3, %v3961_v44, %v3960_v36  ;;  %v4669_v15 = vrot.slane %v4328_v6, 5  ;;  %v4671_v52 = vrot.slane %v4329_v20, 4  ;;  %v4673_v19 = vrot.slane %v4330_v25, 3  ;;  %v5039_v5 = vld [vmem:[#allocation5 + $0xa7] sm:$0x1] }
  0x8e   :  { %v3561_v32 = vadd.f32 %v3521_v59, %v2851_v18  ;;  %v3964_v53 = vsel %vm383_vm4, %v3963_v54, %v3962_v45  ;;  %v4666_v21 = vsel %vm371_vm0, %v4665_v37, %v4325_v4  ;;  %v4675_v49 = vrot.slane %v4331_v28, 2  ;;  %v5041_v60 = vld [vmem:[#allocation5 + $0xb7] sm:$0x1]  ;;  %v5042_v42 = vld [vmem:[#allocation5 + $0xbf] sm:$0x1] }
  0x8f   :  { %v3966_v8 = vsel %vm386_vm5, %v3965_v17, %v3964_v53  ;;  %v4668_v47 = vsel %vm374_vm1, %v4667_v38, %v4666_v21  ;;  %v4677_v16 = vrot.slane %v4332_v35, 1  ;;  %v5375_v62 = vrot.slane %v5036_v40, 7  ;;  %v66_v6 = vld [vmem:[#allocation5 + $0xc0] sm:$0x1]  ;;  %v67_v7 = vld [vmem:[#allocation5 + $0xc8] sm:$0x1] }
  0x90   :  { %v10355_v63 = vsel %vm389_vm6, %v3967_v46, %v3966_v8  ;;  %v4670_v0 = vsel %vm377_vm2, %v4669_v15, %v4668_v47  ;;  %v5377_v2 = vrot.slane %v5037_v41, 6  ;;  %v5379_v61 = vrot.slane %v5038_v51, 5  ;;  %v68_v30 = vld [vmem:[#allocation5 + $0xd0] sm:$0x1]  ;;  %v69_v18 = vld [vmem:[#allocation5 + $0xd8] sm:$0x1] }
  0x91   :  { %v4231_v43 = vmul.f32 %v10128_v29, %v10355_v63  ;;  %v4672_v44 = vsel %vm380_vm3, %v4671_v52, %v4670_v0  ;;  %v5376_v4 = vsel %vm371_vm0, %v5375_v62, %v5035_v55  ;;  %v5381_v1 = vrot.slane %v5039_v5, 4  ;;  %v70_v31 = vld [vmem:[#allocation5 + $0xe0] sm:$0x1]  ;;  %v71_v59 = vld [vmem:[#allocation5 + $0xe8] sm:$0x1] }
  0x92   :  { %v4674_v54 = vsel %vm383_vm4, %v4673_v19, %v4672_v44  ;;  %v5378_v17 = vsel %vm374_vm1, %v5377_v2, %v5376_v4  ;;  %v5383_v20 = vrot.slane %v5040_v14, 3  ;;  %v5385_v25 = vrot.slane %v5041_v60, 2  ;;  %v72_v36 = vld [vmem:[#allocation5 + $0xf0] sm:$0x1]  ;;  %v73_v40 = vld [vmem:[#allocation5 + $0xf8] sm:$0x1] }
  0x93   :  { %v4271_v46 = vadd.f32 %v4231_v43, %v3561_v32  ;;  %v4676_v28 = vsel %vm386_vm5, %v4675_v49, %v4674_v54  ;;  %v5380_v29 = vsel %vm377_vm2, %v5379_v61, %v5378_v17  ;;  %v5387_v35 = vrot.slane %v5042_v42, 1  ;;  %v784_v15 = vld [vmem:[#allocation5 + $0xc9] sm:$0x1]  ;;  %v783_v53 = vld [vmem:[#allocation5 + $0xc1] sm:$0x1] }
  0x94   :  { %v10367_v37 = vsel %vm389_vm6, %v4677_v16, %v4676_v28  ;;  %v5382_v38 = vsel %vm380_vm3, %v5381_v1, %v5380_v29  ;;  %v419_v41 = vrot.slane %v67_v7, 7  ;;  %v421_v45 = vrot.slane %v68_v30, 6  ;;  %v785_v21 = vld [vmem:[#allocation5 + $0xd1] sm:$0x1]  ;;  %v786_v49 = vld [vmem:[#allocation5 + $0xd9] sm:$0x1] }
  0x95   :  { %v4941_v52 = vmul.f32 %v10140_v58, %v10367_v37  ;;  %v5384_v19 = vsel %vm383_vm4, %v5383_v20, %v5382_v38  ;;  %v423_v51 = vrot.slane %v69_v18, 5  ;;  %v425_v32 = vrot.slane %v70_v31, 4  ;;  %v787_v16 = vld [vmem:[#allocation5 + $0xe1] sm:$0x1]  ;;  %v788_v14 = vld [vmem:[#allocation5 + $0xe9] sm:$0x1] }
  0x96   :  { %v5386_v55 = vsel %vm386_vm5, %v5385_v25, %v5384_v19  ;;  %v420_v5 = vsel %vm371_vm0, %v419_v41, %v66_v6  ;;  %v427_v8 = vrot.slane %v71_v59, 3  ;;  %v429_v47 = vrot.slane %v72_v36, 2  ;;  %v789_v42 = vld [vmem:[#allocation5 + $0xf1] sm:$0x1]  ;;  %v790_v2 = vld [vmem:[#allocation5 + $0xf9] sm:$0x1] }
  0x97   :  { %v4981_v60 = vadd.f32 %v4941_v52, %v4271_v46  ;;  %v10376_v62 = vsel %vm389_vm6, %v5387_v35, %v5386_v55  ;;  %v422_v58 = vsel %vm374_vm1, %v421_v45, %v420_v5  ;;  %v431_v0 = vrot.slane %v73_v40, 1  ;;  %v1494_v1 = vld [vmem:[#allocation5 + $0xca] sm:$0x1]  ;;  %v1495_v6 = vld [vmem:[#allocation5 + $0xd2] sm:$0x1] }
  0x98   :  { %v5651_v61 = vmul.f32 %v10152_v22, %v10376_v62  ;;  %v424_v43 = vsel %vm377_vm2, %v423_v51, %v422_v58  ;;  %v1129_v44 = vrot.slane %v784_v15, 7  ;;  %v1131_v4 = vrot.slane %v785_v21, 6  ;;  %v1496_v20 = vld [vmem:[#allocation5 + $0xda] sm:$0x1]  ;;  %v1493_v22 = vld [vmem:[#allocation5 + $0xc2] sm:$0x1] }
  0x99   :  { %v426_v7 = vsel %vm380_vm3, %v425_v32, %v424_v43  ;;  %v1133_v30 = vrot.slane %v786_v49, 5  ;;  %v1135_v54 = vrot.slane %v787_v16, 4  ;;  %v1137_v17 = vrot.slane %v788_v14, 3  ;;  %v1497_v28 = vld [vmem:[#allocation5 + $0xe2] sm:$0x1] }
  0x9a   :  { %v10383_v25 = vadd.f32 %v5651_v61, %v4981_v60  ;;  %v428_v18 = vsel %vm383_vm4, %v427_v8, %v426_v7  ;;  %v1130_v31 = vsel %vm371_vm0, %v1129_v44, %v783_v53  ;;  %v1139_v46 = vrot.slane %v789_v42, 2  ;;  %v1498_v36 = vld [vmem:[#allocation5 + $0xea] sm:$0x1]  ;;  %v1499_v38 = vld [vmem:[#allocation5 + $0xf2] sm:$0x1] }
  0x9b   :  { %v430_v29 = vsel %vm386_vm5, %v429_v47, %v428_v18  ;;  %v1132_v35 = vsel %vm374_vm1, %v1131_v4, %v1130_v31  ;;  %v1141_v59 = vrot.slane %v790_v2, 1  ;;  %v1839_v40 = vrot.slane %v1494_v1, 7  ;;  %v1500_v15 = vld [vmem:[#allocation5 + $0xfa] sm:$0x1]  ;;  %v2204_v51 = vld [vmem:[#allocation5 + $0xcb] sm:$0x1] }
  0x9c   :  { %14296 = vst [vmem:[#allocation15_spill] sm:$0xff] %v10383_v25  ;;  %v10390_v41 = vsel %vm389_vm6, %v431_v0, %v430_v29  ;;  %v1134_v45 = vsel %vm377_vm2, %v1133_v30, %v1132_v35  ;;  %v1841_v52 = vrot.slane %v1495_v6, 6  ;;  %v1843_v19 = vrot.slane %v1496_v20, 5  ;;  %v10393_v32 = vld [vmem:[#allocation2] ss:$0 sm:$0xff] }
  0x9d   :  { %v682_v53 = vmul.f32 %v10393_v32, %v10390_v41  ;;  %v1136_v21 = vsel %vm380_vm3, %v1135_v54, %v1134_v45  ;;  %v1840_v49 = vsel %vm371_vm0, %v1839_v40, %v1493_v22  ;;  %v1845_v55 = vrot.slane %v1497_v28, 4  ;;  %v2205_v5 = vld [vmem:[#allocation5 + $0xd3] sm:$0x1]  ;;  %v2206_v8 = vld [vmem:[#allocation5 + $0xdb] sm:$0x1] }
  0x9e   :  { %v1138_v47 = vsel %vm383_vm4, %v1137_v17, %v1136_v21  ;;  %v1842_v16 = vsel %vm374_vm1, %v1841_v52, %v1840_v49  ;;  %v1847_v14 = vrot.slane %v1498_v36, 3  ;;  %v1849_v60 = vrot.slane %v1499_v38, 2  ;;  %v2203_v58 = vld [vmem:[#allocation5 + $0xc3] sm:$0x1]  ;;  %v2208_v43 = vld [vmem:[#allocation5 + $0xeb] sm:$0x1] }
  0x9f   :  { %v2207_v0 = vld [vmem:[#allocation5 + $0xe3] sm:$0x1]  ;;  %v1140_v42 = vsel %vm386_vm5, %v1139_v46, %v1138_v47  ;;  %v1844_v2 = vsel %vm377_vm2, %v1843_v19, %v1842_v16  ;;  %v1851_v61 = vrot.slane %v1500_v15, 1  ;;  %v2209_v44 = vld [vmem:[#allocation5 + $0xf3] sm:$0x1]  ;;  %v2549_v4 = vrot.slane %v2204_v51, 7 }
  0xa0   :  { %v10404_v1 = vsel %vm389_vm6, %v1141_v59, %v1140_v42  ;;  %v1846_v6 = vsel %vm380_vm3, %v1845_v55, %v1844_v2  ;;  %v2210_v7 = vld [vmem:[#allocation5 + $0xfb] sm:$0x1]  ;;  %v2551_v30 = vrot.slane %v2205_v5, 6  ;;  %v2553_v54 = vrot.slane %v2206_v8, 5  ;;  %v2914_v17 = vld [vmem:[#allocation5 + $0xcc] sm:$0x1] }
  0xa1   :  { %v10407_v20 = vld [vmem:[#allocation2 + $0x1] ss:$0 sm:$0xff]  ;;  %v1848_v31 = vsel %vm383_vm4, %v1847_v14, %v1846_v6  ;;  %v2550_v46 = vsel %vm371_vm0, %v2549_v4, %v2203_v58  ;;  %v2555_v22 = vrot.slane %v2207_v0, 4  ;;  %v2913_v28 = vld [vmem:[#allocation5 + $0xc4] sm:$0x1]  ;;  %v2557_v38 = vrot.slane %v2208_v43, 3 }
  0xa2   :  { %v1392_v18 = vmul.f32 %v10407_v20, %v10404_v1  ;;  %v2915_v29 = vld [vmem:[#allocation5 + $0xd4] sm:$0x1]  ;;  %v2916_v35 = vld [vmem:[#allocation5 + $0xdc] sm:$0x1]  ;;  %v1850_v59 = vsel %vm386_vm5, %v1849_v60, %v1848_v31  ;;  %v2552_v36 = vsel %vm374_vm1, %v2551_v30, %v2550_v46  ;;  %v2559_v40 = vrot.slane %v2209_v44, 2 }
  0xa3   :  { %v2917_v45 = vld [vmem:[#allocation5 + $0xe4] sm:$0x1]  ;;  %v2918_v15 = vld [vmem:[#allocation5 + $0xec] sm:$0x1]  ;;  %v10416_v19 = vsel %vm389_vm6, %v1851_v61, %v1850_v59  ;;  %v2554_v51 = vsel %vm377_vm2, %v2553_v54, %v2552_v36  ;;  %v2561_v21 = vrot.slane %v2210_v7, 1  ;;  %v3259_v16 = vrot.slane %v2914_v17, 7 }
  0xa4   :  { %v1432_v52 = vadd.f32 %v1392_v18, %v682_v53  ;;  %v2919_v49 = vld [vmem:[#allocation5 + $0xf4] sm:$0x1]  ;;  %v2920_v55 = vld [vmem:[#allocation5 + $0xfc] sm:$0x1]  ;;  %v10419_v5 = vld [vmem:[#allocation2 + $0x2] ss:$0 sm:$0xff]  ;;  %v2556_v47 = vsel %vm380_vm3, %v2555_v22, %v2554_v51 }
  0xa5   :  { %v2102_v8 = vmul.f32 %v10419_v5, %v10416_v19  ;;  %v3261_v14 = vrot.slane %v2915_v29, 6  ;;  %v3623_v60 = vld [vmem:[#allocation5 + $0xc5] sm:$0x1]  ;;  %v3624_v58 = vld [vmem:[#allocation5 + $0xcd] sm:$0x1]  ;;  %v2558_v0 = vsel %vm383_vm4, %v2557_v38, %v2556_v47  ;;  %v3263_v42 = vrot.slane %v2916_v35, 5 }
  0xa6   :  { %v3625_v53 = vld [vmem:[#allocation5 + $0xd5] sm:$0x1]  ;;  %v3265_v2 = vrot.slane %v2917_v45, 4  ;;  %v3267_v61 = vrot.slane %v2918_v15, 3  ;;  %v3626_v43 = vld [vmem:[#allocation5 + $0xdd] sm:$0x1]  ;;  %v2560_v4 = vsel %vm386_vm5, %v2559_v40, %v2558_v0  ;;  %v3260_v6 = vsel %vm371_vm0, %v3259_v16, %v2913_v28 }
  0xa7   :  { %v2142_v44 = vadd.f32 %v2102_v8, %v1432_v52  ;;  %v3269_v7 = vrot.slane %v2919_v49, 2  ;;  %v3627_v30 = vld [vmem:[#allocation5 + $0xe5] sm:$0x1]  ;;  %v3628_v54 = vld [vmem:[#allocation5 + $0xed] sm:$0x1]  ;;  %v10428_v17 = vsel %vm389_vm6, %v2561_v21, %v2560_v4  ;;  %v3262_v18 = vsel %vm374_vm1, %v3261_v14, %v3260_v6 }
  0xa8   :  { %v3271_v31 = vrot.slane %v2920_v55, 1  ;;  %v3629_v46 = vld [vmem:[#allocation5 + $0xf5] sm:$0x1]  ;;  %v3969_v22 = vrot.slane %v3624_v58, 7  ;;  %v10431_v29 = vld [vmem:[#allocation2 + $0x3] ss:$0 sm:$0xff]  ;;  %v3264_v59 = vsel %vm377_vm2, %v3263_v42, %v3262_v18 }
  0xa9   :  { %v2812_v35 = vmul.f32 %v10431_v29, %v10428_v17  ;;  %v3630_v36 = vld [vmem:[#allocation5 + $0xfd] sm:$0x1]  ;;  %v3971_v28 = vrot.slane %v3625_v53, 6  ;;  %v3973_v38 = vrot.slane %v3626_v43, 5  ;;  %v4334_v40 = vld [vmem:[#allocation5 + $0xce] sm:$0x1]  ;;  %v3266_v45 = vsel %vm380_vm3, %v3265_v2, %v3264_v59 }
  0xaa   :  { %v3970_v15 = vsel %vm371_vm0, %v3969_v22, %v3623_v60  ;;  %v3975_v52 = vrot.slane %v3627_v30, 4  ;;  %v3977_v51 = vrot.slane %v3628_v54, 3  ;;  %v4335_v21 = vld [vmem:[#allocation5 + $0xd6] sm:$0x1]  ;;  %v4336_v49 = vld [vmem:[#allocation5 + $0xde] sm:$0x1]  ;;  %v3268_v8 = vsel %vm383_vm4, %v3267_v61, %v3266_v45 }
  0xab   :  { %v2852_v55 = vadd.f32 %v2812_v35, %v2142_v44  ;;  %v3972_v47 = vsel %vm374_vm1, %v3971_v28, %v3970_v15  ;;  %v3979_v16 = vrot.slane %v3629_v46, 2  ;;  %v4333_v14 = vld [vmem:[#allocation5 + $0xc6] sm:$0x1]  ;;  %v3270_v53 = vsel %vm386_vm5, %v3269_v7, %v3268_v8  ;;  %v4338_v2 = vld [vmem:[#allocation5 + $0xee] sm:$0x1] }
  0xac   :  { %v4337_v58 = vld [vmem:[#allocation5 + $0xe6] sm:$0x1]  ;;  %v3974_v0 = vsel %vm377_vm2, %v3973_v38, %v3972_v47  ;;  %v3981_v42 = vrot.slane %v3630_v36, 1  ;;  %v4339_v43 = vld [vmem:[#allocation5 + $0xf6] sm:$0x1]  ;;  %v4679_v60 = vrot.slane %v4334_v40, 7  ;;  %v10443_v4 = vsel %vm389_vm6, %v3271_v31, %v3270_v53 }
  0xad   :  { %v3976_v44 = vsel %vm380_vm3, %v3975_v52, %v3974_v0  ;;  %v4340_v6 = vld [vmem:[#allocation5 + $0xfe] sm:$0x1]  ;;  %v4681_v61 = vrot.slane %v4335_v21, 6  ;;  %v4683_v30 = vrot.slane %v4336_v49, 5  ;;  %v10446_v54 = vld [vmem:[#allocation2 + $0x4] ss:$0 sm:$0xff] }
  0xae   :  { %v3522_v18 = vmul.f32 %v10446_v54, %v10443_v4  ;;  %v3978_v7 = vsel %vm383_vm4, %v3977_v51, %v3976_v44  ;;  %v4680_v46 = vsel %vm371_vm0, %v4679_v60, %v4333_v14  ;;  %v4685_v22 = vrot.slane %v4337_v58, 4  ;;  %v5044_v35 = vld [vmem:[#allocation5 + $0xcf] sm:$0x1]  ;;  %v5045_v59 = vld [vmem:[#allocation5 + $0xd7] sm:$0x1] }
  0xaf   :  { %v3980_v31 = vsel %vm386_vm5, %v3979_v16, %v3978_v7  ;;  %v4682_v28 = vsel %vm374_vm1, %v4681_v61, %v4680_v46  ;;  %v4687_v38 = vrot.slane %v4338_v2, 3  ;;  %v4689_v40 = vrot.slane %v4339_v43, 2  ;;  %v5046_v45 = vld [vmem:[#allocation5 + $0xdf] sm:$0x1]  ;;  %v5047_v15 = vld [vmem:[#allocation5 + $0xe7] sm:$0x1] }
  0xb0   :  { %v3562_v52 = vadd.f32 %v3522_v18, %v2852_v55  ;;  %v3982_v21 = vsel %vm389_vm6, %v3981_v42, %v3980_v31  ;;  %v4684_v51 = vsel %vm377_vm2, %v4683_v30, %v4682_v28  ;;  %v5043_v49 = vld [vmem:[#allocation5 + $0xc7] sm:$0x1]  ;;  %v5048_v8 = vld [vmem:[#allocation5 + $0xef] sm:$0x1]  ;;  %v10456_v47 = vld [vmem:[#allocation2 + $0x5] ss:$0 sm:$0xff]  ;;  %v683_v31 = vmul.f32 %v10231_v10, %v10300_v27 }
  0xb1   :  { %v4232_v14 = vmul.f32 %v10456_v47, %v3982_v21  ;;  %v4686_v16 = vsel %vm380_vm3, %v4685_v22, %v4684_v51  ;;  %v4691_v58 = vrot.slane %v4340_v6, 1  ;;  %v5049_v53 = vld [vmem:[#allocation5 + $0xf7] sm:$0x1]  ;;  %v5050_v0 = vld [vmem:[#allocation5 + $0xff] sm:$0x1]  ;;  %v5389_v2 = vrot.slane %v5044_v35, 7 }
  0xb2   :  { %v4688_v43 = vsel %vm383_vm4, %v4687_v38, %v4686_v16  ;;  %v5391_v60 = vrot.slane %v5045_v59, 6  ;;  %v5393_v55 = vrot.slane %v5046_v45, 5  ;;  %v5395_v44 = vrot.slane %v5047_v15, 4 }
  0xb3   :  { %v4272_v42 = vadd.f32 %v4232_v14, %v3562_v52  ;;  %v4690_v61 = vsel %vm386_vm5, %v4689_v40, %v4688_v43  ;;  %v5390_v30 = vsel %vm371_vm0, %v5389_v2, %v5043_v49  ;;  %v5397_v18 = vrot.slane %v5048_v8, 3  ;;  %v76_v2 = vld [vmem:[#allocation5 + $0x110] sm:$0x1]  ;;  %v78_v43 = vld [vmem:[#allocation5 + $0x120] sm:$0x1] }
  0xb4   :  { %v5728_v36 = vpop.xlane.xlu0 %5727  ;;  %v4692_v7 = vsel %vm389_vm6, %v4691_v58, %v4690_v61  ;;  %v5392_v46 = vsel %vm374_vm1, %v5391_v60, %v5390_v30  ;;  %v5399_v22 = vrot.slane %v5049_v53, 2  ;;  %v5401_v6 = vrot.slane %v5050_v0, 1  ;;  %v10499_v53 = vld [vmem:[#allocation2 + $0x7] ss:$0 sm:$0xff]  ;;  %v75_v0 = vld [vmem:[#allocation5 + $0x108] sm:$0x1] }
  0xb5   :  { %9618 = vrcp.f32 %v5728_v36  ;;  %v10465_v36 = vld [vmem:[#allocation2 + $0x6] ss:$0 sm:$0xff]  ;;  %v5394_v59 = vsel %vm377_vm2, %v5393_v55, %v5392_v46  ;;  %v1393_v28 = vmul.f32 %v10233_v12, %v10309_v13  ;;  %v2103_v40 = vmul.f32 %v10237_v23, %v10322_v3  ;;  %v79_v60 = vld [vmem:[#allocation5 + $0x128] sm:$0x1]  ;;  %v80_v55 = vld [vmem:[#allocation5 + $0x130] sm:$0x1] }
  0xb6   :  { %v4942_v35 = vmul.f32 %v10465_v36, %v4692_v7  ;;  %v5396_v38 = vsel %vm380_vm3, %v5395_v44, %v5394_v59  ;;  %v2813_v45 = vmul.f32 %v10239_v24, %v10334_v57  ;;  %v3523_v15 = vmul.f32 %v10243_v33, %v10343_v26  ;;  %v81_v61 = vld [vmem:[#allocation5 + $0x138] sm:$0x1]  ;;  %v792_v46 = vld [vmem:[#allocation5 + $0x109] sm:$0x1] }
  0xb7   :  { %v5398_v51 = vsel %vm383_vm4, %v5397_v18, %v5396_v38  ;;  %v1433_v49 = vadd.f32 %v1393_v28, %v683_v31  ;;  %v4233_v27 = vmul.f32 %v10245_v34, %v10355_v63  ;;  %v4943_v8 = vmul.f32 %v10253_v39, %v10367_v37  ;;  %v791_v31 = vld [vmem:[#allocation5 + $0x101] sm:$0x1]  ;;  %v793_v28 = vld [vmem:[#allocation5 + $0x111] sm:$0x1]  ;;  %v794_v38 = vld [vmem:[#allocation5 + $0x119] sm:$0x1] }
  0xb8   :  { %v4982_v52 = vadd.f32 %v4942_v35, %v4272_v42  ;;  %v5400_v13 = vsel %vm386_vm5, %v5399_v22, %v5398_v51  ;;  %v10488_v3 = vmul.f32 %v10261_v48, %v10376_v62  ;;  %v684_v57 = vmul.f32 %v10231_v10, %v10390_v41 }
  0xb9   :  { %v5402_v26 = vsel %vm389_vm6, %v5401_v6, %v5400_v13  ;;  %v2143_v14 = vadd.f32 %v2103_v40, %v1433_v49  ;;  %v1394_v16 = vmul.f32 %v10233_v12, %v10404_v1  ;;  %v2104_v63 = vmul.f32 %v10237_v23, %v10416_v19 }
  0xba   :  { %v5652_v37 = vmul.f32 %v10499_v53, %v5402_v26  ;;  %v2814_v62 = vmul.f32 %v10239_v24, %v10428_v17  ;;  %v3524_v10 = vmul.f32 %v10243_v33, %v10443_v4  ;;  %v4234_v41 = vmul.f32 %v10245_v34, %v3982_v21  ;;  %v74_v24 = vld [vmem:[#allocation5 + $0x100] sm:$0x1]  ;;  %v77_v17 = vld [vmem:[#allocation5 + $0x118] sm:$0x1] }
  0xbb   :  { %v2853_v4 = vadd.f32 %v2813_v45, %v2143_v14  ;;  %v1434_v21 = vadd.f32 %v1394_v16, %v684_v57  ;;  %v4944_v44 = vmul.f32 %v10253_v39, %v4692_v7  ;;  %v10521_v42 = vmul.f32 %v10261_v48, %v5402_v26  ;;  %v795_v48 = vld [vmem:[#allocation5 + $0x121] sm:$0x1]  ;;  %v796_v57 = vld [vmem:[#allocation5 + $0x129] sm:$0x1]  ;;  %v797_v26 = vld [vmem:[#allocation5 + $0x131] sm:$0x1] }
  0xbc   :  { %v10517_v34 = vadd.f32 %v5652_v37, %v4982_v52  ;;  %v433_v30 = vrot.slane %v75_v0, 7  ;;  %v435_v18 = vrot.slane %v76_v2, 6  ;;  %v437_v59 = vrot.slane %v77_v17, 5 }
  0xbd   :  { %v3563_v6 = vadd.f32 %v3523_v15, %v2853_v4  ;;  %v2144_v35 = vadd.f32 %v2104_v63, %v1434_v21  ;;  %v439_v45 = vrot.slane %v78_v43, 4  ;;  %v441_v39 = vrot.slane %v79_v60, 3  ;;  %v1503_v43 = vld [vmem:[#allocation5 + $0x112] sm:$0x1]  ;;  %v1504_v60 = vld [vmem:[#allocation5 + $0x11a] sm:$0x1] }
  0xbe   :  { %14297 = vst [vmem:[#allocation16_spill] sm:$0xff] %v10517_v34  ;;  %v434_v40 = vsel %vm371_vm0, %v433_v30, %v74_v24  ;;  %v443_v7 = vrot.slane %v80_v55, 2  ;;  %v445_v13 = vrot.slane %v81_v61, 1  ;;  %v1143_v14 = vrot.slane %v792_v46, 7  ;;  %v1506_v46 = vld [vmem:[#allocation5 + $0x12a] sm:$0x1] }
  0xbf   :  { %v10497_v58 = vpop.eup %9618  ;;  %v4273_v52 = vadd.f32 %v4233_v27, %v3563_v6  ;;  %v2854_v51 = vadd.f32 %v2814_v62, %v2144_v35  ;;  %v436_v49 = vsel %vm374_vm1, %v435_v18, %v434_v40  ;;  %v1145_v16 = vrot.slane %v793_v28, 6  ;;  %v1502_v27 = vld [vmem:[#allocation5 + $0x10a] sm:$0x1]  ;;  %v1505_v18 = vld [vmem:[#allocation5 + $0x122] sm:$0x1] }
  0xc0   :  { %v5731_v12 = vmul.f32 %v10497_v58, %v10170_v11  ;;  %v5730_v23 = vmul.f32 %v10497_v58, %v10281_v9  ;;  %v5732_v1 = vmul.f32 %v10497_v58, %v10295_v56  ;;  %v5733_v19 = vmul.f32 %v10497_v58, %v10306_v50 }
  0xc1   :  { %v5734_v33 = vmul.f32 %v10497_v58, %v10383_v25  ;;  %v5735_v22 = vmul.f32 %v10497_v58, %v10517_v34  ;;  %v438_v15 = vsel %vm377_vm2, %v437_v59, %v436_v49  ;;  %v1147_v63 = vrot.slane %v794_v38, 5  ;;  %v2214_v49 = vld [vmem:[#allocation5 + $0x11b] sm:$0x1] }
  0xc2   :  { %5772 = vadd.xlane.f32.xlu1 %v5731_v12  ;;  %5770 = vadd.xlane.f32.xlu0 %v5730_v23  ;;  %v4983_v37 = vadd.f32 %v4943_v8, %v4273_v52  ;;  %v3564_v0 = vadd.f32 %v3524_v10, %v2854_v51  ;;  %v440_v2 = vsel %vm380_vm3, %v439_v45, %v438_v15  ;;  %v798_v12 = vld [vmem:[#allocation5 + $0x139] sm:$0x1]  ;;  %v1149_v23 = vrot.slane %v795_v48, 4  ;;  %v1501_v10 = vld [vmem:[#allocation5 + $0x102] sm:$0x1] }
  0xc3   :  { %v442_v62 = vsel %vm383_vm4, %v441_v39, %v440_v2  ;;  %v1144_v24 = vsel %vm371_vm0, %v1143_v14, %v791_v31  ;;  %v1151_v17 = vrot.slane %v796_v57, 3  ;;  %v1153_v4 = vrot.slane %v797_v26, 2  ;;  %v2211_v45 = vld [vmem:[#allocation5 + $0x103] sm:$0x1]  ;;  %v2212_v39 = vld [vmem:[#allocation5 + $0x10b] sm:$0x1] }
  0xc4   :  { %v444_v21 = vsel %vm386_vm5, %v443_v7, %v442_v62  ;;  %v1146_v8 = vsel %vm374_vm1, %v1145_v16, %v1144_v24  ;;  %v1155_v30 = vrot.slane %v798_v12, 1  ;;  %v1855_v38 = vrot.slane %v1503_v43, 6  ;;  %v2213_v7 = vld [vmem:[#allocation5 + $0x113] sm:$0x1]  ;;  %v2216_v16 = vld [vmem:[#allocation5 + $0x12b] sm:$0x1] }
  0xc5   :  { %v10537_v55 = vsel %vm389_vm6, %v445_v13, %v444_v21  ;;  %v1148_v61 = vsel %vm377_vm2, %v1147_v63, %v1146_v8  ;;  %v1857_v40 = vrot.slane %v1504_v60, 5  ;;  %v1859_v52 = vrot.slane %v1505_v18, 4  ;;  %v2215_v13 = vld [vmem:[#allocation5 + $0x123] sm:$0x1]  ;;  %v2217_v63 = vld [vmem:[#allocation5 + $0x133] sm:$0x1] }
  0xc6   :  { %5774 = vadd.xlane.f32.xlu1 %v5732_v1  ;;  %5776 = vadd.xlane.f32.xlu0 %v5733_v19  ;;  %v10532_v1 = vadd.f32 %v10488_v3, %v4983_v37  ;;  %v4274_v19 = vadd.f32 %v4234_v41, %v3564_v0  ;;  %v1853_v3 = vrot.slane %v1502_v27, 7  ;;  %v685_v35 = vmul.f32 %v10393_v32, %v10537_v55  ;;  %v2218_v2 = vld [vmem:[#allocation5 + $0x13b] sm:$0x1]  ;;  %v2924_v60 = vld [vmem:[#allocation5 + $0x11c] sm:$0x1] }
  0xc7   :  { %v1150_v59 = vsel %vm380_vm3, %v1149_v23, %v1148_v61  ;;  %v1861_v51 = vrot.slane %v1506_v46, 3  ;;  %v2563_v12 = vrot.slane %v2212_v39, 7  ;;  %v2922_v23 = vld [vmem:[#allocation5 + $0x10c] sm:$0x1]  ;;  %v2565_v62 = vrot.slane %v2213_v7, 6 }
  0xc8   :  { %14298 = vst [vmem:[#allocation17_spill] sm:$0xff] %v10532_v1  ;;  %v5736_v41 = vmul.f32 %v10497_v58, %v10532_v1  ;;  %v4984_v6 = vadd.f32 %v4944_v44, %v4274_v19  ;;  %v1152_v31 = vsel %vm383_vm4, %v1151_v17, %v1150_v59  ;;  %v1854_v28 = vsel %vm371_vm0, %v1853_v3, %v1501_v10  ;;  %v2923_v19 = vld [vmem:[#allocation5 + $0x114] sm:$0x1]  ;;  %v2925_v61 = vld [vmem:[#allocation5 + $0x124] sm:$0x1] }
  0xc9   :  { %v1154_v44 = vsel %vm386_vm5, %v1153_v4, %v1152_v31  ;;  %v1856_v26 = vsel %vm374_vm1, %v1855_v38, %v1854_v28  ;;  %v2567_v24 = vrot.slane %v2214_v49, 5  ;;  %v2569_v17 = vrot.slane %v2215_v13, 4  ;;  %v2921_v4 = vld [vmem:[#allocation5 + $0x104] sm:$0x1]  ;;  %v3631_v39 = vld [vmem:[#allocation5 + $0x105] sm:$0x1] }
  0xca   :  { %5778 = vadd.xlane.f32.xlu1 %v5734_v33  ;;  %5780 = vadd.xlane.f32.xlu0 %v5735_v22  ;;  %v1507_v33 = vld [vmem:[#allocation5 + $0x132] sm:$0x1]  ;;  %v1508_v22 = vld [vmem:[#allocation5 + $0x13a] sm:$0x1]  ;;  %v10548_v48 = vadd.f32 %v10521_v42, %v4984_v6  ;;  %v10552_v57 = vsel %vm389_vm6, %v1155_v30, %v1154_v44  ;;  %v1858_v0 = vsel %vm377_vm2, %v1857_v40, %v1856_v26  ;;  %v2571_v43 = vrot.slane %v2216_v16, 3 }
  0xcb   :  { %v1863_v15 = vrot.slane %v1507_v33, 2  ;;  %v1865_v14 = vrot.slane %v1508_v22, 1  ;;  %v1395_v37 = vmul.f32 %v10407_v20, %v10552_v57  ;;  %v1860_v27 = vsel %vm380_vm3, %v1859_v52, %v1858_v0  ;;  %v2927_v6 = vld [vmem:[#allocation5 + $0x134] sm:$0x1]  ;;  %v2928_v33 = vld [vmem:[#allocation5 + $0x13c] sm:$0x1] }
  0xcc   :  { %14299 = vst [vmem:[#allocation18_spill] sm:$0xff] %v10548_v48  ;;  %v5737_v42 = vmul.f32 %v10497_v58, %v10548_v48  ;;  %v1862_v8 = vsel %vm383_vm4, %v1861_v51, %v1860_v27  ;;  %v2564_v10 = vsel %vm371_vm0, %v2563_v12, %v2211_v45  ;;  %v2573_v46 = vrot.slane %v2217_v63, 2  ;;  %v3632_v7 = vld [vmem:[#allocation5 + $0x10d] sm:$0x1]  ;;  %v3633_v44 = vld [vmem:[#allocation5 + $0x115] sm:$0x1] }
  0xcd   :  { %v1435_v21 = vadd.f32 %v1395_v37, %v685_v35  ;;  %v1864_v30 = vsel %vm386_vm5, %v1863_v15, %v1862_v8  ;;  %v2566_v18 = vsel %vm374_vm1, %v2565_v62, %v2564_v10  ;;  %v2575_v3 = vrot.slane %v2218_v2, 1  ;;  %v3634_v26 = vld [vmem:[#allocation5 + $0x11d] sm:$0x1]  ;;  %v3635_v15 = vld [vmem:[#allocation5 + $0x125] sm:$0x1] }
  0xce   :  { %5782 = vadd.xlane.f32.xlu1 %v5736_v41  ;;  %5784 = vadd.xlane.f32.xlu0 %v5737_v42  ;;  %v2926_v41 = vld [vmem:[#allocation5 + $0x12c] sm:$0x1]  ;;  %v10566_v59 = vsel %vm389_vm6, %v1865_v14, %v1864_v30  ;;  %v2568_v35 = vsel %vm377_vm2, %v2567_v24, %v2566_v18  ;;  %v3273_v22 = vrot.slane %v2922_v23, 7  ;;  %v3275_v31 = vrot.slane %v2923_v19, 6  ;;  %v3636_v37 = vld [vmem:[#allocation5 + $0x12d] sm:$0x1] }
  0xcf   :  { %v2105_v28 = vmul.f32 %v10419_v5, %v10566_v59  ;;  %v2570_v38 = vsel %vm380_vm3, %v2569_v17, %v2568_v35  ;;  %v3277_v40 = vrot.slane %v2924_v60, 5  ;;  %v3279_v45 = vrot.slane %v2925_v61, 4  ;;  %v3637_v0 = vld [vmem:[#allocation5 + $0x135] sm:$0x1]  ;;  %v3638_v23 = vld [vmem:[#allocation5 + $0x13d] sm:$0x1] }
  0xd0   :  { %v2572_v52 = vsel %vm383_vm4, %v2571_v43, %v2570_v38  ;;  %v3274_v51 = vsel %vm371_vm0, %v3273_v22, %v2921_v4  ;;  %v3281_v49 = vrot.slane %v2926_v41, 3  ;;  %v3283_v13 = vrot.slane %v2927_v6, 2  ;;  %v4342_v8 = vld [vmem:[#allocation5 + $0x10e] sm:$0x1]  ;;  %v4343_v10 = vld [vmem:[#allocation5 + $0x116] sm:$0x1] }
  0xd1   :  { %v2145_v14 = vadd.f32 %v2105_v28, %v1435_v21  ;;  %v2574_v16 = vsel %vm386_vm5, %v2573_v46, %v2572_v52  ;;  %v3276_v63 = vsel %vm374_vm1, %v3275_v31, %v3274_v51  ;;  %v3285_v42 = vrot.slane %v2928_v33, 1  ;;  %v4341_v21 = vld [vmem:[#allocation5 + $0x106] sm:$0x1]  ;;  %v4344_v18 = vld [vmem:[#allocation5 + $0x11e] sm:$0x1] }
  0xd2   :  { %v10577_v2 = vsel %vm389_vm6, %v2575_v3, %v2574_v16  ;;  %v3278_v12 = vsel %vm377_vm2, %v3277_v40, %v3276_v63  ;;  %v3983_v27 = vrot.slane %v3632_v7, 7  ;;  %v3985_v62 = vrot.slane %v3633_v44, 6  ;;  %v4345_v46 = vld [vmem:[#allocation5 + $0x126] sm:$0x1]  ;;  %v4346_v33 = vld [vmem:[#allocation5 + $0x12e] sm:$0x1] }
  0xd3   :  { %v2815_v24 = vmul.f32 %v10431_v29, %v10577_v2  ;;  %v3280_v17 = vsel %vm380_vm3, %v3279_v45, %v3278_v12  ;;  %v3987_v4 = vrot.slane %v3634_v26, 5  ;;  %v3989_v19 = vrot.slane %v3635_v15, 4  ;;  %v4347_v22 = vld [vmem:[#allocation5 + $0x136] sm:$0x1]  ;;  %v4348_v38 = vld [vmem:[#allocation5 + $0x13e] sm:$0x1] }
  0xd4   :  { %v3282_v43 = vsel %vm383_vm4, %v3281_v49, %v3280_v17  ;;  %v3984_v60 = vsel %vm371_vm0, %v3983_v27, %v3631_v39  ;;  %v3991_v61 = vrot.slane %v3636_v37, 3  ;;  %v3993_v30 = vrot.slane %v3637_v0, 2  ;;  %v5051_v51 = vld [vmem:[#allocation5 + $0x107] sm:$0x1]  ;;  %v5052_v49 = vld [vmem:[#allocation5 + $0x10f] sm:$0x1] }
  0xd5   :  { %v2855_v3 = vadd.f32 %v2815_v24, %v2145_v14  ;;  %v3284_v41 = vsel %vm386_vm5, %v3283_v13, %v3282_v43  ;;  %v3986_v6 = vsel %vm374_vm1, %v3985_v62, %v3984_v60  ;;  %v3995_v35 = vrot.slane %v3638_v23, 1  ;;  %v5053_v13 = vld [vmem:[#allocation5 + $0x117] sm:$0x1]  ;;  %v5054_v63 = vld [vmem:[#allocation5 + $0x11f] sm:$0x1] }
  0xd6   :  { %v10588_v31 = vsel %vm389_vm6, %v3285_v42, %v3284_v41  ;;  %v3988_v28 = vsel %vm377_vm2, %v3987_v4, %v3986_v6  ;;  %v4693_v40 = vrot.slane %v4342_v8, 7  ;;  %v4695_v45 = vrot.slane %v4343_v10, 6  ;;  %v5055_v42 = vld [vmem:[#allocation5 + $0x127] sm:$0x1]  ;;  %v5056_v27 = vld [vmem:[#allocation5 + $0x12f] sm:$0x1] }
  0xd7   :  { %v3525_v39 = vmul.f32 %v10446_v54, %v10588_v31  ;;  %v3990_v7 = vsel %vm380_vm3, %v3989_v19, %v3988_v28  ;;  %v4697_v44 = vrot.slane %v4344_v18, 5  ;;  %v4699_v52 = vrot.slane %v4345_v46, 4  ;;  %v5057_v62 = vld [vmem:[#allocation5 + $0x137] sm:$0x1]  ;;  %v5058_v4 = vld [vmem:[#allocation5 + $0x13f] sm:$0x1] }
  0xd8   :  { %v3992_v26 = vsel %vm383_vm4, %v3991_v61, %v3990_v7  ;;  %v4694_v15 = vsel %vm371_vm0, %v4693_v40, %v4341_v21  ;;  %v4701_v14 = vrot.slane %v4346_v33, 3  ;;  %v4703_v16 = vrot.slane %v4347_v22, 2  ;;  %v82_v61 = vld [vmem:[#allocation5 + $0x140] sm:$0x1]  ;;  %v84_v18 = vld [vmem:[#allocation5 + $0x150] sm:$0x1] }
  0xd9   :  { %v3565_v37 = vadd.f32 %v3525_v39, %v2855_v3  ;;  %v3994_v0 = vsel %vm386_vm5, %v3993_v30, %v3992_v26  ;;  %v4696_v12 = vsel %vm374_vm1, %v4695_v45, %v4694_v15  ;;  %v4705_v23 = vrot.slane %v4348_v38, 1  ;;  %v83_v30 = vld [vmem:[#allocation5 + $0x148] sm:$0x1]  ;;  %v86_v33 = vld [vmem:[#allocation5 + $0x160] sm:$0x1] }
  0xda   :  { %v10599_v24 = vsel %vm389_vm6, %v3995_v35, %v3994_v0  ;;  %v4698_v17 = vsel %vm377_vm2, %v4697_v44, %v4696_v12  ;;  %v5403_v19 = vrot.slane %v5052_v49, 7  ;;  %v5405_v21 = vrot.slane %v5053_v13, 6  ;;  %v85_v35 = vld [vmem:[#allocation5 + $0x158] sm:$0x1]  ;;  %v87_v45 = vld [vmem:[#allocation5 + $0x168] sm:$0x1] }
  0xdb   :  { %v4235_v8 = vmul.f32 %v10456_v47, %v10599_v24  ;;  %v4700_v10 = vsel %vm380_vm3, %v4699_v52, %v4698_v17  ;;  %v5407_v43 = vrot.slane %v5054_v63, 5  ;;  %v5409_v60 = vrot.slane %v5055_v42, 4  ;;  %v88_v39 = vld [vmem:[#allocation5 + $0x170] sm:$0x1]  ;;  %v89_v52 = vld [vmem:[#allocation5 + $0x178] sm:$0x1] }
  0xdc   :  { %v4702_v46 = vsel %vm383_vm4, %v4701_v14, %v4700_v10  ;;  %v5404_v3 = vsel %vm371_vm0, %v5403_v19, %v5051_v51  ;;  %v5411_v41 = vrot.slane %v5056_v27, 3  ;;  %v5413_v6 = vrot.slane %v5057_v62, 2  ;;  %v800_v63 = vld [vmem:[#allocation5 + $0x149] sm:$0x1]  ;;  %v801_v42 = vld [vmem:[#allocation5 + $0x151] sm:$0x1] }
  0xdd   :  { %v4275_v22 = vadd.f32 %v4235_v8, %v3565_v37  ;;  %v4704_v28 = vsel %vm386_vm5, %v4703_v16, %v4702_v46  ;;  %v5406_v38 = vsel %vm374_vm1, %v5405_v21, %v5404_v3  ;;  %v5415_v40 = vrot.slane %v5058_v4, 1  ;;  %v799_v16 = vld [vmem:[#allocation5 + $0x141] sm:$0x1]  ;;  %v802_v27 = vld [vmem:[#allocation5 + $0x159] sm:$0x1] }
  0xde   :  { %v10610_v7 = vsel %vm389_vm6, %v4705_v23, %v4704_v28  ;;  %v5408_v44 = vsel %vm377_vm2, %v5407_v43, %v5406_v38  ;;  %v447_v49 = vrot.slane %v83_v30, 7  ;;  %v449_v51 = vrot.slane %v84_v18, 6  ;;  %v803_v62 = vld [vmem:[#allocation5 + $0x161] sm:$0x1]  ;;  %v804_v8 = vld [vmem:[#allocation5 + $0x169] sm:$0x1] }
  0xdf   :  { %v4945_v13 = vmul.f32 %v10465_v36, %v10610_v7  ;;  %v5410_v26 = vsel %vm380_vm3, %v5409_v60, %v5408_v44  ;;  %v451_v15 = vrot.slane %v85_v35, 5  ;;  %v453_v14 = vrot.slane %v86_v33, 4  ;;  %v805_v10 = vld [vmem:[#allocation5 + $0x171] sm:$0x1]  ;;  %v806_v30 = vld [vmem:[#allocation5 + $0x179] sm:$0x1] }
  0xe0   :  { %v5412_v37 = vsel %vm383_vm4, %v5411_v41, %v5410_v26  ;;  %v448_v0 = vsel %vm371_vm0, %v447_v49, %v82_v61  ;;  %v455_v12 = vrot.slane %v87_v45, 3  ;;  %v457_v23 = vrot.slane %v88_v39, 2  ;;  %v1510_v35 = vld [vmem:[#allocation5 + $0x14a] sm:$0x1]  ;;  %v1511_v33 = vld [vmem:[#allocation5 + $0x152] sm:$0x1] }
  0xe1   :  { %v4985_v17 = vadd.f32 %v4945_v13, %v4275_v22  ;;  %v5414_v4 = vsel %vm386_vm5, %v5413_v6, %v5412_v37  ;;  %v450_v19 = vsel %vm374_vm1, %v449_v51, %v448_v0  ;;  %v459_v21 = vrot.slane %v89_v52, 1  ;;  %v1509_v45 = vld [vmem:[#allocation5 + $0x142] sm:$0x1]  ;;  %v1512_v39 = vld [vmem:[#allocation5 + $0x15a] sm:$0x1] }
  0xe2   :  { %v10621_v43 = vsel %vm389_vm6, %v5415_v40, %v5414_v4  ;;  %v452_v60 = vsel %vm377_vm2, %v451_v15, %v450_v19  ;;  %v1157_v18 = vrot.slane %v800_v63, 7  ;;  %v1159_v61 = vrot.slane %v801_v42, 6  ;;  %v1513_v13 = vld [vmem:[#allocation5 + $0x162] sm:$0x1]  ;;  %v1514_v26 = vld [vmem:[#allocation5 + $0x16a] sm:$0x1] }
  0xe3   :  { %v5655_v46 = vmul.f32 %v10499_v53, %v10621_v43  ;;  %v454_v3 = vsel %vm380_vm3, %v453_v14, %v452_v60  ;;  %v1161_v41 = vrot.slane %v802_v27, 5  ;;  %v1163_v6 = vrot.slane %v803_v62, 4  ;;  %v1515_v63 = vld [vmem:[#allocation5 + $0x172] sm:$0x1]  ;;  %v2219_v62 = vld [vmem:[#allocation5 + $0x143] sm:$0x1] }
  0xe4   :  { %v456_v22 = vsel %vm383_vm4, %v455_v12, %v454_v3  ;;  %v1158_v28 = vsel %vm371_vm0, %v1157_v18, %v799_v16  ;;  %v1165_v38 = vrot.slane %v804_v8, 3  ;;  %v1167_v40 = vrot.slane %v805_v10, 2  ;;  %v1516_v16 = vld [vmem:[#allocation5 + $0x17a] sm:$0x1]  ;;  %v2221_v4 = vld [vmem:[#allocation5 + $0x153] sm:$0x1] }
  0xe5   :  { %v10629_v44 = vadd.f32 %v5655_v46, %v4985_v17  ;;  %v458_v52 = vsel %vm386_vm5, %v457_v23, %v456_v22  ;;  %v1160_v49 = vsel %vm374_vm1, %v1159_v61, %v1158_v28  ;;  %v1169_v51 = vrot.slane %v806_v30, 1  ;;  %v2220_v17 = vld [vmem:[#allocation5 + $0x14b] sm:$0x1]  ;;  %v2222_v60 = vld [vmem:[#allocation5 + $0x15b] sm:$0x1] }
  0xe6   :  { %v10634_v15 = vsel %vm389_vm6, %v459_v21, %v458_v52  ;;  %v1162_v14 = vsel %vm377_vm2, %v1161_v41, %v1160_v49  ;;  %v1867_v42 = vrot.slane %v1510_v35, 7  ;;  %v1869_v37 = vrot.slane %v1511_v33, 6  ;;  %v2223_v30 = vld [vmem:[#allocation5 + $0x163] sm:$0x1]  ;;  %v2224_v3 = vld [vmem:[#allocation5 + $0x16b] sm:$0x1] }
  0xe7   :  { %14300 = vst [vmem:[#allocation19_spill] sm:$0xff] %v10629_v44  ;;  %v5738_v0 = vmul.f32 %v10497_v58, %v10629_v44  ;;  %v686_v12 = vmul.f32 %v10393_v32, %v10634_v15  ;;  %v1164_v23 = vsel %vm380_vm3, %v1163_v6, %v1162_v14  ;;  %v1871_v27 = vrot.slane %v1512_v39, 5  ;;  %v2225_v41 = vld [vmem:[#allocation5 + $0x173] sm:$0x1]  ;;  %v2226_v33 = vld [vmem:[#allocation5 + $0x17b] sm:$0x1] }
  0xe8   :  { %v1166_v19 = vsel %vm383_vm4, %v1165_v38, %v1164_v23  ;;  %v1868_v21 = vsel %vm371_vm0, %v1867_v42, %v1509_v45  ;;  %v1873_v8 = vrot.slane %v1513_v13, 4  ;;  %v1875_v10 = vrot.slane %v1514_v26, 3  ;;  %v2929_v52 = vld [vmem:[#allocation5 + $0x144] sm:$0x1]  ;;  %v2930_v49 = vld [vmem:[#allocation5 + $0x14c] sm:$0x1] }
  0xe9   :  { %5786 = vadd.xlane.f32.xlu1 %v5738_v0  ;;  %v1168_v18 = vsel %vm386_vm5, %v1167_v40, %v1166_v19  ;;  %v1870_v61 = vsel %vm374_vm1, %v1869_v37, %v1868_v21  ;;  %v1877_v32 = vrot.slane %v1515_v63, 2  ;;  %v1879_v46 = vrot.slane %v1516_v16, 1  ;;  %v2931_v13 = vld [vmem:[#allocation5 + $0x154] sm:$0x1]  ;;  %v2932_v16 = vld [vmem:[#allocation5 + $0x15c] sm:$0x1] }
  0xea   :  { %v10647_v6 = vsel %vm389_vm6, %v1169_v51, %v1168_v18  ;;  %v1872_v35 = vsel %vm377_vm2, %v1871_v27, %v1870_v61  ;;  %v2577_v22 = vrot.slane %v2220_v17, 7  ;;  %v2579_v28 = vrot.slane %v2221_v4, 6  ;;  %v2933_v42 = vld [vmem:[#allocation5 + $0x164] sm:$0x1]  ;;  %v2934_v27 = vld [vmem:[#allocation5 + $0x16c] sm:$0x1] }
  0xeb   :  { %v1396_v38 = vmul.f32 %v10407_v20, %v10647_v6  ;;  %v1874_v45 = vsel %vm380_vm3, %v1873_v8, %v1872_v35  ;;  %v2581_v40 = vrot.slane %v2222_v60, 5  ;;  %v2583_v39 = vrot.slane %v2223_v30, 4  ;;  %v2935_v17 = vld [vmem:[#allocation5 + $0x174] sm:$0x1]  ;;  %v2936_v21 = vld [vmem:[#allocation5 + $0x17c] sm:$0x1] }
  0xec   :  { %v1876_v26 = vsel %vm383_vm4, %v1875_v10, %v1874_v45  ;;  %v2578_v51 = vsel %vm371_vm0, %v2577_v22, %v2219_v62  ;;  %v2585_v14 = vrot.slane %v2224_v3, 3  ;;  %v2587_v63 = vrot.slane %v2225_v41, 2  ;;  %v3639_v18 = vld [vmem:[#allocation5 + $0x145] sm:$0x1]  ;;  %v3640_v61 = vld [vmem:[#allocation5 + $0x14d] sm:$0x1] }
  0xed   :  { %v1436_v37 = vadd.f32 %v1396_v38, %v686_v12  ;;  %v1878_v0 = vsel %vm386_vm5, %v1877_v32, %v1876_v26  ;;  %v2580_v20 = vsel %vm374_vm1, %v2579_v28, %v2578_v51  ;;  %v2589_v23 = vrot.slane %v2226_v33, 1  ;;  %v3641_v32 = vld [vmem:[#allocation5 + $0x155] sm:$0x1]  ;;  %v3642_v33 = vld [vmem:[#allocation5 + $0x15d] sm:$0x1] }
  0xee   :  { %v10658_v4 = vsel %vm389_vm6, %v1879_v46, %v1878_v0  ;;  %v2582_v19 = vsel %vm377_vm2, %v2581_v40, %v2580_v20  ;;  %v3287_v8 = vrot.slane %v2930_v49, 7  ;;  %v3289_v62 = vrot.slane %v2931_v13, 6  ;;  %v3643_v22 = vld [vmem:[#allocation5 + $0x165] sm:$0x1]  ;;  %v3644_v40 = vld [vmem:[#allocation5 + $0x16d] sm:$0x1] }
  0xef   :  { %v2106_v10 = vmul.f32 %v10419_v5, %v10658_v4  ;;  %v2584_v12 = vsel %vm380_vm3, %v2583_v39, %v2582_v19  ;;  %v3291_v60 = vrot.slane %v2932_v16, 5  ;;  %v3293_v30 = vrot.slane %v2933_v42, 4  ;;  %v3645_v39 = vld [vmem:[#allocation5 + $0x175] sm:$0x1]  ;;  %v3646_v26 = vld [vmem:[#allocation5 + $0x17d] sm:$0x1] }
  0xf0   :  { %v2586_v3 = vsel %vm383_vm4, %v2585_v14, %v2584_v12  ;;  %v3288_v46 = vsel %vm371_vm0, %v3287_v8, %v2929_v52  ;;  %v3295_v41 = vrot.slane %v2934_v27, 3  ;;  %v3297_v35 = vrot.slane %v2935_v17, 2  ;;  %v4350_v0 = vld [vmem:[#allocation5 + $0x14e] sm:$0x1]  ;;  %v4351_v20 = vld [vmem:[#allocation5 + $0x156] sm:$0x1] }
  0xf1   :  { %v2146_v28 = vadd.f32 %v2106_v10, %v1436_v37  ;;  %v2588_v38 = vsel %vm386_vm5, %v2587_v63, %v2586_v3  ;;  %v3290_v5 = vsel %vm374_vm1, %v3289_v62, %v3288_v46  ;;  %v3299_v45 = vrot.slane %v2936_v21, 1  ;;  %v4349_v37 = vld [vmem:[#allocation5 + $0x146] sm:$0x1]  ;;  %v4352_v21 = vld [vmem:[#allocation5 + $0x15e] sm:$0x1] }
  0xf2   :  { %v10669_v49 = vsel %vm389_vm6, %v2589_v23, %v2588_v38  ;;  %v3292_v13 = vsel %vm377_vm2, %v3291_v60, %v3290_v5  ;;  %v3997_v51 = vrot.slane %v3640_v61, 7  ;;  %v3999_v52 = vrot.slane %v3641_v32, 6  ;;  %v4353_v8 = vld [vmem:[#allocation5 + $0x166] sm:$0x1]  ;;  %v4354_v60 = vld [vmem:[#allocation5 + $0x16e] sm:$0x1] }
  0xf3   :  { %v2816_v14 = vmul.f32 %v10431_v29, %v10669_v49  ;;  %v3294_v16 = vsel %vm380_vm3, %v3293_v30, %v3292_v13  ;;  %v4001_v42 = vrot.slane %v3642_v33, 5  ;;  %v4003_v63 = vrot.slane %v3643_v22, 4  ;;  %v4355_v30 = vld [vmem:[#allocation5 + $0x176] sm:$0x1]  ;;  %v4356_v3 = vld [vmem:[#allocation5 + $0x17e] sm:$0x1] }
  0xf4   :  { %v3296_v27 = vsel %vm383_vm4, %v3295_v41, %v3294_v16  ;;  %v3998_v23 = vsel %vm371_vm0, %v3997_v51, %v3639_v18  ;;  %v4005_v17 = vrot.slane %v3644_v40, 3  ;;  %v4007_v19 = vrot.slane %v3645_v39, 2  ;;  %v5060_v38 = vld [vmem:[#allocation5 + $0x14f] sm:$0x1]  ;;  %v5061_v5 = vld [vmem:[#allocation5 + $0x157] sm:$0x1] }
  0xf5   :  { %v2856_v62 = vadd.f32 %v2816_v14, %v2146_v28  ;;  %v3298_v10 = vsel %vm386_vm5, %v3297_v35, %v3296_v27  ;;  %v4000_v29 = vsel %vm374_vm1, %v3999_v52, %v3998_v23  ;;  %v4009_v12 = vrot.slane %v3646_v26, 1  ;;  %v5059_v28 = vld [vmem:[#allocation5 + $0x147] sm:$0x1]  ;;  %v5062_v26 = vld [vmem:[#allocation5 + $0x15f] sm:$0x1] }
  0xf6   :  { %v10680_v61 = vsel %vm389_vm6, %v3299_v45, %v3298_v10  ;;  %v4002_v32 = vsel %vm377_vm2, %v4001_v42, %v4000_v29  ;;  %v4707_v46 = vrot.slane %v4350_v0, 7  ;;  %v4709_v18 = vrot.slane %v4351_v20, 6  ;;  %v5063_v51 = vld [vmem:[#allocation5 + $0x167] sm:$0x1]  ;;  %v5064_v42 = vld [vmem:[#allocation5 + $0x16f] sm:$0x1] }
  0xf7   :  { %v3526_v41 = vmul.f32 %v10446_v54, %v10680_v61  ;;  %v4004_v33 = vsel %vm380_vm3, %v4003_v63, %v4002_v32  ;;  %v4711_v22 = vrot.slane %v4352_v21, 5  ;;  %v4713_v35 = vrot.slane %v4353_v8, 4  ;;  %v5065_v63 = vld [vmem:[#allocation5 + $0x177] sm:$0x1]  ;;  %v5066_v27 = vld [vmem:[#allocation5 + $0x17f] sm:$0x1] }
  0xf8   :  { %v4006_v40 = vsel %vm383_vm4, %v4005_v17, %v4004_v33  ;;  %v4708_v45 = vsel %vm371_vm0, %v4707_v46, %v4349_v37  ;;  %v4715_v39 = vrot.slane %v4354_v60, 3  ;;  %v4717_v13 = vrot.slane %v4355_v30, 2  ;;  %v10704_v33 = vld [vmem:[#allocation2 + $0x9] ss:$0 sm:$0xff]  ;;  %v5082_v48 = vld [vmem:[#allocation5 + $0x1ff] sm:$0x1] }
  0xf9   :  { %v3566_v52 = vadd.f32 %v3526_v41, %v2856_v62  ;;  %v4008_v14 = vsel %vm386_vm5, %v4007_v19, %v4006_v40  ;;  %v4710_v54 = vsel %vm374_vm1, %v4709_v18, %v4708_v45  ;;  %v4719_v16 = vrot.slane %v4356_v3, 1  ;;  %v10700_v18 = vld [vmem:[#allocation2 + $0x8] ss:$0 sm:$0xff]  ;;  %v10714_v40 = vld [vmem:[#allocation2 + $0xb] ss:$0 sm:$0xff] }
  0xfa   :  { %v4010_v0 = vsel %vm389_vm6, %v4009_v12, %v4008_v14  ;;  %v4712_v20 = vsel %vm377_vm2, %v4711_v22, %v4710_v54  ;;  %v5417_v23 = vrot.slane %v5060_v38, 7  ;;  %v5419_v17 = vrot.slane %v5061_v5, 6  ;;  %v10710_v38 = vld [vmem:[#allocation2 + $0xa] ss:$0 sm:$0xff]  ;;  %v10732_v14 = vld [vmem:[#allocation2 + $0xf] ss:$0 sm:$0xff] }
  0xfb   :  { %v4236_v37 = vmul.f32 %v10456_v47, %v4010_v0  ;;  %v4714_v21 = vsel %vm380_vm3, %v4713_v35, %v4712_v20  ;;  %v5421_v8 = vrot.slane %v5062_v26, 5  ;;  %v5423_v62 = vrot.slane %v5063_v51, 4  ;;  %v92_v20 = vld [vmem:[#allocation5 + $0x190] sm:$0x1]  ;;  %v2337_v1 = vld [vmem:[#allocation5 + $0x4f3] sm:$0x1] }
  0xfc   :  { %v4716_v19 = vsel %vm383_vm4, %v4715_v39, %v4714_v21  ;;  %v5418_v10 = vsel %vm371_vm0, %v5417_v23, %v5059_v28  ;;  %v5425_v29 = vrot.slane %v5064_v42, 3  ;;  %v5427_v60 = vrot.slane %v5065_v63, 2  ;;  %v91_v63 = vld [vmem:[#allocation5 + $0x188] sm:$0x1] }
  0xfd   :  { %v4276_v30 = vadd.f32 %v4236_v37, %v3566_v52  ;;  %v4718_v12 = vsel %vm386_vm5, %v4717_v13, %v4716_v19  ;;  %v5420_v32 = vsel %vm374_vm1, %v5419_v17, %v5418_v10  ;;  %v5429_v3 = vrot.slane %v5066_v27, 1  ;;  %v10719_v13 = vld [vmem:[#allocation2 + $0xc] ss:$0 sm:$0xff]  ;;  %v10728_v52 = vld [vmem:[#allocation2 + $0xe] ss:$0 sm:$0xff] }
  0xfe   :  { %v4720_v46 = vsel %vm389_vm6, %v4719_v16, %v4718_v12  ;;  %v5422_v47 = vsel %vm377_vm2, %v5421_v8, %v5420_v32  ;;  %v687_v41 = vmul.f32 %v10700_v18, %v10537_v55  ;;  %v1397_v22 = vmul.f32 %v10704_v33, %v10552_v57  ;;  %v10723_v57 = vld [vmem:[#allocation2 + $0xd] ss:$0 sm:$0xff]  ;;  %v93_v17 = vld [vmem:[#allocation5 + $0x198] sm:$0x1]  ;;  %v94_v37 = vld [vmem:[#allocation5 + $0x1a0] sm:$0x1] }
  0xff   :  { %v4946_v35 = vmul.f32 %v10465_v36, %v4720_v46  ;;  %v5424_v28 = vsel %vm380_vm3, %v5423_v62, %v5422_v47  ;;  %v2107_v5 = vmul.f32 %v10710_v38, %v10566_v59  ;;  %v2817_v45 = vmul.f32 %v10714_v40, %v10577_v2  ;;  %v90_v62 = vld [vmem:[#allocation5 + $0x180] sm:$0x1]  ;;  %v95_v19 = vld [vmem:[#allocation5 + $0x1a8] sm:$0x1]  ;;  %v809_v47 = vld [vmem:[#allocation5 + $0x191] sm:$0x1] }
 0x100   :  { %v5426_v55 = vsel %vm383_vm4, %v5425_v29, %v5424_v28  ;;  %v1437_v39 = vadd.f32 %v1397_v22, %v687_v41  ;;  %v3527_v36 = vmul.f32 %v10719_v13, %v10588_v31  ;;  %v4237_v26 = vmul.f32 %v10723_v57, %v10599_v24  ;;  %v807_v28 = vld [vmem:[#allocation5 + $0x181] sm:$0x1] }
 0x101   :  { %v4986_v51 = vadd.f32 %v4946_v35, %v4276_v30  ;;  %v5428_v59 = vsel %vm386_vm5, %v5427_v60, %v5426_v55  ;;  %v4947_v2 = vmul.f32 %v10728_v52, %v10610_v7  ;;  %v5657_v54 = vmul.f32 %v10732_v14, %v10621_v43 }
 0x102   :  { %v5430_v31 = vsel %vm389_vm6, %v5429_v3, %v5428_v59  ;;  %v2147_v16 = vadd.f32 %v2107_v5, %v1437_v39  ;;  %v688_v42 = vmul.f32 %v10700_v18, %v10634_v15  ;;  %v1398_v24 = vmul.f32 %v10704_v33, %v10647_v6  ;;  %v811_v5 = vld [vmem:[#allocation5 + $0x1a1] sm:$0x1]  ;;  %v813_v59 = vld [vmem:[#allocation5 + $0x1b1] sm:$0x1] }
 0x103   :  { %v5656_v27 = vmul.f32 %v10499_v53, %v5430_v31  ;;  %v2108_v7 = vmul.f32 %v10710_v38, %v10658_v4  ;;  %v2818_v23 = vmul.f32 %v10714_v40, %v10669_v49  ;;  %v3528_v43 = vmul.f32 %v10719_v13, %v10680_v61  ;;  %v96_v53 = vld [vmem:[#allocation5 + $0x1b0] sm:$0x1]  ;;  %v97_v49 = vld [vmem:[#allocation5 + $0x1b8] sm:$0x1]  ;;  %v808_v61 = vld [vmem:[#allocation5 + $0x189] sm:$0x1] }
 0x104   :  { %v2857_v21 = vadd.f32 %v2817_v45, %v2147_v16  ;;  %v1438_v15 = vadd.f32 %v1398_v24, %v688_v42  ;;  %v4238_v8 = vmul.f32 %v10723_v57, %v4010_v0  ;;  %v4948_v6 = vmul.f32 %v10728_v52, %v4720_v46  ;;  %v810_v0 = vld [vmem:[#allocation5 + $0x199] sm:$0x1] }
 0x105   :  { %v10750_v10 = vadd.f32 %v5656_v27, %v4986_v51  ;;  %v10753_v4 = vmul.f32 %v10732_v14, %v5430_v31  ;;  %v461_v29 = vrot.slane %v91_v63, 7  ;;  %v463_v60 = vrot.slane %v92_v20, 6 }
 0x106   :  { %v3567_v30 = vadd.f32 %v3527_v36, %v2857_v21  ;;  %v2148_v12 = vadd.f32 %v2108_v7, %v1438_v15  ;;  %v465_v32 = vrot.slane %v93_v17, 5  ;;  %v467_v3 = vrot.slane %v94_v37, 4  ;;  %v812_v36 = vld [vmem:[#allocation5 + $0x1a9] sm:$0x1]  ;;  %v814_v7 = vld [vmem:[#allocation5 + $0x1b9] sm:$0x1] }
 0x107   :  { %14301 = vst [vmem:[#allocation20_spill] sm:$0xff] %v10750_v10  ;;  %v5739_v46 = vmul.f32 %v10497_v58, %v10750_v10  ;;  %v462_v41 = vsel %vm371_vm0, %v461_v29, %v90_v62  ;;  %v469_v22 = vrot.slane %v95_v19, 3  ;;  %v471_v35 = vrot.slane %v96_v53, 2  ;;  %v1518_v37 = vld [vmem:[#allocation5 + $0x18a] sm:$0x1] }
 0x108   :  { %v4277_v45 = vadd.f32 %v4237_v26, %v3567_v30  ;;  %v2858_v55 = vadd.f32 %v2818_v23, %v2148_v12  ;;  %v464_v39 = vsel %vm374_vm1, %v463_v60, %v462_v41  ;;  %v473_v51 = vrot.slane %v97_v49, 1  ;;  %v1520_v29 = vld [vmem:[#allocation5 + $0x19a] sm:$0x1]  ;;  %v1521_v12 = vld [vmem:[#allocation5 + $0x1a2] sm:$0x1] }
 0x109   :  { %5788 = vadd.xlane.f32.xlu0 %v5739_v46  ;;  %v466_v31 = vsel %vm377_vm2, %v465_v32, %v464_v39  ;;  %v1171_v16 = vrot.slane %v808_v61, 7  ;;  %v1173_v42 = vrot.slane %v809_v47, 6  ;;  %v1175_v24 = vrot.slane %v810_v0, 5  ;;  %v1522_v32 = vld [vmem:[#allocation5 + $0x1aa] sm:$0x1] }
 0x10a   :  { %v4987_v63 = vadd.f32 %v4947_v2, %v4277_v45  ;;  %v3568_v20 = vadd.f32 %v3528_v43, %v2858_v55  ;;  %v468_v27 = vsel %vm380_vm3, %v467_v3, %v466_v31  ;;  %v1177_v17 = vrot.slane %v811_v5, 4  ;;  %v1517_v2 = vld [vmem:[#allocation5 + $0x182] sm:$0x1]  ;;  %v1519_v43 = vld [vmem:[#allocation5 + $0x192] sm:$0x1] }
 0x10b   :  { %v470_v26 = vsel %vm383_vm4, %v469_v22, %v468_v27  ;;  %v1172_v23 = vsel %vm371_vm0, %v1171_v16, %v807_v28  ;;  %v1179_v21 = vrot.slane %v812_v36, 3  ;;  %v1181_v15 = vrot.slane %v813_v59, 2  ;;  %v10773_v47 = vld [vmem:[#allocation2] ss:$0 sm:$0xff]  ;;  %v1523_v41 = vld [vmem:[#allocation5 + $0x1b2] sm:$0x1] }
 0x10c   :  { %v10763_v62 = vadd.f32 %v5657_v54, %v4987_v63  ;;  %v4278_v19 = vadd.f32 %v4238_v8, %v3568_v20  ;;  %v472_v53 = vsel %vm386_vm5, %v471_v35, %v470_v26  ;;  %v1174_v49 = vsel %vm374_vm1, %v1173_v42, %v1172_v23  ;;  %v1524_v22 = vld [vmem:[#allocation5 + $0x1ba] sm:$0x1]  ;;  %v2227_v55 = vld [vmem:[#allocation5 + $0x183] sm:$0x1]  ;;  %v2228_v39 = vld [vmem:[#allocation5 + $0x18b] sm:$0x1] }
 0x10d   :  { %v10768_v60 = vsel %vm389_vm6, %v473_v51, %v472_v53  ;;  %v1176_v61 = vsel %vm377_vm2, %v1175_v24, %v1174_v49  ;;  %v1183_v30 = vrot.slane %v814_v7, 1  ;;  %v1881_v3 = vrot.slane %v1518_v37, 7  ;;  %v2229_v51 = vld [vmem:[#allocation5 + $0x193] sm:$0x1]  ;;  %v2230_v16 = vld [vmem:[#allocation5 + $0x19b] sm:$0x1] }
 0x10e   :  { %14302 = vst [vmem:[#allocation21_spill] sm:$0xff] %v10763_v62  ;;  %v5740_v54 = vmul.f32 %v10497_v58, %v10763_v62  ;;  %v4988_v8 = vadd.f32 %v4948_v6, %v4278_v19  ;;  %v689_v0 = vmul.f32 %v10773_v47, %v10768_v60  ;;  %v1178_v46 = vsel %vm380_vm3, %v1177_v17, %v1176_v61  ;;  %v2231_v42 = vld [vmem:[#allocation5 + $0x1a3] sm:$0x1]  ;;  %v2232_v7 = vld [vmem:[#allocation5 + $0x1ab] sm:$0x1] }
 0x10f   :  { %v1180_v35 = vsel %vm383_vm4, %v1179_v21, %v1178_v46  ;;  %v1882_v28 = vsel %vm371_vm0, %v1881_v3, %v1517_v2  ;;  %v1883_v5 = vrot.slane %v1519_v43, 6  ;;  %v1885_v45 = vrot.slane %v1520_v29, 5  ;;  %v2233_v17 = vld [vmem:[#allocation5 + $0x1b3] sm:$0x1]  ;;  %v2234_v21 = vld [vmem:[#allocation5 + $0x1bb] sm:$0x1] }
 0x110   :  { %5790 = vadd.xlane.f32.xlu1 %v5740_v54  ;;  %v10781_v6 = vadd.f32 %v10753_v4, %v4988_v8  ;;  %v1182_v36 = vsel %vm386_vm5, %v1181_v15, %v1180_v35  ;;  %v1887_v59 = vrot.slane %v1521_v12, 4  ;;  %v1889_v31 = vrot.slane %v1522_v32, 3  ;;  %v10790_v4 = vld [vmem:[#allocation2 + $0x1] ss:$0 sm:$0xff]  ;;  %v2938_v19 = vld [vmem:[#allocation5 + $0x18c] sm:$0x1] }
 0x111   :  { %v10785_v24 = vsel %vm389_vm6, %v1183_v30, %v1182_v36  ;;  %v1884_v63 = vsel %vm374_vm1, %v1883_v5, %v1882_v28  ;;  %v1891_v20 = vrot.slane %v1523_v41, 2  ;;  %v1893_v27 = vrot.slane %v1524_v22, 1  ;;  %v2937_v29 = vld [vmem:[#allocation5 + $0x184] sm:$0x1]  ;;  %v2939_v61 = vld [vmem:[#allocation5 + $0x194] sm:$0x1] }
 0x112   :  { %14303 = vst [vmem:[#allocation22_spill] sm:$0xff] %v10781_v6  ;;  %v5741_v37 = vmul.f32 %v10497_v58, %v10781_v6  ;;  %v1399_v26 = vmul.f32 %v10790_v4, %v10785_v24  ;;  %v1886_v23 = vsel %vm377_vm2, %v1885_v45, %v1884_v63  ;;  %v2591_v15 = vrot.slane %v2228_v39, 7  ;;  %v2940_v54 = vld [vmem:[#allocation5 + $0x19c] sm:$0x1]  ;;  %v2941_v8 = vld [vmem:[#allocation5 + $0x1a4] sm:$0x1] }
 0x113   :  { %v1888_v53 = vsel %vm380_vm3, %v1887_v59, %v1886_v23  ;;  %v2593_v49 = vrot.slane %v2229_v51, 6  ;;  %v2595_v2 = vrot.slane %v2230_v16, 5  ;;  %v2597_v43 = vrot.slane %v2231_v42, 4  ;;  %v2942_v28 = vld [vmem:[#allocation5 + $0x1ac] sm:$0x1] }
 0x114   :  { %5792 = vadd.xlane.f32.xlu0 %v5741_v37  ;;  %v1439_v30 = vadd.f32 %v1399_v26, %v689_v0  ;;  %v1890_v12 = vsel %vm383_vm4, %v1889_v31, %v1888_v53  ;;  %v2592_v32 = vsel %vm371_vm0, %v2591_v15, %v2227_v55  ;;  %v2599_v3 = vrot.slane %v2232_v7, 3  ;;  %v2943_v5 = vld [vmem:[#allocation5 + $0x1b4] sm:$0x1]  ;;  %v2944_v39 = vld [vmem:[#allocation5 + $0x1bc] sm:$0x1] }
 0x115   :  { %v1892_v46 = vsel %vm386_vm5, %v1891_v20, %v1890_v12  ;;  %v2594_v41 = vsel %vm374_vm1, %v2593_v49, %v2592_v32  ;;  %v2601_v22 = vrot.slane %v2233_v17, 2  ;;  %v2603_v35 = vrot.slane %v2234_v21, 1  ;;  %v10804_v55 = vld [vmem:[#allocation2 + $0x2] ss:$0 sm:$0xff]  ;;  %v3647_v63 = vld [vmem:[#allocation5 + $0x185] sm:$0x1] }
 0x116   :  { %v10801_v45 = vsel %vm389_vm6, %v1893_v27, %v1892_v46  ;;  %v2596_v0 = vsel %vm377_vm2, %v2595_v2, %v2594_v41  ;;  %v3301_v51 = vrot.slane %v2938_v19, 7  ;;  %v3303_v36 = vrot.slane %v2939_v61, 6  ;;  %v3648_v20 = vld [vmem:[#allocation5 + $0x18d] sm:$0x1]  ;;  %v3649_v7 = vld [vmem:[#allocation5 + $0x195] sm:$0x1] }
 0x117   :  { %v2109_v59 = vmul.f32 %v10804_v55, %v10801_v45  ;;  %v2598_v31 = vsel %vm380_vm3, %v2597_v43, %v2596_v0  ;;  %v3305_v16 = vrot.slane %v2940_v54, 5  ;;  %v3307_v42 = vrot.slane %v2941_v8, 4  ;;  %v3650_v23 = vld [vmem:[#allocation5 + $0x19d] sm:$0x1]  ;;  %v3651_v21 = vld [vmem:[#allocation5 + $0x1a5] sm:$0x1] }
 0x118   :  { %v2600_v27 = vsel %vm383_vm4, %v2599_v3, %v2598_v31  ;;  %v3302_v17 = vsel %vm371_vm0, %v3301_v51, %v2937_v29  ;;  %v3309_v37 = vrot.slane %v2942_v28, 3  ;;  %v3311_v26 = vrot.slane %v2943_v5, 2  ;;  %v3652_v2 = vld [vmem:[#allocation5 + $0x1ad] sm:$0x1]  ;;  %v3653_v43 = vld [vmem:[#allocation5 + $0x1b5] sm:$0x1] }
 0x119   :  { %v2149_v15 = vadd.f32 %v2109_v59, %v1439_v30  ;;  %v2602_v19 = vsel %vm386_vm5, %v2601_v22, %v2600_v27  ;;  %v3304_v53 = vsel %vm374_vm1, %v3303_v36, %v3302_v17  ;;  %v3313_v49 = vrot.slane %v2944_v39, 1  ;;  %v3654_v32 = vld [vmem:[#allocation5 + $0x1bd] sm:$0x1]  ;;  %v10817_v54 = vld [vmem:[#allocation2 + $0x3] ss:$0 sm:$0xff] }
 0x11a   :  { %v10814_v61 = vsel %vm389_vm6, %v2603_v35, %v2602_v19  ;;  %v3306_v12 = vsel %vm377_vm2, %v3305_v16, %v3304_v53  ;;  %v4011_v3 = vrot.slane %v3648_v20, 7  ;;  %v4013_v29 = vrot.slane %v3649_v7, 6  ;;  %v4357_v22 = vld [vmem:[#allocation5 + $0x186] sm:$0x1]  ;;  %v4358_v28 = vld [vmem:[#allocation5 + $0x18e] sm:$0x1] }
 0x11b   :  { %v2819_v30 = vmul.f32 %v10817_v54, %v10814_v61  ;;  %v3308_v8 = vsel %vm380_vm3, %v3307_v42, %v3306_v12  ;;  %v4015_v46 = vrot.slane %v3650_v23, 5  ;;  %v4017_v41 = vrot.slane %v3651_v21, 4  ;;  %v4359_v5 = vld [vmem:[#allocation5 + $0x196] sm:$0x1]  ;;  %v4360_v36 = vld [vmem:[#allocation5 + $0x19e] sm:$0x1] }
 0x11c   :  { %v3310_v35 = vsel %vm383_vm4, %v3309_v37, %v3308_v8  ;;  %v4012_v0 = vsel %vm371_vm0, %v4011_v3, %v3647_v63  ;;  %v4019_v39 = vrot.slane %v3652_v2, 3  ;;  %v4021_v51 = vrot.slane %v3653_v43, 2  ;;  %v4361_v59 = vld [vmem:[#allocation5 + $0x1a6] sm:$0x1]  ;;  %v4362_v42 = vld [vmem:[#allocation5 + $0x1ae] sm:$0x1] }
 0x11d   :  { %v2859_v31 = vadd.f32 %v2819_v30, %v2149_v15  ;;  %v3312_v16 = vsel %vm386_vm5, %v3311_v26, %v3310_v35  ;;  %v4014_v20 = vsel %vm374_vm1, %v4013_v29, %v4012_v0  ;;  %v4023_v7 = vrot.slane %v3654_v32, 1  ;;  %v4363_v27 = vld [vmem:[#allocation5 + $0x1b6] sm:$0x1]  ;;  %v4364_v37 = vld [vmem:[#allocation5 + $0x1be] sm:$0x1] }
 0x11e   :  { %v10827_v17 = vsel %vm389_vm6, %v3313_v49, %v3312_v16  ;;  %v4016_v23 = vsel %vm377_vm2, %v4015_v46, %v4014_v20  ;;  %v4721_v21 = vrot.slane %v4358_v28, 7  ;;  %v4723_v63 = vrot.slane %v4359_v5, 6  ;;  %v10830_v19 = vld [vmem:[#allocation2 + $0x4] ss:$0 sm:$0xff]  ;;  %v5067_v43 = vld [vmem:[#allocation5 + $0x187] sm:$0x1] }
 0x11f   :  { %v3529_v15 = vmul.f32 %v10830_v19, %v10827_v17  ;;  %v4018_v26 = vsel %vm380_vm3, %v4017_v41, %v4016_v23  ;;  %v4725_v53 = vrot.slane %v4360_v36, 5  ;;  %v4727_v2 = vrot.slane %v4361_v59, 4  ;;  %v5068_v12 = vld [vmem:[#allocation5 + $0x18f] sm:$0x1]  ;;  %v5069_v32 = vld [vmem:[#allocation5 + $0x197] sm:$0x1] }
 0x120   :  { %v4020_v49 = vsel %vm383_vm4, %v4019_v39, %v4018_v26  ;;  %v4722_v3 = vsel %vm371_vm0, %v4721_v21, %v4357_v22  ;;  %v4729_v29 = vrot.slane %v4362_v42, 3  ;;  %v4731_v30 = vrot.slane %v4363_v27, 2  ;;  %v5070_v8 = vld [vmem:[#allocation5 + $0x19f] sm:$0x1]  ;;  %v5071_v46 = vld [vmem:[#allocation5 + $0x1a7] sm:$0x1] }
 0x121   :  { %v3569_v28 = vadd.f32 %v3529_v15, %v2859_v31  ;;  %v4022_v5 = vsel %vm386_vm5, %v4021_v51, %v4020_v49  ;;  %v4724_v35 = vsel %vm374_vm1, %v4723_v63, %v4722_v3  ;;  %v4733_v0 = vrot.slane %v4364_v37, 1  ;;  %v5072_v41 = vld [vmem:[#allocation5 + $0x1af] sm:$0x1]  ;;  %v5073_v36 = vld [vmem:[#allocation5 + $0x1b7] sm:$0x1] }
 0x122   :  { %v10840_v59 = vsel %vm389_vm6, %v4023_v7, %v4022_v5  ;;  %v4726_v16 = vsel %vm377_vm2, %v4725_v53, %v4724_v35  ;;  %v5074_v39 = vld [vmem:[#allocation5 + $0x1bf] sm:$0x1]  ;;  %v5431_v20 = vrot.slane %v5068_v12, 7  ;;  %v5433_v22 = vrot.slane %v5069_v32, 6  ;;  %v10843_v42 = vld [vmem:[#allocation2 + $0x5] ss:$0 sm:$0xff] }
 0x123   :  { %v4239_v31 = vmul.f32 %v10843_v42, %v10840_v59  ;;  %v4728_v51 = vsel %vm380_vm3, %v4727_v2, %v4726_v16  ;;  %v5435_v27 = vrot.slane %v5070_v8, 5  ;;  %v5437_v23 = vrot.slane %v5071_v46, 4  ;;  %v98_v37 = vld [vmem:[#allocation5 + $0x1c0] sm:$0x1]  ;;  %v99_v21 = vld [vmem:[#allocation5 + $0x1c8] sm:$0x1] }
 0x124   :  { %v100_v63 = vld [vmem:[#allocation5 + $0x1d0] sm:$0x1]  ;;  %v4730_v7 = vsel %vm383_vm4, %v4729_v29, %v4728_v51  ;;  %v5432_v15 = vsel %vm371_vm0, %v5431_v20, %v5067_v43  ;;  %v5439_v26 = vrot.slane %v5072_v41, 3  ;;  %v5441_v53 = vrot.slane %v5073_v36, 2  ;;  %v101_v12 = vld [vmem:[#allocation5 + $0x1d8] sm:$0x1] }
 0x125   :  { %v102_v32 = vld [vmem:[#allocation5 + $0x1e0] sm:$0x1]  ;;  %v4279_v49 = vadd.f32 %v4239_v31, %v3569_v28  ;;  %v4732_v3 = vsel %vm386_vm5, %v4731_v30, %v4730_v7  ;;  %v5434_v5 = vsel %vm374_vm1, %v5433_v22, %v5432_v15  ;;  %v5443_v35 = vrot.slane %v5074_v39, 1  ;;  %v103_v2 = vld [vmem:[#allocation5 + $0x1e8] sm:$0x1] }
 0x126   :  { %v104_v8 = vld [vmem:[#allocation5 + $0x1f0] sm:$0x1]  ;;  %v10853_v46 = vsel %vm389_vm6, %v4733_v0, %v4732_v3  ;;  %v5436_v16 = vsel %vm377_vm2, %v5435_v27, %v5434_v5  ;;  %v105_v29 = vld [vmem:[#allocation5 + $0x1f8] sm:$0x1]  ;;  %v475_v51 = vrot.slane %v99_v21, 7  ;;  %v477_v43 = vrot.slane %v100_v63, 6 }
 0x127   :  { %v10856_v41 = vld [vmem:[#allocation2 + $0x6] ss:$0 sm:$0xff]  ;;  %v5438_v30 = vsel %vm380_vm3, %v5437_v23, %v5436_v16  ;;  %v479_v36 = vrot.slane %v101_v12, 5  ;;  %v481_v20 = vrot.slane %v102_v32, 4  ;;  %v815_v39 = vld [vmem:[#allocation5 + $0x1c1] sm:$0x1] }
 0x128   :  { %v4949_v28 = vmul.f32 %v10856_v41, %v10853_v46  ;;  %v816_v22 = vld [vmem:[#allocation5 + $0x1c9] sm:$0x1]  ;;  %v817_v31 = vld [vmem:[#allocation5 + $0x1d1] sm:$0x1]  ;;  %v5440_v0 = vsel %vm383_vm4, %v5439_v26, %v5438_v30  ;;  %v476_v7 = vsel %vm371_vm0, %v475_v51, %v98_v37  ;;  %v483_v27 = vrot.slane %v103_v2, 3 }
 0x129   :  { %v485_v15 = vrot.slane %v104_v8, 2  ;;  %v818_v21 = vld [vmem:[#allocation5 + $0x1d9] sm:$0x1]  ;;  %v819_v63 = vld [vmem:[#allocation5 + $0x1e1] sm:$0x1]  ;;  %v5442_v5 = vsel %vm386_vm5, %v5441_v53, %v5440_v0  ;;  %v478_v10 = vsel %vm374_vm1, %v477_v43, %v476_v7  ;;  %v487_v6 = vrot.slane %v105_v29, 1 }
 0x12a   :  { %v4989_v3 = vadd.f32 %v4949_v28, %v4279_v49  ;;  %v820_v23 = vld [vmem:[#allocation5 + $0x1e9] sm:$0x1]  ;;  %v821_v12 = vld [vmem:[#allocation5 + $0x1f1] sm:$0x1]  ;;  %v10866_v32 = vsel %vm389_vm6, %v5443_v35, %v5442_v5  ;;  %v480_v16 = vsel %vm377_vm2, %v479_v36, %v478_v10  ;;  %v822_v26 = vld [vmem:[#allocation5 + $0x1f9] sm:$0x1] }
 0x12b   :  { %v1185_v30 = vrot.slane %v816_v22, 7  ;;  %v1187_v37 = vrot.slane %v817_v31, 6  ;;  %v10869_v2 = vld [vmem:[#allocation2 + $0x7] ss:$0 sm:$0xff]  ;;  %v482_v53 = vsel %vm380_vm3, %v481_v20, %v480_v16  ;;  %v1189_v8 = vrot.slane %v818_v21, 5 }
 0x12c   :  { %v5659_v49 = vmul.f32 %v10869_v2, %v10866_v32  ;;  %v1191_v51 = vrot.slane %v819_v63, 4  ;;  %v1526_v29 = vld [vmem:[#allocation5 + $0x1ca] sm:$0x1]  ;;  %v1527_v43 = vld [vmem:[#allocation5 + $0x1d2] sm:$0x1]  ;;  %v484_v28 = vsel %vm383_vm4, %v483_v27, %v482_v53  ;;  %v1193_v0 = vrot.slane %v820_v23, 3 }
 0x12d   :  { %v1186_v35 = vsel %vm371_vm0, %v1185_v30, %v815_v39  ;;  %v1195_v10 = vrot.slane %v821_v12, 2  ;;  %v1525_v36 = vld [vmem:[#allocation5 + $0x1c2] sm:$0x1]  ;;  %v1528_v22 = vld [vmem:[#allocation5 + $0x1da] sm:$0x1]  ;;  %v486_v7 = vsel %vm386_vm5, %v485_v15, %v484_v28  ;;  %v1197_v44 = vrot.slane %v822_v26, 1 }
 0x12e   :  { %v10876_v31 = vadd.f32 %v5659_v49, %v4989_v3  ;;  %v1188_v5 = vsel %vm374_vm1, %v1187_v37, %v1186_v35  ;;  %v1529_v20 = vld [vmem:[#allocation5 + $0x1e2] sm:$0x1]  ;;  %v1530_v21 = vld [vmem:[#allocation5 + $0x1ea] sm:$0x1]  ;;  %v10881_v63 = vsel %vm389_vm6, %v487_v6, %v486_v7  ;;  %v1531_v16 = vld [vmem:[#allocation5 + $0x1f2] sm:$0x1] }
 0x12f   :  { %v1190_v27 = vsel %vm377_vm2, %v1189_v8, %v1188_v5  ;;  %v1532_v39 = vld [vmem:[#allocation5 + $0x1fa] sm:$0x1]  ;;  %v1895_v23 = vrot.slane %v1526_v29, 7  ;;  %v1897_v12 = vrot.slane %v1527_v43, 6  ;;  %v690_v15 = vmul.f32 %v10773_v47, %v10881_v63  ;;  %v2235_v37 = vld [vmem:[#allocation5 + $0x1c3] sm:$0x1] }
 0x130   :  { %14304 = vst [vmem:[#allocation23_spill] sm:$0xff] %v10876_v31  ;;  %v5742_v3 = vmul.f32 %v10497_v58, %v10876_v31  ;;  %v1192_v30 = vsel %vm380_vm3, %v1191_v51, %v1190_v27  ;;  %v1899_v26 = vrot.slane %v1528_v22, 5  ;;  %v2236_v49 = vld [vmem:[#allocation5 + $0x1cb] sm:$0x1]  ;;  %v2237_v53 = vld [vmem:[#allocation5 + $0x1d3] sm:$0x1] }
 0x131   :  { %v1194_v6 = vsel %vm383_vm4, %v1193_v0, %v1192_v30  ;;  %v1896_v8 = vsel %vm371_vm0, %v1895_v23, %v1525_v36  ;;  %v1901_v28 = vrot.slane %v1529_v20, 4  ;;  %v1903_v35 = vrot.slane %v1530_v21, 3  ;;  %v2238_v29 = vld [vmem:[#allocation5 + $0x1db] sm:$0x1]  ;;  %v2239_v43 = vld [vmem:[#allocation5 + $0x1e3] sm:$0x1] }
 0x132   :  { %5794 = vadd.xlane.f32.xlu1 %v5742_v3  ;;  %v1196_v7 = vsel %vm386_vm5, %v1195_v10, %v1194_v6  ;;  %v1898_v5 = vsel %vm374_vm1, %v1897_v12, %v1896_v8  ;;  %v1905_v31 = vrot.slane %v1531_v16, 2  ;;  %v1907_v56 = vrot.slane %v1532_v39, 1  ;;  %v2240_v51 = vld [vmem:[#allocation5 + $0x1eb] sm:$0x1]  ;;  %v2241_v22 = vld [vmem:[#allocation5 + $0x1f3] sm:$0x1] }
 0x133   :  { %v10894_v27 = vsel %vm389_vm6, %v1197_v44, %v1196_v7  ;;  %v1900_v0 = vsel %vm377_vm2, %v1899_v26, %v1898_v5  ;;  %v2242_v30 = vld [vmem:[#allocation5 + $0x1fb] sm:$0x1]  ;;  %v2605_v36 = vrot.slane %v2236_v49, 7  ;;  %v2607_v20 = vrot.slane %v2237_v53, 6  ;;  %v2945_v12 = vld [vmem:[#allocation5 + $0x1c4] sm:$0x1] }
 0x134   :  { %v1400_v21 = vmul.f32 %v10790_v4, %v10894_v27  ;;  %v1902_v23 = vsel %vm380_vm3, %v1901_v28, %v1900_v0  ;;  %v2609_v10 = vrot.slane %v2238_v29, 5  ;;  %v2611_v3 = vrot.slane %v2239_v43, 4  ;;  %v2946_v16 = vld [vmem:[#allocation5 + $0x1cc] sm:$0x1]  ;;  %v2947_v39 = vld [vmem:[#allocation5 + $0x1d4] sm:$0x1] }
 0x135   :  { %v1904_v6 = vsel %vm383_vm4, %v1903_v35, %v1902_v23  ;;  %v2606_v44 = vsel %vm371_vm0, %v2605_v36, %v2235_v37  ;;  %v2613_v8 = vrot.slane %v2240_v51, 3  ;;  %v2615_v7 = vrot.slane %v2241_v22, 2  ;;  %v2948_v26 = vld [vmem:[#allocation5 + $0x1dc] sm:$0x1]  ;;  %v2949_v5 = vld [vmem:[#allocation5 + $0x1e4] sm:$0x1] }
 0x136   :  { %v1440_v49 = vadd.f32 %v1400_v21, %v690_v15  ;;  %v1906_v53 = vsel %vm386_vm5, %v1905_v31, %v1904_v6  ;;  %v2608_v62 = vsel %vm374_vm1, %v2607_v20, %v2606_v44  ;;  %v2617_v34 = vrot.slane %v2242_v30, 1  ;;  %v2950_v28 = vld [vmem:[#allocation5 + $0x1ec] sm:$0x1]  ;;  %v2951_v29 = vld [vmem:[#allocation5 + $0x1f4] sm:$0x1] }
 0x137   :  { %v10905_v43 = vsel %vm389_vm6, %v1907_v56, %v1906_v53  ;;  %v2610_v0 = vsel %vm377_vm2, %v2609_v10, %v2608_v62  ;;  %v2952_v35 = vld [vmem:[#allocation5 + $0x1fc] sm:$0x1]  ;;  %v3315_v23 = vrot.slane %v2946_v16, 7  ;;  %v3317_v37 = vrot.slane %v2947_v39, 6  ;;  %v3655_v36 = vld [vmem:[#allocation5 + $0x1c5] sm:$0x1] }
 0x138   :  { %v2110_v51 = vmul.f32 %v10804_v55, %v10905_v43  ;;  %v2612_v15 = vsel %vm380_vm3, %v2611_v3, %v2610_v0  ;;  %v3319_v22 = vrot.slane %v2948_v26, 5  ;;  %v3321_v31 = vrot.slane %v2949_v5, 4  ;;  %v3656_v20 = vld [vmem:[#allocation5 + $0x1cd] sm:$0x1]  ;;  %v3657_v30 = vld [vmem:[#allocation5 + $0x1d5] sm:$0x1] }
 0x139   :  { %v2614_v21 = vsel %vm383_vm4, %v2613_v8, %v2612_v15  ;;  %v3316_v56 = vsel %vm371_vm0, %v3315_v23, %v2945_v12  ;;  %v3323_v6 = vrot.slane %v2950_v28, 3  ;;  %v3325_v44 = vrot.slane %v2951_v29, 2  ;;  %v3658_v62 = vld [vmem:[#allocation5 + $0x1dd] sm:$0x1]  ;;  %v3659_v10 = vld [vmem:[#allocation5 + $0x1e5] sm:$0x1] }
 0x13a   :  { %v2150_v16 = vadd.f32 %v2110_v51, %v1440_v49  ;;  %v2616_v39 = vsel %vm386_vm5, %v2615_v7, %v2614_v21  ;;  %v3318_v53 = vsel %vm374_vm1, %v3317_v37, %v3316_v56  ;;  %v3327_v50 = vrot.slane %v2952_v35, 1  ;;  %v3660_v3 = vld [vmem:[#allocation5 + $0x1ed] sm:$0x1]  ;;  %v3661_v26 = vld [vmem:[#allocation5 + $0x1f5] sm:$0x1] }
 0x13b   :  { %v10916_v5 = vsel %vm389_vm6, %v2617_v34, %v2616_v39  ;;  %v3320_v0 = vsel %vm377_vm2, %v3319_v22, %v3318_v53  ;;  %v3662_v8 = vld [vmem:[#allocation5 + $0x1fd] sm:$0x1]  ;;  %v4025_v15 = vrot.slane %v3656_v20, 7  ;;  %v4027_v12 = vrot.slane %v3657_v30, 6  ;;  %v4365_v23 = vld [vmem:[#allocation5 + $0x1c6] sm:$0x1] }
 0x13c   :  { %v2820_v28 = vmul.f32 %v10817_v54, %v10916_v5  ;;  %v3322_v49 = vsel %vm380_vm3, %v3321_v31, %v3320_v0  ;;  %v4029_v29 = vrot.slane %v3658_v62, 5  ;;  %v4031_v7 = vrot.slane %v3659_v10, 4  ;;  %v4366_v37 = vld [vmem:[#allocation5 + $0x1ce] sm:$0x1]  ;;  %v4367_v35 = vld [vmem:[#allocation5 + $0x1d6] sm:$0x1] }
 0x13d   :  { %v3324_v51 = vsel %vm383_vm4, %v3323_v6, %v3322_v49  ;;  %v4026_v34 = vsel %vm371_vm0, %v4025_v15, %v3655_v36  ;;  %v4033_v21 = vrot.slane %v3660_v3, 3  ;;  %v4035_v56 = vrot.slane %v3661_v26, 2  ;;  %v4368_v22 = vld [vmem:[#allocation5 + $0x1de] sm:$0x1]  ;;  %v4369_v39 = vld [vmem:[#allocation5 + $0x1e6] sm:$0x1] }
 0x13e   :  { %v2860_v20 = vadd.f32 %v2820_v28, %v2150_v16  ;;  %v3326_v30 = vsel %vm386_vm5, %v3325_v44, %v3324_v51  ;;  %v4028_v53 = vsel %vm374_vm1, %v4027_v12, %v4026_v34  ;;  %v4037_v11 = vrot.slane %v3662_v8, 1  ;;  %v4370_v31 = vld [vmem:[#allocation5 + $0x1ee] sm:$0x1]  ;;  %v4371_v62 = vld [vmem:[#allocation5 + $0x1f6] sm:$0x1] }
 0x13f   :  { %v10927_v10 = vsel %vm389_vm6, %v3327_v50, %v3326_v30  ;;  %v4030_v0 = vsel %vm377_vm2, %v4029_v29, %v4028_v53  ;;  %v4372_v6 = vld [vmem:[#allocation5 + $0x1fe] sm:$0x1]  ;;  %v4735_v49 = vrot.slane %v4366_v37, 7  ;;  %v4737_v36 = vrot.slane %v4367_v35, 6  ;;  %v5075_v15 = vld [vmem:[#allocation5 + $0x1c7] sm:$0x1] }
 0x140   :  { %v3530_v3 = vmul.f32 %v10830_v19, %v10927_v10  ;;  %v4032_v16 = vsel %vm380_vm3, %v4031_v7, %v4030_v0  ;;  %v4739_v26 = vrot.slane %v4368_v22, 5  ;;  %v4741_v44 = vrot.slane %v4369_v39, 4  ;;  %v5076_v12 = vld [vmem:[#allocation5 + $0x1cf] sm:$0x1]  ;;  %v5077_v8 = vld [vmem:[#allocation5 + $0x1d7] sm:$0x1] }
 0x141   :  { %v4034_v28 = vsel %vm383_vm4, %v4033_v21, %v4032_v16  ;;  %v4736_v50 = vsel %vm371_vm0, %v4735_v49, %v4365_v23  ;;  %v4743_v51 = vrot.slane %v4370_v31, 3  ;;  %v4745_v34 = vrot.slane %v4371_v62, 2  ;;  %v5078_v29 = vld [vmem:[#allocation5 + $0x1df] sm:$0x1]  ;;  %v5079_v30 = vld [vmem:[#allocation5 + $0x1e7] sm:$0x1] }
 0x142   :  { %v3570_v37 = vadd.f32 %v3530_v3, %v2860_v20  ;;  %v4036_v35 = vsel %vm386_vm5, %v4035_v56, %v4034_v28  ;;  %v4738_v53 = vsel %vm374_vm1, %v4737_v36, %v4736_v50  ;;  %v4747_v9 = vrot.slane %v4372_v6, 1  ;;  %v5080_v7 = vld [vmem:[#allocation5 + $0x1ef] sm:$0x1]  ;;  %v5081_v22 = vld [vmem:[#allocation5 + $0x1f7] sm:$0x1] }
 0x143   :  { %v4038_v39 = vsel %vm389_vm6, %v4037_v11, %v4036_v35  ;;  %v4740_v0 = vsel %vm377_vm2, %v4739_v26, %v4738_v53  ;;  %v5445_v21 = vrot.slane %v5076_v12, 7  ;;  %v5447_v16 = vrot.slane %v5077_v8, 6 }
 0x144   :  { %v4240_v23 = vmul.f32 %v10843_v42, %v4038_v39  ;;  %v4742_v31 = vsel %vm380_vm3, %v4741_v44, %v4740_v0  ;;  %v5449_v62 = vrot.slane %v5078_v29, 5  ;;  %v5451_v20 = vrot.slane %v5079_v30, 4 }
 0x145   :  { %v4744_v56 = vsel %vm383_vm4, %v4743_v51, %v4742_v31  ;;  %v5446_v49 = vsel %vm371_vm0, %v5445_v21, %v5075_v15  ;;  %v5453_v6 = vrot.slane %v5080_v7, 3  ;;  %v5455_v36 = vrot.slane %v5081_v22, 2  ;;  %v107_v22 = vld [vmem:[#allocation5 + $0x208] sm:$0x1] }
 0x146   :  { %v4280_v3 = vadd.f32 %v4240_v23, %v3570_v37  ;;  %v4746_v11 = vsel %vm386_vm5, %v4745_v34, %v4744_v56  ;;  %v5448_v26 = vsel %vm374_vm1, %v5447_v16, %v5446_v49  ;;  %v5457_v28 = vrot.slane %v5082_v48, 1  ;;  %v109_v16 = vld [vmem:[#allocation5 + $0x218] sm:$0x1]  ;;  %v110_v23 = vld [vmem:[#allocation5 + $0x220] sm:$0x1] }
 0x147   :  { %v4748_v12 = vsel %vm389_vm6, %v4747_v9, %v4746_v11  ;;  %v5450_v8 = vsel %vm377_vm2, %v5449_v62, %v5448_v26  ;;  %v691_v44 = vmul.f32 %v10700_v18, %v10768_v60  ;;  %v1401_v50 = vmul.f32 %v10704_v33, %v10785_v24  ;;  %v111_v62 = vld [vmem:[#allocation5 + $0x228] sm:$0x1] }
 0x148   :  { %v4950_v15 = vmul.f32 %v10856_v41, %v4748_v12  ;;  %v5452_v51 = vsel %vm380_vm3, %v5451_v20, %v5450_v8  ;;  %v2111_v34 = vmul.f32 %v10710_v38, %v10801_v45  ;;  %v2821_v48 = vmul.f32 %v10714_v40, %v10814_v61  ;;  %v112_v20 = vld [vmem:[#allocation5 + $0x230] sm:$0x1] }
 0x149   :  { %v5454_v9 = vsel %vm383_vm4, %v5453_v6, %v5452_v51  ;;  %v1441_v29 = vadd.f32 %v1401_v50, %v691_v44  ;;  %v3531_v30 = vmul.f32 %v10719_v13, %v10827_v17  ;;  %v4241_v60 = vmul.f32 %v10723_v57, %v10840_v59  ;;  %v108_v59 = vld [vmem:[#allocation5 + $0x210] sm:$0x1]  ;;  %v829_v51 = vld [vmem:[#allocation5 + $0x231] sm:$0x1] }
 0x14a   :  { %v4990_v24 = vadd.f32 %v4950_v15, %v4280_v3  ;;  %v5456_v37 = vsel %vm386_vm5, %v5455_v36, %v5454_v9  ;;  %v4951_v35 = vmul.f32 %v10728_v52, %v10853_v46  ;;  %v5661_v45 = vmul.f32 %v10732_v14, %v10866_v32  ;;  %v825_v3 = vld [vmem:[#allocation5 + $0x211] sm:$0x1]  ;;  %v828_v15 = vld [vmem:[#allocation5 + $0x229] sm:$0x1] }
 0x14b   :  { %v5458_v61 = vsel %vm389_vm6, %v5457_v28, %v5456_v37  ;;  %v2151_v53 = vadd.f32 %v2111_v34, %v1441_v29  ;;  %v692_v7 = vmul.f32 %v10700_v18, %v10881_v63  ;;  %v1402_v17 = vmul.f32 %v10704_v33, %v10894_v27  ;;  %v106_v27 = vld [vmem:[#allocation5 + $0x200] sm:$0x1]  ;;  %v823_v28 = vld [vmem:[#allocation5 + $0x201] sm:$0x1] }
 0x14c   :  { %v5660_v0 = vmul.f32 %v10869_v2, %v5458_v61  ;;  %v2112_v21 = vmul.f32 %v10710_v38, %v10905_v43  ;;  %v2822_v46 = vmul.f32 %v10714_v40, %v10916_v5  ;;  %v3532_v32 = vmul.f32 %v10719_v13, %v10927_v10  ;;  %v113_v40 = vld [vmem:[#allocation5 + $0x238] sm:$0x1]  ;;  %v824_v13 = vld [vmem:[#allocation5 + $0x209] sm:$0x1] }
 0x14d   :  { %v2861_v31 = vadd.f32 %v2821_v48, %v2151_v53  ;;  %v1442_v18 = vadd.f32 %v1402_v17, %v692_v7  ;;  %v4242_v63 = vmul.f32 %v10723_v57, %v4038_v39  ;;  %v4952_v33 = vmul.f32 %v10728_v52, %v4748_v12  ;;  %v826_v57 = vld [vmem:[#allocation5 + $0x219] sm:$0x1]  ;;  %v1534_v7 = vld [vmem:[#allocation5 + $0x20a] sm:$0x1] }
 0x14e   :  { %v10981_v56 = vadd.f32 %v5660_v0, %v4990_v24  ;;  %v10984_v38 = vmul.f32 %v10732_v14, %v5458_v61  ;;  %v489_v43 = vrot.slane %v107_v22, 7  ;;  %v491_v5 = vrot.slane %v108_v59, 6  ;;  %v827_v14 = vld [vmem:[#allocation5 + $0x221] sm:$0x1]  ;;  %v830_v61 = vld [vmem:[#allocation5 + $0x239] sm:$0x1] }
 0x14f   :  { %v3571_v10 = vadd.f32 %v3531_v30, %v2861_v31  ;;  %v2152_v49 = vadd.f32 %v2112_v21, %v1442_v18  ;;  %v493_v6 = vrot.slane %v109_v16, 5  ;;  %v495_v36 = vrot.slane %v110_v23, 4  ;;  %v1536_v23 = vld [vmem:[#allocation5 + $0x21a] sm:$0x1] }
 0x150   :  { %14305 = vst [vmem:[#allocation24_spill] sm:$0xff] %v10981_v56  ;;  %v5743_v52 = vmul.f32 %v10497_v58, %v10981_v56  ;;  %v490_v39 = vsel %vm371_vm0, %v489_v43, %v106_v27  ;;  %v497_v11 = vrot.slane %v111_v62, 3  ;;  %v499_v26 = vrot.slane %v112_v20, 2  ;;  %v1537_v62 = vld [vmem:[#allocation5 + $0x222] sm:$0x1] }
 0x151   :  { %v4281_v12 = vadd.f32 %v4241_v60, %v3571_v10  ;;  %v2862_v8 = vadd.f32 %v2822_v46, %v2152_v49  ;;  %v492_v44 = vsel %vm374_vm1, %v491_v5, %v490_v39  ;;  %v501_v50 = vrot.slane %v113_v40, 1  ;;  %v1538_v20 = vld [vmem:[#allocation5 + $0x22a] sm:$0x1]  ;;  %v1540_v10 = vld [vmem:[#allocation5 + $0x23a] sm:$0x1] }
 0x152   :  { %5796 = vadd.xlane.f32.xlu0 %v5743_v52  ;;  %v494_v34 = vsel %vm377_vm2, %v493_v6, %v492_v44  ;;  %v1199_v48 = vrot.slane %v824_v13, 7  ;;  %v1201_v9 = vrot.slane %v825_v3, 6  ;;  %v1203_v29 = vrot.slane %v826_v57, 5  ;;  %v1539_v13 = vld [vmem:[#allocation5 + $0x232] sm:$0x1] }
 0x153   :  { %v4991_v30 = vadd.f32 %v4951_v35, %v4281_v12  ;;  %v3572_v24 = vadd.f32 %v3532_v32, %v2862_v8  ;;  %v496_v37 = vsel %vm380_vm3, %v495_v36, %v494_v34  ;;  %v1205_v53 = vrot.slane %v827_v14, 4  ;;  %v1533_v35 = vld [vmem:[#allocation5 + $0x202] sm:$0x1]  ;;  %v1535_v32 = vld [vmem:[#allocation5 + $0x212] sm:$0x1] }
 0x154   :  { %v498_v60 = vsel %vm383_vm4, %v497_v11, %v496_v37  ;;  %v1200_v17 = vsel %vm371_vm0, %v1199_v48, %v823_v28  ;;  %v1207_v22 = vrot.slane %v828_v15, 3  ;;  %v1209_v59 = vrot.slane %v829_v51, 2  ;;  %v2243_v57 = vld [vmem:[#allocation5 + $0x203] sm:$0x1]  ;;  %v2244_v52 = vld [vmem:[#allocation5 + $0x20b] sm:$0x1] }
 0x155   :  { %v10994_v0 = vadd.f32 %v5661_v45, %v4991_v30  ;;  %v4282_v21 = vadd.f32 %v4242_v63, %v3572_v24  ;;  %v500_v46 = vsel %vm386_vm5, %v499_v26, %v498_v60  ;;  %v1202_v16 = vsel %vm374_vm1, %v1201_v9, %v1200_v17  ;;  %v2245_v39 = vld [vmem:[#allocation5 + $0x213] sm:$0x1]  ;;  %v2246_v28 = vld [vmem:[#allocation5 + $0x21b] sm:$0x1]  ;;  %v2247_v14 = vld [vmem:[#allocation5 + $0x223] sm:$0x1] }
 0x156   :  { %v10999_v31 = vsel %vm389_vm6, %v501_v50, %v500_v46  ;;  %v1204_v18 = vsel %vm377_vm2, %v1203_v29, %v1202_v16  ;;  %v1211_v27 = vrot.slane %v830_v61, 1  ;;  %v1909_v40 = vrot.slane %v1534_v7, 7  ;;  %v2248_v15 = vld [vmem:[#allocation5 + $0x22b] sm:$0x1]  ;;  %v2249_v51 = vld [vmem:[#allocation5 + $0x233] sm:$0x1] }
 0x157   :  { %14306 = vst [vmem:[#allocation25_spill] sm:$0xff] %v10994_v0  ;;  %v5744_v45 = vmul.f32 %v10497_v58, %v10994_v0  ;;  %v4992_v63 = vadd.f32 %v4952_v33, %v4282_v21  ;;  %v693_v43 = vmul.f32 %v10773_v47, %v10999_v31  ;;  %v1206_v5 = vsel %vm380_vm3, %v1205_v53, %v1204_v18  ;;  %v2250_v9 = vld [vmem:[#allocation5 + $0x23b] sm:$0x1]  ;;  %v2954_v30 = vld [vmem:[#allocation5 + $0x20c] sm:$0x1] }
 0x158   :  { %v1208_v49 = vsel %vm383_vm4, %v1207_v22, %v1206_v5  ;;  %v1910_v6 = vsel %vm371_vm0, %v1909_v40, %v1533_v35  ;;  %v1911_v36 = vrot.slane %v1535_v32, 6  ;;  %v1913_v3 = vrot.slane %v1536_v23, 5  ;;  %v2953_v7 = vld [vmem:[#allocation5 + $0x204] sm:$0x1]  ;;  %v2955_v60 = vld [vmem:[#allocation5 + $0x214] sm:$0x1] }
 0x159   :  { %5798 = vadd.xlane.f32.xlu1 %v5744_v45  ;;  %v11010_v11 = vadd.f32 %v10984_v38, %v4992_v63  ;;  %v1210_v33 = vsel %vm386_vm5, %v1209_v59, %v1208_v49  ;;  %v1915_v47 = vrot.slane %v1537_v62, 4  ;;  %v1917_v26 = vrot.slane %v1538_v20, 3  ;;  %v2957_v46 = vld [vmem:[#allocation5 + $0x224] sm:$0x1]  ;;  %v2958_v18 = vld [vmem:[#allocation5 + $0x22c] sm:$0x1] }
 0x15a   :  { %v11014_v12 = vsel %vm389_vm6, %v1211_v27, %v1210_v33  ;;  %v1912_v8 = vsel %vm374_vm1, %v1911_v36, %v1910_v6  ;;  %v1919_v44 = vrot.slane %v1539_v13, 2  ;;  %v1921_v50 = vrot.slane %v1540_v10, 1  ;;  %v2959_v27 = vld [vmem:[#allocation5 + $0x234] sm:$0x1]  ;;  %v2960_v40 = vld [vmem:[#allocation5 + $0x23c] sm:$0x1] }
 0x15b   :  { %14307 = vst [vmem:[#allocation26_spill] sm:$0xff] %v11010_v11  ;;  %v5745_v34 = vmul.f32 %v10497_v58, %v11010_v11  ;;  %v1403_v38 = vmul.f32 %v10790_v4, %v11014_v12  ;;  %v1914_v48 = vsel %vm377_vm2, %v1913_v3, %v1912_v8  ;;  %v2619_v29 = vrot.slane %v2244_v52, 7  ;;  %v2956_v4 = vld [vmem:[#allocation5 + $0x21c] sm:$0x1]  ;;  %v3663_v49 = vld [vmem:[#allocation5 + $0x205] sm:$0x1] }
 0x15c   :  { %v1916_v24 = vsel %vm380_vm3, %v1915_v47, %v1914_v48  ;;  %v2621_v37 = vrot.slane %v2245_v39, 6  ;;  %v2623_v61 = vrot.slane %v2246_v28, 5  ;;  %v2625_v53 = vrot.slane %v2247_v14, 4  ;;  %v3664_v6 = vld [vmem:[#allocation5 + $0x20d] sm:$0x1] }
 0x15d   :  { %5800 = vadd.xlane.f32.xlu0 %v5745_v34  ;;  %v1443_v17 = vadd.f32 %v1403_v38, %v693_v43  ;;  %v1918_v22 = vsel %vm383_vm4, %v1917_v26, %v1916_v24  ;;  %v2620_v59 = vsel %vm371_vm0, %v2619_v29, %v2243_v57  ;;  %v2627_v21 = vrot.slane %v2248_v15, 3  ;;  %v3665_v36 = vld [vmem:[#allocation5 + $0x215] sm:$0x1]  ;;  %v3666_v33 = vld [vmem:[#allocation5 + $0x21d] sm:$0x1] }
 0x15e   :  { %v1920_v16 = vsel %vm386_vm5, %v1919_v44, %v1918_v22  ;;  %v2622_v35 = vsel %vm374_vm1, %v2621_v37, %v2620_v59  ;;  %v2629_v32 = vrot.slane %v2249_v51, 2  ;;  %v2631_v23 = vrot.slane %v2250_v9, 1  ;;  %v3667_v47 = vld [vmem:[#allocation5 + $0x225] sm:$0x1]  ;;  %v3668_v8 = vld [vmem:[#allocation5 + $0x22d] sm:$0x1] }
 0x15f   :  { %v11028_v62 = vsel %vm389_vm6, %v1921_v50, %v1920_v16  ;;  %v2624_v20 = vsel %vm377_vm2, %v2623_v61, %v2622_v35  ;;  %v3329_v45 = vrot.slane %v2954_v30, 7  ;;  %v3331_v63 = vrot.slane %v2955_v60, 6  ;;  %v3669_v44 = vld [vmem:[#allocation5 + $0x235] sm:$0x1]  ;;  %v3670_v51 = vld [vmem:[#allocation5 + $0x23d] sm:$0x1] }
 0x160   :  { %v2113_v43 = vmul.f32 %v10804_v55, %v11028_v62  ;;  %v2626_v5 = vsel %vm380_vm3, %v2625_v53, %v2624_v20  ;;  %v3333_v13 = vrot.slane %v2956_v4, 5  ;;  %v3335_v10 = vrot.slane %v2957_v46, 4  ;;  %v4373_v24 = vld [vmem:[#allocation5 + $0x206] sm:$0x1]  ;;  %v4374_v37 = vld [vmem:[#allocation5 + $0x20e] sm:$0x1] }
 0x161   :  { %v2628_v3 = vsel %vm383_vm4, %v2627_v21, %v2626_v5  ;;  %v3330_v57 = vsel %vm371_vm0, %v3329_v45, %v2953_v7  ;;  %v3337_v52 = vrot.slane %v2958_v18, 3  ;;  %v3339_v39 = vrot.slane %v2959_v27, 2  ;;  %v4375_v61 = vld [vmem:[#allocation5 + $0x216] sm:$0x1]  ;;  %v4376_v22 = vld [vmem:[#allocation5 + $0x21e] sm:$0x1] }
 0x162   :  { %v2153_v26 = vadd.f32 %v2113_v43, %v1443_v17  ;;  %v2630_v28 = vsel %vm386_vm5, %v2629_v32, %v2628_v3  ;;  %v3332_v55 = vsel %vm374_vm1, %v3331_v63, %v3330_v57  ;;  %v3341_v14 = vrot.slane %v2960_v40, 1  ;;  %v4377_v59 = vld [vmem:[#allocation5 + $0x226] sm:$0x1]  ;;  %v4378_v16 = vld [vmem:[#allocation5 + $0x22e] sm:$0x1] }
 0x163   :  { %v11039_v50 = vsel %vm389_vm6, %v2631_v23, %v2630_v28  ;;  %v3334_v15 = vsel %vm377_vm2, %v3333_v13, %v3332_v55  ;;  %v4039_v34 = vrot.slane %v3664_v6, 7  ;;  %v4041_v38 = vrot.slane %v3665_v36, 6  ;;  %v4379_v35 = vld [vmem:[#allocation5 + $0x236] sm:$0x1]  ;;  %v4380_v18 = vld [vmem:[#allocation5 + $0x23e] sm:$0x1] }
 0x164   :  { %v2823_v48 = vmul.f32 %v10817_v54, %v11039_v50  ;;  %v3336_v9 = vsel %vm380_vm3, %v3335_v10, %v3334_v15  ;;  %v4043_v29 = vrot.slane %v3666_v33, 5  ;;  %v4045_v30 = vrot.slane %v3667_v47, 4  ;;  %v5083_v5 = vld [vmem:[#allocation5 + $0x207] sm:$0x1]  ;;  %v5084_v13 = vld [vmem:[#allocation5 + $0x20f] sm:$0x1] }
 0x165   :  { %v3338_v53 = vsel %vm383_vm4, %v3337_v52, %v3336_v9  ;;  %v4040_v7 = vsel %vm371_vm0, %v4039_v34, %v3663_v49  ;;  %v4047_v60 = vrot.slane %v3668_v8, 3  ;;  %v4049_v17 = vrot.slane %v3669_v44, 2  ;;  %v5085_v10 = vld [vmem:[#allocation5 + $0x217] sm:$0x1]  ;;  %v5086_v57 = vld [vmem:[#allocation5 + $0x21f] sm:$0x1] }
 0x166   :  { %v2863_v21 = vadd.f32 %v2823_v48, %v2153_v26  ;;  %v3340_v4 = vsel %vm386_vm5, %v3339_v39, %v3338_v53  ;;  %v4042_v54 = vsel %vm374_vm1, %v4041_v38, %v4040_v7  ;;  %v4051_v46 = vrot.slane %v3670_v51, 1  ;;  %v5087_v52 = vld [vmem:[#allocation5 + $0x227] sm:$0x1]  ;;  %v5088_v26 = vld [vmem:[#allocation5 + $0x22f] sm:$0x1] }
 0x167   :  { %v11050_v32 = vsel %vm389_vm6, %v3341_v14, %v3340_v4  ;;  %v4044_v23 = vsel %vm377_vm2, %v4043_v29, %v4042_v54  ;;  %v4749_v27 = vrot.slane %v4374_v37, 7  ;;  %v4751_v20 = vrot.slane %v4375_v61, 6  ;;  %v5089_v28 = vld [vmem:[#allocation5 + $0x237] sm:$0x1]  ;;  %v5090_v8 = vld [vmem:[#allocation5 + $0x23f] sm:$0x1] }
 0x168   :  { %v3533_v40 = vmul.f32 %v10830_v19, %v11050_v32  ;;  %v4046_v45 = vsel %vm380_vm3, %v4045_v30, %v4044_v23  ;;  %v4753_v63 = vrot.slane %v4376_v22, 5  ;;  %v4755_v43 = vrot.slane %v4377_v59, 4  ;;  %v114_v9 = vld [vmem:[#allocation5 + $0x240] sm:$0x1]  ;;  %v115_v29 = vld [vmem:[#allocation5 + $0x248] sm:$0x1] }
 0x169   :  { %v4048_v49 = vsel %vm383_vm4, %v4047_v60, %v4046_v45  ;;  %v4750_v6 = vsel %vm371_vm0, %v4749_v27, %v4373_v24  ;;  %v4757_v36 = vrot.slane %v4378_v16, 3  ;;  %v4759_v3 = vrot.slane %v4379_v35, 2  ;;  %v116_v30 = vld [vmem:[#allocation5 + $0x250] sm:$0x1]  ;;  %v117_v7 = vld [vmem:[#allocation5 + $0x258] sm:$0x1] }
 0x16a   :  { %v3573_v39 = vadd.f32 %v3533_v40, %v2863_v21  ;;  %v4050_v33 = vsel %vm386_vm5, %v4049_v17, %v4048_v49  ;;  %v4752_v19 = vsel %vm374_vm1, %v4751_v20, %v4750_v6  ;;  %v4761_v47 = vrot.slane %v4380_v18, 1  ;;  %v118_v60 = vld [vmem:[#allocation5 + $0x260] sm:$0x1]  ;;  %v119_v21 = vld [vmem:[#allocation5 + $0x268] sm:$0x1] }
 0x16b   :  { %v11061_v55 = vsel %vm389_vm6, %v4051_v46, %v4050_v33  ;;  %v4754_v14 = vsel %vm377_vm2, %v4753_v63, %v4752_v19  ;;  %v5459_v44 = vrot.slane %v5084_v13, 7  ;;  %v5461_v15 = vrot.slane %v5085_v10, 6  ;;  %v120_v4 = vld [vmem:[#allocation5 + $0x270] sm:$0x1]  ;;  %v121_v16 = vld [vmem:[#allocation5 + $0x278] sm:$0x1] }
 0x16c   :  { %v4243_v51 = vmul.f32 %v10843_v42, %v11061_v55  ;;  %v4756_v34 = vsel %vm380_vm3, %v4755_v43, %v4754_v14  ;;  %v5463_v38 = vrot.slane %v5086_v57, 5  ;;  %v5465_v48 = vrot.slane %v5087_v52, 4  ;;  %v831_v45 = vld [vmem:[#allocation5 + $0x241] sm:$0x1]  ;;  %v832_v63 = vld [vmem:[#allocation5 + $0x249] sm:$0x1] }
 0x16d   :  { %v4758_v24 = vsel %vm383_vm4, %v4757_v36, %v4756_v34  ;;  %v5460_v37 = vsel %vm371_vm0, %v5459_v44, %v5083_v5  ;;  %v5467_v61 = vrot.slane %v5088_v26, 3  ;;  %v5469_v53 = vrot.slane %v5089_v28, 2  ;;  %v833_v43 = vld [vmem:[#allocation5 + $0x251] sm:$0x1]  ;;  %v834_v6 = vld [vmem:[#allocation5 + $0x259] sm:$0x1] }
 0x16e   :  { %v4283_v17 = vadd.f32 %v4243_v51, %v3573_v39  ;;  %v4760_v22 = vsel %vm386_vm5, %v4759_v3, %v4758_v24  ;;  %v5462_v42 = vsel %vm374_vm1, %v5461_v15, %v5460_v37  ;;  %v5471_v59 = vrot.slane %v5090_v8, 1  ;;  %v835_v36 = vld [vmem:[#allocation5 + $0x261] sm:$0x1]  ;;  %v836_v39 = vld [vmem:[#allocation5 + $0x269] sm:$0x1] }
 0x16f   :  { %v11072_v54 = vsel %vm389_vm6, %v4761_v47, %v4760_v22  ;;  %v5464_v46 = vsel %vm377_vm2, %v5463_v38, %v5462_v42  ;;  %v503_v35 = vrot.slane %v115_v29, 7  ;;  %v505_v23 = vrot.slane %v116_v30, 6  ;;  %v837_v33 = vld [vmem:[#allocation5 + $0x271] sm:$0x1]  ;;  %v838_v26 = vld [vmem:[#allocation5 + $0x279] sm:$0x1] }
 0x170   :  { %v4953_v18 = vmul.f32 %v10856_v41, %v11072_v54  ;;  %v5466_v27 = vsel %vm380_vm3, %v5465_v48, %v5464_v46  ;;  %v507_v20 = vrot.slane %v117_v7, 5  ;;  %v509_v40 = vrot.slane %v118_v60, 4  ;;  %v1542_v34 = vld [vmem:[#allocation5 + $0x24a] sm:$0x1]  ;;  %v1543_v38 = vld [vmem:[#allocation5 + $0x252] sm:$0x1] }
 0x171   :  { %v5468_v5 = vsel %vm383_vm4, %v5467_v61, %v5466_v27  ;;  %v504_v13 = vsel %vm371_vm0, %v503_v35, %v114_v9  ;;  %v511_v10 = vrot.slane %v119_v21, 3  ;;  %v513_v49 = vrot.slane %v120_v4, 2  ;;  %v1541_v24 = vld [vmem:[#allocation5 + $0x242] sm:$0x1]  ;;  %v1544_v37 = vld [vmem:[#allocation5 + $0x25a] sm:$0x1] }
 0x172   :  { %v4993_v3 = vadd.f32 %v4953_v18, %v4283_v17  ;;  %v5470_v57 = vsel %vm386_vm5, %v5469_v53, %v5468_v5  ;;  %v506_v41 = vsel %vm374_vm1, %v505_v23, %v504_v13  ;;  %v515_v52 = vrot.slane %v121_v16, 1  ;;  %v1545_v60 = vld [vmem:[#allocation5 + $0x262] sm:$0x1]  ;;  %v1546_v17 = vld [vmem:[#allocation5 + $0x26a] sm:$0x1] }
 0x173   :  { %v11083_v19 = vsel %vm389_vm6, %v5471_v59, %v5470_v57  ;;  %v508_v47 = vsel %vm377_vm2, %v507_v20, %v506_v41  ;;  %v1213_v28 = vrot.slane %v832_v63, 7  ;;  %v1215_v14 = vrot.slane %v833_v43, 6  ;;  %v1547_v59 = vld [vmem:[#allocation5 + $0x272] sm:$0x1]  ;;  %v1548_v21 = vld [vmem:[#allocation5 + $0x27a] sm:$0x1] }
 0x174   :  { %v5663_v8 = vmul.f32 %v10869_v2, %v11083_v19  ;;  %v510_v44 = vsel %vm380_vm3, %v509_v40, %v508_v47  ;;  %v1217_v15 = vrot.slane %v834_v6, 5  ;;  %v1219_v51 = vrot.slane %v835_v36, 4  ;;  %v11101_v35 = vld [vmem:[#allocation2] ss:$0 sm:$0xff]  ;;  %v2251_v20 = vld [vmem:[#allocation5 + $0x243] sm:$0x1] }
 0x175   :  { %v512_v48 = vsel %vm383_vm4, %v511_v10, %v510_v44  ;;  %v1214_v9 = vsel %vm371_vm0, %v1213_v28, %v831_v45  ;;  %v1221_v29 = vrot.slane %v836_v39, 3  ;;  %v1223_v30 = vrot.slane %v837_v33, 2  ;;  %v2252_v40 = vld [vmem:[#allocation5 + $0x24b] sm:$0x1]  ;;  %v2253_v45 = vld [vmem:[#allocation5 + $0x253] sm:$0x1] }
 0x176   :  { %v11091_v61 = vadd.f32 %v5663_v8, %v4993_v3  ;;  %v514_v53 = vsel %vm386_vm5, %v513_v49, %v512_v48  ;;  %v1216_v2 = vsel %vm374_vm1, %v1215_v14, %v1214_v9  ;;  %v1225_v7 = vrot.slane %v838_v26, 1  ;;  %v2254_v10 = vld [vmem:[#allocation5 + $0x25b] sm:$0x1]  ;;  %v2255_v49 = vld [vmem:[#allocation5 + $0x263] sm:$0x1] }
 0x177   :  { %v11096_v22 = vsel %vm389_vm6, %v515_v52, %v514_v53  ;;  %v1218_v42 = vsel %vm377_vm2, %v1217_v15, %v1216_v2  ;;  %v1923_v4 = vrot.slane %v1542_v34, 7  ;;  %v1925_v46 = vrot.slane %v1543_v38, 6  ;;  %v2256_v41 = vld [vmem:[#allocation5 + $0x26b] sm:$0x1]  ;;  %v2257_v52 = vld [vmem:[#allocation5 + $0x273] sm:$0x1] }
 0x178   :  { %14308 = vst [vmem:[#allocation27_spill] sm:$0xff] %v11091_v61  ;;  %v5746_v16 = vmul.f32 %v10497_v58, %v11091_v61  ;;  %v694_v23 = vmul.f32 %v11101_v35, %v11096_v22  ;;  %v1220_v18 = vsel %vm380_vm3, %v1219_v51, %v1218_v42  ;;  %v1927_v27 = vrot.slane %v1544_v37, 5  ;;  %v2258_v47 = vld [vmem:[#allocation5 + $0x27b] sm:$0x1]  ;;  %v11114_v14 = vld [vmem:[#allocation2 + $0x1] ss:$0 sm:$0xff] }
 0x179   :  { %v1222_v63 = vsel %vm383_vm4, %v1221_v29, %v1220_v18  ;;  %v1924_v43 = vsel %vm371_vm0, %v1923_v4, %v1541_v24  ;;  %v1929_v5 = vrot.slane %v1545_v60, 4  ;;  %v1931_v13 = vrot.slane %v1546_v17, 3  ;;  %v2961_v34 = vld [vmem:[#allocation5 + $0x244] sm:$0x1]  ;;  %v2962_v38 = vld [vmem:[#allocation5 + $0x24c] sm:$0x1] }
 0x17a   :  { %5802 = vadd.xlane.f32.xlu1 %v5746_v16  ;;  %v1224_v6 = vsel %vm386_vm5, %v1223_v30, %v1222_v63  ;;  %v1926_v36 = vsel %vm374_vm1, %v1925_v46, %v1924_v43  ;;  %v1933_v3 = vrot.slane %v1547_v59, 2  ;;  %v1935_v57 = vrot.slane %v1548_v21, 1  ;;  %v2963_v48 = vld [vmem:[#allocation5 + $0x254] sm:$0x1]  ;;  %v2964_v37 = vld [vmem:[#allocation5 + $0x25c] sm:$0x1] }
 0x17b   :  { %v11111_v39 = vsel %vm389_vm6, %v1225_v7, %v1224_v6  ;;  %v1928_v33 = vsel %vm377_vm2, %v1927_v27, %v1926_v36  ;;  %v2633_v26 = vrot.slane %v2252_v40, 7  ;;  %v2635_v28 = vrot.slane %v2253_v45, 6  ;;  %v2965_v53 = vld [vmem:[#allocation5 + $0x264] sm:$0x1]  ;;  %v2966_v42 = vld [vmem:[#allocation5 + $0x26c] sm:$0x1] }
 0x17c   :  { %v1404_v8 = vmul.f32 %v11114_v14, %v11111_v39  ;;  %v1930_v44 = vsel %vm380_vm3, %v1929_v5, %v1928_v33  ;;  %v2637_v15 = vrot.slane %v2254_v10, 5  ;;  %v2639_v51 = vrot.slane %v2255_v49, 4  ;;  %v2967_v59 = vld [vmem:[#allocation5 + $0x274] sm:$0x1]  ;;  %v2968_v46 = vld [vmem:[#allocation5 + $0x27c] sm:$0x1] }
 0x17d   :  { %v1932_v9 = vsel %vm383_vm4, %v1931_v13, %v1930_v44  ;;  %v2634_v29 = vsel %vm371_vm0, %v2633_v26, %v2251_v20  ;;  %v2641_v30 = vrot.slane %v2256_v41, 3  ;;  %v2643_v24 = vrot.slane %v2257_v52, 2  ;;  %v11127_v27 = vld [vmem:[#allocation2 + $0x2] ss:$0 sm:$0xff]  ;;  %v3671_v63 = vld [vmem:[#allocation5 + $0x245] sm:$0x1] }
 0x17e   :  { %v1444_v2 = vadd.f32 %v1404_v8, %v694_v23  ;;  %v1934_v7 = vsel %vm386_vm5, %v1933_v3, %v1932_v9  ;;  %v2636_v60 = vsel %vm374_vm1, %v2635_v28, %v2634_v29  ;;  %v2645_v17 = vrot.slane %v2258_v47, 1  ;;  %v3672_v43 = vld [vmem:[#allocation5 + $0x24d] sm:$0x1]  ;;  %v3673_v5 = vld [vmem:[#allocation5 + $0x255] sm:$0x1] }
 0x17f   :  { %v11124_v21 = vsel %vm389_vm6, %v1935_v57, %v1934_v7  ;;  %v2638_v4 = vsel %vm377_vm2, %v2637_v15, %v2636_v60  ;;  %v3343_v16 = vrot.slane %v2962_v38, 7  ;;  %v3345_v18 = vrot.slane %v2963_v48, 6  ;;  %v3674_v36 = vld [vmem:[#allocation5 + $0x25d] sm:$0x1]  ;;  %v3675_v3 = vld [vmem:[#allocation5 + $0x265] sm:$0x1] }
 0x180   :  { %v2114_v23 = vmul.f32 %v11127_v27, %v11124_v21  ;;  %v2640_v20 = vsel %vm380_vm3, %v2639_v51, %v2638_v4  ;;  %v3347_v40 = vrot.slane %v2964_v37, 5  ;;  %v3349_v45 = vrot.slane %v2965_v53, 4  ;;  %v3676_v47 = vld [vmem:[#allocation5 + $0x26d] sm:$0x1]  ;;  %v3677_v26 = vld [vmem:[#allocation5 + $0x275] sm:$0x1] }
 0x181   :  { %v2642_v13 = vsel %vm383_vm4, %v2641_v30, %v2640_v20  ;;  %v3344_v10 = vsel %vm371_vm0, %v3343_v16, %v2961_v34  ;;  %v3351_v49 = vrot.slane %v2966_v42, 3  ;;  %v3353_v6 = vrot.slane %v2967_v59, 2  ;;  %v3678_v44 = vld [vmem:[#allocation5 + $0x27d] sm:$0x1]  ;;  %v11140_v34 = vld [vmem:[#allocation2 + $0x3] ss:$0 sm:$0xff] }
 0x182   :  { %v2154_v57 = vadd.f32 %v2114_v23, %v1444_v2  ;;  %v2644_v41 = vsel %vm386_vm5, %v2643_v24, %v2642_v13  ;;  %v3346_v52 = vsel %vm374_vm1, %v3345_v18, %v3344_v10  ;;  %v3355_v33 = vrot.slane %v2968_v46, 1  ;;  %v4381_v30 = vld [vmem:[#allocation5 + $0x246] sm:$0x1]  ;;  %v4382_v24 = vld [vmem:[#allocation5 + $0x24e] sm:$0x1] }
 0x183   :  { %v11137_v28 = vsel %vm389_vm6, %v2645_v17, %v2644_v41  ;;  %v3348_v8 = vsel %vm377_vm2, %v3347_v40, %v3346_v52  ;;  %v4053_v15 = vrot.slane %v3672_v43, 7  ;;  %v4055_v51 = vrot.slane %v3673_v5, 6  ;;  %v4383_v37 = vld [vmem:[#allocation5 + $0x256] sm:$0x1]  ;;  %v4384_v17 = vld [vmem:[#allocation5 + $0x25e] sm:$0x1] }
 0x184   :  { %v2824_v38 = vmul.f32 %v11140_v34, %v11137_v28  ;;  %v3350_v48 = vsel %vm380_vm3, %v3349_v45, %v3348_v8  ;;  %v4057_v9 = vrot.slane %v3674_v36, 5  ;;  %v4059_v29 = vrot.slane %v3675_v3, 4  ;;  %v4385_v42 = vld [vmem:[#allocation5 + $0x266] sm:$0x1]  ;;  %v4386_v18 = vld [vmem:[#allocation5 + $0x26e] sm:$0x1] }
 0x185   :  { %v3352_v53 = vsel %vm383_vm4, %v3351_v49, %v3350_v48  ;;  %v4054_v2 = vsel %vm371_vm0, %v4053_v15, %v3671_v63  ;;  %v4061_v7 = vrot.slane %v3676_v47, 3  ;;  %v4063_v60 = vrot.slane %v3677_v26, 2  ;;  %v4387_v23 = vld [vmem:[#allocation5 + $0x276] sm:$0x1]  ;;  %v4388_v45 = vld [vmem:[#allocation5 + $0x27e] sm:$0x1] }
 0x186   :  { %v2864_v59 = vadd.f32 %v2824_v38, %v2154_v57  ;;  %v3354_v4 = vsel %vm386_vm5, %v3353_v6, %v3352_v53  ;;  %v4056_v46 = vsel %vm374_vm1, %v4055_v51, %v4054_v2  ;;  %v4065_v16 = vrot.slane %v3678_v44, 1  ;;  %v11153_v5 = vld [vmem:[#allocation2 + $0x4] ss:$0 sm:$0xff]  ;;  %v5091_v36 = vld [vmem:[#allocation5 + $0x247] sm:$0x1] }
 0x187   :  { %v11150_v20 = vsel %vm389_vm6, %v3355_v33, %v3354_v4  ;;  %v4058_v40 = vsel %vm377_vm2, %v4057_v9, %v4056_v46  ;;  %v4763_v43 = vrot.slane %v4382_v24, 7  ;;  %v4765_v63 = vrot.slane %v4383_v37, 6  ;;  %v5092_v3 = vld [vmem:[#allocation5 + $0x24f] sm:$0x1]  ;;  %v5093_v57 = vld [vmem:[#allocation5 + $0x257] sm:$0x1] }
 0x188   :  { %v3534_v13 = vmul.f32 %v11153_v5, %v11150_v20  ;;  %v4060_v10 = vsel %vm380_vm3, %v4059_v29, %v4058_v40  ;;  %v4767_v49 = vrot.slane %v4384_v17, 5  ;;  %v4769_v6 = vrot.slane %v4385_v42, 4  ;;  %v5094_v26 = vld [vmem:[#allocation5 + $0x25f] sm:$0x1]  ;;  %v5095_v8 = vld [vmem:[#allocation5 + $0x267] sm:$0x1] }
 0x189   :  { %v4062_v41 = vsel %vm383_vm4, %v4061_v7, %v4060_v10  ;;  %v4764_v52 = vsel %vm371_vm0, %v4763_v43, %v4381_v30  ;;  %v4771_v33 = vrot.slane %v4386_v18, 3  ;;  %v4773_v47 = vrot.slane %v4387_v23, 2  ;;  %v5096_v48 = vld [vmem:[#allocation5 + $0x26f] sm:$0x1]  ;;  %v5097_v9 = vld [vmem:[#allocation5 + $0x277] sm:$0x1] }
 0x18a   :  { %v3574_v44 = vadd.f32 %v3534_v13, %v2864_v59  ;;  %v4064_v15 = vsel %vm386_vm5, %v4063_v60, %v4062_v41  ;;  %v4766_v51 = vsel %vm374_vm1, %v4765_v63, %v4764_v52  ;;  %v4775_v38 = vrot.slane %v4388_v45, 1  ;;  %v5098_v37 = vld [vmem:[#allocation5 + $0x27f] sm:$0x1]  ;;  %v11164_v30 = vld [vmem:[#allocation2 + $0x5] ss:$0 sm:$0xff] }
 0x18b   :  { %v4066_v29 = vsel %vm389_vm6, %v4065_v16, %v4064_v15  ;;  %v4768_v24 = vsel %vm377_vm2, %v4767_v49, %v4766_v51  ;;  %v5473_v53 = vrot.slane %v5092_v3, 7  ;;  %v5475_v2 = vrot.slane %v5093_v57, 6  ;;  %v11174_v13 = vld [vmem:[#allocation2 + $0x8] ss:$0 sm:$0xff]  ;;  %v11178_v49 = vld [vmem:[#allocation2 + $0x9] ss:$0 sm:$0xff] }
 0x18c   :  { %v4244_v7 = vmul.f32 %v11164_v30, %v4066_v29  ;;  %v4770_v17 = vsel %vm380_vm3, %v4769_v6, %v4768_v24  ;;  %v5477_v42 = vrot.slane %v5094_v26, 5  ;;  %v5479_v60 = vrot.slane %v5095_v8, 4  ;;  %v11186_v41 = vld [vmem:[#allocation2 + $0xa] ss:$0 sm:$0xff]  ;;  %v5146_v61 = vld [vmem:[#allocation5 + $0x3ff] sm:$0x1] }
 0x18d   :  { %v4772_v59 = vsel %vm383_vm4, %v4771_v33, %v4770_v17  ;;  %v5474_v4 = vsel %vm371_vm0, %v5473_v53, %v5091_v36  ;;  %v5481_v46 = vrot.slane %v5096_v48, 3  ;;  %v5483_v18 = vrot.slane %v5097_v9, 2  ;;  %v11182_v36 = vld [vmem:[#allocation2 + $0x6] ss:$0 sm:$0xff]  ;;  %v11190_v33 = vld [vmem:[#allocation2 + $0xb] ss:$0 sm:$0xff] }
 0x18e   :  { %v4284_v16 = vadd.f32 %v4244_v7, %v3574_v44  ;;  %v4774_v23 = vsel %vm386_vm5, %v4773_v47, %v4772_v59  ;;  %v5476_v40 = vsel %vm374_vm1, %v5475_v2, %v5474_v4  ;;  %v5485_v45 = vrot.slane %v5098_v37, 1  ;;  %v11199_v44 = vld [vmem:[#allocation2 + $0xd] ss:$0 sm:$0xff]  ;;  %v11208_v48 = vld [vmem:[#allocation2 + $0xf] ss:$0 sm:$0xff] }
 0x18f   :  { %v4776_v43 = vsel %vm389_vm6, %v4775_v38, %v4774_v23  ;;  %v5478_v63 = vsel %vm377_vm2, %v5477_v42, %v5476_v40  ;;  %v695_v10 = vmul.f32 %v11174_v13, %v10999_v31  ;;  %v1405_v6 = vmul.f32 %v11178_v49, %v11014_v12  ;;  %v11195_v12 = vld [vmem:[#allocation2 + $0xc] ss:$0 sm:$0xff]  ;;  %v11204_v38 = vld [vmem:[#allocation2 + $0xe] ss:$0 sm:$0xff]  ;;  %v123_v53 = vld [vmem:[#allocation5 + $0x288] sm:$0x1] }
 0x190   :  { %v4954_v3 = vmul.f32 %v11182_v36, %v4776_v43  ;;  %v5480_v57 = vsel %vm380_vm3, %v5479_v60, %v5478_v63  ;;  %v2115_v52 = vmul.f32 %v11186_v41, %v11028_v62  ;;  %v2825_v31 = vmul.f32 %v11190_v33, %v11039_v50  ;;  %v124_v2 = vld [vmem:[#allocation5 + $0x290] sm:$0x1]  ;;  %v11217_v7 = vld [vmem:[#allocation2 + $0x7] ss:$0 sm:$0xff]  ;;  %v125_v60 = vld [vmem:[#allocation5 + $0x298] sm:$0x1] }
 0x191   :  { %v5482_v47 = vsel %vm383_vm4, %v5481_v46, %v5480_v57  ;;  %v1445_v26 = vadd.f32 %v1405_v6, %v695_v10  ;;  %v3535_v8 = vmul.f32 %v11195_v12, %v11050_v32  ;;  %v4245_v15 = vmul.f32 %v11199_v44, %v11061_v55  ;;  %v128_v23 = vld [vmem:[#allocation5 + $0x2b0] sm:$0x1] }
 0x192   :  { %v4994_v51 = vadd.f32 %v4954_v3, %v4284_v16  ;;  %v5484_v62 = vsel %vm386_vm5, %v5483_v18, %v5482_v47  ;;  %v4955_v50 = vmul.f32 %v11204_v38, %v11072_v54  ;;  %v5665_v9 = vmul.f32 %v11208_v48, %v11083_v19  ;;  %v122_v18 = vld [vmem:[#allocation5 + $0x280] sm:$0x1]  ;;  %v127_v16 = vld [vmem:[#allocation5 + $0x2a8] sm:$0x1] }
 0x193   :  { %v5486_v32 = vsel %vm389_vm6, %v5485_v45, %v5484_v62  ;;  %v2155_v24 = vadd.f32 %v2115_v52, %v1445_v26  ;;  %v696_v37 = vmul.f32 %v11174_v13, %v11096_v22  ;;  %v1406_v55 = vmul.f32 %v11178_v49, %v11111_v39  ;;  %v126_v22 = vld [vmem:[#allocation5 + $0x2a0] sm:$0x1]  ;;  %v841_v52 = vld [vmem:[#allocation5 + $0x291] sm:$0x1]  ;;  %v843_v62 = vld [vmem:[#allocation5 + $0x2a1] sm:$0x1] }
 0x194   :  { %v5664_v54 = vmul.f32 %v11217_v7, %v5486_v32  ;;  %v2116_v17 = vmul.f32 %v11186_v41, %v11124_v21  ;;  %v2826_v19 = vmul.f32 %v11190_v33, %v11137_v28  ;;  %v3536_v42 = vmul.f32 %v11195_v12, %v11150_v20  ;;  %v129_v28 = vld [vmem:[#allocation5 + $0x2b8] sm:$0x1]  ;;  %v840_v20 = vld [vmem:[#allocation5 + $0x289] sm:$0x1] }
 0x195   :  { %v2865_v59 = vadd.f32 %v2825_v31, %v2155_v24  ;;  %v1446_v4 = vadd.f32 %v1406_v55, %v696_v37  ;;  %v4246_v39 = vmul.f32 %v11199_v44, %v4066_v29  ;;  %v4956_v46 = vmul.f32 %v11204_v38, %v4776_v43  ;;  %v842_v29 = vld [vmem:[#allocation5 + $0x299] sm:$0x1] }
 0x196   :  { %v11228_v40 = vadd.f32 %v5664_v54, %v4994_v51  ;;  %v11231_v21 = vmul.f32 %v11208_v48, %v5486_v32  ;;  %v517_v45 = vrot.slane %v123_v53, 7  ;;  %v519_v63 = vrot.slane %v124_v2, 6  ;;  %v839_v51 = vld [vmem:[#allocation5 + $0x281] sm:$0x1]  ;;  %v845_v53 = vld [vmem:[#allocation5 + $0x2b1] sm:$0x1] }
 0x197   :  { %v3575_v10 = vadd.f32 %v3535_v8, %v2865_v59  ;;  %v2156_v6 = vadd.f32 %v2116_v17, %v1446_v4  ;;  %v521_v3 = vrot.slane %v125_v60, 5  ;;  %v523_v57 = vrot.slane %v126_v22, 4  ;;  %v844_v8 = vld [vmem:[#allocation5 + $0x2a9] sm:$0x1] }
 0x198   :  { %14309 = vst [vmem:[#allocation28_spill] sm:$0xff] %v11228_v40  ;;  %v5747_v43 = vmul.f32 %v10497_v58, %v11228_v40  ;;  %v518_v31 = vsel %vm371_vm0, %v517_v45, %v122_v18  ;;  %v525_v47 = vrot.slane %v127_v16, 3  ;;  %v527_v26 = vrot.slane %v128_v23, 2  ;;  %v846_v18 = vld [vmem:[#allocation5 + $0x2b9] sm:$0x1] }
 0x199   :  { %v4285_v32 = vadd.f32 %v4245_v15, %v3575_v10  ;;  %v2866_v24 = vadd.f32 %v2826_v19, %v2156_v6  ;;  %v520_v37 = vsel %vm374_vm1, %v519_v63, %v518_v31  ;;  %v529_v55 = vrot.slane %v129_v28, 1  ;;  %v1550_v23 = vld [vmem:[#allocation5 + $0x28a] sm:$0x1] }
 0x19a   :  { %5804 = vadd.xlane.f32.xlu0 %v5747_v43  ;;  %v522_v2 = vsel %vm377_vm2, %v521_v3, %v520_v37  ;;  %v1227_v54 = vrot.slane %v840_v20, 7  ;;  %v1229_v17 = vrot.slane %v841_v52, 6  ;;  %v1231_v60 = vrot.slane %v842_v29, 5  ;;  %v1552_v3 = vld [vmem:[#allocation5 + $0x29a] sm:$0x1] }
 0x19b   :  { %v4995_v22 = vadd.f32 %v4955_v50, %v4285_v32  ;;  %v3576_v59 = vadd.f32 %v3536_v42, %v2866_v24  ;;  %v524_v4 = vsel %vm380_vm3, %v523_v57, %v522_v2  ;;  %v1233_v16 = vrot.slane %v843_v62, 4  ;;  %v1549_v50 = vld [vmem:[#allocation5 + $0x282] sm:$0x1]  ;;  %v1551_v42 = vld [vmem:[#allocation5 + $0x292] sm:$0x1] }
 0x19c   :  { %v526_v15 = vsel %vm383_vm4, %v525_v47, %v524_v4  ;;  %v1228_v19 = vsel %vm371_vm0, %v1227_v54, %v839_v51  ;;  %v1235_v28 = vrot.slane %v844_v8, 3  ;;  %v1237_v45 = vrot.slane %v845_v53, 2  ;;  %v1553_v43 = vld [vmem:[#allocation5 + $0x2a2] sm:$0x1]  ;;  %v1554_v31 = vld [vmem:[#allocation5 + $0x2aa] sm:$0x1] }
 0x19d   :  { %v11241_v63 = vadd.f32 %v5665_v9, %v4995_v22  ;;  %v4286_v10 = vadd.f32 %v4246_v39, %v3576_v59  ;;  %v528_v20 = vsel %vm386_vm5, %v527_v26, %v526_v15  ;;  %v1230_v6 = vsel %vm374_vm1, %v1229_v17, %v1228_v19  ;;  %v1555_v62 = vld [vmem:[#allocation5 + $0x2b2] sm:$0x1]  ;;  %v1556_v32 = vld [vmem:[#allocation5 + $0x2ba] sm:$0x1]  ;;  %v2259_v53 = vld [vmem:[#allocation5 + $0x283] sm:$0x1] }
 0x19e   :  { %v11246_v57 = vsel %vm389_vm6, %v529_v55, %v528_v20  ;;  %v1232_v52 = vsel %vm377_vm2, %v1231_v60, %v1230_v6  ;;  %v1239_v29 = vrot.slane %v846_v18, 1  ;;  %v1937_v47 = vrot.slane %v1550_v23, 7  ;;  %v2260_v2 = vld [vmem:[#allocation5 + $0x28b] sm:$0x1]  ;;  %v2261_v54 = vld [vmem:[#allocation5 + $0x293] sm:$0x1] }
 0x19f   :  { %14310 = vst [vmem:[#allocation29_spill] sm:$0xff] %v11241_v63  ;;  %v5748_v9 = vmul.f32 %v10497_v58, %v11241_v63  ;;  %v4996_v39 = vadd.f32 %v4956_v46, %v4286_v10  ;;  %v697_v26 = vmul.f32 %v11101_v35, %v11246_v57  ;;  %v1234_v51 = vsel %vm380_vm3, %v1233_v16, %v1232_v52  ;;  %v2262_v59 = vld [vmem:[#allocation5 + $0x29b] sm:$0x1]  ;;  %v2263_v4 = vld [vmem:[#allocation5 + $0x2a3] sm:$0x1] }
 0x1a0   :  { %v1236_v24 = vsel %vm383_vm4, %v1235_v28, %v1234_v51  ;;  %v1938_v37 = vsel %vm371_vm0, %v1937_v47, %v1549_v50  ;;  %v1939_v55 = vrot.slane %v1551_v42, 6  ;;  %v1941_v8 = vrot.slane %v1552_v3, 5  ;;  %v2264_v19 = vld [vmem:[#allocation5 + $0x2ab] sm:$0x1]  ;;  %v2265_v28 = vld [vmem:[#allocation5 + $0x2b3] sm:$0x1] }
 0x1a1   :  { %5806 = vadd.xlane.f32.xlu1 %v5748_v9  ;;  %v11257_v17 = vadd.f32 %v11231_v21, %v4996_v39  ;;  %v1238_v46 = vsel %vm386_vm5, %v1237_v45, %v1236_v24  ;;  %v1943_v60 = vrot.slane %v1553_v43, 4  ;;  %v1945_v22 = vrot.slane %v1554_v31, 3  ;;  %v2266_v20 = vld [vmem:[#allocation5 + $0x2bb] sm:$0x1]  ;;  %v2970_v50 = vld [vmem:[#allocation5 + $0x28c] sm:$0x1] }
 0x1a2   :  { %v11261_v18 = vsel %vm389_vm6, %v1239_v29, %v1238_v46  ;;  %v1940_v16 = vsel %vm374_vm1, %v1939_v55, %v1938_v37  ;;  %v1947_v23 = vrot.slane %v1555_v62, 2  ;;  %v1949_v15 = vrot.slane %v1556_v32, 1  ;;  %v2969_v43 = vld [vmem:[#allocation5 + $0x284] sm:$0x1]  ;;  %v2971_v31 = vld [vmem:[#allocation5 + $0x294] sm:$0x1] }
 0x1a3   :  { %14311 = vst [vmem:[#allocation30_spill] sm:$0xff] %v11257_v17  ;;  %v5749_v10 = vmul.f32 %v10497_v58, %v11257_v17  ;;  %v1407_v21 = vmul.f32 %v11114_v14, %v11261_v18  ;;  %v1942_v45 = vsel %vm377_vm2, %v1941_v8, %v1940_v16  ;;  %v2647_v6 = vrot.slane %v2260_v2, 7  ;;  %v2972_v62 = vld [vmem:[#allocation5 + $0x29c] sm:$0x1]  ;;  %v2973_v32 = vld [vmem:[#allocation5 + $0x2a4] sm:$0x1] }
 0x1a4   :  { %v1944_v42 = vsel %vm380_vm3, %v1943_v60, %v1942_v45  ;;  %v2649_v3 = vrot.slane %v2261_v54, 6  ;;  %v2651_v52 = vrot.slane %v2262_v59, 5  ;;  %v2653_v29 = vrot.slane %v2263_v4, 4  ;;  %v2974_v2 = vld [vmem:[#allocation5 + $0x2ac] sm:$0x1] }
 0x1a5   :  { %5808 = vadd.xlane.f32.xlu0 %v5749_v10  ;;  %v1447_v47 = vadd.f32 %v1407_v21, %v697_v26  ;;  %v1946_v9 = vsel %vm383_vm4, %v1945_v22, %v1944_v42  ;;  %v2648_v39 = vsel %vm371_vm0, %v2647_v6, %v2259_v53  ;;  %v2655_v51 = vrot.slane %v2264_v19, 3  ;;  %v2975_v54 = vld [vmem:[#allocation5 + $0x2b4] sm:$0x1]  ;;  %v2976_v60 = vld [vmem:[#allocation5 + $0x2bc] sm:$0x1] }
 0x1a6   :  { %v1948_v24 = vsel %vm386_vm5, %v1947_v23, %v1946_v9  ;;  %v2650_v37 = vsel %vm374_vm1, %v2649_v3, %v2648_v39  ;;  %v2657_v55 = vrot.slane %v2265_v28, 2  ;;  %v2659_v8 = vrot.slane %v2266_v20, 1  ;;  %v3679_v19 = vld [vmem:[#allocation5 + $0x285] sm:$0x1]  ;;  %v3680_v28 = vld [vmem:[#allocation5 + $0x28d] sm:$0x1] }
 0x1a7   :  { %v11275_v46 = vsel %vm389_vm6, %v1949_v15, %v1948_v24  ;;  %v2652_v26 = vsel %vm377_vm2, %v2651_v52, %v2650_v37  ;;  %v3357_v22 = vrot.slane %v2970_v50, 7  ;;  %v3359_v59 = vrot.slane %v2971_v31, 6  ;;  %v3681_v10 = vld [vmem:[#allocation5 + $0x295] sm:$0x1]  ;;  %v3682_v6 = vld [vmem:[#allocation5 + $0x29d] sm:$0x1] }
 0x1a8   :  { %v2117_v53 = vmul.f32 %v11127_v27, %v11275_v46  ;;  %v2654_v4 = vsel %vm380_vm3, %v2653_v29, %v2652_v26  ;;  %v3361_v16 = vrot.slane %v2972_v62, 5  ;;  %v3363_v23 = vrot.slane %v2973_v32, 4  ;;  %v3683_v42 = vld [vmem:[#allocation5 + $0x2a5] sm:$0x1]  ;;  %v3684_v29 = vld [vmem:[#allocation5 + $0x2ad] sm:$0x1] }
 0x1a9   :  { %v2656_v21 = vsel %vm383_vm4, %v2655_v51, %v2654_v4  ;;  %v3358_v15 = vsel %vm371_vm0, %v3357_v22, %v2969_v43  ;;  %v3365_v45 = vrot.slane %v2974_v2, 3  ;;  %v3367_v20 = vrot.slane %v2975_v54, 2  ;;  %v3685_v9 = vld [vmem:[#allocation5 + $0x2b5] sm:$0x1]  ;;  %v3686_v51 = vld [vmem:[#allocation5 + $0x2bd] sm:$0x1] }
 0x1aa   :  { %v2157_v50 = vadd.f32 %v2117_v53, %v1447_v47  ;;  %v2658_v3 = vsel %vm386_vm5, %v2657_v55, %v2656_v21  ;;  %v3360_v52 = vsel %vm374_vm1, %v3359_v59, %v3358_v15  ;;  %v3369_v31 = vrot.slane %v2976_v60, 1  ;;  %v4389_v2 = vld [vmem:[#allocation5 + $0x286] sm:$0x1]  ;;  %v4390_v54 = vld [vmem:[#allocation5 + $0x28e] sm:$0x1] }
 0x1ab   :  { %v11286_v39 = vsel %vm389_vm6, %v2659_v8, %v2658_v3  ;;  %v3362_v62 = vsel %vm377_vm2, %v3361_v16, %v3360_v52  ;;  %v4067_v32 = vrot.slane %v3680_v28, 7  ;;  %v4069_v43 = vrot.slane %v3681_v10, 6  ;;  %v4391_v26 = vld [vmem:[#allocation5 + $0x296] sm:$0x1]  ;;  %v4392_v53 = vld [vmem:[#allocation5 + $0x29e] sm:$0x1] }
 0x1ac   :  { %v2827_v24 = vmul.f32 %v11140_v34, %v11286_v39  ;;  %v3364_v47 = vsel %vm380_vm3, %v3363_v23, %v3362_v62  ;;  %v4071_v37 = vrot.slane %v3682_v6, 5  ;;  %v4073_v55 = vrot.slane %v3683_v42, 4  ;;  %v4393_v4 = vld [vmem:[#allocation5 + $0x2a6] sm:$0x1]  ;;  %v4394_v23 = vld [vmem:[#allocation5 + $0x2ae] sm:$0x1] }
 0x1ad   :  { %v3366_v60 = vsel %vm383_vm4, %v3365_v45, %v3364_v47  ;;  %v4068_v8 = vsel %vm371_vm0, %v4067_v32, %v3679_v19  ;;  %v4075_v22 = vrot.slane %v3684_v29, 3  ;;  %v4077_v59 = vrot.slane %v3685_v9, 2  ;;  %v4395_v15 = vld [vmem:[#allocation5 + $0x2b6] sm:$0x1]  ;;  %v4396_v45 = vld [vmem:[#allocation5 + $0x2be] sm:$0x1] }
 0x1ae   :  { %v2867_v16 = vadd.f32 %v2827_v24, %v2157_v50  ;;  %v3368_v28 = vsel %vm386_vm5, %v3367_v20, %v3366_v60  ;;  %v4070_v10 = vsel %vm374_vm1, %v4069_v43, %v4068_v8  ;;  %v4079_v21 = vrot.slane %v3686_v51, 1  ;;  %v5099_v9 = vld [vmem:[#allocation5 + $0x287] sm:$0x1]  ;;  %v5100_v62 = vld [vmem:[#allocation5 + $0x28f] sm:$0x1] }
 0x1af   :  { %v11297_v6 = vsel %vm389_vm6, %v3369_v31, %v3368_v28  ;;  %v4072_v42 = vsel %vm377_vm2, %v4071_v37, %v4070_v10  ;;  %v4777_v3 = vrot.slane %v4390_v54, 7  ;;  %v4779_v19 = vrot.slane %v4391_v26, 6  ;;  %v5101_v51 = vld [vmem:[#allocation5 + $0x297] sm:$0x1]  ;;  %v5102_v47 = vld [vmem:[#allocation5 + $0x29f] sm:$0x1] }
 0x1b0   :  { %v3537_v52 = vmul.f32 %v11153_v5, %v11297_v6  ;;  %v4074_v50 = vsel %vm380_vm3, %v4073_v55, %v4072_v42  ;;  %v4781_v29 = vrot.slane %v4392_v53, 5  ;;  %v4783_v20 = vrot.slane %v4393_v4, 4  ;;  %v5103_v37 = vld [vmem:[#allocation5 + $0x2a7] sm:$0x1]  ;;  %v5104_v55 = vld [vmem:[#allocation5 + $0x2af] sm:$0x1] }
 0x1b1   :  { %v4076_v32 = vsel %vm383_vm4, %v4075_v22, %v4074_v50  ;;  %v4778_v31 = vsel %vm371_vm0, %v4777_v3, %v4389_v2  ;;  %v4785_v43 = vrot.slane %v4394_v23, 3  ;;  %v4787_v24 = vrot.slane %v4395_v15, 2  ;;  %v5105_v53 = vld [vmem:[#allocation5 + $0x2b7] sm:$0x1]  ;;  %v5106_v22 = vld [vmem:[#allocation5 + $0x2bf] sm:$0x1] }
 0x1b2   :  { %v3577_v54 = vadd.f32 %v3537_v52, %v2867_v16  ;;  %v4078_v26 = vsel %vm386_vm5, %v4077_v59, %v4076_v32  ;;  %v4780_v60 = vsel %vm374_vm1, %v4779_v19, %v4778_v31  ;;  %v4789_v8 = vrot.slane %v4396_v45, 1  ;;  %v130_v42 = vld [vmem:[#allocation5 + $0x2c0] sm:$0x1]  ;;  %v131_v3 = vld [vmem:[#allocation5 + $0x2c8] sm:$0x1] }
 0x1b3   :  { %v11308_v4 = vsel %vm389_vm6, %v4079_v21, %v4078_v26  ;;  %v4782_v28 = vsel %vm377_vm2, %v4781_v29, %v4780_v60  ;;  %v5487_v10 = vrot.slane %v5100_v62, 7  ;;  %v5489_v2 = vrot.slane %v5101_v51, 6  ;;  %v132_v45 = vld [vmem:[#allocation5 + $0x2d0] sm:$0x1]  ;;  %v133_v29 = vld [vmem:[#allocation5 + $0x2d8] sm:$0x1] }
 0x1b4   :  { %v4247_v23 = vmul.f32 %v11164_v30, %v11308_v4  ;;  %v4784_v16 = vsel %vm380_vm3, %v4783_v20, %v4782_v28  ;;  %v5491_v15 = vrot.slane %v5102_v47, 5  ;;  %v5493_v59 = vrot.slane %v5103_v37, 4  ;;  %v134_v32 = vld [vmem:[#allocation5 + $0x2e0] sm:$0x1]  ;;  %v135_v20 = vld [vmem:[#allocation5 + $0x2e8] sm:$0x1] }
 0x1b5   :  { %v4786_v19 = vsel %vm383_vm4, %v4785_v43, %v4784_v16  ;;  %v5488_v21 = vsel %vm371_vm0, %v5487_v10, %v5099_v9  ;;  %v5495_v52 = vrot.slane %v5104_v55, 3  ;;  %v5497_v50 = vrot.slane %v5105_v53, 2  ;;  %v136_v47 = vld [vmem:[#allocation5 + $0x2f0] sm:$0x1]  ;;  %v137_v43 = vld [vmem:[#allocation5 + $0x2f8] sm:$0x1] }
 0x1b6   :  { %v4287_v62 = vadd.f32 %v4247_v23, %v3577_v54  ;;  %v4788_v51 = vsel %vm386_vm5, %v4787_v24, %v4786_v19  ;;  %v5490_v31 = vsel %vm374_vm1, %v5489_v2, %v5488_v21  ;;  %v5499_v26 = vrot.slane %v5106_v22, 1  ;;  %v847_v10 = vld [vmem:[#allocation5 + $0x2c1] sm:$0x1]  ;;  %v848_v2 = vld [vmem:[#allocation5 + $0x2c9] sm:$0x1] }
 0x1b7   :  { %v11319_v37 = vsel %vm389_vm6, %v4789_v8, %v4788_v51  ;;  %v5492_v60 = vsel %vm377_vm2, %v5491_v15, %v5490_v31  ;;  %v531_v28 = vrot.slane %v131_v3, 7  ;;  %v533_v9 = vrot.slane %v132_v45, 6  ;;  %v849_v22 = vld [vmem:[#allocation5 + $0x2d1] sm:$0x1]  ;;  %v850_v15 = vld [vmem:[#allocation5 + $0x2d9] sm:$0x1] }
 0x1b8   :  { %v4957_v55 = vmul.f32 %v11182_v36, %v11319_v37  ;;  %v5494_v54 = vsel %vm380_vm3, %v5493_v59, %v5492_v60  ;;  %v535_v53 = vrot.slane %v133_v29, 5  ;;  %v537_v24 = vrot.slane %v134_v32, 4  ;;  %v851_v21 = vld [vmem:[#allocation5 + $0x2e1] sm:$0x1]  ;;  %v852_v59 = vld [vmem:[#allocation5 + $0x2e9] sm:$0x1] }
 0x1b9   :  { %v5496_v23 = vsel %vm383_vm4, %v5495_v52, %v5494_v54  ;;  %v532_v8 = vsel %vm371_vm0, %v531_v28, %v130_v42  ;;  %v539_v16 = vrot.slane %v135_v20, 3  ;;  %v541_v19 = vrot.slane %v136_v47, 2  ;;  %v853_v29 = vld [vmem:[#allocation5 + $0x2f1] sm:$0x1]  ;;  %v854_v52 = vld [vmem:[#allocation5 + $0x2f9] sm:$0x1] }
 0x1ba   :  { %v4997_v3 = vadd.f32 %v4957_v55, %v4287_v62  ;;  %v5498_v45 = vsel %vm386_vm5, %v5497_v50, %v5496_v23  ;;  %v534_v51 = vsel %vm374_vm1, %v533_v9, %v532_v8  ;;  %v543_v31 = vrot.slane %v137_v43, 1  ;;  %v1558_v28 = vld [vmem:[#allocation5 + $0x2ca] sm:$0x1]  ;;  %v1559_v9 = vld [vmem:[#allocation5 + $0x2d2] sm:$0x1] }
 0x1bb   :  { %v11330_v32 = vsel %vm389_vm6, %v5499_v26, %v5498_v45  ;;  %v536_v60 = vsel %vm377_vm2, %v535_v53, %v534_v51  ;;  %v1241_v54 = vrot.slane %v848_v2, 7  ;;  %v1243_v42 = vrot.slane %v849_v22, 6  ;;  %v1557_v8 = vld [vmem:[#allocation5 + $0x2c2] sm:$0x1]  ;;  %v1560_v53 = vld [vmem:[#allocation5 + $0x2da] sm:$0x1] }
 0x1bc   :  { %v5667_v20 = vmul.f32 %v11217_v7, %v11330_v32  ;;  %v538_v62 = vsel %vm380_vm3, %v537_v24, %v536_v60  ;;  %v1245_v47 = vrot.slane %v850_v15, 5  ;;  %v1247_v50 = vrot.slane %v851_v21, 4  ;;  %v1561_v24 = vld [vmem:[#allocation5 + $0x2e2] sm:$0x1]  ;;  %v1562_v15 = vld [vmem:[#allocation5 + $0x2ea] sm:$0x1] }
 0x1bd   :  { %v540_v43 = vsel %vm383_vm4, %v539_v16, %v538_v62  ;;  %v1242_v55 = vsel %vm371_vm0, %v1241_v54, %v847_v10  ;;  %v1249_v26 = vrot.slane %v852_v59, 3  ;;  %v1251_v23 = vrot.slane %v853_v29, 2  ;;  %v1563_v60 = vld [vmem:[#allocation5 + $0x2f2] sm:$0x1]  ;;  %v1564_v10 = vld [vmem:[#allocation5 + $0x2fa] sm:$0x1] }
 0x1be   :  { %v11338_v45 = vadd.f32 %v5667_v20, %v4997_v3  ;;  %v542_v2 = vsel %vm386_vm5, %v541_v19, %v540_v43  ;;  %v1244_v22 = vsel %vm374_vm1, %v1243_v42, %v1242_v55  ;;  %v1253_v51 = vrot.slane %v854_v52, 1  ;;  %v2267_v42 = vld [vmem:[#allocation5 + $0x2c3] sm:$0x1]  ;;  %v2268_v20 = vld [vmem:[#allocation5 + $0x2cb] sm:$0x1] }
 0x1bf   :  { %v11343_v21 = vsel %vm389_vm6, %v543_v31, %v542_v2  ;;  %v1246_v16 = vsel %vm377_vm2, %v1245_v47, %v1244_v22  ;;  %v1951_v59 = vrot.slane %v1558_v28, 7  ;;  %v1953_v29 = vrot.slane %v1559_v9, 6  ;;  %v2269_v62 = vld [vmem:[#allocation5 + $0x2d3] sm:$0x1]  ;;  %v2270_v28 = vld [vmem:[#allocation5 + $0x2db] sm:$0x1] }
 0x1c0   :  { %14312 = vst [vmem:[#allocation31_spill] sm:$0xff] %v11338_v45  ;;  %v5750_v3 = vmul.f32 %v10497_v58, %v11338_v45  ;;  %v698_v19 = vmul.f32 %v11101_v35, %v11343_v21  ;;  %v1248_v54 = vsel %vm380_vm3, %v1247_v50, %v1246_v16  ;;  %v1955_v52 = vrot.slane %v1560_v53, 5  ;;  %v2271_v9 = vld [vmem:[#allocation5 + $0x2e3] sm:$0x1]  ;;  %v2272_v50 = vld [vmem:[#allocation5 + $0x2eb] sm:$0x1] }
 0x1c1   :  { %v1250_v31 = vsel %vm383_vm4, %v1249_v26, %v1248_v54  ;;  %v1952_v47 = vsel %vm371_vm0, %v1951_v59, %v1557_v8  ;;  %v1957_v43 = vrot.slane %v1561_v24, 4  ;;  %v1959_v55 = vrot.slane %v1562_v15, 3  ;;  %v2273_v53 = vld [vmem:[#allocation5 + $0x2f3] sm:$0x1]  ;;  %v2274_v54 = vld [vmem:[#allocation5 + $0x2fb] sm:$0x1] }
 0x1c2   :  { %5810 = vadd.xlane.f32.xlu1 %v5750_v3  ;;  %v1252_v2 = vsel %vm386_vm5, %v1251_v23, %v1250_v31  ;;  %v1954_v22 = vsel %vm374_vm1, %v1953_v29, %v1952_v47  ;;  %v1961_v35 = vrot.slane %v1563_v60, 2  ;;  %v1963_v45 = vrot.slane %v1564_v10, 1  ;;  %v2977_v29 = vld [vmem:[#allocation5 + $0x2c4] sm:$0x1]  ;;  %v2978_v60 = vld [vmem:[#allocation5 + $0x2cc] sm:$0x1] }
 0x1c3   :  { %v11356_v16 = vsel %vm389_vm6, %v1253_v51, %v1252_v2  ;;  %v1956_v26 = vsel %vm377_vm2, %v1955_v52, %v1954_v22  ;;  %v2661_v8 = vrot.slane %v2268_v20, 7  ;;  %v2663_v24 = vrot.slane %v2269_v62, 6  ;;  %v2979_v10 = vld [vmem:[#allocation5 + $0x2d4] sm:$0x1]  ;;  %v2980_v52 = vld [vmem:[#allocation5 + $0x2dc] sm:$0x1] }
 0x1c4   :  { %v1408_v15 = vmul.f32 %v11114_v14, %v11356_v16  ;;  %v1958_v59 = vsel %vm380_vm3, %v1957_v43, %v1956_v26  ;;  %v2665_v23 = vrot.slane %v2270_v28, 5  ;;  %v2667_v3 = vrot.slane %v2271_v9, 4  ;;  %v2981_v22 = vld [vmem:[#allocation5 + $0x2e4] sm:$0x1]  ;;  %v2982_v43 = vld [vmem:[#allocation5 + $0x2ec] sm:$0x1] }
 0x1c5   :  { %v1960_v31 = vsel %vm383_vm4, %v1959_v55, %v1958_v59  ;;  %v2662_v51 = vsel %vm371_vm0, %v2661_v8, %v2267_v42  ;;  %v2669_v47 = vrot.slane %v2272_v50, 3  ;;  %v2671_v2 = vrot.slane %v2273_v53, 2  ;;  %v2983_v28 = vld [vmem:[#allocation5 + $0x2f4] sm:$0x1]  ;;  %v2984_v55 = vld [vmem:[#allocation5 + $0x2fc] sm:$0x1] }
 0x1c6   :  { %v1448_v20 = vadd.f32 %v1408_v15, %v698_v19  ;;  %v1962_v62 = vsel %vm386_vm5, %v1961_v35, %v1960_v31  ;;  %v2664_v14 = vsel %vm374_vm1, %v2663_v24, %v2662_v51  ;;  %v2673_v17 = vrot.slane %v2274_v54, 1  ;;  %v3687_v8 = vld [vmem:[#allocation5 + $0x2c5] sm:$0x1]  ;;  %v3688_v24 = vld [vmem:[#allocation5 + $0x2cd] sm:$0x1] }
 0x1c7   :  { %v11367_v9 = vsel %vm389_vm6, %v1963_v45, %v1962_v62  ;;  %v2666_v26 = vsel %vm377_vm2, %v2665_v23, %v2664_v14  ;;  %v3371_v59 = vrot.slane %v2978_v60, 7  ;;  %v3373_v42 = vrot.slane %v2979_v10, 6  ;;  %v3689_v54 = vld [vmem:[#allocation5 + $0x2d5] sm:$0x1]  ;;  %v3690_v23 = vld [vmem:[#allocation5 + $0x2dd] sm:$0x1] }
 0x1c8   :  { %v2118_v50 = vmul.f32 %v11127_v27, %v11367_v9  ;;  %v2668_v19 = vsel %vm380_vm3, %v2667_v3, %v2666_v26  ;;  %v3375_v53 = vrot.slane %v2980_v52, 5  ;;  %v3377_v35 = vrot.slane %v2981_v22, 4  ;;  %v3691_v62 = vld [vmem:[#allocation5 + $0x2e5] sm:$0x1]  ;;  %v3692_v3 = vld [vmem:[#allocation5 + $0x2ed] sm:$0x1] }
 0x1c9   :  { %v2670_v15 = vsel %vm383_vm4, %v2669_v47, %v2668_v19  ;;  %v3372_v45 = vsel %vm371_vm0, %v3371_v59, %v2977_v29  ;;  %v3379_v31 = vrot.slane %v2982_v43, 3  ;;  %v3381_v51 = vrot.slane %v2983_v28, 2  ;;  %v3693_v52 = vld [vmem:[#allocation5 + $0x2f5] sm:$0x1]  ;;  %v3694_v47 = vld [vmem:[#allocation5 + $0x2fd] sm:$0x1] }
 0x1ca   :  { %v2158_v60 = vadd.f32 %v2118_v50, %v1448_v20  ;;  %v2672_v10 = vsel %vm386_vm5, %v2671_v2, %v2670_v15  ;;  %v3374_v27 = vsel %vm374_vm1, %v3373_v42, %v3372_v45  ;;  %v3383_v14 = vrot.slane %v2984_v55, 1  ;;  %v4397_v59 = vld [vmem:[#allocation5 + $0x2c6] sm:$0x1]  ;;  %v4398_v42 = vld [vmem:[#allocation5 + $0x2ce] sm:$0x1] }
 0x1cb   :  { %v11378_v22 = vsel %vm389_vm6, %v2673_v17, %v2672_v10  ;;  %v3376_v26 = vsel %vm377_vm2, %v3375_v53, %v3374_v27  ;;  %v4081_v19 = vrot.slane %v3688_v24, 7  ;;  %v4083_v29 = vrot.slane %v3689_v54, 6  ;;  %v4399_v55 = vld [vmem:[#allocation5 + $0x2d6] sm:$0x1]  ;;  %v4400_v53 = vld [vmem:[#allocation5 + $0x2de] sm:$0x1] }
 0x1cc   :  { %v2828_v43 = vmul.f32 %v11140_v34, %v11378_v22  ;;  %v3378_v20 = vsel %vm380_vm3, %v3377_v35, %v3376_v26  ;;  %v4085_v28 = vrot.slane %v3690_v23, 5  ;;  %v4087_v2 = vrot.slane %v3691_v62, 4  ;;  %v4401_v10 = vld [vmem:[#allocation5 + $0x2e6] sm:$0x1]  ;;  %v4402_v35 = vld [vmem:[#allocation5 + $0x2ee] sm:$0x1] }
 0x1cd   :  { %v3380_v50 = vsel %vm383_vm4, %v3379_v31, %v3378_v20  ;;  %v4082_v17 = vsel %vm371_vm0, %v4081_v19, %v3687_v8  ;;  %v4089_v15 = vrot.slane %v3692_v3, 3  ;;  %v4091_v45 = vrot.slane %v3693_v52, 2  ;;  %v4403_v23 = vld [vmem:[#allocation5 + $0x2f6] sm:$0x1]  ;;  %v4404_v31 = vld [vmem:[#allocation5 + $0x2fe] sm:$0x1] }
 0x1ce   :  { %v2868_v24 = vadd.f32 %v2828_v43, %v2158_v60  ;;  %v3382_v54 = vsel %vm386_vm5, %v3381_v51, %v3380_v50  ;;  %v4084_v34 = vsel %vm374_vm1, %v4083_v29, %v4082_v17  ;;  %v4093_v27 = vrot.slane %v3694_v47, 1  ;;  %v5107_v19 = vld [vmem:[#allocation5 + $0x2c7] sm:$0x1]  ;;  %v5108_v29 = vld [vmem:[#allocation5 + $0x2cf] sm:$0x1] }
 0x1cf   :  { %v11389_v62 = vsel %vm389_vm6, %v3383_v14, %v3382_v54  ;;  %v4086_v26 = vsel %vm377_vm2, %v4085_v28, %v4084_v34  ;;  %v4791_v20 = vrot.slane %v4398_v42, 7  ;;  %v4793_v8 = vrot.slane %v4399_v55, 6  ;;  %v5109_v47 = vld [vmem:[#allocation5 + $0x2d7] sm:$0x1]  ;;  %v5110_v28 = vld [vmem:[#allocation5 + $0x2df] sm:$0x1] }
 0x1d0   :  { %v3538_v3 = vmul.f32 %v11153_v5, %v11389_v62  ;;  %v4088_v60 = vsel %vm380_vm3, %v4087_v2, %v4086_v26  ;;  %v4795_v52 = vrot.slane %v4400_v53, 5  ;;  %v4797_v51 = vrot.slane %v4401_v10, 4  ;;  %v5111_v54 = vld [vmem:[#allocation5 + $0x2e7] sm:$0x1]  ;;  %v5112_v2 = vld [vmem:[#allocation5 + $0x2ef] sm:$0x1] }
 0x1d1   :  { %v4090_v43 = vsel %vm383_vm4, %v4089_v15, %v4088_v60  ;;  %v4792_v14 = vsel %vm371_vm0, %v4791_v20, %v4397_v59  ;;  %v4799_v50 = vrot.slane %v4402_v35, 3  ;;  %v4801_v17 = vrot.slane %v4403_v23, 2  ;;  %v5113_v53 = vld [vmem:[#allocation5 + $0x2f7] sm:$0x1]  ;;  %v5114_v63 = vld [vmem:[#allocation5 + $0x2ff] sm:$0x1] }
 0x1d2   :  { %v3578_v42 = vadd.f32 %v3538_v3, %v2868_v24  ;;  %v4092_v55 = vsel %vm386_vm5, %v4091_v45, %v4090_v43  ;;  %v4794_v5 = vsel %vm374_vm1, %v4793_v8, %v4792_v14  ;;  %v4803_v34 = vrot.slane %v4404_v31, 1 }
 0x1d3   :  { %v4094_v10 = vsel %vm389_vm6, %v4093_v27, %v4092_v55  ;;  %v4796_v26 = vsel %vm377_vm2, %v4795_v52, %v4794_v5  ;;  %v5501_v15 = vrot.slane %v5108_v29, 7  ;;  %v5503_v60 = vrot.slane %v5109_v47, 6 }
 0x1d4   :  { %v4248_v59 = vmul.f32 %v11164_v30, %v4094_v10  ;;  %v4798_v35 = vsel %vm380_vm3, %v4797_v51, %v4796_v26  ;;  %v5505_v23 = vrot.slane %v5110_v28, 5  ;;  %v5507_v24 = vrot.slane %v5111_v54, 4  ;;  %v141_v26 = vld [vmem:[#allocation5 + $0x318] sm:$0x1] }
 0x1d5   :  { %v4800_v45 = vsel %vm383_vm4, %v4799_v50, %v4798_v35  ;;  %v5502_v20 = vsel %vm371_vm0, %v5501_v15, %v5107_v19  ;;  %v5509_v31 = vrot.slane %v5112_v2, 3  ;;  %v5511_v8 = vrot.slane %v5113_v53, 2  ;;  %v142_v15 = vld [vmem:[#allocation5 + $0x320] sm:$0x1] }
 0x1d6   :  { %v4288_v3 = vadd.f32 %v4248_v59, %v3578_v42  ;;  %v4802_v27 = vsel %vm386_vm5, %v4801_v17, %v4800_v45  ;;  %v5504_v52 = vsel %vm374_vm1, %v5503_v60, %v5502_v20  ;;  %v5513_v43 = vrot.slane %v5114_v63, 1  ;;  %v143_v59 = vld [vmem:[#allocation5 + $0x328] sm:$0x1]  ;;  %v857_v20 = vld [vmem:[#allocation5 + $0x311] sm:$0x1] }
 0x1d7   :  { %v4804_v29 = vsel %vm389_vm6, %v4803_v34, %v4802_v27  ;;  %v5506_v30 = vsel %vm377_vm2, %v5505_v23, %v5504_v52  ;;  %v699_v51 = vmul.f32 %v11174_v13, %v11246_v57  ;;  %v1409_v47 = vmul.f32 %v11178_v49, %v11261_v18  ;;  %v139_v34 = vld [vmem:[#allocation5 + $0x308] sm:$0x1] }
 0x1d8   :  { %v4958_v19 = vmul.f32 %v11182_v36, %v4804_v29  ;;  %v5508_v14 = vsel %vm380_vm3, %v5507_v24, %v5506_v30  ;;  %v2119_v50 = vmul.f32 %v11186_v41, %v11275_v46  ;;  %v2829_v63 = vmul.f32 %v11190_v33, %v11286_v39  ;;  %v860_v30 = vld [vmem:[#allocation5 + $0x329] sm:$0x1] }
 0x1d9   :  { %v5510_v17 = vsel %vm383_vm4, %v5509_v31, %v5508_v14  ;;  %v1449_v28 = vadd.f32 %v1409_v47, %v699_v51  ;;  %v3539_v54 = vmul.f32 %v11195_v12, %v11297_v6  ;;  %v4249_v57 = vmul.f32 %v11199_v44, %v11308_v4  ;;  %v140_v4 = vld [vmem:[#allocation5 + $0x310] sm:$0x1]  ;;  %v861_v51 = vld [vmem:[#allocation5 + $0x331] sm:$0x1] }
 0x1da   :  { %v4998_v18 = vadd.f32 %v4958_v19, %v4288_v3  ;;  %v5512_v36 = vsel %vm386_vm5, %v5511_v8, %v5510_v17  ;;  %v4959_v42 = vmul.f32 %v11204_v38, %v11319_v37  ;;  %v5669_v46 = vmul.f32 %v11208_v48, %v11330_v32  ;;  %v855_v3 = vld [vmem:[#allocation5 + $0x301] sm:$0x1] }
 0x1db   :  { %v5514_v39 = vsel %vm389_vm6, %v5513_v43, %v5512_v36  ;;  %v2159_v55 = vadd.f32 %v2119_v50, %v1449_v28  ;;  %v700_v5 = vmul.f32 %v11174_v13, %v11343_v21  ;;  %v1410_v6 = vmul.f32 %v11178_v49, %v11356_v16  ;;  %v138_v16 = vld [vmem:[#allocation5 + $0x300] sm:$0x1]  ;;  %v1566_v36 = vld [vmem:[#allocation5 + $0x30a] sm:$0x1] }
 0x1dc   :  { %v5668_v2 = vmul.f32 %v11217_v7, %v5514_v39  ;;  %v2120_v53 = vmul.f32 %v11186_v41, %v11367_v9  ;;  %v2830_v37 = vmul.f32 %v11190_v33, %v11378_v22  ;;  %v3540_v32 = vmul.f32 %v11195_v12, %v11389_v62  ;;  %v144_v7 = vld [vmem:[#allocation5 + $0x330] sm:$0x1]  ;;  %v145_v33 = vld [vmem:[#allocation5 + $0x338] sm:$0x1]  ;;  %v856_v12 = vld [vmem:[#allocation5 + $0x309] sm:$0x1] }
 0x1dd   :  { %v2869_v60 = vadd.f32 %v2829_v63, %v2159_v55  ;;  %v1450_v13 = vadd.f32 %v1410_v6, %v700_v5  ;;  %v4250_v21 = vmul.f32 %v11199_v44, %v4094_v10  ;;  %v4960_v49 = vmul.f32 %v11204_v38, %v4804_v29  ;;  %v858_v44 = vld [vmem:[#allocation5 + $0x319] sm:$0x1] }
 0x1de   :  { %v11443_v35 = vadd.f32 %v5668_v2, %v4998_v18  ;;  %v11446_v41 = vmul.f32 %v11208_v48, %v5514_v39  ;;  %v545_v9 = vrot.slane %v139_v34, 7  ;;  %v547_v22 = vrot.slane %v140_v4, 6  ;;  %v859_v48 = vld [vmem:[#allocation5 + $0x321] sm:$0x1] }
 0x1df   :  { %v3579_v62 = vadd.f32 %v3539_v54, %v2869_v60  ;;  %v2160_v23 = vadd.f32 %v2120_v53, %v1450_v13  ;;  %v549_v24 = vrot.slane %v141_v26, 5  ;;  %v551_v45 = vrot.slane %v142_v15, 4  ;;  %v862_v54 = vld [vmem:[#allocation5 + $0x339] sm:$0x1]  ;;  %v1567_v53 = vld [vmem:[#allocation5 + $0x312] sm:$0x1] }
 0x1e0   :  { %14313 = vst [vmem:[#allocation32_spill] sm:$0xff] %v11443_v35  ;;  %v5751_v38 = vmul.f32 %v10497_v58, %v11443_v35  ;;  %v546_v10 = vsel %vm371_vm0, %v545_v9, %v138_v16  ;;  %v553_v31 = vrot.slane %v143_v59, 3  ;;  %v555_v8 = vrot.slane %v144_v7, 2  ;;  %v1569_v60 = vld [vmem:[#allocation5 + $0x322] sm:$0x1] }
 0x1e1   :  { %v4289_v27 = vadd.f32 %v4249_v57, %v3579_v62  ;;  %v2870_v52 = vadd.f32 %v2830_v37, %v2160_v23  ;;  %v548_v43 = vsel %vm374_vm1, %v547_v22, %v546_v10  ;;  %v557_v29 = vrot.slane %v145_v33, 1  ;;  %v1568_v37 = vld [vmem:[#allocation5 + $0x31a] sm:$0x1]  ;;  %v1570_v13 = vld [vmem:[#allocation5 + $0x32a] sm:$0x1] }
 0x1e2   :  { %5812 = vadd.xlane.f32.xlu0 %v5751_v38  ;;  %v550_v47 = vsel %vm377_vm2, %v549_v24, %v548_v43  ;;  %v1255_v19 = vrot.slane %v856_v12, 7  ;;  %v1257_v14 = vrot.slane %v857_v20, 6  ;;  %v1259_v50 = vrot.slane %v858_v44, 5  ;;  %v11466_v59 = vld [vmem:[#allocation2] ss:$0 sm:$0xff] }
 0x1e3   :  { %v4999_v63 = vadd.f32 %v4959_v42, %v4289_v27  ;;  %v3580_v17 = vadd.f32 %v3540_v32, %v2870_v52  ;;  %v552_v28 = vsel %vm380_vm3, %v551_v45, %v550_v47  ;;  %v1261_v18 = vrot.slane %v859_v48, 4  ;;  %v1565_v42 = vld [vmem:[#allocation5 + $0x302] sm:$0x1]  ;;  %v1571_v9 = vld [vmem:[#allocation5 + $0x332] sm:$0x1] }
 0x1e4   :  { %v554_v57 = vsel %vm383_vm4, %v553_v31, %v552_v28  ;;  %v1256_v39 = vsel %vm371_vm0, %v1255_v19, %v855_v3  ;;  %v1263_v55 = vrot.slane %v860_v30, 3  ;;  %v1265_v5 = vrot.slane %v861_v51, 2  ;;  %v1572_v22 = vld [vmem:[#allocation5 + $0x33a] sm:$0x1]  ;;  %v2275_v45 = vld [vmem:[#allocation5 + $0x303] sm:$0x1] }
 0x1e5   :  { %v11456_v6 = vadd.f32 %v5669_v46, %v4999_v63  ;;  %v4290_v34 = vadd.f32 %v4250_v21, %v3580_v17  ;;  %v556_v4 = vsel %vm386_vm5, %v555_v8, %v554_v57  ;;  %v1258_v2 = vsel %vm374_vm1, %v1257_v14, %v1256_v39  ;;  %v2276_v20 = vld [vmem:[#allocation5 + $0x30b] sm:$0x1]  ;;  %v2277_v44 = vld [vmem:[#allocation5 + $0x313] sm:$0x1]  ;;  %v2278_v8 = vld [vmem:[#allocation5 + $0x31b] sm:$0x1] }
 0x1e6   :  { %v11461_v32 = vsel %vm389_vm6, %v557_v29, %v556_v4  ;;  %v1260_v26 = vsel %vm377_vm2, %v1259_v50, %v1258_v2  ;;  %v1267_v15 = vrot.slane %v862_v54, 1  ;;  %v1965_v16 = vrot.slane %v1566_v36, 7  ;;  %v2279_v3 = vld [vmem:[#allocation5 + $0x323] sm:$0x1]  ;;  %v2280_v29 = vld [vmem:[#allocation5 + $0x32b] sm:$0x1] }
 0x1e7   :  { %14314 = vst [vmem:[#allocation33_spill] sm:$0xff] %v11456_v6  ;;  %v5752_v46 = vmul.f32 %v10497_v58, %v11456_v6  ;;  %v5000_v21 = vadd.f32 %v4960_v49, %v4290_v34  ;;  %v701_v7 = vmul.f32 %v11466_v59, %v11461_v32  ;;  %v1262_v33 = vsel %vm380_vm3, %v1261_v18, %v1260_v26  ;;  %v2281_v30 = vld [vmem:[#allocation5 + $0x333] sm:$0x1]  ;;  %v2282_v14 = vld [vmem:[#allocation5 + $0x33b] sm:$0x1] }
 0x1e8   :  { %v1264_v12 = vsel %vm383_vm4, %v1263_v55, %v1262_v33  ;;  %v1966_v62 = vsel %vm371_vm0, %v1965_v16, %v1565_v42  ;;  %v1967_v23 = vrot.slane %v1567_v53, 6  ;;  %v1969_v24 = vrot.slane %v1568_v37, 5  ;;  %v2986_v63 = vld [vmem:[#allocation5 + $0x30c] sm:$0x1]  ;;  %v2985_v36 = vld [vmem:[#allocation5 + $0x304] sm:$0x1] }
 0x1e9   :  { %5814 = vadd.xlane.f32.xlu1 %v5752_v46  ;;  %v11474_v49 = vadd.f32 %v11446_v41, %v5000_v21  ;;  %v1266_v38 = vsel %vm386_vm5, %v1265_v5, %v1264_v12  ;;  %v1971_v10 = vrot.slane %v1569_v60, 4  ;;  %v1973_v31 = vrot.slane %v1570_v13, 3  ;;  %v11483_v41 = vld [vmem:[#allocation2 + $0x1] ss:$0 sm:$0xff]  ;;  %v2987_v57 = vld [vmem:[#allocation5 + $0x314] sm:$0x1] }
 0x1ea   :  { %v11478_v48 = vsel %vm389_vm6, %v1267_v15, %v1266_v38  ;;  %v1968_v27 = vsel %vm374_vm1, %v1967_v23, %v1966_v62  ;;  %v1975_v52 = vrot.slane %v1571_v9, 2  ;;  %v1977_v43 = vrot.slane %v1572_v22, 1  ;;  %v2988_v4 = vld [vmem:[#allocation5 + $0x31c] sm:$0x1]  ;;  %v2989_v2 = vld [vmem:[#allocation5 + $0x324] sm:$0x1] }
 0x1eb   :  { %14315 = vst [vmem:[#allocation34_spill] sm:$0xff] %v11474_v49  ;;  %v5753_v51 = vmul.f32 %v10497_v58, %v11474_v49  ;;  %v1411_v47 = vmul.f32 %v11483_v41, %v11478_v48  ;;  %v1970_v19 = vsel %vm377_vm2, %v1969_v24, %v1968_v27  ;;  %v2675_v50 = vrot.slane %v2276_v20, 7  ;;  %v2990_v15 = vld [vmem:[#allocation5 + $0x32c] sm:$0x1]  ;;  %v2991_v60 = vld [vmem:[#allocation5 + $0x334] sm:$0x1] }
 0x1ec   :  { %v1972_v17 = vsel %vm380_vm3, %v1971_v10, %v1970_v19  ;;  %v2677_v28 = vrot.slane %v2277_v44, 6  ;;  %v2679_v54 = vrot.slane %v2278_v8, 5  ;;  %v2681_v18 = vrot.slane %v2279_v3, 4  ;;  %v2992_v46 = vld [vmem:[#allocation5 + $0x33c] sm:$0x1] }
 0x1ed   :  { %5816 = vadd.xlane.f32.xlu0 %v5753_v51  ;;  %v1451_v39 = vadd.f32 %v1411_v47, %v701_v7  ;;  %v1974_v55 = vsel %vm383_vm4, %v1973_v31, %v1972_v17  ;;  %v2676_v5 = vsel %vm371_vm0, %v2675_v50, %v2275_v45  ;;  %v2683_v34 = vrot.slane %v2280_v29, 3  ;;  %v11497_v33 = vld [vmem:[#allocation2 + $0x2] ss:$0 sm:$0xff]  ;;  %v3695_v23 = vld [vmem:[#allocation5 + $0x305] sm:$0x1] }
 0x1ee   :  { %v1976_v42 = vsel %vm386_vm5, %v1975_v52, %v1974_v55  ;;  %v2678_v53 = vsel %vm374_vm1, %v2677_v28, %v2676_v5  ;;  %v2685_v37 = vrot.slane %v2281_v30, 2  ;;  %v2687_v26 = vrot.slane %v2282_v14, 1  ;;  %v3696_v24 = vld [vmem:[#allocation5 + $0x30d] sm:$0x1]  ;;  %v3697_v45 = vld [vmem:[#allocation5 + $0x315] sm:$0x1] }
 0x1ef   :  { %v11494_v13 = vsel %vm389_vm6, %v1977_v43, %v1976_v42  ;;  %v2680_v16 = vsel %vm377_vm2, %v2679_v54, %v2678_v53  ;;  %v3385_v21 = vrot.slane %v2986_v63, 7  ;;  %v3387_v7 = vrot.slane %v2987_v57, 6  ;;  %v3698_v31 = vld [vmem:[#allocation5 + $0x31d] sm:$0x1]  ;;  %v3699_v8 = vld [vmem:[#allocation5 + $0x325] sm:$0x1] }
 0x1f0   :  { %v2121_v9 = vmul.f32 %v11497_v33, %v11494_v13  ;;  %v2682_v22 = vsel %vm380_vm3, %v2681_v18, %v2680_v16  ;;  %v3389_v12 = vrot.slane %v2988_v4, 5  ;;  %v3391_v62 = vrot.slane %v2989_v2, 4  ;;  %v3700_v29 = vld [vmem:[#allocation5 + $0x32d] sm:$0x1]  ;;  %v3701_v30 = vld [vmem:[#allocation5 + $0x335] sm:$0x1] }
 0x1f1   :  { %v2684_v20 = vsel %vm383_vm4, %v2683_v34, %v2682_v22  ;;  %v3386_v44 = vsel %vm371_vm0, %v3385_v21, %v2985_v36  ;;  %v3393_v38 = vrot.slane %v2990_v15, 3  ;;  %v3395_v10 = vrot.slane %v2991_v60, 2  ;;  %v3702_v19 = vld [vmem:[#allocation5 + $0x33d] sm:$0x1]  ;;  %v11510_v63 = vld [vmem:[#allocation2 + $0x3] ss:$0 sm:$0xff] }
 0x1f2   :  { %v2161_v3 = vadd.f32 %v2121_v9, %v1451_v39  ;;  %v2686_v27 = vsel %vm386_vm5, %v2685_v37, %v2684_v20  ;;  %v3388_v52 = vsel %vm374_vm1, %v3387_v7, %v3386_v44  ;;  %v3397_v43 = vrot.slane %v2992_v46, 1  ;;  %v4405_v36 = vld [vmem:[#allocation5 + $0x306] sm:$0x1]  ;;  %v4406_v57 = vld [vmem:[#allocation5 + $0x30e] sm:$0x1] }
 0x1f3   :  { %v11507_v51 = vsel %vm389_vm6, %v2687_v26, %v2686_v27  ;;  %v3390_v47 = vsel %vm377_vm2, %v3389_v12, %v3388_v52  ;;  %v4095_v14 = vrot.slane %v3696_v24, 7  ;;  %v4097_v50 = vrot.slane %v3697_v45, 6  ;;  %v4407_v39 = vld [vmem:[#allocation5 + $0x316] sm:$0x1]  ;;  %v4408_v2 = vld [vmem:[#allocation5 + $0x31e] sm:$0x1] }
 0x1f4   :  { %v2831_v17 = vmul.f32 %v11510_v63, %v11507_v51  ;;  %v3392_v28 = vsel %vm380_vm3, %v3391_v62, %v3390_v47  ;;  %v4099_v54 = vrot.slane %v3698_v31, 5  ;;  %v4101_v18 = vrot.slane %v3699_v8, 4  ;;  %v4409_v42 = vld [vmem:[#allocation5 + $0x326] sm:$0x1]  ;;  %v4410_v60 = vld [vmem:[#allocation5 + $0x32e] sm:$0x1] }
 0x1f5   :  { %v3394_v55 = vsel %vm383_vm4, %v3393_v38, %v3392_v28  ;;  %v4096_v5 = vsel %vm371_vm0, %v4095_v14, %v3695_v23  ;;  %v4103_v34 = vrot.slane %v3700_v29, 3  ;;  %v4105_v4 = vrot.slane %v3701_v30, 2  ;;  %v4411_v16 = vld [vmem:[#allocation5 + $0x336] sm:$0x1]  ;;  %v4412_v7 = vld [vmem:[#allocation5 + $0x33e] sm:$0x1] }
 0x1f6   :  { %v2871_v53 = vadd.f32 %v2831_v17, %v2161_v3  ;;  %v3396_v37 = vsel %vm386_vm5, %v3395_v10, %v3394_v55  ;;  %v4098_v26 = vsel %vm374_vm1, %v4097_v50, %v4096_v5  ;;  %v4107_v15 = vrot.slane %v3702_v19, 1  ;;  %v11523_v12 = vld [vmem:[#allocation2 + $0x4] ss:$0 sm:$0xff]  ;;  %v5115_v20 = vld [vmem:[#allocation5 + $0x307] sm:$0x1] }
 0x1f7   :  { %v11520_v46 = vsel %vm389_vm6, %v3397_v43, %v3396_v37  ;;  %v4100_v21 = vsel %vm377_vm2, %v4099_v54, %v4098_v26  ;;  %v4805_v9 = vrot.slane %v4406_v57, 7  ;;  %v4807_v22 = vrot.slane %v4407_v39, 6  ;;  %v5116_v44 = vld [vmem:[#allocation5 + $0x30f] sm:$0x1]  ;;  %v5117_v38 = vld [vmem:[#allocation5 + $0x317] sm:$0x1] }
 0x1f8   :  { %v3541_v62 = vmul.f32 %v11523_v12, %v11520_v46  ;;  %v4102_v23 = vsel %vm380_vm3, %v4101_v18, %v4100_v21  ;;  %v4809_v24 = vrot.slane %v4408_v2, 5  ;;  %v4811_v45 = vrot.slane %v4409_v42, 4  ;;  %v5118_v27 = vld [vmem:[#allocation5 + $0x31f] sm:$0x1]  ;;  %v5119_v52 = vld [vmem:[#allocation5 + $0x327] sm:$0x1] }
 0x1f9   :  { %v4104_v10 = vsel %vm383_vm4, %v4103_v34, %v4102_v23  ;;  %v4806_v31 = vsel %vm371_vm0, %v4805_v9, %v4405_v36  ;;  %v4813_v8 = vrot.slane %v4410_v60, 3  ;;  %v4815_v3 = vrot.slane %v4411_v16, 2  ;;  %v5120_v19 = vld [vmem:[#allocation5 + $0x32f] sm:$0x1]  ;;  %v5121_v14 = vld [vmem:[#allocation5 + $0x337] sm:$0x1] }
 0x1fa   :  { %v3581_v43 = vadd.f32 %v3541_v62, %v2871_v53  ;;  %v4106_v29 = vsel %vm386_vm5, %v4105_v4, %v4104_v10  ;;  %v4808_v30 = vsel %vm374_vm1, %v4807_v22, %v4806_v31  ;;  %v4817_v47 = vrot.slane %v4412_v7, 1  ;;  %v5122_v28 = vld [vmem:[#allocation5 + $0x33f] sm:$0x1]  ;;  %v11536_v36 = vld [vmem:[#allocation2 + $0x5] ss:$0 sm:$0xff] }
 0x1fb   :  { %v11533_v50 = vsel %vm389_vm6, %v4107_v15, %v4106_v29  ;;  %v4810_v17 = vsel %vm377_vm2, %v4809_v24, %v4808_v30  ;;  %v5515_v54 = vrot.slane %v5116_v44, 7  ;;  %v5517_v18 = vrot.slane %v5117_v38, 6  ;;  %v146_v34 = vld [vmem:[#allocation5 + $0x340] sm:$0x1]  ;;  %v147_v4 = vld [vmem:[#allocation5 + $0x348] sm:$0x1] }
 0x1fc   :  { %v4251_v57 = vmul.f32 %v11536_v36, %v11533_v50  ;;  %v4812_v39 = vsel %vm380_vm3, %v4811_v45, %v4810_v17  ;;  %v5519_v55 = vrot.slane %v5118_v27, 5  ;;  %v5521_v5 = vrot.slane %v5119_v52, 4  ;;  %v148_v2 = vld [vmem:[#allocation5 + $0x350] sm:$0x1]  ;;  %v149_v15 = vld [vmem:[#allocation5 + $0x358] sm:$0x1] }
 0x1fd   :  { %v4814_v42 = vsel %vm383_vm4, %v4813_v8, %v4812_v39  ;;  %v5516_v53 = vsel %vm371_vm0, %v5515_v54, %v5115_v20  ;;  %v5523_v37 = vrot.slane %v5120_v19, 3  ;;  %v5525_v26 = vrot.slane %v5121_v14, 2  ;;  %v150_v60 = vld [vmem:[#allocation5 + $0x360] sm:$0x1]  ;;  %v151_v22 = vld [vmem:[#allocation5 + $0x368] sm:$0x1] }
 0x1fe   :  { %v4291_v16 = vadd.f32 %v4251_v57, %v3581_v43  ;;  %v4816_v21 = vsel %vm386_vm5, %v4815_v3, %v4814_v42  ;;  %v5518_v7 = vsel %vm374_vm1, %v5517_v18, %v5516_v53  ;;  %v5527_v9 = vrot.slane %v5122_v28, 1  ;;  %v152_v62 = vld [vmem:[#allocation5 + $0x370] sm:$0x1]  ;;  %v153_v45 = vld [vmem:[#allocation5 + $0x378] sm:$0x1] }
 0x1ff   :  { %v11546_v23 = vsel %vm389_vm6, %v4817_v47, %v4816_v21  ;;  %v5520_v24 = vsel %vm377_vm2, %v5519_v55, %v5518_v7  ;;  %v559_v44 = vrot.slane %v147_v4, 7  ;;  %v561_v20 = vrot.slane %v148_v2, 6  ;;  %v11549_v38 = vld [vmem:[#allocation2 + $0x6] ss:$0 sm:$0xff]  ;;  %v863_v27 = vld [vmem:[#allocation5 + $0x341] sm:$0x1] }
 0x200   :  { %v4961_v10 = vmul.f32 %v11549_v38, %v11546_v23  ;;  %v5522_v31 = vsel %vm380_vm3, %v5521_v5, %v5520_v24  ;;  %v563_v8 = vrot.slane %v149_v15, 5  ;;  %v565_v3 = vrot.slane %v150_v60, 4  ;;  %v864_v52 = vld [vmem:[#allocation5 + $0x349] sm:$0x1]  ;;  %v865_v43 = vld [vmem:[#allocation5 + $0x351] sm:$0x1] }
 0x201   :  { %v5524_v29 = vsel %vm383_vm4, %v5523_v37, %v5522_v31  ;;  %v560_v30 = vsel %vm371_vm0, %v559_v44, %v146_v34  ;;  %v567_v47 = vrot.slane %v151_v22, 3  ;;  %v569_v19 = vrot.slane %v152_v62, 2  ;;  %v866_v14 = vld [vmem:[#allocation5 + $0x359] sm:$0x1]  ;;  %v867_v17 = vld [vmem:[#allocation5 + $0x361] sm:$0x1] }
 0x202   :  { %v5001_v28 = vadd.f32 %v4961_v10, %v4291_v16  ;;  %v5526_v54 = vsel %vm386_vm5, %v5525_v26, %v5524_v29  ;;  %v562_v18 = vsel %vm374_vm1, %v561_v20, %v560_v30  ;;  %v571_v57 = vrot.slane %v153_v45, 1  ;;  %v868_v39 = vld [vmem:[#allocation5 + $0x369] sm:$0x1]  ;;  %v869_v55 = vld [vmem:[#allocation5 + $0x371] sm:$0x1] }
 0x203   :  { %v11559_v5 = vsel %vm389_vm6, %v5527_v9, %v5526_v54  ;;  %v564_v4 = vsel %vm377_vm2, %v563_v8, %v562_v18  ;;  %v870_v2 = vld [vmem:[#allocation5 + $0x379] sm:$0x1]  ;;  %v1269_v42 = vrot.slane %v864_v52, 7  ;;  %v1271_v34 = vrot.slane %v865_v43, 6  ;;  %v11562_v53 = vld [vmem:[#allocation2 + $0x7] ss:$0 sm:$0xff] }
 0x204   :  { %v5671_v37 = vmul.f32 %v11562_v53, %v11559_v5  ;;  %v566_v26 = vsel %vm380_vm3, %v565_v3, %v564_v4  ;;  %v1273_v15 = vrot.slane %v866_v14, 5  ;;  %v1275_v60 = vrot.slane %v867_v17, 4  ;;  %v1574_v16 = vld [vmem:[#allocation5 + $0x34a] sm:$0x1]  ;;  %v1575_v21 = vld [vmem:[#allocation5 + $0x352] sm:$0x1] }
 0x205   :  { %v568_v7 = vsel %vm383_vm4, %v567_v47, %v566_v26  ;;  %v1270_v9 = vsel %vm371_vm0, %v1269_v42, %v863_v27  ;;  %v1277_v22 = vrot.slane %v868_v39, 3  ;;  %v1279_v62 = vrot.slane %v869_v55, 2  ;;  %v1573_v24 = vld [vmem:[#allocation5 + $0x342] sm:$0x1]  ;;  %v1576_v45 = vld [vmem:[#allocation5 + $0x35a] sm:$0x1] }
 0x206   :  { %v11569_v44 = vadd.f32 %v5671_v37, %v5001_v28  ;;  %v570_v20 = vsel %vm386_vm5, %v569_v19, %v568_v7  ;;  %v1272_v10 = vsel %vm374_vm1, %v1271_v34, %v1270_v9  ;;  %v1281_v31 = vrot.slane %v870_v2, 1  ;;  %v1577_v8 = vld [vmem:[#allocation5 + $0x362] sm:$0x1]  ;;  %v1578_v3 = vld [vmem:[#allocation5 + $0x36a] sm:$0x1] }
 0x207   :  { %v11574_v52 = vsel %vm389_vm6, %v571_v57, %v570_v20  ;;  %v1274_v43 = vsel %vm377_vm2, %v1273_v15, %v1272_v10  ;;  %v1579_v29 = vld [vmem:[#allocation5 + $0x372] sm:$0x1]  ;;  %v1580_v27 = vld [vmem:[#allocation5 + $0x37a] sm:$0x1]  ;;  %v1979_v30 = vrot.slane %v1574_v16, 7  ;;  %v1981_v47 = vrot.slane %v1575_v21, 6 }
 0x208   :  { %14316 = vst [vmem:[#allocation35_spill] sm:$0xff] %v11569_v44  ;;  %v5754_v14 = vmul.f32 %v10497_v58, %v11569_v44  ;;  %v702_v19 = vmul.f32 %v11466_v59, %v11574_v52  ;;  %v1276_v17 = vsel %vm380_vm3, %v1275_v60, %v1274_v43  ;;  %v1983_v28 = vrot.slane %v1576_v45, 5  ;;  %v2283_v54 = vld [vmem:[#allocation5 + $0x343] sm:$0x1]  ;;  %v2284_v18 = vld [vmem:[#allocation5 + $0x34b] sm:$0x1] }
 0x209   :  { %v2285_v39 = vld [vmem:[#allocation5 + $0x353] sm:$0x1]  ;;  %v1278_v57 = vsel %vm383_vm4, %v1277_v22, %v1276_v17  ;;  %v1980_v55 = vsel %vm371_vm0, %v1979_v30, %v1573_v24  ;;  %v1985_v4 = vrot.slane %v1577_v8, 4  ;;  %v1987_v2 = vrot.slane %v1578_v3, 3  ;;  %v2286_v42 = vld [vmem:[#allocation5 + $0x35b] sm:$0x1] }
 0x20a   :  { %v2287_v34 = vld [vmem:[#allocation5 + $0x363] sm:$0x1]  ;;  %5818 = vadd.xlane.f32.xlu1 %v5754_v14  ;;  %v1280_v37 = vsel %vm386_vm5, %v1279_v62, %v1278_v57  ;;  %v1982_v26 = vsel %vm374_vm1, %v1981_v47, %v1980_v55  ;;  %v1989_v15 = vrot.slane %v1579_v29, 2  ;;  %v1991_v16 = vrot.slane %v1580_v27, 1  ;;  %v2288_v60 = vld [vmem:[#allocation5 + $0x36b] sm:$0x1] }
 0x20b   :  { %v2289_v21 = vld [vmem:[#allocation5 + $0x373] sm:$0x1]  ;;  %v11587_v7 = vsel %vm389_vm6, %v1281_v31, %v1280_v37  ;;  %v1984_v9 = vsel %vm377_vm2, %v1983_v28, %v1982_v26  ;;  %v2290_v22 = vld [vmem:[#allocation5 + $0x37b] sm:$0x1]  ;;  %v2689_v24 = vrot.slane %v2284_v18, 7  ;;  %v2691_v45 = vrot.slane %v2285_v39, 6 }
 0x20c   :  { %v1412_v20 = vmul.f32 %v11483_v41, %v11587_v7  ;;  %v1986_v10 = vsel %vm380_vm3, %v1985_v4, %v1984_v9  ;;  %v2693_v62 = vrot.slane %v2286_v42, 5  ;;  %v2695_v8 = vrot.slane %v2287_v34, 4  ;;  %v2993_v3 = vld [vmem:[#allocation5 + $0x344] sm:$0x1]  ;;  %v2994_v43 = vld [vmem:[#allocation5 + $0x34c] sm:$0x1] }
 0x20d   :  { %v2995_v29 = vld [vmem:[#allocation5 + $0x354] sm:$0x1]  ;;  %v1988_v27 = vsel %vm383_vm4, %v1987_v2, %v1986_v10  ;;  %v2690_v31 = vsel %vm371_vm0, %v2689_v24, %v2283_v54  ;;  %v2697_v30 = vrot.slane %v2288_v60, 3  ;;  %v2699_v47 = vrot.slane %v2289_v21, 2  ;;  %v2996_v14 = vld [vmem:[#allocation5 + $0x35c] sm:$0x1] }
 0x20e   :  { %v2997_v17 = vld [vmem:[#allocation5 + $0x364] sm:$0x1]  ;;  %v1452_v28 = vadd.f32 %v1412_v20, %v702_v19  ;;  %v1990_v18 = vsel %vm386_vm5, %v1989_v15, %v1988_v27  ;;  %v2692_v39 = vsel %vm374_vm1, %v2691_v45, %v2690_v31  ;;  %v2701_v57 = vrot.slane %v2290_v22, 1  ;;  %v2998_v55 = vld [vmem:[#allocation5 + $0x36c] sm:$0x1] }
 0x20f   :  { %v2999_v4 = vld [vmem:[#allocation5 + $0x374] sm:$0x1]  ;;  %v11598_v42 = vsel %vm389_vm6, %v1991_v16, %v1990_v18  ;;  %v2694_v34 = vsel %vm377_vm2, %v2693_v62, %v2692_v39  ;;  %v3000_v2 = vld [vmem:[#allocation5 + $0x37c] sm:$0x1]  ;;  %v3399_v37 = vrot.slane %v2994_v43, 7  ;;  %v3401_v54 = vrot.slane %v2995_v29, 6 }
 0x210   :  { %v2122_v26 = vmul.f32 %v11497_v33, %v11598_v42  ;;  %v2696_v19 = vsel %vm380_vm3, %v2695_v8, %v2694_v34  ;;  %v3403_v60 = vrot.slane %v2996_v14, 5  ;;  %v3405_v15 = vrot.slane %v2997_v17, 4  ;;  %v3703_v21 = vld [vmem:[#allocation5 + $0x345] sm:$0x1]  ;;  %v3704_v9 = vld [vmem:[#allocation5 + $0x34d] sm:$0x1] }
 0x211   :  { %v3705_v22 = vld [vmem:[#allocation5 + $0x355] sm:$0x1]  ;;  %v2698_v24 = vsel %vm383_vm4, %v2697_v30, %v2696_v19  ;;  %v3400_v16 = vsel %vm371_vm0, %v3399_v37, %v2993_v3  ;;  %v3407_v45 = vrot.slane %v2998_v55, 3  ;;  %v3409_v20 = vrot.slane %v2999_v4, 2  ;;  %v3706_v10 = vld [vmem:[#allocation5 + $0x35d] sm:$0x1] }
 0x212   :  { %v3707_v62 = vld [vmem:[#allocation5 + $0x365] sm:$0x1]  ;;  %v2162_v43 = vadd.f32 %v2122_v26, %v1452_v28  ;;  %v2700_v29 = vsel %vm386_vm5, %v2699_v47, %v2698_v24  ;;  %v3402_v27 = vsel %vm374_vm1, %v3401_v54, %v3400_v16  ;;  %v3411_v31 = vrot.slane %v3000_v2, 1  ;;  %v3708_v8 = vld [vmem:[#allocation5 + $0x36d] sm:$0x1] }
 0x213   :  { %v3709_v14 = vld [vmem:[#allocation5 + $0x375] sm:$0x1]  ;;  %v11609_v17 = vsel %vm389_vm6, %v2701_v57, %v2700_v29  ;;  %v3404_v18 = vsel %vm377_vm2, %v3403_v60, %v3402_v27  ;;  %v3710_v30 = vld [vmem:[#allocation5 + $0x37d] sm:$0x1]  ;;  %v4109_v39 = vrot.slane %v3704_v9, 7  ;;  %v4111_v3 = vrot.slane %v3705_v22, 6 }
 0x214   :  { %v2832_v55 = vmul.f32 %v11510_v63, %v11609_v17  ;;  %v3406_v28 = vsel %vm380_vm3, %v3405_v15, %v3404_v18  ;;  %v4113_v4 = vrot.slane %v3706_v10, 5  ;;  %v4115_v47 = vrot.slane %v3707_v62, 4  ;;  %v4413_v34 = vld [vmem:[#allocation5 + $0x346] sm:$0x1]  ;;  %v4414_v37 = vld [vmem:[#allocation5 + $0x34e] sm:$0x1] }
 0x215   :  { %v4415_v2 = vld [vmem:[#allocation5 + $0x356] sm:$0x1]  ;;  %v3408_v54 = vsel %vm383_vm4, %v3407_v45, %v3406_v28  ;;  %v4110_v57 = vsel %vm371_vm0, %v4109_v39, %v3703_v21  ;;  %v4117_v26 = vrot.slane %v3708_v8, 3  ;;  %v4119_v19 = vrot.slane %v3709_v14, 2  ;;  %v4416_v60 = vld [vmem:[#allocation5 + $0x35e] sm:$0x1] }
 0x216   :  { %v4417_v24 = vld [vmem:[#allocation5 + $0x366] sm:$0x1]  ;;  %v2872_v9 = vadd.f32 %v2832_v55, %v2162_v43  ;;  %v3410_v22 = vsel %vm386_vm5, %v3409_v20, %v3408_v54  ;;  %v4112_v16 = vsel %vm374_vm1, %v4111_v3, %v4110_v57  ;;  %v4121_v29 = vrot.slane %v3710_v30, 1  ;;  %v4418_v15 = vld [vmem:[#allocation5 + $0x36e] sm:$0x1] }
 0x217   :  { %v4419_v10 = vld [vmem:[#allocation5 + $0x376] sm:$0x1]  ;;  %v11620_v62 = vsel %vm389_vm6, %v3411_v31, %v3410_v22  ;;  %v4114_v27 = vsel %vm377_vm2, %v4113_v4, %v4112_v16  ;;  %v4420_v45 = vld [vmem:[#allocation5 + $0x37e] sm:$0x1]  ;;  %v4819_v18 = vrot.slane %v4414_v37, 7  ;;  %v4821_v21 = vrot.slane %v4415_v2, 6 }
 0x218   :  { %v3542_v8 = vmul.f32 %v11523_v12, %v11620_v62  ;;  %v4116_v43 = vsel %vm380_vm3, %v4115_v47, %v4114_v27  ;;  %v4823_v14 = vrot.slane %v4416_v60, 5  ;;  %v4825_v20 = vrot.slane %v4417_v24, 4  ;;  %v5123_v39 = vld [vmem:[#allocation5 + $0x347] sm:$0x1]  ;;  %v5124_v3 = vld [vmem:[#allocation5 + $0x34f] sm:$0x1] }
 0x219   :  { %v5125_v30 = vld [vmem:[#allocation5 + $0x357] sm:$0x1]  ;;  %v4118_v55 = vsel %vm383_vm4, %v4117_v26, %v4116_v43  ;;  %v4820_v31 = vsel %vm371_vm0, %v4819_v18, %v4413_v34  ;;  %v4827_v28 = vrot.slane %v4418_v15, 3  ;;  %v4829_v54 = vrot.slane %v4419_v10, 2  ;;  %v5126_v4 = vld [vmem:[#allocation5 + $0x35f] sm:$0x1] }
 0x21a   :  { %v5127_v57 = vld [vmem:[#allocation5 + $0x367] sm:$0x1]  ;;  %v3582_v37 = vadd.f32 %v3542_v8, %v2872_v9  ;;  %v4120_v2 = vsel %vm386_vm5, %v4119_v19, %v4118_v55  ;;  %v4822_v22 = vsel %vm374_vm1, %v4821_v21, %v4820_v31  ;;  %v4831_v16 = vrot.slane %v4420_v45, 1  ;;  %v5128_v47 = vld [vmem:[#allocation5 + $0x36f] sm:$0x1] }
 0x21b   :  { %v5129_v60 = vld [vmem:[#allocation5 + $0x377] sm:$0x1]  ;;  %v4122_v24 = vsel %vm389_vm6, %v4121_v29, %v4120_v2  ;;  %v4824_v27 = vsel %vm377_vm2, %v4823_v14, %v4822_v22  ;;  %v5130_v44 = vld [vmem:[#allocation5 + $0x37f] sm:$0x1]  ;;  %v5529_v26 = vrot.slane %v5124_v3, 7  ;;  %v5531_v43 = vrot.slane %v5125_v30, 6 }
 0x21c   :  { %v4252_v34 = vmul.f32 %v11536_v36, %v4122_v24  ;;  %v4826_v15 = vsel %vm380_vm3, %v4825_v20, %v4824_v27  ;;  %v5533_v10 = vrot.slane %v5126_v4, 5  ;;  %v5535_v9 = vrot.slane %v5127_v57, 4  ;;  %v11640_v31 = vld [vmem:[#allocation2 + $0x8] ss:$0 sm:$0xff]  ;;  %v11650_v57 = vld [vmem:[#allocation2 + $0xa] ss:$0 sm:$0xff] }
 0x21d   :  { %v4828_v19 = vsel %vm383_vm4, %v4827_v28, %v4826_v15  ;;  %v5530_v18 = vsel %vm371_vm0, %v5529_v26, %v5123_v39  ;;  %v5537_v45 = vrot.slane %v5128_v47, 3  ;;  %v5539_v21 = vrot.slane %v5129_v60, 2  ;;  %v11644_v28 = vld [vmem:[#allocation2 + $0x9] ss:$0 sm:$0xff]  ;;  %v11663_v47 = vld [vmem:[#allocation2 + $0xd] ss:$0 sm:$0xff] }
 0x21e   :  { %v4292_v8 = vadd.f32 %v4252_v34, %v3582_v37  ;;  %v4830_v29 = vsel %vm386_vm5, %v4829_v54, %v4828_v19  ;;  %v5532_v14 = vsel %vm374_vm1, %v5531_v43, %v5530_v18  ;;  %v5541_v55 = vrot.slane %v5130_v44, 1  ;;  %v11654_v37 = vld [vmem:[#allocation2 + $0xb] ss:$0 sm:$0xff]  ;;  %v11668_v26 = vld [vmem:[#allocation2 + $0xe] ss:$0 sm:$0xff] }
 0x21f   :  { %v4832_v3 = vsel %vm389_vm6, %v4831_v16, %v4830_v29  ;;  %v5534_v30 = vsel %vm377_vm2, %v5533_v10, %v5532_v14  ;;  %v703_v20 = vmul.f32 %v11640_v31, %v11461_v32  ;;  %v1413_v39 = vmul.f32 %v11644_v28, %v11478_v48  ;;  %v11659_v16 = vld [vmem:[#allocation2 + $0xc] ss:$0 sm:$0xff]  ;;  %v11672_v43 = vld [vmem:[#allocation2 + $0xf] ss:$0 sm:$0xff]  ;;  %v156_v19 = vld [vmem:[#allocation5 + $0x390] sm:$0x1] }
 0x220   :  { %v4962_v4 = vmul.f32 %v11549_v38, %v4832_v3  ;;  %v5536_v54 = vsel %vm380_vm3, %v5535_v9, %v5534_v30  ;;  %v2123_v44 = vmul.f32 %v11650_v57, %v11494_v13  ;;  %v2833_v2 = vmul.f32 %v11654_v37, %v11507_v51  ;;  %v155_v9 = vld [vmem:[#allocation5 + $0x388] sm:$0x1] }
 0x221   :  { %v5538_v32 = vsel %vm383_vm4, %v5537_v45, %v5536_v54  ;;  %v1453_v22 = vadd.f32 %v1413_v39, %v703_v20  ;;  %v3543_v48 = vmul.f32 %v11659_v16, %v11520_v46  ;;  %v4253_v60 = vmul.f32 %v11663_v47, %v11533_v50  ;;  %v159_v30 = vld [vmem:[#allocation5 + $0x3a8] sm:$0x1]  ;;  %v160_v20 = vld [vmem:[#allocation5 + $0x3b0] sm:$0x1] }
 0x222   :  { %v5002_v27 = vadd.f32 %v4962_v4, %v4292_v8  ;;  %v5540_v13 = vsel %vm386_vm5, %v5539_v21, %v5538_v32  ;;  %v4963_v51 = vmul.f32 %v11668_v26, %v11546_v23  ;;  %v5673_v34 = vmul.f32 %v11672_v43, %v11559_v5  ;;  %v157_v21 = vld [vmem:[#allocation5 + $0x398] sm:$0x1]  ;;  %v158_v8 = vld [vmem:[#allocation5 + $0x3a0] sm:$0x1] }
 0x223   :  { %v5542_v46 = vsel %vm389_vm6, %v5541_v55, %v5540_v13  ;;  %v2163_v15 = vadd.f32 %v2123_v44, %v1453_v22  ;;  %v704_v10 = vmul.f32 %v11640_v31, %v11574_v52  ;;  %v1414_v50 = vmul.f32 %v11644_v28, %v11587_v7  ;;  %v154_v55 = vld [vmem:[#allocation5 + $0x380] sm:$0x1]  ;;  %v873_v13 = vld [vmem:[#allocation5 + $0x391] sm:$0x1] }
 0x224   :  { %v5672_v18 = vmul.f32 %v11562_v53, %v5542_v46  ;;  %v2124_v23 = vmul.f32 %v11650_v57, %v11598_v42  ;;  %v2834_v45 = vmul.f32 %v11654_v37, %v11609_v17  ;;  %v3544_v5 = vmul.f32 %v11659_v16, %v11620_v62  ;;  %v161_v17 = vld [vmem:[#allocation5 + $0x3b8] sm:$0x1]  ;;  %v872_v62 = vld [vmem:[#allocation5 + $0x389] sm:$0x1] }
 0x225   :  { %v2873_v29 = vadd.f32 %v2833_v2, %v2163_v15  ;;  %v1454_v52 = vadd.f32 %v1414_v50, %v704_v10  ;;  %v4254_v14 = vmul.f32 %v11663_v47, %v4122_v24  ;;  %v4964_v7 = vmul.f32 %v11668_v26, %v4832_v3  ;;  %v874_v24 = vld [vmem:[#allocation5 + $0x399] sm:$0x1]  ;;  %v871_v50 = vld [vmem:[#allocation5 + $0x381] sm:$0x1] }
 0x226   :  { %v11690_v39 = vadd.f32 %v5672_v18, %v5002_v27  ;;  %v11693_v42 = vmul.f32 %v11672_v43, %v5542_v46  ;;  %v573_v4 = vrot.slane %v155_v9, 7  ;;  %v575_v54 = vrot.slane %v156_v19, 6  ;;  %v875_v46 = vld [vmem:[#allocation5 + $0x3a1] sm:$0x1] }
 0x227   :  { %v3583_v44 = vadd.f32 %v3543_v48, %v2873_v29  ;;  %v2164_v32 = vadd.f32 %v2124_v23, %v1454_v52  ;;  %v577_v2 = vrot.slane %v157_v21, 5  ;;  %v579_v22 = vrot.slane %v158_v8, 4  ;;  %v876_v48 = vld [vmem:[#allocation5 + $0x3a9] sm:$0x1]  ;;  %v877_v23 = vld [vmem:[#allocation5 + $0x3b1] sm:$0x1] }
 0x228   :  { %14317 = vst [vmem:[#allocation36_spill] sm:$0xff] %v11690_v39  ;;  %v5755_v3 = vmul.f32 %v10497_v58, %v11690_v39  ;;  %v574_v15 = vsel %vm371_vm0, %v573_v4, %v154_v55  ;;  %v581_v27 = vrot.slane %v159_v30, 3  ;;  %v583_v10 = vrot.slane %v160_v20, 2  ;;  %v878_v30 = vld [vmem:[#allocation5 + $0x3b9] sm:$0x1] }
 0x229   :  { %v4293_v18 = vadd.f32 %v4253_v60, %v3583_v44  ;;  %v2874_v49 = vadd.f32 %v2834_v45, %v2164_v32  ;;  %v576_v9 = vsel %vm374_vm1, %v575_v54, %v574_v15  ;;  %v585_v19 = vrot.slane %v161_v17, 1  ;;  %v1582_v4 = vld [vmem:[#allocation5 + $0x38a] sm:$0x1] }
 0x22a   :  { %5820 = vadd.xlane.f32.xlu0 %v5755_v3  ;;  %v578_v21 = vsel %vm377_vm2, %v577_v2, %v576_v9  ;;  %v1283_v8 = vrot.slane %v872_v62, 7  ;;  %v1285_v29 = vrot.slane %v873_v13, 6  ;;  %v1287_v52 = vrot.slane %v874_v24, 5  ;;  %v1585_v3 = vld [vmem:[#allocation5 + $0x3a2] sm:$0x1] }
 0x22b   :  { %v5003_v39 = vadd.f32 %v4963_v51, %v4293_v18  ;;  %v3584_v6 = vadd.f32 %v3544_v5, %v2874_v49  ;;  %v580_v55 = vsel %vm380_vm3, %v579_v22, %v578_v21  ;;  %v1289_v20 = vrot.slane %v875_v46, 4  ;;  %v1581_v51 = vld [vmem:[#allocation5 + $0x382] sm:$0x1]  ;;  %v1583_v49 = vld [vmem:[#allocation5 + $0x392] sm:$0x1] }
 0x22c   :  { %v582_v60 = vsel %vm383_vm4, %v581_v27, %v580_v55  ;;  %v1284_v45 = vsel %vm371_vm0, %v1283_v8, %v871_v50  ;;  %v1291_v17 = vrot.slane %v876_v48, 3  ;;  %v1293_v54 = vrot.slane %v877_v23, 2  ;;  %v1584_v5 = vld [vmem:[#allocation5 + $0x39a] sm:$0x1]  ;;  %v1586_v15 = vld [vmem:[#allocation5 + $0x3aa] sm:$0x1] }
 0x22d   :  { %v11703_v44 = vadd.f32 %v5673_v34, %v5003_v39  ;;  %v4294_v32 = vadd.f32 %v4254_v14, %v3584_v6  ;;  %v584_v62 = vsel %vm386_vm5, %v583_v10, %v582_v60  ;;  %v1286_v2 = vsel %vm374_vm1, %v1285_v29, %v1284_v45  ;;  %v1587_v10 = vld [vmem:[#allocation5 + $0x3b2] sm:$0x1]  ;;  %v1588_v50 = vld [vmem:[#allocation5 + $0x3ba] sm:$0x1]  ;;  %v2291_v48 = vld [vmem:[#allocation5 + $0x383] sm:$0x1] }
 0x22e   :  { %v11708_v22 = vsel %vm389_vm6, %v585_v19, %v584_v62  ;;  %v1288_v13 = vsel %vm377_vm2, %v1287_v52, %v1286_v2  ;;  %v1295_v24 = vrot.slane %v878_v30, 1  ;;  %v1993_v27 = vrot.slane %v1582_v4, 7  ;;  %v2292_v23 = vld [vmem:[#allocation5 + $0x38b] sm:$0x1]  ;;  %v2293_v21 = vld [vmem:[#allocation5 + $0x393] sm:$0x1] }
 0x22f   :  { %14318 = vst [vmem:[#allocation37_spill] sm:$0xff] %v11703_v44  ;;  %v5756_v34 = vmul.f32 %v10497_v58, %v11703_v44  ;;  %v5004_v6 = vadd.f32 %v4964_v7, %v4294_v32  ;;  %v705_v14 = vmul.f32 %v11466_v59, %v11708_v22  ;;  %v1290_v39 = vsel %vm380_vm3, %v1289_v20, %v1288_v13  ;;  %v2294_v52 = vld [vmem:[#allocation5 + $0x39b] sm:$0x1]  ;;  %v2295_v55 = vld [vmem:[#allocation5 + $0x3a3] sm:$0x1] }
 0x230   :  { %v1292_v46 = vsel %vm383_vm4, %v1291_v17, %v1290_v39  ;;  %v1994_v18 = vsel %vm371_vm0, %v1993_v27, %v1581_v51  ;;  %v1995_v9 = vrot.slane %v1583_v49, 6  ;;  %v1997_v19 = vrot.slane %v1584_v5, 5  ;;  %v2296_v45 = vld [vmem:[#allocation5 + $0x3ab] sm:$0x1]  ;;  %v2297_v17 = vld [vmem:[#allocation5 + $0x3b3] sm:$0x1] }
 0x231   :  { %5822 = vadd.xlane.f32.xlu1 %v5756_v34  ;;  %v11719_v8 = vadd.f32 %v11693_v42, %v5004_v6  ;;  %v1294_v7 = vsel %vm386_vm5, %v1293_v54, %v1292_v46  ;;  %v1999_v59 = vrot.slane %v1585_v3, 4  ;;  %v2001_v29 = vrot.slane %v1586_v15, 3  ;;  %v2298_v62 = vld [vmem:[#allocation5 + $0x3bb] sm:$0x1]  ;;  %v3002_v51 = vld [vmem:[#allocation5 + $0x38c] sm:$0x1] }
 0x232   :  { %v11723_v30 = vsel %vm389_vm6, %v1295_v24, %v1294_v7  ;;  %v1996_v20 = vsel %vm374_vm1, %v1995_v9, %v1994_v18  ;;  %v2003_v4 = vrot.slane %v1587_v10, 2  ;;  %v2005_v60 = vrot.slane %v1588_v50, 1  ;;  %v3001_v3 = vld [vmem:[#allocation5 + $0x384] sm:$0x1]  ;;  %v3003_v15 = vld [vmem:[#allocation5 + $0x394] sm:$0x1] }
 0x233   :  { %14319 = vst [vmem:[#allocation38_spill] sm:$0xff] %v11719_v8  ;;  %v5757_v32 = vmul.f32 %v10497_v58, %v11719_v8  ;;  %v1415_v42 = vmul.f32 %v11483_v41, %v11723_v30  ;;  %v1998_v54 = vsel %vm377_vm2, %v1997_v19, %v1996_v20  ;;  %v2703_v2 = vrot.slane %v2292_v23, 7  ;;  %v3004_v41 = vld [vmem:[#allocation5 + $0x39c] sm:$0x1]  ;;  %v3005_v10 = vld [vmem:[#allocation5 + $0x3a4] sm:$0x1] }
 0x234   :  { %v2000_v49 = vsel %vm380_vm3, %v1999_v59, %v1998_v54  ;;  %v2705_v5 = vrot.slane %v2293_v21, 6  ;;  %v2707_v13 = vrot.slane %v2294_v52, 5  ;;  %v2709_v24 = vrot.slane %v2295_v55, 4  ;;  %v3006_v19 = vld [vmem:[#allocation5 + $0x3ac] sm:$0x1] }
 0x235   :  { %5824 = vadd.xlane.f32.xlu0 %v5757_v32  ;;  %v1455_v27 = vadd.f32 %v1415_v42, %v705_v14  ;;  %v2002_v34 = vsel %vm383_vm4, %v2001_v29, %v2000_v49  ;;  %v2704_v6 = vsel %vm371_vm0, %v2703_v2, %v2291_v48  ;;  %v2711_v39 = vrot.slane %v2296_v45, 3  ;;  %v3007_v23 = vld [vmem:[#allocation5 + $0x3b4] sm:$0x1]  ;;  %v3008_v7 = vld [vmem:[#allocation5 + $0x3bc] sm:$0x1] }
 0x236   :  { %v2004_v50 = vsel %vm386_vm5, %v2003_v4, %v2002_v34  ;;  %v2706_v46 = vsel %vm374_vm1, %v2705_v5, %v2704_v6  ;;  %v2713_v18 = vrot.slane %v2297_v17, 2  ;;  %v2715_v9 = vrot.slane %v2298_v62, 1  ;;  %v3711_v4 = vld [vmem:[#allocation5 + $0x385] sm:$0x1]  ;;  %v3712_v45 = vld [vmem:[#allocation5 + $0x38d] sm:$0x1] }
 0x237   :  { %v11737_v21 = vsel %vm389_vm6, %v2005_v60, %v2004_v50  ;;  %v2708_v14 = vsel %vm377_vm2, %v2707_v13, %v2706_v46  ;;  %v3413_v59 = vrot.slane %v3002_v51, 7  ;;  %v3415_v29 = vrot.slane %v3003_v15, 6  ;;  %v3713_v17 = vld [vmem:[#allocation5 + $0x395] sm:$0x1]  ;;  %v3714_v62 = vld [vmem:[#allocation5 + $0x39d] sm:$0x1] }
 0x238   :  { %v2125_v48 = vmul.f32 %v11497_v33, %v11737_v21  ;;  %v2710_v52 = vsel %vm380_vm3, %v2709_v24, %v2708_v14  ;;  %v3417_v55 = vrot.slane %v3004_v41, 5  ;;  %v3419_v20 = vrot.slane %v3005_v10, 4  ;;  %v3715_v2 = vld [vmem:[#allocation5 + $0x3a5] sm:$0x1]  ;;  %v3716_v13 = vld [vmem:[#allocation5 + $0x3ad] sm:$0x1] }
 0x239   :  { %v2712_v32 = vsel %vm383_vm4, %v2711_v39, %v2710_v52  ;;  %v3414_v60 = vsel %vm371_vm0, %v3413_v59, %v3001_v3  ;;  %v3421_v42 = vrot.slane %v3006_v19, 3  ;;  %v3423_v54 = vrot.slane %v3007_v23, 2  ;;  %v3717_v24 = vld [vmem:[#allocation5 + $0x3b5] sm:$0x1]  ;;  %v3718_v6 = vld [vmem:[#allocation5 + $0x3bd] sm:$0x1] }
 0x23a   :  { %v2165_v51 = vadd.f32 %v2125_v48, %v1455_v27  ;;  %v2714_v49 = vsel %vm386_vm5, %v2713_v18, %v2712_v32  ;;  %v3416_v33 = vsel %vm374_vm1, %v3415_v29, %v3414_v60  ;;  %v3425_v5 = vrot.slane %v3008_v7, 1  ;;  %v4421_v46 = vld [vmem:[#allocation5 + $0x386] sm:$0x1]  ;;  %v4422_v18 = vld [vmem:[#allocation5 + $0x38e] sm:$0x1] }
 0x23b   :  { %v11748_v15 = vsel %vm389_vm6, %v2715_v9, %v2714_v49  ;;  %v3418_v34 = vsel %vm377_vm2, %v3417_v55, %v3416_v33  ;;  %v4123_v39 = vrot.slane %v3712_v45, 7  ;;  %v4125_v3 = vrot.slane %v3713_v17, 6  ;;  %v4423_v19 = vld [vmem:[#allocation5 + $0x396] sm:$0x1]  ;;  %v4424_v59 = vld [vmem:[#allocation5 + $0x39e] sm:$0x1] }
 0x23c   :  { %v2835_v41 = vmul.f32 %v11510_v63, %v11748_v15  ;;  %v3420_v27 = vsel %vm380_vm3, %v3419_v20, %v3418_v34  ;;  %v4127_v10 = vrot.slane %v3714_v62, 5  ;;  %v4129_v50 = vrot.slane %v3715_v2, 4  ;;  %v4425_v29 = vld [vmem:[#allocation5 + $0x3a6] sm:$0x1]  ;;  %v4426_v20 = vld [vmem:[#allocation5 + $0x3ae] sm:$0x1] }
 0x23d   :  { %v3422_v23 = vsel %vm383_vm4, %v3421_v42, %v3420_v27  ;;  %v4124_v9 = vsel %vm371_vm0, %v4123_v39, %v3711_v4  ;;  %v4131_v14 = vrot.slane %v3716_v13, 3  ;;  %v4133_v7 = vrot.slane %v3717_v24, 2  ;;  %v4427_v45 = vld [vmem:[#allocation5 + $0x3b6] sm:$0x1]  ;;  %v4428_v60 = vld [vmem:[#allocation5 + $0x3be] sm:$0x1] }
 0x23e   :  { %v2875_v48 = vadd.f32 %v2835_v41, %v2165_v51  ;;  %v3424_v52 = vsel %vm386_vm5, %v3423_v54, %v3422_v23  ;;  %v4126_v63 = vsel %vm374_vm1, %v4125_v3, %v4124_v9  ;;  %v4135_v55 = vrot.slane %v3718_v6, 1  ;;  %v5131_v49 = vld [vmem:[#allocation5 + $0x387] sm:$0x1]  ;;  %v5132_v33 = vld [vmem:[#allocation5 + $0x38f] sm:$0x1] }
 0x23f   :  { %v11759_v17 = vsel %vm389_vm6, %v3425_v5, %v3424_v52  ;;  %v4128_v32 = vsel %vm377_vm2, %v4127_v10, %v4126_v63  ;;  %v4833_v42 = vrot.slane %v4422_v18, 7  ;;  %v4835_v4 = vrot.slane %v4423_v19, 6  ;;  %v5133_v13 = vld [vmem:[#allocation5 + $0x397] sm:$0x1]  ;;  %v5134_v39 = vld [vmem:[#allocation5 + $0x39f] sm:$0x1] }
 0x240   :  { %v3545_v62 = vmul.f32 %v11523_v12, %v11759_v17  ;;  %v4130_v2 = vsel %vm380_vm3, %v4129_v50, %v4128_v32  ;;  %v4837_v51 = vrot.slane %v4424_v59, 5  ;;  %v4839_v54 = vrot.slane %v4425_v29, 4  ;;  %v5135_v3 = vld [vmem:[#allocation5 + $0x3a7] sm:$0x1]  ;;  %v5136_v50 = vld [vmem:[#allocation5 + $0x3af] sm:$0x1] }
 0x241   :  { %v4132_v24 = vsel %vm383_vm4, %v4131_v14, %v4130_v2  ;;  %v4834_v5 = vsel %vm371_vm0, %v4833_v42, %v4421_v46  ;;  %v4841_v34 = vrot.slane %v4426_v20, 3  ;;  %v4843_v6 = vrot.slane %v4427_v45, 2  ;;  %v5137_v18 = vld [vmem:[#allocation5 + $0x3b7] sm:$0x1]  ;;  %v5138_v9 = vld [vmem:[#allocation5 + $0x3bf] sm:$0x1] }
 0x242   :  { %v3585_v41 = vadd.f32 %v3545_v62, %v2875_v48  ;;  %v4134_v27 = vsel %vm386_vm5, %v4133_v7, %v4132_v24  ;;  %v4836_v12 = vsel %vm374_vm1, %v4835_v4, %v4834_v5  ;;  %v4845_v10 = vrot.slane %v4428_v60, 1  ;;  %v162_v52 = vld [vmem:[#allocation5 + $0x3c0] sm:$0x1]  ;;  %v163_v63 = vld [vmem:[#allocation5 + $0x3c8] sm:$0x1] }
 0x243   :  { %v11770_v19 = vsel %vm389_vm6, %v4135_v55, %v4134_v27  ;;  %v4838_v23 = vsel %vm377_vm2, %v4837_v51, %v4836_v12  ;;  %v5543_v14 = vrot.slane %v5132_v33, 7  ;;  %v5545_v46 = vrot.slane %v5133_v13, 6  ;;  %v164_v20 = vld [vmem:[#allocation5 + $0x3d0] sm:$0x1]  ;;  %v165_v42 = vld [vmem:[#allocation5 + $0x3d8] sm:$0x1] }
 0x244   :  { %v4255_v59 = vmul.f32 %v11536_v36, %v11770_v19  ;;  %v4840_v29 = vsel %vm380_vm3, %v4839_v54, %v4838_v23  ;;  %v5547_v48 = vrot.slane %v5134_v39, 5  ;;  %v5549_v7 = vrot.slane %v5135_v3, 4  ;;  %v166_v4 = vld [vmem:[#allocation5 + $0x3e0] sm:$0x1]  ;;  %v167_v54 = vld [vmem:[#allocation5 + $0x3e8] sm:$0x1] }
 0x245   :  { %v4842_v45 = vsel %vm383_vm4, %v4841_v34, %v4840_v29  ;;  %v5544_v55 = vsel %vm371_vm0, %v5543_v14, %v5131_v49  ;;  %v5551_v32 = vrot.slane %v5136_v50, 3  ;;  %v5553_v60 = vrot.slane %v5137_v18, 2  ;;  %v168_v33 = vld [vmem:[#allocation5 + $0x3f0] sm:$0x1]  ;;  %v169_v5 = vld [vmem:[#allocation5 + $0x3f8] sm:$0x1] }
 0x246   :  { %v4295_v62 = vadd.f32 %v4255_v59, %v3585_v41  ;;  %v4844_v2 = vsel %vm386_vm5, %v4843_v6, %v4842_v45  ;;  %v5546_v36 = vsel %vm374_vm1, %v5545_v46, %v5544_v55  ;;  %v5555_v51 = vrot.slane %v5138_v9, 1  ;;  %v879_v27 = vld [vmem:[#allocation5 + $0x3c1] sm:$0x1]  ;;  %v880_v12 = vld [vmem:[#allocation5 + $0x3c9] sm:$0x1] }
 0x247   :  { %v11781_v13 = vsel %vm389_vm6, %v4845_v10, %v4844_v2  ;;  %v5548_v24 = vsel %vm377_vm2, %v5547_v48, %v5546_v36  ;;  %v587_v34 = vrot.slane %v163_v63, 7  ;;  %v589_v49 = vrot.slane %v164_v20, 6  ;;  %v881_v50 = vld [vmem:[#allocation5 + $0x3d1] sm:$0x1]  ;;  %v882_v14 = vld [vmem:[#allocation5 + $0x3d9] sm:$0x1] }
 0x248   :  { %v4965_v39 = vmul.f32 %v11549_v38, %v11781_v13  ;;  %v5550_v3 = vsel %vm380_vm3, %v5549_v7, %v5548_v24  ;;  %v591_v41 = vrot.slane %v165_v42, 5  ;;  %v593_v6 = vrot.slane %v166_v4, 4  ;;  %v883_v46 = vld [vmem:[#allocation5 + $0x3e1] sm:$0x1]  ;;  %v884_v7 = vld [vmem:[#allocation5 + $0x3e9] sm:$0x1] }
 0x249   :  { %v5552_v18 = vsel %vm383_vm4, %v5551_v32, %v5550_v3  ;;  %v588_v10 = vsel %vm371_vm0, %v587_v34, %v162_v52  ;;  %v595_v23 = vrot.slane %v167_v54, 3  ;;  %v597_v9 = vrot.slane %v168_v33, 2  ;;  %v885_v63 = vld [vmem:[#allocation5 + $0x3f1] sm:$0x1]  ;;  %v886_v55 = vld [vmem:[#allocation5 + $0x3f9] sm:$0x1] }
 0x24a   :  { %v5005_v59 = vadd.f32 %v4965_v39, %v4295_v62  ;;  %v5554_v29 = vsel %vm386_vm5, %v5553_v60, %v5552_v18  ;;  %v590_v38 = vsel %vm374_vm1, %v589_v49, %v588_v10  ;;  %v599_v48 = vrot.slane %v169_v5, 1  ;;  %v1590_v2 = vld [vmem:[#allocation5 + $0x3ca] sm:$0x1]  ;;  %v1591_v36 = vld [vmem:[#allocation5 + $0x3d2] sm:$0x1] }
 0x24b   :  { %v11792_v20 = vsel %vm389_vm6, %v5555_v51, %v5554_v29  ;;  %v592_v45 = vsel %vm377_vm2, %v591_v41, %v590_v38  ;;  %v1297_v32 = vrot.slane %v880_v12, 7  ;;  %v1299_v52 = vrot.slane %v881_v50, 6  ;;  %v1589_v5 = vld [vmem:[#allocation5 + $0x3c2] sm:$0x1]  ;;  %v1592_v34 = vld [vmem:[#allocation5 + $0x3da] sm:$0x1] }
 0x24c   :  { %v5675_v42 = vmul.f32 %v11562_v53, %v11792_v20  ;;  %v594_v4 = vsel %vm380_vm3, %v593_v6, %v592_v45  ;;  %v1301_v62 = vrot.slane %v882_v14, 5  ;;  %v1303_v60 = vrot.slane %v883_v46, 4  ;;  %v1593_v41 = vld [vmem:[#allocation5 + $0x3e2] sm:$0x1]  ;;  %v1594_v6 = vld [vmem:[#allocation5 + $0x3ea] sm:$0x1] }
 0x24d   :  { %v596_v54 = vsel %vm383_vm4, %v595_v23, %v594_v4  ;;  %v1298_v33 = vsel %vm371_vm0, %v1297_v32, %v879_v27  ;;  %v1305_v51 = vrot.slane %v884_v7, 3  ;;  %v1307_v24 = vrot.slane %v885_v63, 2  ;;  %v1595_v18 = vld [vmem:[#allocation5 + $0x3f2] sm:$0x1]  ;;  %v1596_v27 = vld [vmem:[#allocation5 + $0x3fa] sm:$0x1] }
 0x24e   :  { %v11800_v49 = vadd.f32 %v5675_v42, %v5005_v59  ;;  %v598_v39 = vsel %vm386_vm5, %v597_v9, %v596_v54  ;;  %v1300_v53 = vsel %vm374_vm1, %v1299_v52, %v1298_v33  ;;  %v1309_v3 = vrot.slane %v886_v55, 1  ;;  %v11810_v46 = vld [vmem:[#allocation2] ss:$0 sm:$0xff]  ;;  %v2299_v38 = vld [vmem:[#allocation5 + $0x3c3] sm:$0x1] }
 0x24f   :  { %v11805_v12 = vsel %vm389_vm6, %v599_v48, %v598_v39  ;;  %v1302_v50 = vsel %vm377_vm2, %v1301_v62, %v1300_v53  ;;  %v2007_v10 = vrot.slane %v1590_v2, 7  ;;  %v2009_v23 = vrot.slane %v1591_v36, 6  ;;  %v2300_v48 = vld [vmem:[#allocation5 + $0x3cb] sm:$0x1]  ;;  %v2301_v7 = vld [vmem:[#allocation5 + $0x3d3] sm:$0x1] }
 0x250   :  { %14320 = vst [vmem:[#allocation39_spill] sm:$0xff] %v11800_v49  ;;  %v5758_v14 = vmul.f32 %v10497_v58, %v11800_v49  ;;  %v706_v9 = vmul.f32 %v11810_v46, %v11805_v12  ;;  %v1304_v59 = vsel %vm380_vm3, %v1303_v60, %v1302_v50  ;;  %v2011_v29 = vrot.slane %v1592_v34, 5  ;;  %v2302_v52 = vld [vmem:[#allocation5 + $0x3db] sm:$0x1]  ;;  %v2303_v42 = vld [vmem:[#allocation5 + $0x3e3] sm:$0x1] }
 0x251   :  { %v1306_v63 = vsel %vm383_vm4, %v1305_v51, %v1304_v59  ;;  %v2008_v45 = vsel %vm371_vm0, %v2007_v10, %v1589_v5  ;;  %v2013_v55 = vrot.slane %v1593_v41, 4  ;;  %v2015_v32 = vrot.slane %v1594_v6, 3  ;;  %v2304_v60 = vld [vmem:[#allocation5 + $0x3eb] sm:$0x1]  ;;  %v2305_v54 = vld [vmem:[#allocation5 + $0x3f3] sm:$0x1] }
 0x252   :  { %5826 = vadd.xlane.f32.xlu1 %v5758_v14  ;;  %v1308_v4 = vsel %vm386_vm5, %v1307_v24, %v1306_v63  ;;  %v2010_v62 = vsel %vm374_vm1, %v2009_v23, %v2008_v45  ;;  %v2017_v2 = vrot.slane %v1595_v18, 2  ;;  %v2019_v36 = vrot.slane %v1596_v27, 1  ;;  %v2306_v34 = vld [vmem:[#allocation5 + $0x3fb] sm:$0x1]  ;;  %v11823_v53 = vld [vmem:[#allocation2 + $0x1] ss:$0 sm:$0xff] }
 0x253   :  { %v11820_v33 = vsel %vm389_vm6, %v1309_v3, %v1308_v4  ;;  %v2012_v51 = vsel %vm377_vm2, %v2011_v29, %v2010_v62  ;;  %v2717_v5 = vrot.slane %v2300_v48, 7  ;;  %v2719_v39 = vrot.slane %v2301_v7, 6  ;;  %v3009_v18 = vld [vmem:[#allocation5 + $0x3c4] sm:$0x1]  ;;  %v3010_v27 = vld [vmem:[#allocation5 + $0x3cc] sm:$0x1] }
 0x254   :  { %v1416_v41 = vmul.f32 %v11823_v53, %v11820_v33  ;;  %v2014_v24 = vsel %vm380_vm3, %v2013_v55, %v2012_v51  ;;  %v2721_v6 = vrot.slane %v2302_v52, 5  ;;  %v2723_v50 = vrot.slane %v2303_v42, 4  ;;  %v3011_v10 = vld [vmem:[#allocation5 + $0x3d4] sm:$0x1]  ;;  %v3012_v29 = vld [vmem:[#allocation5 + $0x3dc] sm:$0x1] }
 0x255   :  { %v2016_v3 = vsel %vm383_vm4, %v2015_v32, %v2014_v24  ;;  %v2718_v23 = vsel %vm371_vm0, %v2717_v5, %v2299_v38  ;;  %v2725_v14 = vrot.slane %v2304_v60, 3  ;;  %v2727_v59 = vrot.slane %v2305_v54, 2  ;;  %v3013_v48 = vld [vmem:[#allocation5 + $0x3e4] sm:$0x1]  ;;  %v3014_v55 = vld [vmem:[#allocation5 + $0x3ec] sm:$0x1] }
 0x256   :  { %v1456_v7 = vadd.f32 %v1416_v41, %v706_v9  ;;  %v2018_v63 = vsel %vm386_vm5, %v2017_v2, %v2016_v3  ;;  %v2720_v45 = vsel %vm374_vm1, %v2719_v39, %v2718_v23  ;;  %v2729_v4 = vrot.slane %v2306_v34, 1  ;;  %v3015_v52 = vld [vmem:[#allocation5 + $0x3f4] sm:$0x1]  ;;  %v3016_v32 = vld [vmem:[#allocation5 + $0x3fc] sm:$0x1] }
 0x257   :  { %v11833_v42 = vsel %vm389_vm6, %v2019_v36, %v2018_v63  ;;  %v2722_v62 = vsel %vm377_vm2, %v2721_v6, %v2720_v45  ;;  %v3427_v51 = vrot.slane %v3010_v27, 7  ;;  %v3429_v38 = vrot.slane %v3011_v10, 6  ;;  %v11836_v60 = vld [vmem:[#allocation2 + $0x2] ss:$0 sm:$0xff]  ;;  %v3719_v34 = vld [vmem:[#allocation5 + $0x3c5] sm:$0x1] }
 0x258   :  { %v2126_v9 = vmul.f32 %v11836_v60, %v11833_v42  ;;  %v2724_v2 = vsel %vm380_vm3, %v2723_v50, %v2722_v62  ;;  %v3431_v54 = vrot.slane %v3012_v29, 5  ;;  %v3433_v5 = vrot.slane %v3013_v48, 4  ;;  %v3720_v39 = vld [vmem:[#allocation5 + $0x3cd] sm:$0x1]  ;;  %v3721_v41 = vld [vmem:[#allocation5 + $0x3d5] sm:$0x1] }
 0x259   :  { %v2726_v36 = vsel %vm383_vm4, %v2725_v14, %v2724_v2  ;;  %v3428_v24 = vsel %vm371_vm0, %v3427_v51, %v3009_v18  ;;  %v3435_v6 = vrot.slane %v3014_v55, 3  ;;  %v3437_v3 = vrot.slane %v3015_v52, 2  ;;  %v3722_v27 = vld [vmem:[#allocation5 + $0x3dd] sm:$0x1]  ;;  %v3723_v10 = vld [vmem:[#allocation5 + $0x3e5] sm:$0x1] }
 0x25a   :  { %v2166_v23 = vadd.f32 %v2126_v9, %v1456_v7  ;;  %v2728_v63 = vsel %vm386_vm5, %v2727_v59, %v2726_v36  ;;  %v3430_v45 = vsel %vm374_vm1, %v3429_v38, %v3428_v24  ;;  %v3439_v49 = vrot.slane %v3016_v32, 1  ;;  %v3724_v50 = vld [vmem:[#allocation5 + $0x3ed] sm:$0x1]  ;;  %v3725_v29 = vld [vmem:[#allocation5 + $0x3f5] sm:$0x1] }
 0x25b   :  { %v11846_v48 = vsel %vm389_vm6, %v2729_v4, %v2728_v63  ;;  %v3432_v62 = vsel %vm377_vm2, %v3431_v54, %v3430_v45  ;;  %v3726_v14 = vld [vmem:[#allocation5 + $0x3fd] sm:$0x1]  ;;  %v4137_v2 = vrot.slane %v3720_v39, 7  ;;  %v4139_v18 = vrot.slane %v3721_v41, 6  ;;  %v11849_v55 = vld [vmem:[#allocation2 + $0x3] ss:$0 sm:$0xff] }
 0x25c   :  { %v2836_v7 = vmul.f32 %v11849_v55, %v11846_v48  ;;  %v3434_v59 = vsel %vm380_vm3, %v3433_v5, %v3432_v62  ;;  %v4141_v52 = vrot.slane %v3722_v27, 5  ;;  %v4143_v51 = vrot.slane %v3723_v10, 4  ;;  %v4429_v32 = vld [vmem:[#allocation5 + $0x3c6] sm:$0x1]  ;;  %v4430_v38 = vld [vmem:[#allocation5 + $0x3ce] sm:$0x1] }
 0x25d   :  { %v4431_v9 = vld [vmem:[#allocation5 + $0x3d6] sm:$0x1]  ;;  %v3436_v4 = vsel %vm383_vm4, %v3435_v6, %v3434_v59  ;;  %v4138_v36 = vsel %vm371_vm0, %v4137_v2, %v3719_v34  ;;  %v4145_v54 = vrot.slane %v3724_v50, 3  ;;  %v4147_v24 = vrot.slane %v3725_v29, 2  ;;  %v4432_v39 = vld [vmem:[#allocation5 + $0x3de] sm:$0x1] }
 0x25e   :  { %v4433_v41 = vld [vmem:[#allocation5 + $0x3e6] sm:$0x1]  ;;  %v2876_v63 = vadd.f32 %v2836_v7, %v2166_v23  ;;  %v3438_v45 = vsel %vm386_vm5, %v3437_v3, %v3436_v4  ;;  %v4140_v8 = vsel %vm374_vm1, %v4139_v18, %v4138_v36  ;;  %v4149_v44 = vrot.slane %v3726_v14, 1  ;;  %v4434_v5 = vld [vmem:[#allocation5 + $0x3ee] sm:$0x1] }
 0x25f   :  { %v4435_v27 = vld [vmem:[#allocation5 + $0x3f6] sm:$0x1]  ;;  %v11859_v10 = vsel %vm389_vm6, %v3439_v49, %v3438_v45  ;;  %v4142_v62 = vsel %vm377_vm2, %v4141_v52, %v4140_v8  ;;  %v4436_v6 = vld [vmem:[#allocation5 + $0x3fe] sm:$0x1]  ;;  %v4847_v59 = vrot.slane %v4430_v38, 7  ;;  %v4849_v34 = vrot.slane %v4431_v9, 6 }
 0x260   :  { %v11862_v50 = vld [vmem:[#allocation2 + $0x4] ss:$0 sm:$0xff]  ;;  %v4144_v3 = vsel %vm380_vm3, %v4143_v51, %v4142_v62  ;;  %v4851_v29 = vrot.slane %v4432_v39, 5  ;;  %v4853_v2 = vrot.slane %v4433_v41, 4  ;;  %v5139_v14 = vld [vmem:[#allocation5 + $0x3c7] sm:$0x1] }
 0x261   :  { %v3546_v23 = vmul.f32 %v11862_v50, %v11859_v10  ;;  %v5140_v18 = vld [vmem:[#allocation5 + $0x3cf] sm:$0x1]  ;;  %v5141_v7 = vld [vmem:[#allocation5 + $0x3d7] sm:$0x1]  ;;  %v4146_v49 = vsel %vm383_vm4, %v4145_v54, %v4144_v3  ;;  %v4848_v4 = vsel %vm371_vm0, %v4847_v59, %v4429_v32  ;;  %v4855_v8 = vrot.slane %v4434_v5, 3 }
 0x262   :  { %v4857_v52 = vrot.slane %v4435_v27, 2  ;;  %v5142_v38 = vld [vmem:[#allocation5 + $0x3df] sm:$0x1]  ;;  %v5143_v9 = vld [vmem:[#allocation5 + $0x3e7] sm:$0x1]  ;;  %v4148_v45 = vsel %vm386_vm5, %v4147_v24, %v4146_v49  ;;  %v4850_v35 = vsel %vm374_vm1, %v4849_v34, %v4848_v4  ;;  %v4859_v40 = vrot.slane %v4436_v6, 1 }
 0x263   :  { %v3586_v36 = vadd.f32 %v3546_v23, %v2876_v63  ;;  %v5144_v51 = vld [vmem:[#allocation5 + $0x3ef] sm:$0x1]  ;;  %v5145_v39 = vld [vmem:[#allocation5 + $0x3f7] sm:$0x1]  ;;  %v4150_v41 = vsel %vm389_vm6, %v4149_v44, %v4148_v45  ;;  %v4852_v62 = vsel %vm377_vm2, %v4851_v29, %v4850_v35  ;;  %v5557_v54 = vrot.slane %v5140_v18, 7 }
 0x264   :  { %v5559_v3 = vrot.slane %v5141_v7, 6  ;;  %v11873_v32 = vld [vmem:[#allocation2 + $0x5] ss:$0 sm:$0xff]  ;;  %v4854_v63 = vsel %vm380_vm3, %v4853_v2, %v4852_v62  ;;  %v5561_v27 = vrot.slane %v5142_v38, 5  ;;  %v5563_v24 = vrot.slane %v5143_v9, 4 }
 0x265   :  { %v4256_v5 = vmul.f32 %v11873_v32, %v4150_v41  ;;  %v4856_v59 = vsel %vm383_vm4, %v4855_v8, %v4854_v63  ;;  %v5558_v6 = vsel %vm371_vm0, %v5557_v54, %v5139_v14  ;;  %v5565_v34 = vrot.slane %v5144_v51, 3  ;;  %v11887_v8 = vld [vmem:[#allocation2 + $0x6] ss:$0 sm:$0xff]  ;;  %v171_v54 = vld [vmem:[#allocation5 + $0x408] sm:$0x1] }
 0x266   :  { %v5567_v23 = vrot.slane %v5145_v39, 2  ;;  %v4858_v35 = vsel %vm386_vm5, %v4857_v52, %v4856_v59  ;;  %v5560_v29 = vsel %vm374_vm1, %v5559_v3, %v5558_v6  ;;  %v5569_v18 = vrot.slane %v5146_v61, 1  ;;  %v11910_v3 = vld [vmem:[#allocation2 + $0x7] ss:$0 sm:$0xff]  ;;  %v170_v59 = vld [vmem:[#allocation5 + $0x400] sm:$0x1] }
 0x267   :  { %v4296_v44 = vadd.f32 %v4256_v5, %v3586_v36  ;;  %v4860_v7 = vsel %vm389_vm6, %v4859_v40, %v4858_v35  ;;  %v5562_v49 = vsel %vm377_vm2, %v5561_v27, %v5560_v29  ;;  %v707_v2 = vmul.f32 %v11640_v31, %v11708_v22  ;;  %v173_v27 = vld [vmem:[#allocation5 + $0x418] sm:$0x1]  ;;  %v175_v6 = vld [vmem:[#allocation5 + $0x428] sm:$0x1] }
 0x268   :  { %v1417_v4 = vmul.f32 %v11644_v28, %v11723_v30  ;;  %v4966_v14 = vmul.f32 %v11887_v8, %v4860_v7  ;;  %v5564_v38 = vsel %vm380_vm3, %v5563_v24, %v5562_v49  ;;  %v2127_v52 = vmul.f32 %v11650_v57, %v11737_v21 }
 0x269   :  { %v2837_v61 = vmul.f32 %v11654_v37, %v11748_v15  ;;  %v5566_v40 = vsel %vm383_vm4, %v5565_v34, %v5564_v38  ;;  %v3547_v22 = vmul.f32 %v11659_v16, %v11759_v17  ;;  %v4257_v30 = vmul.f32 %v11663_v47, %v11770_v19  ;;  %v172_v19 = vld [vmem:[#allocation5 + $0x410] sm:$0x1] }
 0x26a   :  { %v1457_v9 = vadd.f32 %v1417_v4, %v707_v2  ;;  %v5006_v36 = vadd.f32 %v4966_v14, %v4296_v44  ;;  %v5568_v45 = vsel %vm386_vm5, %v5567_v23, %v5566_v40  ;;  %v4967_v51 = vmul.f32 %v11668_v26, %v11781_v13  ;;  %v176_v34 = vld [vmem:[#allocation5 + $0x430] sm:$0x1]  ;;  %v887_v2 = vld [vmem:[#allocation5 + $0x401] sm:$0x1]  ;;  %v893_v40 = vld [vmem:[#allocation5 + $0x431] sm:$0x1] }
 0x26b   :  { %v5677_v21 = vmul.f32 %v11672_v43, %v11792_v20  ;;  %v5570_v15 = vsel %vm389_vm6, %v5569_v18, %v5568_v45  ;;  %v708_v62 = vmul.f32 %v11640_v31, %v11805_v12  ;;  %v1418_v17 = vmul.f32 %v11644_v28, %v11820_v33  ;;  %v174_v31 = vld [vmem:[#allocation5 + $0x420] sm:$0x1]  ;;  %v889_v18 = vld [vmem:[#allocation5 + $0x411] sm:$0x1] }
 0x26c   :  { %v2167_v39 = vadd.f32 %v2127_v52, %v1457_v9  ;;  %v5676_v5 = vmul.f32 %v11910_v3, %v5570_v15  ;;  %v2128_v13 = vmul.f32 %v11650_v57, %v11833_v42  ;;  %v2838_v20 = vmul.f32 %v11654_v37, %v11846_v48  ;;  %v177_v37 = vld [vmem:[#allocation5 + $0x438] sm:$0x1] }
 0x26d   :  { %v3548_v63 = vmul.f32 %v11659_v16, %v11859_v10  ;;  %v1458_v24 = vadd.f32 %v1418_v17, %v708_v62  ;;  %v4258_v28 = vmul.f32 %v11663_v47, %v4150_v41  ;;  %v4968_v33 = vmul.f32 %v11668_v26, %v4860_v7  ;;  %v888_v16 = vld [vmem:[#allocation5 + $0x409] sm:$0x1]  ;;  %v890_v47 = vld [vmem:[#allocation5 + $0x419] sm:$0x1] }
 0x26e   :  { %v2877_v12 = vadd.f32 %v2837_v61, %v2167_v39  ;;  %v11921_v23 = vadd.f32 %v5676_v5, %v5006_v36  ;;  %v11924_v57 = vmul.f32 %v11672_v43, %v5570_v15  ;;  %v601_v42 = vrot.slane %v171_v54, 7  ;;  %v891_v43 = vld [vmem:[#allocation5 + $0x421] sm:$0x1]  ;;  %v892_v61 = vld [vmem:[#allocation5 + $0x429] sm:$0x1] }
 0x26f   :  { %v603_v48 = vrot.slane %v172_v19, 6  ;;  %v2168_v44 = vadd.f32 %v2128_v13, %v1458_v24  ;;  %v605_v35 = vrot.slane %v173_v27, 5  ;;  %v607_v29 = vrot.slane %v174_v31, 4  ;;  %v894_v17 = vld [vmem:[#allocation5 + $0x439] sm:$0x1] }
 0x270   :  { %14321 = vst [vmem:[#allocation40_spill] sm:$0xff] %v11921_v23  ;;  %v3587_v10 = vadd.f32 %v3547_v22, %v2877_v12  ;;  %v5759_v26 = vmul.f32 %v10497_v58, %v11921_v23  ;;  %v602_v41 = vsel %vm371_vm0, %v601_v42, %v170_v59  ;;  %v609_v7 = vrot.slane %v175_v6, 3  ;;  %v1598_v19 = vld [vmem:[#allocation5 + $0x40a] sm:$0x1]  ;;  %v1600_v59 = vld [vmem:[#allocation5 + $0x41a] sm:$0x1] }
 0x271   :  { %v611_v49 = vrot.slane %v176_v34, 2  ;;  %v2878_v14 = vadd.f32 %v2838_v20, %v2168_v44  ;;  %v604_v38 = vsel %vm374_vm1, %v603_v48, %v602_v41  ;;  %v613_v52 = vrot.slane %v177_v37, 1  ;;  %v1601_v42 = vld [vmem:[#allocation5 + $0x422] sm:$0x1]  ;;  %v1602_v48 = vld [vmem:[#allocation5 + $0x42a] sm:$0x1] }
 0x272   :  { %v4297_v4 = vadd.f32 %v4257_v30, %v3587_v10  ;;  %5828 = vadd.xlane.f32.xlu0 %v5759_v26  ;;  %v606_v9 = vsel %vm377_vm2, %v605_v35, %v604_v38  ;;  %v1311_v22 = vrot.slane %v888_v16, 7  ;;  %v1313_v36 = vrot.slane %v889_v18, 6  ;;  %v1603_v35 = vld [vmem:[#allocation5 + $0x432] sm:$0x1]  ;;  %v2310_v38 = vld [vmem:[#allocation5 + $0x41b] sm:$0x1] }
 0x273   :  { %v1315_v45 = vrot.slane %v890_v47, 5  ;;  %v3588_v39 = vadd.f32 %v3548_v63, %v2878_v14  ;;  %v608_v62 = vsel %vm380_vm3, %v607_v29, %v606_v9  ;;  %v1317_v54 = vrot.slane %v891_v43, 4  ;;  %v1599_v63 = vld [vmem:[#allocation5 + $0x412] sm:$0x1]  ;;  %v1604_v29 = vld [vmem:[#allocation5 + $0x43a] sm:$0x1] }
 0x274   :  { %v5007_v15 = vadd.f32 %v4967_v51, %v4297_v4  ;;  %v610_v30 = vsel %vm383_vm4, %v609_v7, %v608_v62  ;;  %v1312_v5 = vsel %vm371_vm0, %v1311_v22, %v887_v2  ;;  %v1319_v13 = vrot.slane %v892_v61, 3  ;;  %v1597_v51 = vld [vmem:[#allocation5 + $0x402] sm:$0x1]  ;;  %v2307_v7 = vld [vmem:[#allocation5 + $0x403] sm:$0x1] }
 0x275   :  { %v1321_v20 = vrot.slane %v893_v40, 2  ;;  %v4298_v31 = vadd.f32 %v4258_v28, %v3588_v39  ;;  %v612_v12 = vsel %vm386_vm5, %v611_v49, %v610_v30  ;;  %v1314_v24 = vsel %vm374_vm1, %v1313_v36, %v1312_v5  ;;  %v2308_v49 = vld [vmem:[#allocation5 + $0x40b] sm:$0x1]  ;;  %v2309_v2 = vld [vmem:[#allocation5 + $0x413] sm:$0x1] }
 0x276   :  { %v11934_v27 = vadd.f32 %v5677_v21, %v5007_v15  ;;  %v11939_v6 = vsel %vm389_vm6, %v613_v52, %v612_v12  ;;  %v1316_v34 = vsel %vm377_vm2, %v1315_v45, %v1314_v24  ;;  %v1323_v37 = vrot.slane %v894_v17, 1  ;;  %v2311_v52 = vld [vmem:[#allocation5 + $0x423] sm:$0x1]  ;;  %v2312_v36 = vld [vmem:[#allocation5 + $0x42b] sm:$0x1] }
 0x277   :  { %v2021_v16 = vrot.slane %v1598_v19, 7  ;;  %v5008_v28 = vadd.f32 %v4968_v33, %v4298_v31  ;;  %v709_v10 = vmul.f32 %v11810_v46, %v11939_v6  ;;  %v1318_v44 = vsel %vm380_vm3, %v1317_v54, %v1316_v34  ;;  %v2313_v45 = vld [vmem:[#allocation5 + $0x433] sm:$0x1]  ;;  %v2314_v62 = vld [vmem:[#allocation5 + $0x43b] sm:$0x1] }
 0x278   :  { %14322 = vst [vmem:[#allocation41_spill] sm:$0xff] %v11934_v27  ;;  %v5760_v21 = vmul.f32 %v10497_v58, %v11934_v27  ;;  %v1320_v18 = vsel %vm383_vm4, %v1319_v13, %v1318_v44  ;;  %v2023_v26 = vrot.slane %v1599_v63, 6  ;;  %v2025_v41 = vrot.slane %v1600_v59, 5  ;;  %v3018_v54 = vld [vmem:[#allocation5 + $0x40c] sm:$0x1] }
 0x279   :  { %v2022_v47 = vsel %vm371_vm0, %v2021_v16, %v1597_v51  ;;  %v11950_v43 = vadd.f32 %v11924_v57, %v5008_v28  ;;  %v1322_v33 = vsel %vm386_vm5, %v1321_v20, %v1320_v18  ;;  %v2027_v4 = vrot.slane %v1601_v42, 4  ;;  %v3017_v20 = vld [vmem:[#allocation5 + $0x404] sm:$0x1]  ;;  %v3019_v31 = vld [vmem:[#allocation5 + $0x414] sm:$0x1] }
 0x27a   :  { %5830 = vadd.xlane.f32.xlu1 %v5760_v21  ;;  %v2029_v14 = vrot.slane %v1602_v48, 3  ;;  %v11954_v61 = vsel %vm389_vm6, %v1323_v37, %v1322_v33  ;;  %v2024_v40 = vsel %vm374_vm1, %v2023_v26, %v2022_v47  ;;  %v2031_v9 = vrot.slane %v1603_v35, 2  ;;  %v3020_v59 = vld [vmem:[#allocation5 + $0x41c] sm:$0x1]  ;;  %v3021_v34 = vld [vmem:[#allocation5 + $0x424] sm:$0x1] }
 0x27b   :  { %14323 = vst [vmem:[#allocation42_spill] sm:$0xff] %v11950_v43  ;;  %v2033_v22 = vrot.slane %v1604_v29, 1  ;;  %v5761_v15 = vmul.f32 %v10497_v58, %v11950_v43  ;;  %v1419_v57 = vmul.f32 %v11823_v53, %v11954_v61  ;;  %v2026_v39 = vsel %vm377_vm2, %v2025_v41, %v2024_v40  ;;  %v3022_v21 = vld [vmem:[#allocation5 + $0x42c] sm:$0x1]  ;;  %v3023_v28 = vld [vmem:[#allocation5 + $0x434] sm:$0x1] }
 0x27c   :  { %v2731_v17 = vrot.slane %v2308_v49, 7  ;;  %v2028_v19 = vsel %vm380_vm3, %v2027_v4, %v2026_v39  ;;  %v2733_v30 = vrot.slane %v2309_v2, 6  ;;  %v2735_v5 = vrot.slane %v2310_v38, 5  ;;  %v3024_v35 = vld [vmem:[#allocation5 + $0x43c] sm:$0x1] }
 0x27d   :  { %v2737_v13 = vrot.slane %v2311_v52, 4  ;;  %5832 = vadd.xlane.f32.xlu0 %v5761_v15  ;;  %v1459_v12 = vadd.f32 %v1419_v57, %v709_v10  ;;  %v2030_v24 = vsel %vm383_vm4, %v2029_v14, %v2028_v19  ;;  %v2739_v63 = vrot.slane %v2312_v36, 3  ;;  %v3727_v49 = vld [vmem:[#allocation5 + $0x405] sm:$0x1]  ;;  %v3728_v2 = vld [vmem:[#allocation5 + $0x40d] sm:$0x1] }
 0x27e   :  { %v2732_v51 = vsel %vm371_vm0, %v2731_v17, %v2307_v7  ;;  %v2032_v37 = vsel %vm386_vm5, %v2031_v9, %v2030_v24  ;;  %v2741_v48 = vrot.slane %v2313_v45, 2  ;;  %v2743_v16 = vrot.slane %v2314_v62, 1  ;;  %v3729_v33 = vld [vmem:[#allocation5 + $0x415] sm:$0x1]  ;;  %v3730_v40 = vld [vmem:[#allocation5 + $0x41d] sm:$0x1] }
 0x27f   :  { %v2734_v42 = vsel %vm374_vm1, %v2733_v30, %v2732_v51  ;;  %v11968_v44 = vsel %vm389_vm6, %v2033_v22, %v2032_v37  ;;  %v3441_v29 = vrot.slane %v3018_v54, 7  ;;  %v3443_v18 = vrot.slane %v3019_v31, 6  ;;  %v3731_v9 = vld [vmem:[#allocation5 + $0x425] sm:$0x1]  ;;  %v3732_v57 = vld [vmem:[#allocation5 + $0x42d] sm:$0x1] }
 0x280   :  { %v2736_v10 = vsel %vm377_vm2, %v2735_v5, %v2734_v42  ;;  %v2129_v47 = vmul.f32 %v11836_v60, %v11968_v44  ;;  %v3445_v41 = vrot.slane %v3020_v59, 5  ;;  %v3447_v7 = vrot.slane %v3021_v34, 4  ;;  %v3733_v39 = vld [vmem:[#allocation5 + $0x435] sm:$0x1]  ;;  %v3734_v54 = vld [vmem:[#allocation5 + $0x43d] sm:$0x1] }
 0x281   :  { %v2738_v26 = vsel %vm380_vm3, %v2737_v13, %v2736_v10  ;;  %v3442_v14 = vsel %vm371_vm0, %v3441_v29, %v3017_v20  ;;  %v3449_v38 = vrot.slane %v3022_v21, 3  ;;  %v3451_v52 = vrot.slane %v3023_v28, 2  ;;  %v4438_v24 = vld [vmem:[#allocation5 + $0x40e] sm:$0x1]  ;;  %v4439_v51 = vld [vmem:[#allocation5 + $0x416] sm:$0x1] }
 0x282   :  { %v2740_v4 = vsel %vm383_vm4, %v2739_v63, %v2738_v26  ;;  %v2169_v22 = vadd.f32 %v2129_v47, %v1459_v12  ;;  %v3444_v45 = vsel %vm374_vm1, %v3443_v18, %v3442_v14  ;;  %v3453_v15 = vrot.slane %v3024_v35, 1  ;;  %v4437_v12 = vld [vmem:[#allocation5 + $0x406] sm:$0x1]  ;;  %v4440_v42 = vld [vmem:[#allocation5 + $0x41e] sm:$0x1] }
 0x283   :  { %v2742_v36 = vsel %vm386_vm5, %v2741_v48, %v2740_v4  ;;  %v3446_v17 = vsel %vm377_vm2, %v3445_v41, %v3444_v45  ;;  %v4151_v19 = vrot.slane %v3728_v2, 7  ;;  %v4153_v30 = vrot.slane %v3729_v33, 6  ;;  %v4441_v48 = vld [vmem:[#allocation5 + $0x426] sm:$0x1]  ;;  %v4442_v35 = vld [vmem:[#allocation5 + $0x42e] sm:$0x1] }
 0x284   :  { %v11979_v62 = vsel %vm389_vm6, %v2743_v16, %v2742_v36  ;;  %v3448_v13 = vsel %vm380_vm3, %v3447_v7, %v3446_v17  ;;  %v4155_v20 = vrot.slane %v3730_v40, 5  ;;  %v4157_v31 = vrot.slane %v3731_v9, 4  ;;  %v4443_v29 = vld [vmem:[#allocation5 + $0x436] sm:$0x1]  ;;  %v4444_v26 = vld [vmem:[#allocation5 + $0x43e] sm:$0x1] }
 0x285   :  { %v2839_v5 = vmul.f32 %v11849_v55, %v11979_v62  ;;  %v3450_v63 = vsel %vm383_vm4, %v3449_v38, %v3448_v13  ;;  %v4152_v59 = vsel %vm371_vm0, %v4151_v19, %v3727_v49  ;;  %v4159_v34 = vrot.slane %v3732_v57, 3  ;;  %v5147_v14 = vld [vmem:[#allocation5 + $0x407] sm:$0x1]  ;;  %v5148_v38 = vld [vmem:[#allocation5 + $0x40f] sm:$0x1] }
 0x286   :  { %v4161_v37 = vrot.slane %v3733_v39, 2  ;;  %v3452_v21 = vsel %vm386_vm5, %v3451_v52, %v3450_v63  ;;  %v4154_v28 = vsel %vm374_vm1, %v4153_v30, %v4152_v59  ;;  %v4163_v10 = vrot.slane %v3734_v54, 1  ;;  %v5149_v52 = vld [vmem:[#allocation5 + $0x417] sm:$0x1]  ;;  %v5150_v45 = vld [vmem:[#allocation5 + $0x41f] sm:$0x1] }
 0x287   :  { %v2879_v16 = vadd.f32 %v2839_v5, %v2169_v22  ;;  %v11990_v18 = vsel %vm389_vm6, %v3453_v15, %v3452_v21  ;;  %v4156_v47 = vsel %vm377_vm2, %v4155_v20, %v4154_v28  ;;  %v4861_v41 = vrot.slane %v4438_v24, 7  ;;  %v5151_v15 = vld [vmem:[#allocation5 + $0x427] sm:$0x1]  ;;  %v5152_v19 = vld [vmem:[#allocation5 + $0x42f] sm:$0x1] }
 0x288   :  { %v4863_v7 = vrot.slane %v4439_v51, 6  ;;  %v3549_v49 = vmul.f32 %v11862_v50, %v11990_v18  ;;  %v4158_v2 = vsel %vm380_vm3, %v4157_v31, %v4156_v47  ;;  %v4865_v33 = vrot.slane %v4440_v42, 5  ;;  %v5153_v30 = vld [vmem:[#allocation5 + $0x437] sm:$0x1]  ;;  %v5154_v20 = vld [vmem:[#allocation5 + $0x43f] sm:$0x1] }
 0x289   :  { %v4867_v4 = vrot.slane %v4441_v48, 4  ;;  %v4160_v40 = vsel %vm383_vm4, %v4159_v34, %v4158_v2  ;;  %v4862_v9 = vsel %vm371_vm0, %v4861_v41, %v4437_v12  ;;  %v4869_v22 = vrot.slane %v4442_v35, 3  ;;  %v178_v34 = vld [vmem:[#allocation5 + $0x440] sm:$0x1]  ;;  %v180_v42 = vld [vmem:[#allocation5 + $0x450] sm:$0x1] }
 0x28a   :  { %v4871_v36 = vrot.slane %v4443_v29, 2  ;;  %v3589_v57 = vadd.f32 %v3549_v49, %v2879_v16  ;;  %v4162_v39 = vsel %vm386_vm5, %v4161_v37, %v4160_v40  ;;  %v4864_v17 = vsel %vm374_vm1, %v4863_v7, %v4862_v9  ;;  %v179_v37 = vld [vmem:[#allocation5 + $0x448] sm:$0x1]  ;;  %v182_v35 = vld [vmem:[#allocation5 + $0x460] sm:$0x1] }
 0x28b   :  { %v4873_v54 = vrot.slane %v4444_v26, 1  ;;  %v12001_v5 = vsel %vm389_vm6, %v4163_v10, %v4162_v39  ;;  %v4866_v13 = vsel %vm377_vm2, %v4865_v33, %v4864_v17  ;;  %v5571_v31 = vrot.slane %v5148_v38, 7  ;;  %v181_v10 = vld [vmem:[#allocation5 + $0x458] sm:$0x1]  ;;  %v183_v7 = vld [vmem:[#allocation5 + $0x468] sm:$0x1] }
 0x28c   :  { %v5573_v12 = vrot.slane %v5149_v52, 6  ;;  %v4259_v24 = vmul.f32 %v11873_v32, %v12001_v5  ;;  %v4868_v51 = vsel %vm380_vm3, %v4867_v4, %v4866_v13  ;;  %v5575_v63 = vrot.slane %v5150_v45, 5  ;;  %v184_v49 = vld [vmem:[#allocation5 + $0x470] sm:$0x1]  ;;  %v185_v4 = vld [vmem:[#allocation5 + $0x478] sm:$0x1] }
 0x28d   :  { %v5577_v59 = vrot.slane %v5151_v15, 4  ;;  %v4870_v48 = vsel %vm383_vm4, %v4869_v22, %v4868_v51  ;;  %v5572_v16 = vsel %vm371_vm0, %v5571_v31, %v5147_v14  ;;  %v5579_v21 = vrot.slane %v5152_v19, 3  ;;  %v896_v45 = vld [vmem:[#allocation5 + $0x449] sm:$0x1]  ;;  %v897_v15 = vld [vmem:[#allocation5 + $0x451] sm:$0x1] }
 0x28e   :  { %v5581_v28 = vrot.slane %v5153_v30, 2  ;;  %v4299_v29 = vadd.f32 %v4259_v24, %v3589_v57  ;;  %v4872_v47 = vsel %vm386_vm5, %v4871_v36, %v4870_v48  ;;  %v5574_v26 = vsel %vm374_vm1, %v5573_v12, %v5572_v16  ;;  %v895_v36 = vld [vmem:[#allocation5 + $0x441] sm:$0x1]  ;;  %v898_v19 = vld [vmem:[#allocation5 + $0x459] sm:$0x1] }
 0x28f   :  { %v5583_v41 = vrot.slane %v5154_v20, 1  ;;  %v12012_v2 = vsel %vm389_vm6, %v4873_v54, %v4872_v47  ;;  %v5576_v33 = vsel %vm377_vm2, %v5575_v63, %v5574_v26  ;;  %v615_v38 = vrot.slane %v179_v37, 7  ;;  %v899_v30 = vld [vmem:[#allocation5 + $0x461] sm:$0x1]  ;;  %v900_v24 = vld [vmem:[#allocation5 + $0x469] sm:$0x1] }
 0x290   :  { %v617_v14 = vrot.slane %v180_v42, 6  ;;  %v4969_v52 = vmul.f32 %v11887_v8, %v12012_v2  ;;  %v5578_v40 = vsel %vm380_vm3, %v5577_v59, %v5576_v33  ;;  %v619_v9 = vrot.slane %v181_v10, 5  ;;  %v901_v51 = vld [vmem:[#allocation5 + $0x471] sm:$0x1]  ;;  %v902_v37 = vld [vmem:[#allocation5 + $0x479] sm:$0x1] }
 0x291   :  { %v621_v22 = vrot.slane %v182_v35, 4  ;;  %v5580_v57 = vsel %vm383_vm4, %v5579_v21, %v5578_v40  ;;  %v616_v39 = vsel %vm371_vm0, %v615_v38, %v178_v34  ;;  %v623_v17 = vrot.slane %v183_v7, 3  ;;  %v1606_v10 = vld [vmem:[#allocation5 + $0x44a] sm:$0x1]  ;;  %v1607_v35 = vld [vmem:[#allocation5 + $0x452] sm:$0x1] }
 0x292   :  { %v625_v54 = vrot.slane %v184_v49, 2  ;;  %v5009_v13 = vadd.f32 %v4969_v52, %v4299_v29  ;;  %v5582_v20 = vsel %vm386_vm5, %v5581_v28, %v5580_v57  ;;  %v618_v31 = vsel %vm374_vm1, %v617_v14, %v616_v39  ;;  %v1605_v7 = vld [vmem:[#allocation5 + $0x442] sm:$0x1]  ;;  %v1608_v49 = vld [vmem:[#allocation5 + $0x45a] sm:$0x1] }
 0x293   :  { %v627_v12 = vrot.slane %v185_v4, 1  ;;  %v12023_v63 = vsel %vm389_vm6, %v5583_v41, %v5582_v20  ;;  %v620_v59 = vsel %vm377_vm2, %v619_v9, %v618_v31  ;;  %v1325_v42 = vrot.slane %v896_v45, 7  ;;  %v1609_v52 = vld [vmem:[#allocation5 + $0x462] sm:$0x1]  ;;  %v1610_v40 = vld [vmem:[#allocation5 + $0x46a] sm:$0x1] }
 0x294   :  { %v1327_v34 = vrot.slane %v897_v15, 6  ;;  %v5679_v48 = vmul.f32 %v11910_v3, %v12023_v63  ;;  %v622_v16 = vsel %vm380_vm3, %v621_v22, %v620_v59  ;;  %v1329_v21 = vrot.slane %v898_v19, 5  ;;  %v1611_v45 = vld [vmem:[#allocation5 + $0x472] sm:$0x1]  ;;  %v2317_v20 = vld [vmem:[#allocation5 + $0x453] sm:$0x1] }
 0x295   :  { %v1331_v28 = vrot.slane %v899_v30, 4  ;;  %v624_v29 = vsel %vm383_vm4, %v623_v17, %v622_v16  ;;  %v1326_v47 = vsel %vm371_vm0, %v1325_v42, %v895_v36  ;;  %v1333_v26 = vrot.slane %v900_v24, 3  ;;  %v1612_v36 = vld [vmem:[#allocation5 + $0x47a] sm:$0x1]  ;;  %v2315_v30 = vld [vmem:[#allocation5 + $0x443] sm:$0x1] }
 0x296   :  { %v1335_v41 = vrot.slane %v901_v51, 2  ;;  %v12031_v33 = vadd.f32 %v5679_v48, %v5009_v13  ;;  %v626_v4 = vsel %vm386_vm5, %v625_v54, %v624_v29  ;;  %v1328_v38 = vsel %vm374_vm1, %v1327_v34, %v1326_v47  ;;  %v2316_v13 = vld [vmem:[#allocation5 + $0x44b] sm:$0x1]  ;;  %v2318_v59 = vld [vmem:[#allocation5 + $0x45b] sm:$0x1] }
 0x297   :  { %v1337_v14 = vrot.slane %v902_v37, 1  ;;  %v12036_v9 = vsel %vm389_vm6, %v627_v12, %v626_v4  ;;  %v1330_v22 = vsel %vm377_vm2, %v1329_v21, %v1328_v38  ;;  %v2035_v15 = vrot.slane %v1606_v10, 7  ;;  %v2319_v37 = vld [vmem:[#allocation5 + $0x463] sm:$0x1]  ;;  %v2320_v16 = vld [vmem:[#allocation5 + $0x46b] sm:$0x1] }
 0x298   :  { %14324 = vst [vmem:[#allocation43_spill] sm:$0xff] %v12031_v33  ;;  %v2037_v57 = vrot.slane %v1607_v35, 6  ;;  %v5762_v39 = vmul.f32 %v10497_v58, %v12031_v33  ;;  %v710_v17 = vmul.f32 %v11810_v46, %v12036_v9  ;;  %v1332_v54 = vsel %vm380_vm3, %v1331_v28, %v1330_v22  ;;  %v2321_v21 = vld [vmem:[#allocation5 + $0x473] sm:$0x1]  ;;  %v2322_v35 = vld [vmem:[#allocation5 + $0x47b] sm:$0x1] }
 0x299   :  { %v2039_v19 = vrot.slane %v1608_v49, 5  ;;  %v1334_v31 = vsel %vm383_vm4, %v1333_v26, %v1332_v54  ;;  %v2036_v12 = vsel %vm371_vm0, %v2035_v15, %v1605_v7  ;;  %v2041_v24 = vrot.slane %v1609_v52, 4  ;;  %v3025_v4 = vld [vmem:[#allocation5 + $0x444] sm:$0x1]  ;;  %v3026_v38 = vld [vmem:[#allocation5 + $0x44c] sm:$0x1] }
 0x29a   :  { %v2043_v51 = vrot.slane %v1610_v40, 3  ;;  %5834 = vadd.xlane.f32.xlu1 %v5762_v39  ;;  %v1336_v42 = vsel %vm386_vm5, %v1335_v41, %v1334_v31  ;;  %v2038_v34 = vsel %vm374_vm1, %v2037_v57, %v2036_v12  ;;  %v2045_v46 = vrot.slane %v1611_v45, 2  ;;  %v3027_v52 = vld [vmem:[#allocation5 + $0x454] sm:$0x1]  ;;  %v3029_v15 = vld [vmem:[#allocation5 + $0x464] sm:$0x1] }
 0x29b   :  { %v2047_v48 = vrot.slane %v1612_v36, 1  ;;  %v12049_v28 = vsel %vm389_vm6, %v1337_v14, %v1336_v42  ;;  %v2040_v10 = vsel %vm377_vm2, %v2039_v19, %v2038_v34  ;;  %v2745_v29 = vrot.slane %v2316_v13, 7  ;;  %v3028_v36 = vld [vmem:[#allocation5 + $0x45c] sm:$0x1]  ;;  %v3030_v19 = vld [vmem:[#allocation5 + $0x46c] sm:$0x1] }
 0x29c   :  { %v2747_v47 = vrot.slane %v2317_v20, 6  ;;  %v1420_v26 = vmul.f32 %v11823_v53, %v12049_v28  ;;  %v2042_v7 = vsel %vm380_vm3, %v2041_v24, %v2040_v10  ;;  %v2749_v41 = vrot.slane %v2318_v59, 5  ;;  %v3031_v13 = vld [vmem:[#allocation5 + $0x474] sm:$0x1]  ;;  %v3032_v12 = vld [vmem:[#allocation5 + $0x47c] sm:$0x1] }
 0x29d   :  { %v2751_v49 = vrot.slane %v2319_v37, 4  ;;  %v2044_v40 = vsel %vm383_vm4, %v2043_v51, %v2042_v7  ;;  %v2746_v14 = vsel %vm371_vm0, %v2745_v29, %v2315_v30  ;;  %v2753_v22 = vrot.slane %v2320_v16, 3  ;;  %v3735_v42 = vld [vmem:[#allocation5 + $0x445] sm:$0x1]  ;;  %v3736_v34 = vld [vmem:[#allocation5 + $0x44d] sm:$0x1] }
 0x29e   :  { %v2755_v45 = vrot.slane %v2321_v21, 2  ;;  %v1460_v57 = vadd.f32 %v1420_v26, %v710_v17  ;;  %v2046_v39 = vsel %vm386_vm5, %v2045_v46, %v2044_v40  ;;  %v2748_v53 = vsel %vm374_vm1, %v2747_v47, %v2746_v14  ;;  %v3737_v46 = vld [vmem:[#allocation5 + $0x455] sm:$0x1]  ;;  %v3739_v29 = vld [vmem:[#allocation5 + $0x465] sm:$0x1] }
 0x29f   :  { %v2757_v54 = vrot.slane %v2322_v35, 1  ;;  %v12060_v20 = vsel %vm389_vm6, %v2047_v48, %v2046_v39  ;;  %v2750_v31 = vsel %vm377_vm2, %v2749_v41, %v2748_v53  ;;  %v3455_v24 = vrot.slane %v3026_v38, 7  ;;  %v3738_v35 = vld [vmem:[#allocation5 + $0x45d] sm:$0x1]  ;;  %v3740_v41 = vld [vmem:[#allocation5 + $0x46d] sm:$0x1] }
 0x2a0   :  { %v3457_v30 = vrot.slane %v3027_v52, 6  ;;  %v2130_v51 = vmul.f32 %v11836_v60, %v12060_v20  ;;  %v2752_v17 = vsel %vm380_vm3, %v2751_v49, %v2750_v31  ;;  %v3459_v59 = vrot.slane %v3028_v36, 5  ;;  %v3741_v49 = vld [vmem:[#allocation5 + $0x475] sm:$0x1]  ;;  %v3742_v40 = vld [vmem:[#allocation5 + $0x47d] sm:$0x1] }
 0x2a1   :  { %v3461_v37 = vrot.slane %v3029_v15, 4  ;;  %v2754_v16 = vsel %vm383_vm4, %v2753_v22, %v2752_v17  ;;  %v3456_v48 = vsel %vm371_vm0, %v3455_v24, %v3025_v4  ;;  %v3463_v21 = vrot.slane %v3030_v19, 3  ;;  %v4446_v39 = vld [vmem:[#allocation5 + $0x44e] sm:$0x1]  ;;  %v4447_v53 = vld [vmem:[#allocation5 + $0x456] sm:$0x1] }
 0x2a2   :  { %v3465_v10 = vrot.slane %v3031_v13, 2  ;;  %v2170_v47 = vadd.f32 %v2130_v51, %v1460_v57  ;;  %v2756_v26 = vsel %vm386_vm5, %v2755_v45, %v2754_v16  ;;  %v3458_v60 = vsel %vm374_vm1, %v3457_v30, %v3456_v48  ;;  %v4445_v57 = vld [vmem:[#allocation5 + $0x446] sm:$0x1]  ;;  %v4452_v16 = vld [vmem:[#allocation5 + $0x47e] sm:$0x1] }
 0x2a3   :  { %v3467_v7 = vrot.slane %v3032_v12, 1  ;;  %v12071_v38 = vsel %vm389_vm6, %v2757_v54, %v2756_v26  ;;  %v3460_v52 = vsel %vm377_vm2, %v3459_v59, %v3458_v60  ;;  %v4165_v14 = vrot.slane %v3736_v34, 7  ;;  %v4448_v12 = vld [vmem:[#allocation5 + $0x45e] sm:$0x1]  ;;  %v4449_v24 = vld [vmem:[#allocation5 + $0x466] sm:$0x1] }
 0x2a4   :  { %v4167_v4 = vrot.slane %v3737_v46, 6  ;;  %v2840_v22 = vmul.f32 %v11849_v55, %v12071_v38  ;;  %v3462_v36 = vsel %vm380_vm3, %v3461_v37, %v3460_v52  ;;  %v4169_v15 = vrot.slane %v3738_v35, 5  ;;  %v4450_v59 = vld [vmem:[#allocation5 + $0x46e] sm:$0x1]  ;;  %v4451_v37 = vld [vmem:[#allocation5 + $0x476] sm:$0x1] }
 0x2a5   :  { %v4171_v45 = vrot.slane %v3739_v29, 4  ;;  %v3464_v19 = vsel %vm383_vm4, %v3463_v21, %v3462_v36  ;;  %v4166_v54 = vsel %vm371_vm0, %v4165_v14, %v3735_v42  ;;  %v4173_v13 = vrot.slane %v3740_v41, 3  ;;  %v5156_v26 = vld [vmem:[#allocation5 + $0x44f] sm:$0x1]  ;;  %v5157_v60 = vld [vmem:[#allocation5 + $0x457] sm:$0x1] }
 0x2a6   :  { %v4175_v31 = vrot.slane %v3741_v49, 2  ;;  %v2880_v30 = vadd.f32 %v2840_v22, %v2170_v47  ;;  %v3466_v51 = vsel %vm386_vm5, %v3465_v10, %v3464_v19  ;;  %v4168_v55 = vsel %vm374_vm1, %v4167_v4, %v4166_v54  ;;  %v5155_v47 = vld [vmem:[#allocation5 + $0x447] sm:$0x1]  ;;  %v5162_v19 = vld [vmem:[#allocation5 + $0x47f] sm:$0x1] }
 0x2a7   :  { %v4177_v17 = vrot.slane %v3742_v40, 1  ;;  %v12082_v34 = vsel %vm389_vm6, %v3467_v7, %v3466_v51  ;;  %v4170_v46 = vsel %vm377_vm2, %v4169_v15, %v4168_v55  ;;  %v4875_v48 = vrot.slane %v4446_v39, 7  ;;  %v5158_v40 = vld [vmem:[#allocation5 + $0x45f] sm:$0x1]  ;;  %v5159_v14 = vld [vmem:[#allocation5 + $0x467] sm:$0x1] }
 0x2a8   :  { %v4877_v42 = vrot.slane %v4447_v53, 6  ;;  %v3550_v21 = vmul.f32 %v11862_v50, %v12082_v34  ;;  %v4172_v35 = vsel %vm380_vm3, %v4171_v45, %v4170_v46  ;;  %v4879_v29 = vrot.slane %v4448_v12, 5  ;;  %v5160_v15 = vld [vmem:[#allocation5 + $0x46f] sm:$0x1]  ;;  %v5161_v45 = vld [vmem:[#allocation5 + $0x477] sm:$0x1] }
 0x2a9   :  { %v4881_v10 = vrot.slane %v4449_v24, 4  ;;  %v4174_v41 = vsel %vm383_vm4, %v4173_v13, %v4172_v35  ;;  %v4876_v7 = vsel %vm371_vm0, %v4875_v48, %v4445_v57  ;;  %v4883_v49 = vrot.slane %v4450_v59, 3  ;;  %v12106_v35 = vld [vmem:[#allocation2 + $0x9] ss:$0 sm:$0xff] }
 0x2aa   :  { %v4885_v52 = vrot.slane %v4451_v37, 2  ;;  %v3590_v4 = vadd.f32 %v3550_v21, %v2880_v30  ;;  %v4176_v22 = vsel %vm386_vm5, %v4175_v31, %v4174_v41  ;;  %v4878_v50 = vsel %vm374_vm1, %v4877_v42, %v4876_v7  ;;  %v12102_v42 = vld [vmem:[#allocation2 + $0x8] ss:$0 sm:$0xff]  ;;  %v12116_v41 = vld [vmem:[#allocation2 + $0xb] ss:$0 sm:$0xff] }
 0x2ab   :  { %v4887_v36 = vrot.slane %v4452_v16, 1  ;;  %v4178_v39 = vsel %vm389_vm6, %v4177_v17, %v4176_v22  ;;  %v4880_v53 = vsel %vm377_vm2, %v4879_v29, %v4878_v50  ;;  %v5585_v54 = vrot.slane %v5156_v26, 7  ;;  %v12112_v26 = vld [vmem:[#allocation2 + $0xa] ss:$0 sm:$0xff]  ;;  %v12134_v22 = vld [vmem:[#allocation2 + $0xf] ss:$0 sm:$0xff] }
 0x2ac   :  { %v5587_v13 = vrot.slane %v5157_v60, 6  ;;  %v4260_v57 = vmul.f32 %v11873_v32, %v4178_v39  ;;  %v4882_v12 = vsel %vm380_vm3, %v4881_v10, %v4880_v53  ;;  %v5589_v24 = vrot.slane %v5158_v40, 5  ;;  %v188_v53 = vld [vmem:[#allocation5 + $0x490] sm:$0x1] }
 0x2ad   :  { %v5591_v30 = vrot.slane %v5159_v14, 4  ;;  %v4884_v31 = vsel %vm383_vm4, %v4883_v49, %v4882_v12  ;;  %v5586_v51 = vsel %vm371_vm0, %v5585_v54, %v5155_v47  ;;  %v5593_v55 = vrot.slane %v5160_v15, 3 }
 0x2ae   :  { %v5595_v59 = vrot.slane %v5161_v45, 2  ;;  %v4300_v37 = vadd.f32 %v4260_v57, %v3590_v4  ;;  %v4886_v17 = vsel %vm386_vm5, %v4885_v52, %v4884_v31  ;;  %v5588_v46 = vsel %vm374_vm1, %v5587_v13, %v5586_v51  ;;  %v12121_v52 = vld [vmem:[#allocation2 + $0xc] ss:$0 sm:$0xff]  ;;  %v12130_v4 = vld [vmem:[#allocation2 + $0xe] ss:$0 sm:$0xff] }
 0x2af   :  { %v5597_v16 = vrot.slane %v5162_v19, 1  ;;  %v4888_v48 = vsel %vm389_vm6, %v4887_v36, %v4886_v17  ;;  %v5590_v32 = vsel %vm377_vm2, %v5589_v24, %v5588_v46  ;;  %v711_v21 = vmul.f32 %v12102_v42, %v11939_v6  ;;  %v187_v45 = vld [vmem:[#allocation5 + $0x488] sm:$0x1]  ;;  %v189_v13 = vld [vmem:[#allocation5 + $0x498] sm:$0x1] }
 0x2b0   :  { %v1421_v29 = vmul.f32 %v12106_v35, %v11954_v61  ;;  %v4970_v10 = vmul.f32 %v11887_v8, %v4888_v48  ;;  %v5592_v47 = vsel %vm380_vm3, %v5591_v30, %v5590_v32  ;;  %v2131_v60 = vmul.f32 %v12112_v26, %v11968_v44  ;;  %v12125_v61 = vld [vmem:[#allocation2 + $0xd] ss:$0 sm:$0xff]  ;;  %v190_v57 = vld [vmem:[#allocation5 + $0x4a0] sm:$0x1]  ;;  %v191_v31 = vld [vmem:[#allocation5 + $0x4a8] sm:$0x1] }
 0x2b1   :  { %v2841_v7 = vmul.f32 %v12116_v41, %v11979_v62  ;;  %v5594_v6 = vsel %vm383_vm4, %v5593_v55, %v5592_v47  ;;  %v3551_v8 = vmul.f32 %v12121_v52, %v11990_v18  ;;  %v4261_v40 = vmul.f32 %v12125_v61, %v12001_v5  ;;  %v186_v30 = vld [vmem:[#allocation5 + $0x480] sm:$0x1]  ;;  %v905_v32 = vld [vmem:[#allocation5 + $0x491] sm:$0x1]  ;;  %v903_v47 = vld [vmem:[#allocation5 + $0x481] sm:$0x1] }
 0x2b2   :  { %v1461_v49 = vadd.f32 %v1421_v29, %v711_v21  ;;  %v5010_v14 = vadd.f32 %v4970_v10, %v4300_v37  ;;  %v5596_v44 = vsel %vm386_vm5, %v5595_v59, %v5594_v6  ;;  %v4971_v62 = vmul.f32 %v12130_v4, %v12012_v2 }
 0x2b3   :  { %v5681_v50 = vmul.f32 %v12134_v22, %v12023_v63  ;;  %v5598_v18 = vsel %vm389_vm6, %v5597_v16, %v5596_v44  ;;  %v712_v15 = vmul.f32 %v12102_v42, %v12036_v9  ;;  %v1422_v5 = vmul.f32 %v12106_v35, %v12049_v28  ;;  %v909_v44 = vld [vmem:[#allocation5 + $0x4b1] sm:$0x1] }
 0x2b4   :  { %v2171_v36 = vadd.f32 %v2131_v60, %v1461_v49  ;;  %v5680_v19 = vmul.f32 %v11910_v3, %v5598_v18  ;;  %v2132_v2 = vmul.f32 %v12112_v26, %v12060_v20  ;;  %v2842_v54 = vmul.f32 %v12116_v41, %v12071_v38  ;;  %v192_v3 = vld [vmem:[#allocation5 + $0x4b0] sm:$0x1]  ;;  %v193_v38 = vld [vmem:[#allocation5 + $0x4b8] sm:$0x1]  ;;  %v907_v60 = vld [vmem:[#allocation5 + $0x4a1] sm:$0x1] }
 0x2b5   :  { %v3552_v63 = vmul.f32 %v12121_v52, %v12082_v34  ;;  %v1462_v9 = vadd.f32 %v1422_v5, %v712_v15  ;;  %v4262_v24 = vmul.f32 %v12125_v61, %v4178_v39  ;;  %v4972_v28 = vmul.f32 %v12130_v4, %v4888_v48  ;;  %v904_v34 = vld [vmem:[#allocation5 + $0x489] sm:$0x1]  ;;  %v906_v39 = vld [vmem:[#allocation5 + $0x499] sm:$0x1] }
 0x2b6   :  { %v2881_v12 = vadd.f32 %v2841_v7, %v2171_v36  ;;  %v12152_v51 = vadd.f32 %v5680_v19, %v5010_v14  ;;  %v12155_v20 = vmul.f32 %v12134_v22, %v5598_v18  ;;  %v629_v55 = vrot.slane %v187_v45, 7 }
 0x2b7   :  { %v631_v59 = vrot.slane %v188_v53, 6  ;;  %v2172_v17 = vadd.f32 %v2132_v2, %v1462_v9  ;;  %v633_v46 = vrot.slane %v189_v13, 5  ;;  %v635_v16 = vrot.slane %v190_v57, 4  ;;  %v910_v2 = vld [vmem:[#allocation5 + $0x4b9] sm:$0x1] }
 0x2b8   :  { %14325 = vst [vmem:[#allocation44_spill] sm:$0xff] %v12152_v51  ;;  %v3591_v37 = vadd.f32 %v3551_v8, %v2881_v12  ;;  %v5763_v48 = vmul.f32 %v10497_v58, %v12152_v51  ;;  %v630_v21 = vsel %vm371_vm0, %v629_v55, %v186_v30  ;;  %v637_v29 = vrot.slane %v191_v31, 3  ;;  %v908_v8 = vld [vmem:[#allocation5 + $0x4a9] sm:$0x1]  ;;  %v1614_v57 = vld [vmem:[#allocation5 + $0x48a] sm:$0x1] }
 0x2b9   :  { %v639_v10 = vrot.slane %v192_v3, 2  ;;  %v2882_v6 = vadd.f32 %v2842_v54, %v2172_v17  ;;  %v632_v49 = vsel %vm374_vm1, %v631_v59, %v630_v21  ;;  %v641_v14 = vrot.slane %v193_v38, 1  ;;  %v1616_v55 = vld [vmem:[#allocation5 + $0x49a] sm:$0x1]  ;;  %v1617_v17 = vld [vmem:[#allocation5 + $0x4a2] sm:$0x1] }
 0x2ba   :  { %v4301_v7 = vadd.f32 %v4261_v40, %v3591_v37  ;;  %5836 = vadd.xlane.f32.xlu0 %v5763_v48  ;;  %v634_v18 = vsel %vm377_vm2, %v633_v46, %v632_v49  ;;  %v1339_v36 = vrot.slane %v904_v34, 7  ;;  %v1341_v15 = vrot.slane %v905_v32, 6  ;;  %v1618_v46 = vld [vmem:[#allocation5 + $0x4aa] sm:$0x1]  ;;  %v12175_v32 = vld [vmem:[#allocation2] ss:$0 sm:$0xff] }
 0x2bb   :  { %v1343_v5 = vrot.slane %v906_v39, 5  ;;  %v3592_v53 = vadd.f32 %v3552_v63, %v2882_v6  ;;  %v636_v19 = vsel %vm380_vm3, %v635_v16, %v634_v18  ;;  %v1345_v13 = vrot.slane %v907_v60, 4  ;;  %v1615_v63 = vld [vmem:[#allocation5 + $0x492] sm:$0x1]  ;;  %v2323_v6 = vld [vmem:[#allocation5 + $0x483] sm:$0x1] }
 0x2bc   :  { %v5011_v45 = vadd.f32 %v4971_v62, %v4301_v7  ;;  %v638_v40 = vsel %vm383_vm4, %v637_v29, %v636_v19  ;;  %v1340_v54 = vsel %vm371_vm0, %v1339_v36, %v903_v47  ;;  %v1347_v12 = vrot.slane %v908_v8, 3  ;;  %v1613_v62 = vld [vmem:[#allocation5 + $0x482] sm:$0x1]  ;;  %v1619_v21 = vld [vmem:[#allocation5 + $0x4b2] sm:$0x1] }
 0x2bd   :  { %v1349_v9 = vrot.slane %v909_v44, 2  ;;  %v4302_v31 = vadd.f32 %v4262_v24, %v3592_v53  ;;  %v640_v3 = vsel %vm386_vm5, %v639_v10, %v638_v40  ;;  %v1342_v38 = vsel %vm374_vm1, %v1341_v15, %v1340_v54  ;;  %v1620_v29 = vld [vmem:[#allocation5 + $0x4ba] sm:$0x1]  ;;  %v2324_v49 = vld [vmem:[#allocation5 + $0x48b] sm:$0x1] }
 0x2be   :  { %v12165_v30 = vadd.f32 %v5681_v50, %v5011_v45  ;;  %v12170_v59 = vsel %vm389_vm6, %v641_v14, %v640_v3  ;;  %v1344_v34 = vsel %vm377_vm2, %v1343_v5, %v1342_v38  ;;  %v1351_v37 = vrot.slane %v910_v2, 1  ;;  %v2325_v14 = vld [vmem:[#allocation5 + $0x493] sm:$0x1]  ;;  %v2326_v36 = vld [vmem:[#allocation5 + $0x49b] sm:$0x1] }
 0x2bf   :  { %v2049_v16 = vrot.slane %v1614_v57, 7  ;;  %v5012_v24 = vadd.f32 %v4972_v28, %v4302_v31  ;;  %v713_v39 = vmul.f32 %v12175_v32, %v12170_v59  ;;  %v1346_v48 = vsel %vm380_vm3, %v1345_v13, %v1344_v34  ;;  %v2327_v15 = vld [vmem:[#allocation5 + $0x4a3] sm:$0x1]  ;;  %v2328_v2 = vld [vmem:[#allocation5 + $0x4ab] sm:$0x1] }
 0x2c0   :  { %14326 = vst [vmem:[#allocation45_spill] sm:$0xff] %v12165_v30  ;;  %v5764_v50 = vmul.f32 %v10497_v58, %v12165_v30  ;;  %v1348_v10 = vsel %vm383_vm4, %v1347_v12, %v1346_v48  ;;  %v2051_v60 = vrot.slane %v1615_v63, 6  ;;  %v2053_v7 = vrot.slane %v1616_v55, 5  ;;  %v2329_v13 = vld [vmem:[#allocation5 + $0x4b3] sm:$0x1] }
 0x2c1   :  { %v2050_v47 = vsel %vm371_vm0, %v2049_v16, %v1613_v62  ;;  %v12183_v28 = vadd.f32 %v12155_v20, %v5012_v24  ;;  %v1350_v8 = vsel %vm386_vm5, %v1349_v9, %v1348_v10  ;;  %v2055_v44 = vrot.slane %v1617_v17, 4  ;;  %v12192_v20 = vld [vmem:[#allocation2 + $0x1] ss:$0 sm:$0xff]  ;;  %v2330_v12 = vld [vmem:[#allocation5 + $0x4bb] sm:$0x1] }
 0x2c2   :  { %5838 = vadd.xlane.f32.xlu1 %v5764_v50  ;;  %v2057_v18 = vrot.slane %v1618_v46, 3  ;;  %v12187_v5 = vsel %vm389_vm6, %v1351_v37, %v1350_v8  ;;  %v2052_v45 = vsel %vm374_vm1, %v2051_v60, %v2050_v47  ;;  %v2059_v53 = vrot.slane %v1619_v21, 2  ;;  %v3034_v31 = vld [vmem:[#allocation5 + $0x48c] sm:$0x1]  ;;  %v3033_v55 = vld [vmem:[#allocation5 + $0x484] sm:$0x1] }
 0x2c3   :  { %14327 = vst [vmem:[#allocation46_spill] sm:$0xff] %v12183_v28  ;;  %v2061_v19 = vrot.slane %v1620_v29, 1  ;;  %v5765_v57 = vmul.f32 %v10497_v58, %v12183_v28  ;;  %v1423_v40 = vmul.f32 %v12192_v20, %v12187_v5  ;;  %v2054_v54 = vsel %vm377_vm2, %v2053_v7, %v2052_v45  ;;  %v3035_v34 = vld [vmem:[#allocation5 + $0x494] sm:$0x1]  ;;  %v3036_v50 = vld [vmem:[#allocation5 + $0x49c] sm:$0x1]  ;;  %v12202_v7 = vpop.xlane.xlu1 %5772 }
 0x2c4   :  { %v2759_v9 = vrot.slane %v2324_v49, 7  ;;  %v2056_v3 = vsel %vm380_vm3, %v2055_v44, %v2054_v54  ;;  %v2761_v38 = vrot.slane %v2325_v14, 6  ;;  %v2763_v62 = vrot.slane %v2326_v36, 5  ;;  %v3037_v24 = vld [vmem:[#allocation5 + $0x4a4] sm:$0x1] }
 0x2c5   :  { %v2765_v63 = vrot.slane %v2327_v15, 4  ;;  %5840 = vadd.xlane.f32.xlu0 %v5765_v57  ;;  %v1463_v37 = vadd.f32 %v1423_v40, %v713_v39  ;;  %v2058_v17 = vsel %vm383_vm4, %v2057_v18, %v2056_v3  ;;  %v2767_v16 = vrot.slane %v2328_v2, 3  ;;  %v3038_v47 = vld [vmem:[#allocation5 + $0x4ac] sm:$0x1]  ;;  %v3039_v60 = vld [vmem:[#allocation5 + $0x4b4] sm:$0x1]  ;;  %v12213_v57 = vpop.xlane.xlu0 %5770 }
 0x2c6   :  { %v2760_v46 = vsel %vm371_vm0, %v2759_v9, %v2323_v6  ;;  %v2060_v48 = vsel %vm386_vm5, %v2059_v53, %v2058_v17  ;;  %v2769_v29 = vrot.slane %v2329_v13, 2  ;;  %v2771_v10 = vrot.slane %v2330_v12, 1  ;;  %v3040_v14 = vld [vmem:[#allocation5 + $0x4bc] sm:$0x1]  ;;  %v12208_v44 = vld [vmem:[#allocation2 + $0x2] ss:$0 sm:$0xff] }
 0x2c7   :  { %v2762_v21 = vsel %vm374_vm1, %v2761_v38, %v2760_v46  ;;  %v12205_v49 = vsel %vm389_vm6, %v2061_v19, %v2060_v48  ;;  %v3469_v6 = vrot.slane %v3034_v31, 7  ;;  %v3471_v8 = vrot.slane %v3035_v34, 6  ;;  %v3743_v53 = vld [vmem:[#allocation5 + $0x485] sm:$0x1]  ;;  %v3744_v2 = vld [vmem:[#allocation5 + $0x48d] sm:$0x1] }
 0x2c8   :  { %v2764_v39 = vsel %vm377_vm2, %v2763_v62, %v2762_v21  ;;  %v2133_v18 = vmul.f32 %v12208_v44, %v12205_v49  ;;  %v3473_v15 = vrot.slane %v3036_v50, 5  ;;  %v3475_v45 = vrot.slane %v3037_v24, 4  ;;  %v3745_v13 = vld [vmem:[#allocation5 + $0x495] sm:$0x1]  ;;  %v3746_v9 = vld [vmem:[#allocation5 + $0x49d] sm:$0x1] }
 0x2c9   :  { %v2766_v36 = vsel %vm380_vm3, %v2765_v63, %v2764_v39  ;;  %v3470_v40 = vsel %vm371_vm0, %v3469_v6, %v3033_v55  ;;  %v3477_v54 = vrot.slane %v3038_v47, 3  ;;  %v3479_v12 = vrot.slane %v3039_v60, 2  ;;  %v3747_v31 = vld [vmem:[#allocation5 + $0x4a5] sm:$0x1]  ;;  %v3748_v34 = vld [vmem:[#allocation5 + $0x4ad] sm:$0x1]  ;;  %v12228_v6 = vpop.xlane.xlu1 %5774 }
 0x2ca   :  { %v2768_v19 = vsel %vm383_vm4, %v2767_v16, %v2766_v36  ;;  %v2173_v3 = vadd.f32 %v2133_v18, %v1463_v37  ;;  %v3472_v62 = vsel %vm374_vm1, %v3471_v8, %v3470_v40  ;;  %v3481_v63 = vrot.slane %v3040_v14, 1  ;;  %v3749_v17 = vld [vmem:[#allocation5 + $0x4b5] sm:$0x1]  ;;  %v3750_v16 = vld [vmem:[#allocation5 + $0x4bd] sm:$0x1] }
 0x2cb   :  { %v2770_v38 = vsel %vm386_vm5, %v2769_v29, %v2768_v19  ;;  %v3474_v50 = vsel %vm377_vm2, %v3473_v15, %v3472_v62  ;;  %v4179_v24 = vrot.slane %v3744_v2, 7  ;;  %v4181_v55 = vrot.slane %v3745_v13, 6  ;;  %v12223_v48 = vld [vmem:[#allocation2 + $0x3] ss:$0 sm:$0xff]  ;;  %v4453_v60 = vld [vmem:[#allocation5 + $0x486] sm:$0x1] }
 0x2cc   :  { %v12220_v46 = vsel %vm389_vm6, %v2771_v10, %v2770_v38  ;;  %v3476_v21 = vsel %vm380_vm3, %v3475_v45, %v3474_v50  ;;  %v4183_v29 = vrot.slane %v3746_v9, 5  ;;  %v4185_v47 = vrot.slane %v3747_v31, 4  ;;  %v4454_v39 = vld [vmem:[#allocation5 + $0x48e] sm:$0x1]  ;;  %v4455_v14 = vld [vmem:[#allocation5 + $0x496] sm:$0x1]  ;;  %v12234_v38 = vpop.xlane.xlu0 %5776 }
 0x2cd   :  { %v2843_v37 = vmul.f32 %v12223_v48, %v12220_v46  ;;  %v3478_v10 = vsel %vm383_vm4, %v3477_v54, %v3476_v21  ;;  %v4180_v8 = vsel %vm371_vm0, %v4179_v24, %v3743_v53  ;;  %v4187_v18 = vrot.slane %v3748_v34, 3  ;;  %v4456_v15 = vld [vmem:[#allocation5 + $0x49e] sm:$0x1]  ;;  %v4457_v2 = vld [vmem:[#allocation5 + $0x4a6] sm:$0x1] }
 0x2ce   :  { %v4189_v36 = vrot.slane %v3749_v17, 2  ;;  %v3480_v19 = vsel %vm386_vm5, %v3479_v12, %v3478_v10  ;;  %v4182_v45 = vsel %vm374_vm1, %v4181_v55, %v4180_v8  ;;  %v4191_v40 = vrot.slane %v3750_v16, 1  ;;  %v4458_v9 = vld [vmem:[#allocation5 + $0x4ae] sm:$0x1]  ;;  %v4459_v31 = vld [vmem:[#allocation5 + $0x4b6] sm:$0x1] }
 0x2cf   :  { %v2883_v13 = vadd.f32 %v2843_v37, %v2173_v3  ;;  %v12237_v62 = vsel %vm389_vm6, %v3481_v63, %v3480_v19  ;;  %v4184_v54 = vsel %vm377_vm2, %v4183_v29, %v4182_v45  ;;  %v4460_v53 = vld [vmem:[#allocation5 + $0x4be] sm:$0x1]  ;;  %v4889_v34 = vrot.slane %v4454_v39, 7  ;;  %v12240_v50 = vld [vmem:[#allocation2 + $0x4] ss:$0 sm:$0xff] }
 0x2d0   :  { %v4891_v17 = vrot.slane %v4455_v14, 6  ;;  %v3553_v12 = vmul.f32 %v12240_v50, %v12237_v62  ;;  %v4186_v3 = vsel %vm380_vm3, %v4185_v47, %v4184_v54  ;;  %v4893_v16 = vrot.slane %v4456_v15, 5  ;;  %v5163_v55 = vld [vmem:[#allocation5 + $0x487] sm:$0x1]  ;;  %v5164_v37 = vld [vmem:[#allocation5 + $0x48f] sm:$0x1] }
 0x2d1   :  { %v4895_v24 = vrot.slane %v4457_v2, 4  ;;  %v5165_v21 = vld [vmem:[#allocation5 + $0x497] sm:$0x1]  ;;  %v4188_v63 = vsel %vm383_vm4, %v4187_v18, %v4186_v3  ;;  %v4890_v10 = vsel %vm371_vm0, %v4889_v34, %v4453_v60  ;;  %v4897_v29 = vrot.slane %v4458_v9, 3  ;;  %v5166_v39 = vld [vmem:[#allocation5 + $0x49f] sm:$0x1]  ;;  %v12249_v2 = vpop.xlane.xlu1 %5778 }
 0x2d2   :  { %v4899_v8 = vrot.slane %v4459_v31, 2  ;;  %v5167_v14 = vld [vmem:[#allocation5 + $0x4a7] sm:$0x1]  ;;  %v3593_v19 = vadd.f32 %v3553_v12, %v2883_v13  ;;  %v4190_v45 = vsel %vm386_vm5, %v4189_v36, %v4188_v63  ;;  %v4892_v30 = vsel %vm374_vm1, %v4891_v17, %v4890_v10  ;;  %v5168_v47 = vld [vmem:[#allocation5 + $0x4af] sm:$0x1]  ;;  %v12260_v10 = vpop.xlane.xlu0 %5780 }
 0x2d3   :  { %v4901_v28 = vrot.slane %v4460_v53, 1  ;;  %v5169_v15 = vld [vmem:[#allocation5 + $0x4b7] sm:$0x1]  ;;  %v12252_v54 = vsel %vm389_vm6, %v4191_v40, %v4190_v45  ;;  %v4894_v18 = vsel %vm377_vm2, %v4893_v16, %v4892_v30  ;;  %v5170_v60 = vld [vmem:[#allocation5 + $0x4bf] sm:$0x1]  ;;  %v5599_v9 = vrot.slane %v5164_v37, 7 }
 0x2d4   :  { %v5601_v31 = vrot.slane %v5165_v21, 6  ;;  %v12255_v34 = vld [vmem:[#allocation2 + $0x5] ss:$0 sm:$0xff]  ;;  %v4896_v13 = vsel %vm380_vm3, %v4895_v24, %v4894_v18  ;;  %v5603_v53 = vrot.slane %v5166_v39, 5  ;;  %v5605_v17 = vrot.slane %v5167_v14, 4 }
 0x2d5   :  { %v4263_v36 = vmul.f32 %v12255_v34, %v12252_v54  ;;  %v194_v12 = vld [vmem:[#allocation5 + $0x4c0] sm:$0x1]  ;;  %v195_v3 = vld [vmem:[#allocation5 + $0x4c8] sm:$0x1]  ;;  %v196_v63 = vld [vmem:[#allocation5 + $0x4d0] sm:$0x1]  ;;  %v4898_v40 = vsel %vm383_vm4, %v4897_v29, %v4896_v13  ;;  %v5600_v30 = vsel %vm371_vm0, %v5599_v9, %v5163_v55 }
 0x2d6   :  { %v5607_v16 = vrot.slane %v5168_v47, 3  ;;  %v5609_v37 = vrot.slane %v5169_v15, 2  ;;  %v197_v21 = vld [vmem:[#allocation5 + $0x4d8] sm:$0x1]  ;;  %v198_v45 = vld [vmem:[#allocation5 + $0x4e0] sm:$0x1]  ;;  %v4900_v51 = vsel %vm386_vm5, %v4899_v8, %v4898_v40  ;;  %v5602_v24 = vsel %vm374_vm1, %v5601_v31, %v5600_v30  ;;  %v12275_v40 = vpop.xlane.xlu1 %5782  ;;  %v12281_v56 = vpop.xlane.xlu0 %5784 }
 0x2d7   :  { %v4303_v33 = vadd.f32 %v4263_v36, %v3593_v19  ;;  %v5611_v39 = vrot.slane %v5170_v60, 1  ;;  %v199_v14 = vld [vmem:[#allocation5 + $0x4e8] sm:$0x1]  ;;  %v200_v18 = vld [vmem:[#allocation5 + $0x4f0] sm:$0x1]  ;;  %v12267_v43 = vsel %vm389_vm6, %v4901_v28, %v4900_v51  ;;  %v5604_v27 = vsel %vm377_vm2, %v5603_v53, %v5602_v24 }
 0x2d8   :  { %v201_v29 = vld [vmem:[#allocation5 + $0x4f8] sm:$0x1]  ;;  %v643_v13 = vrot.slane %v195_v3, 7  ;;  %v645_v55 = vrot.slane %v196_v63, 6  ;;  %v12270_v47 = vld [vmem:[#allocation2 + $0x6] ss:$0 sm:$0xff]  ;;  %v5606_v8 = vsel %vm380_vm3, %v5605_v17, %v5604_v27 }
 0x2d9   :  { %v4973_v19 = vmul.f32 %v12270_v47, %v12267_v43  ;;  %v647_v15 = vrot.slane %v197_v21, 5  ;;  %v649_v9 = vrot.slane %v198_v45, 4  ;;  %v911_v60 = vld [vmem:[#allocation5 + $0x4c1] sm:$0x1]  ;;  %v912_v31 = vld [vmem:[#allocation5 + $0x4c9] sm:$0x1]  ;;  %v5608_v51 = vsel %vm383_vm4, %v5607_v16, %v5606_v8 }
 0x2da   :  { %v913_v36 = vld [vmem:[#allocation5 + $0x4d1] sm:$0x1]  ;;  %v644_v28 = vsel %vm371_vm0, %v643_v13, %v194_v12  ;;  %v651_v53 = vrot.slane %v199_v14, 3  ;;  %v653_v3 = vrot.slane %v200_v18, 2  ;;  %v914_v63 = vld [vmem:[#allocation5 + $0x4d9] sm:$0x1]  ;;  %v5610_v23 = vsel %vm386_vm5, %v5609_v37, %v5608_v51 }
 0x2db   :  { %v915_v30 = vld [vmem:[#allocation5 + $0x4e1] sm:$0x1]  ;;  %v5013_v24 = vadd.f32 %v4973_v19, %v4303_v33  ;;  %v646_v27 = vsel %vm374_vm1, %v645_v55, %v644_v28  ;;  %v655_v17 = vrot.slane %v201_v29, 1  ;;  %v916_v21 = vld [vmem:[#allocation5 + $0x4e9] sm:$0x1]  ;;  %v12284_v11 = vsel %vm389_vm6, %v5611_v39, %v5610_v23 }
 0x2dc   :  { %v917_v45 = vld [vmem:[#allocation5 + $0x4f1] sm:$0x1]  ;;  %v648_v16 = vsel %vm377_vm2, %v647_v15, %v646_v27  ;;  %v918_v12 = vld [vmem:[#allocation5 + $0x4f9] sm:$0x1]  ;;  %v1353_v14 = vrot.slane %v912_v31, 7  ;;  %v1355_v18 = vrot.slane %v913_v36, 6 }
 0x2dd   :  { %v12287_v13 = vld [vmem:[#allocation2 + $0x7] ss:$0 sm:$0xff]  ;;  %v650_v37 = vsel %vm380_vm3, %v649_v9, %v648_v16  ;;  %v1357_v29 = vrot.slane %v914_v63, 5  ;;  %v1359_v55 = vrot.slane %v915_v30, 4  ;;  %v1622_v19 = vld [vmem:[#allocation5 + $0x4ca] sm:$0x1]  ;;  %v12298_v30 = vpop.xlane.xlu1 %5786 }
 0x2de   :  { %v5683_v33 = vmul.f32 %v12287_v13, %v12284_v11  ;;  %v1623_v8 = vld [vmem:[#allocation5 + $0x4d2] sm:$0x1]  ;;  %v652_v51 = vsel %vm383_vm4, %v651_v53, %v650_v37  ;;  %v1354_v23 = vsel %vm371_vm0, %v1353_v14, %v911_v60  ;;  %v1361_v39 = vrot.slane %v916_v21, 3  ;;  %v1621_v28 = vld [vmem:[#allocation5 + $0x4c2] sm:$0x1]  ;;  %14329 = vst [vmem:[#allocation48_spill] sm:$0xff] %v12298_v30 }
 0x2df   :  { %v1363_v15 = vrot.slane %v917_v45, 2  ;;  %v1624_v31 = vld [vmem:[#allocation5 + $0x4da] sm:$0x1]  ;;  %v654_v27 = vsel %vm386_vm5, %v653_v3, %v652_v51  ;;  %v1356_v0 = vsel %vm374_vm1, %v1355_v18, %v1354_v23  ;;  %v1365_v25 = vrot.slane %v918_v12, 1  ;;  %v1625_v9 = vld [vmem:[#allocation5 + $0x4e2] sm:$0x1] }
 0x2e0   :  { %v12294_v36 = vadd.f32 %v5683_v33, %v5013_v24  ;;  %v1626_v63 = vld [vmem:[#allocation5 + $0x4ea] sm:$0x1]  ;;  %v12301_v16 = vsel %vm389_vm6, %v655_v17, %v654_v27  ;;  %v1358_v60 = vsel %vm377_vm2, %v1357_v29, %v1356_v0  ;;  %v1627_v53 = vld [vmem:[#allocation5 + $0x4f2] sm:$0x1]  ;;  %v1628_v21 = vld [vmem:[#allocation5 + $0x4fa] sm:$0x1]  ;;  %v12309_v17 = vpop.xlane.xlu0 %5788 }
 0x2e1   :  { %v2063_v45 = vrot.slane %v1622_v19, 7  ;;  %v2065_v14 = vrot.slane %v1623_v8, 6  ;;  %v714_v3 = vmul.f32 %v12175_v32, %v12301_v16  ;;  %v1360_v12 = vsel %vm380_vm3, %v1359_v55, %v1358_v60  ;;  %v2331_v33 = vld [vmem:[#allocation5 + $0x4c3] sm:$0x1]  ;;  %v2332_v37 = vld [vmem:[#allocation5 + $0x4cb] sm:$0x1] }
 0x2e2   :  { %14328 = vst [vmem:[#allocation47_spill] sm:$0xff] %v12294_v36  ;;  %v5766_v24 = vmul.f32 %v10497_v58, %v12294_v36  ;;  %v2067_v18 = vrot.slane %v1624_v31, 5  ;;  %v2333_v51 = vld [vmem:[#allocation5 + $0x4d3] sm:$0x1]  ;;  %14330 = vst [vmem:[#allocation49_spill] sm:$0xff] %v12309_v17  ;;  %v1362_v0 = vsel %vm383_vm4, %v1361_v39, %v1360_v12  ;;  %v2069_v19 = vrot.slane %v1625_v9, 4 }
 0x2e3   :  { %v2064_v29 = vsel %vm371_vm0, %v2063_v45, %v1621_v28  ;;  %v2071_v8 = vrot.slane %v1626_v63, 3  ;;  %v2334_v23 = vld [vmem:[#allocation5 + $0x4db] sm:$0x1]  ;;  %v2335_v27 = vld [vmem:[#allocation5 + $0x4e3] sm:$0x1]  ;;  %v1364_v36 = vsel %vm386_vm5, %v1363_v15, %v1362_v0  ;;  %v2073_v55 = vrot.slane %v1627_v53, 2  ;;  %v12322_v0 = vpop.xlane.xlu1 %5790 }
 0x2e4   :  { %5842 = vadd.xlane.f32.xlu1 %v5766_v24  ;;  %v2066_v32 = vsel %vm374_vm1, %v2065_v14, %v2064_v29  ;;  %v2075_v31 = vrot.slane %v1628_v21, 1  ;;  %v2336_v60 = vld [vmem:[#allocation5 + $0x4eb] sm:$0x1]  ;;  %v12316_v30 = vsel %vm389_vm6, %v1365_v25, %v1364_v36  ;;  %v2338_v12 = vld [vmem:[#allocation5 + $0x4fb] sm:$0x1]  ;;  %v2773_v28 = vrot.slane %v2332_v37, 7  ;;  %v12328_v17 = vpop.xlane.xlu0 %5792 }
 0x2e5   :  { %v2068_v39 = vsel %vm377_vm2, %v2067_v18, %v2066_v32  ;;  %v2775_v9 = vrot.slane %v2333_v51, 6  ;;  %v1424_v63 = vmul.f32 %v12192_v20, %v12316_v30  ;;  %v2777_v15 = vrot.slane %v2334_v23, 5  ;;  %v3041_v14 = vld [vmem:[#allocation5 + $0x4c4] sm:$0x1]  ;;  %v3042_v53 = vld [vmem:[#allocation5 + $0x4cc] sm:$0x1] }
 0x2e6   :  { %v2070_v45 = vsel %vm380_vm3, %v2069_v19, %v2068_v39  ;;  %v2779_v24 = vrot.slane %v2335_v27, 4  ;;  %v3043_v21 = vld [vmem:[#allocation5 + $0x4d4] sm:$0x1]  ;;  %14331 = vst [vmem:[#allocation50_spill] sm:$0xff] %v12322_v0  ;;  %v2774_v36 = vsel %vm371_vm0, %v2773_v28, %v2331_v33  ;;  %v2781_v18 = vrot.slane %v2336_v60, 3  ;;  %14332 = vst [vmem:[#allocation51_spill] sm:$0xff] %v12328_v17 }
 0x2e7   :  { %v2072_v25 = vsel %vm383_vm4, %v2071_v8, %v2070_v45  ;;  %v2783_v29 = vrot.slane %v2337_v1, 2  ;;  %v3044_v37 = vld [vmem:[#allocation5 + $0x4dc] sm:$0x1]  ;;  %v3045_v51 = vld [vmem:[#allocation5 + $0x4e4] sm:$0x1]  ;;  %v1464_v32 = vadd.f32 %v1424_v63, %v714_v3  ;;  %v2776_v19 = vsel %vm374_vm1, %v2775_v9, %v2774_v36 }
 0x2e8   :  { %v2074_v20 = vsel %vm386_vm5, %v2073_v55, %v2072_v25  ;;  %v2785_v23 = vrot.slane %v2338_v12, 1  ;;  %v3046_v27 = vld [vmem:[#allocation5 + $0x4ec] sm:$0x1]  ;;  %v3047_v39 = vld [vmem:[#allocation5 + $0x4f4] sm:$0x1]  ;;  %v2778_v8 = vsel %vm377_vm2, %v2777_v15, %v2776_v19  ;;  %v3483_v60 = vrot.slane %v3042_v53, 7 }
 0x2e9   :  { %v12331_v0 = vsel %vm389_vm6, %v2075_v31, %v2074_v20  ;;  %v3048_v33 = vld [vmem:[#allocation5 + $0x4fc] sm:$0x1]  ;;  %v3485_v1 = vrot.slane %v3043_v21, 6  ;;  %v2780_v55 = vsel %vm380_vm3, %v2779_v24, %v2778_v8  ;;  %v3487_v28 = vrot.slane %v3044_v37, 5  ;;  %v3751_v12 = vld [vmem:[#allocation5 + $0x4c5] sm:$0x1] }
 0x2ea   :  { %v2134_v3 = vmul.f32 %v12208_v44, %v12331_v0  ;;  %v3489_v9 = vrot.slane %v3045_v51, 4  ;;  %v3752_v63 = vld [vmem:[#allocation5 + $0x4cd] sm:$0x1]  ;;  %v3753_v45 = vld [vmem:[#allocation5 + $0x4d5] sm:$0x1]  ;;  %v2782_v25 = vsel %vm383_vm4, %v2781_v18, %v2780_v55  ;;  %v3484_v31 = vsel %vm371_vm0, %v3483_v60, %v3041_v14  ;;  %v12341_v51 = vpop.xlane.xlu1 %5794 }
 0x2eb   :  { %v3491_v36 = vrot.slane %v3046_v27, 3  ;;  %v3493_v20 = vrot.slane %v3047_v39, 2  ;;  %v3754_v15 = vld [vmem:[#allocation5 + $0x4dd] sm:$0x1]  ;;  %v3755_v19 = vld [vmem:[#allocation5 + $0x4e5] sm:$0x1]  ;;  %v2784_v21 = vsel %vm386_vm5, %v2783_v29, %v2782_v25  ;;  %v3486_v44 = vsel %vm374_vm1, %v3485_v1, %v3484_v31  ;;  %v12350_v25 = vpop.xlane.xlu0 %5796 }
 0x2ec   :  { %v2174_v53 = vadd.f32 %v2134_v3, %v1464_v32  ;;  %v3495_v17 = vrot.slane %v3048_v33, 1  ;;  %v3756_v24 = vld [vmem:[#allocation5 + $0x4ed] sm:$0x1]  ;;  %v3757_v37 = vld [vmem:[#allocation5 + $0x4f5] sm:$0x1]  ;;  %14333 = vst [vmem:[#allocation52_spill] sm:$0xff] %v12341_v51  ;;  %v12344_v8 = vsel %vm389_vm6, %v2785_v23, %v2784_v21  ;;  %v3488_v18 = vsel %vm377_vm2, %v3487_v28, %v3486_v44 }
 0x2ed   :  { %v3758_v14 = vld [vmem:[#allocation5 + $0x4fd] sm:$0x1]  ;;  %v4193_v27 = vrot.slane %v3752_v63, 7  ;;  %v4195_v39 = vrot.slane %v3753_v45, 6  ;;  %v2844_v32 = vmul.f32 %v12223_v48, %v12344_v8  ;;  %v3490_v29 = vsel %vm380_vm3, %v3489_v9, %v3488_v18  ;;  %v4461_v33 = vld [vmem:[#allocation5 + $0x4c6] sm:$0x1] }
 0x2ee   :  { %v4197_v60 = vrot.slane %v3754_v15, 5  ;;  %v4199_v1 = vrot.slane %v3755_v19, 4  ;;  %v4462_v3 = vld [vmem:[#allocation5 + $0x4ce] sm:$0x1]  ;;  %v4463_v55 = vld [vmem:[#allocation5 + $0x4d6] sm:$0x1]  ;;  %v3492_v23 = vsel %vm383_vm4, %v3491_v36, %v3490_v29 }
 0x2ef   :  { %14334 = vst [vmem:[#allocation53_spill] sm:$0xff] %v12350_v25  ;;  %v4194_v31 = vsel %vm371_vm0, %v4193_v27, %v3751_v12  ;;  %v4201_v28 = vrot.slane %v3756_v24, 3  ;;  %v4203_v21 = vrot.slane %v3757_v37, 2  ;;  %v4464_v63 = vld [vmem:[#allocation5 + $0x4de] sm:$0x1]  ;;  %v2884_v44 = vadd.f32 %v2844_v32, %v2174_v53  ;;  %v12363_v32 = vpop.xlane.xlu1 %5798 }
 0x2f0   :  { %v4465_v45 = vld [vmem:[#allocation5 + $0x4e6] sm:$0x1]  ;;  %v3494_v48 = vsel %vm386_vm5, %v3493_v20, %v3492_v23  ;;  %v4196_v9 = vsel %vm374_vm1, %v4195_v39, %v4194_v31  ;;  %v4205_v15 = vrot.slane %v3758_v14, 1  ;;  %v4466_v19 = vld [vmem:[#allocation5 + $0x4ee] sm:$0x1]  ;;  %v4903_v29 = vrot.slane %v4462_v3, 7 }
 0x2f1   :  { %v4467_v18 = vld [vmem:[#allocation5 + $0x4f6] sm:$0x1]  ;;  %v12357_v51 = vsel %vm389_vm6, %v3495_v17, %v3494_v48  ;;  %v4198_v25 = vsel %vm377_vm2, %v4197_v60, %v4196_v9  ;;  %v4468_v36 = vld [vmem:[#allocation5 + $0x4fe] sm:$0x1]  ;;  %v4905_v12 = vrot.slane %v4463_v55, 6  ;;  %v4907_v37 = vrot.slane %v4464_v63, 5  ;;  %v12369_v9 = vpop.xlane.xlu0 %5800 }
 0x2f2   :  { %v3554_v24 = vmul.f32 %v12240_v50, %v12357_v51  ;;  %v4200_v53 = vsel %vm380_vm3, %v4199_v1, %v4198_v25  ;;  %v4909_v20 = vrot.slane %v4465_v45, 4  ;;  %v5171_v27 = vld [vmem:[#allocation5 + $0x4c7] sm:$0x1]  ;;  %v5172_v39 = vld [vmem:[#allocation5 + $0x4cf] sm:$0x1]  ;;  %14335 = vst [vmem:[#allocation54_spill] sm:$0xff] %v12363_v32  ;;  %v4904_v23 = vsel %vm371_vm0, %v4903_v29, %v4461_v33 }
 0x2f3   :  { %v5173_v14 = vld [vmem:[#allocation5 + $0x4d7] sm:$0x1]  ;;  %v4202_v17 = vsel %vm383_vm4, %v4201_v28, %v4200_v53  ;;  %v4911_v60 = vrot.slane %v4466_v19, 3  ;;  %v4913_v31 = vrot.slane %v4467_v18, 2  ;;  %v5174_v3 = vld [vmem:[#allocation5 + $0x4df] sm:$0x1]  ;;  %v4906_v1 = vsel %vm374_vm1, %v4905_v12, %v4904_v23 }
 0x2f4   :  { %v5175_v55 = vld [vmem:[#allocation5 + $0x4e7] sm:$0x1]  ;;  %v3594_v48 = vadd.f32 %v3554_v24, %v2884_v44  ;;  %v4204_v50 = vsel %vm386_vm5, %v4203_v21, %v4202_v17  ;;  %v4915_v25 = vrot.slane %v4468_v36, 1  ;;  %v5176_v63 = vld [vmem:[#allocation5 + $0x4ef] sm:$0x1]  ;;  %v4908_v28 = vsel %vm377_vm2, %v4907_v37, %v4906_v1 }
 0x2f5   :  { %v5177_v45 = vld [vmem:[#allocation5 + $0x4f7] sm:$0x1]  ;;  %v4206_v32 = vsel %vm389_vm6, %v4205_v15, %v4204_v50  ;;  %v5178_v53 = vld [vmem:[#allocation5 + $0x4ff] sm:$0x1]  ;;  %v5613_v33 = vrot.slane %v5172_v39, 7  ;;  %v5615_v19 = vrot.slane %v5173_v14, 6  ;;  %v4910_v44 = vsel %vm380_vm3, %v4909_v20, %v4908_v28  ;;  %v12379_v39 = vpop.xlane.xlu1 %5802 }
 0x2f6   :  { %v4264_v18 = vmul.f32 %v12255_v34, %v4206_v32  ;;  %v5617_v29 = vrot.slane %v5174_v3, 5  ;;  %v5619_v21 = vrot.slane %v5175_v55, 4  ;;  %v4912_v12 = vsel %vm383_vm4, %v4911_v60, %v4910_v44  ;;  %v12391_v55 = vpop.xlane.xlu0 %5804 }
 0x2f7   :  { %v5614_v36 = vsel %vm371_vm0, %v5613_v33, %v5171_v27  ;;  %v5621_v24 = vrot.slane %v5176_v63, 3  ;;  %v5623_v17 = vrot.slane %v5177_v45, 2  ;;  %v4914_v15 = vsel %vm386_vm5, %v4913_v31, %v4912_v12 }
 0x2f8   :  { %v4304_v23 = vadd.f32 %v4264_v18, %v3594_v48  ;;  %v5616_v37 = vsel %vm374_vm1, %v5615_v19, %v5614_v36  ;;  %v5625_v50 = vrot.slane %v5178_v53, 1  ;;  %v4916_v34 = vsel %vm389_vm6, %v4915_v25, %v4914_v15 }
 0x2f9   :  { %v5618_v20 = vsel %vm377_vm2, %v5617_v29, %v5616_v37  ;;  %v715_v14 = vmul.f32 %v12102_v42, %v12170_v59  ;;  %v1425_v27 = vmul.f32 %v12106_v35, %v12187_v5  ;;  %v4974_v60 = vmul.f32 %v12270_v47, %v4916_v34  ;;  %v12407_v33 = vpop.xlane.xlu1 %5806 }
 0x2fa   :  { %v5620_v3 = vsel %vm380_vm3, %v5619_v21, %v5618_v20  ;;  %v2135_v31 = vmul.f32 %v12112_v26, %v12205_v49  ;;  %v2845_v25 = vmul.f32 %v12116_v41, %v12220_v46  ;;  %v3555_v5 = vmul.f32 %v12121_v52, %v12237_v62 }
 0x2fb   :  { %v5622_v48 = vsel %vm383_vm4, %v5621_v24, %v5620_v3  ;;  %v1465_v1 = vadd.f32 %v1425_v27, %v715_v14  ;;  %v5014_v63 = vadd.f32 %v4974_v60, %v4304_v23  ;;  %v716_v49 = vmul.f32 %v12102_v42, %v12301_v16 }
 0x2fc   :  { %v5624_v59 = vsel %vm386_vm5, %v5623_v17, %v5622_v48  ;;  %v1426_v28 = vmul.f32 %v12106_v35, %v12316_v30  ;;  %v2136_v46 = vmul.f32 %v12112_v26, %v12331_v0  ;;  %v4265_v62 = vmul.f32 %v12125_v61, %v12252_v54 }
 0x2fd   :  { %v5626_v47 = vsel %vm389_vm6, %v5625_v50, %v5624_v59  ;;  %v2175_v45 = vadd.f32 %v2135_v31, %v1465_v1  ;;  %v2846_v44 = vmul.f32 %v12116_v41, %v12344_v8  ;;  %v4975_v42 = vmul.f32 %v12130_v4, %v12267_v43 }
 0x2fe   :  { %v5684_v53 = vmul.f32 %v12287_v13, %v5626_v47  ;;  %v1466_v18 = vadd.f32 %v1426_v28, %v716_v49  ;;  %v5930_v35 = vlaneseq  ;;  %v12417_v13 = vpop.xlane.xlu0 %5808  ;;  %v5685_v26 = vmul.f32 %v12134_v22, %v12284_v11 }
 0x2ff   :  { %v2885_v19 = vadd.f32 %v2845_v25, %v2175_v45  ;;  %v3556_v54 = vmul.f32 %v12121_v52, %v12357_v51  ;;  %v4266_v41 = vmul.f32 %v12125_v61, %v4206_v32  ;;  %v5850_v36 = vmul.f32 %v12213_v57, %v12213_v57  ;;  %v12436_v61 = vpop.xlane.xlu1 %5810 }
 0x300   :  { %v12413_v29 = vadd.f32 %v5684_v53, %v5014_v63  ;;  %v2176_v16 = vadd.f32 %v2136_v46, %v1466_v18  ;;  %v5931_v8 = vand.u32 127, %v5930_v35  ;;  %v12426_v21 = vshrl.u32 %v5930_v35, 7 }
 0x301   :  { %v3595_v30 = vadd.f32 %v3555_v5, %v2885_v19  ;;  %v5852_v11 = vmul.f32 %v12228_v6, %v12228_v6  ;;  %v5851_v52 = vmul.f32 %v12202_v7, %v12202_v7  ;;  %v5853_v51 = vmul.f32 %v12234_v38, %v12234_v38 }
 0x302   :  { %14336 = vst [vmem:[#allocation55_spill] sm:$0xff] %v12413_v29  ;;  %v5767_v0 = vmul.f32 %v10497_v58, %v12413_v29  ;;  %v2886_v12 = vadd.f32 %v2846_v44, %v2176_v16  ;;  %v5936_v24 = vadd.s32 4294967288, %v5931_v8  ;;  %v4976_v23 = vmul.f32 %v12130_v4, %v4916_v34  ;;  %v12450_v27 = vpop.xlane.xlu0 %5812  ;;  %v14343_v16 = vld [vmem:[#allocation50_spill] sm:$0xff] }
 0x303   :  { %v4305_v43 = vadd.f32 %v4265_v62, %v3595_v30  ;;  %v12440_v15 = vsub.s32 %v5931_v8, %v12426_v21  ;;  %v5686_v37 = vmul.f32 %v12134_v22, %v5626_v47  ;;  %v5854_v20 = vmul.f32 %v12249_v2, %v12249_v2  ;;  %v12464_v59 = vpop.xlane.xlu1 %5814  ;;  %v14342_v30 = vld [vmem:[#allocation49_spill] sm:$0xff] }
 0x304   :  { %5844 = vadd.xlane.f32.xlu0 %v5767_v0  ;;  %v3596_v17 = vadd.f32 %v3556_v54, %v2886_v12  ;;  %v12444_v50 = vsub.s32 %v5936_v24, %v12426_v21  ;;  %v5855_v14 = vmul.f32 %v12260_v10, %v12260_v10  ;;  %v5856_v48 = vmul.f32 %v12275_v40, %v12275_v40 }
 0x305   :  { %v5015_v32 = vadd.f32 %v4975_v42, %v4305_v43  ;;  %14337 = vst [vmem:[#allocation56_spill] sm:$0xff] %v12440_v15  ;;  %v5935_v4 = vrot.slane %v5850_v36, %v12440_v15  ;;  %v5946_v34 = vrot.slane %v5852_v11, %v12440_v15  ;;  %v5857_v1 = vmul.f32 %v12281_v56, %v12281_v56  ;;  %v14341_v42 = vld [vmem:[#allocation48_spill] sm:$0xff]  ;;  %v14344_v11 = vld [vmem:[#allocation51_spill] sm:$0xff] }
 0x306   :  { %14338 = vst [vmem:[#allocation57_spill] sm:$0xff] %v12444_v50  ;;  %v4306_v3 = vadd.f32 %v4266_v41, %v3596_v17  ;;  %v5940_v22 = vrot.slane %v5851_v52, %v12444_v50  ;;  %v5950_v31 = vrot.slane %v5853_v51, %v12444_v50  ;;  %vm5941_vm7 = vcmask 130112   ;;  %v12475_v62 = vpop.xlane.xlu0 %5816  ;;  %v14345_v52 = vld [vmem:[#allocation52_spill] sm:$0xff]  ;;  %v14346_v17 = vld [vmem:[#allocation53_spill] sm:$0xff] }
 0x307   :  { %v12452_v60 = vadd.f32 %v5685_v26, %v5015_v32  ;;  %vm6134_vm8 = vcmask 123904   ;;  %v5955_v47 = vrot.slane %v5854_v20, %v12440_v15  ;;  %v5959_v28 = vrot.slane %v5855_v14, %v12444_v50  ;;  %v12490_v43 = vpop.xlane.xlu1 %5818  ;;  %v14347_v14 = vld [vmem:[#allocation54_spill] sm:$0xff] }
 0x308   :  { %v5016_v63 = vadd.f32 %v4976_v23, %v4306_v3  ;;  %v5942_v45 = vsel %vm5941_vm7, %v5940_v22, %v5935_v4  ;;  %v5951_v49 = vsel %vm5941_vm7, %v5950_v31, %v5946_v34  ;;  %v5964_v53 = vrot.slane %v5856_v48, %v12440_v15 }
 0x309   :  { %14339 = vst [vmem:[#allocation58_spill] sm:$0xff] %v12452_v60  ;;  %v5768_v25 = vmul.f32 %v10497_v58, %v12452_v60  ;;  %v6114_v46 = vsel %vm371_vm0, %v5951_v49, %v5942_v45  ;;  %v5968_v19 = vrot.slane %v5857_v1, %v12444_v50  ;;  %v5858_v35 = vmul.f32 %v14341_v42, %v14341_v42 }
 0x30a   :  { %v12466_v5 = vadd.f32 %v5686_v37, %v5016_v63  ;;  %v6135_v44 = vsel %vm6134_vm8, %v6114_v46, 0.0  ;;  %v5859_v26 = vmul.f32 %v14342_v30, %v14342_v30  ;;  %v5860_v54 = vmul.f32 %v14343_v16, %v14343_v16  ;;  %v12501_v37 = vpop.xlane.xlu0 %5820 }
 0x30b   :  { %5846 = vadd.xlane.f32.xlu1 %v5768_v25  ;;  %v5973_v0 = vrot.slane %v5858_v35, %v12440_v15  ;;  %v5960_v8 = vsel %vm5941_vm7, %v5959_v28, %v5955_v47  ;;  %v5861_v24 = vmul.f32 %v14344_v11, %v14344_v11  ;;  %v5862_v51 = vmul.f32 %v14345_v52, %v14345_v52  ;;  %v12518_v45 = vpop.xlane.xlu1 %5822 }
 0x30c   :  { %14340 = vst [vmem:[#allocation59_spill] sm:$0xff] %v12466_v5  ;;  %v5769_v18 = vmul.f32 %v10497_v58, %v12466_v5  ;;  %v5977_v41 = vrot.slane %v5859_v26, %v12444_v50  ;;  %v5969_v58 = vsel %vm5941_vm7, %v5968_v19, %v5964_v53  ;;  %v5982_v12 = vrot.slane %v5860_v54, %v12440_v15 }
 0x30d   :  { %v6115_v36 = vsel %vm371_vm0, %v5969_v58, %v5960_v8  ;;  %v5863_v23 = vmul.f32 %v14346_v17, %v14346_v17  ;;  %v5986_v20 = vrot.slane %v5861_v24, %v12444_v50  ;;  %v5864_v3 = vmul.f32 %v14347_v14, %v14347_v14 }
 0x30e   :  { %5848 = vadd.xlane.f32.xlu0 %v5769_v18  ;;  %v6138_v32 = vsel %vm6134_vm8, %v6115_v36, 0.0  ;;  %v5991_v4 = vrot.slane %v5862_v51, %v12440_v15  ;;  %v5978_v31 = vsel %vm5941_vm7, %v5977_v41, %v5973_v0  ;;  %v5865_v1 = vmul.f32 %v12369_v9, %v12369_v9  ;;  %v12525_v19 = vpop.xlane.xlu0 %5824 }
 0x30f   :  { %6136 = vadd.xlane.f32.xlu1 %v6135_v44  ;;  %v5995_v34 = vrot.slane %v5863_v23, %v12444_v50  ;;  %v6000_v22 = vrot.slane %v5864_v3, %v12440_v15  ;;  %v5987_v48 = vsel %vm5941_vm7, %v5986_v20, %v5982_v12  ;;  %v5866_v63 = vmul.f32 %v12379_v39, %v12379_v39  ;;  %v12542_v24 = vpop.xlane.xlu1 %5826 }
 0x310   :  { %v6116_v25 = vsel %vm371_vm0, %v5987_v48, %v5978_v31  ;;  %v5867_v47 = vmul.f32 %v12391_v55, %v12391_v55  ;;  %v6004_v28 = vrot.slane %v5865_v1, %v12444_v50  ;;  %v5868_v46 = vmul.f32 %v12407_v33, %v12407_v33 }
 0x311   :  { %v6141_v49 = vsel %vm6134_vm8, %v6116_v25, 0.0  ;;  %v6009_v53 = vrot.slane %v5866_v63, %v12440_v15  ;;  %v5996_v44 = vsel %vm5941_vm7, %v5995_v34, %v5991_v4  ;;  %v5869_v26 = vmul.f32 %v12417_v13, %v12417_v13 }
 0x312   :  { %6139 = vadd.xlane.f32.xlu0 %v6138_v32  ;;  %v6013_v18 = vrot.slane %v5867_v47, %v12444_v50  ;;  %v6005_v35 = vsel %vm5941_vm7, %v6004_v28, %v6000_v22  ;;  %v6018_v54 = vrot.slane %v5868_v46, %v12440_v15  ;;  %v5870_v41 = vmul.f32 %v12436_v61, %v12436_v61  ;;  %v12552_v22 = vpop.xlane.xlu0 %5828 }
 0x313   :  { %6142 = vadd.xlane.f32.xlu1 %v6141_v49  ;;  %v6117_v0 = vsel %vm371_vm0, %v6005_v35, %v5996_v44  ;;  %v6022_v58 = vrot.slane %v5869_v26, %v12444_v50  ;;  %v5871_v12 = vmul.f32 %v12450_v27, %v12450_v27  ;;  %v5872_v36 = vmul.f32 %v12464_v59, %v12464_v59  ;;  %v12566_v46 = vpop.xlane.xlu1 %5830 }
 0x314   :  { %v6144_v8 = vsel %vm6134_vm8, %v6117_v0, 0.0  ;;  %v6027_v51 = vrot.slane %v5870_v41, %v12440_v15  ;;  %v6014_v32 = vsel %vm5941_vm7, %v6013_v18, %v6009_v53  ;;  %v5873_v34 = vmul.f32 %v12475_v62, %v12475_v62 }
 0x315   :  { %v6023_v23 = vsel %vm5941_vm7, %v6022_v58, %v6018_v54  ;;  %v6031_v20 = vrot.slane %v5871_v12, %v12444_v50  ;;  %v6036_v3 = vrot.slane %v5872_v36, %v12440_v15  ;;  %v5874_v48 = vmul.f32 %v12490_v43, %v12490_v43 }
 0x316   :  { %6145 = vadd.xlane.f32.xlu0 %v6144_v8  ;;  %v6118_v4 = vsel %vm371_vm0, %v6023_v23, %v6014_v32  ;;  %v6040_v1 = vrot.slane %v5873_v34, %v12444_v50  ;;  %v5875_v25 = vmul.f32 %v12501_v37, %v12501_v37  ;;  %v5876_v63 = vmul.f32 %v12518_v45, %v12518_v45  ;;  %v12577_v41 = vpop.xlane.xlu0 %5832 }
 0x317   :  { %v6147_v31 = vsel %vm6134_vm8, %v6118_v4, 0.0  ;;  %v6045_v47 = vrot.slane %v5874_v48, %v12440_v15  ;;  %v6032_v28 = vsel %vm5941_vm7, %v6031_v20, %v6027_v51  ;;  %v5877_v35 = vmul.f32 %v12525_v19, %v12525_v19 }
 0x318   :  { %6148 = vadd.xlane.f32.xlu1 %v6147_v31  ;;  %v6049_v49 = vrot.slane %v5875_v25, %v12444_v50  ;;  %v6041_v53 = vsel %vm5941_vm7, %v6040_v1, %v6036_v3  ;;  %v6054_v18 = vrot.slane %v5876_v63, %v12440_v15  ;;  %v5878_v26 = vmul.f32 %v12542_v24, %v12542_v24 }
 0x319   :  { %v6119_v44 = vsel %vm371_vm0, %v6041_v53, %v6032_v28  ;;  %v5879_v0 = vmul.f32 %v12552_v22, %v12552_v22  ;;  %v6058_v8 = vrot.slane %v5877_v35, %v12444_v50  ;;  %v5880_v58 = vmul.f32 %v12566_v46, %v12566_v46 }
 0x31a   :  { %v6150_v54 = vsel %vm6134_vm8, %v6119_v44, 0.0  ;;  %v6063_v12 = vrot.slane %v5878_v26, %v12440_v15  ;;  %v6050_v32 = vsel %vm5941_vm7, %v6049_v49, %v6045_v47  ;;  %v5881_v20 = vmul.f32 %v12577_v41, %v12577_v41 }
 0x31b   :  { %6151 = vadd.xlane.f32.xlu0 %v6150_v54  ;;  %v6067_v36 = vrot.slane %v5879_v0, %v12444_v50  ;;  %v6072_v51 = vrot.slane %v5880_v58, %v12440_v15  ;;  %v6059_v23 = vsel %vm5941_vm7, %v6058_v8, %v6054_v18  ;;  %vm6925_vm9 = vcmask 1041408  }
 0x31c   :  { %v6120_v3 = vsel %vm371_vm0, %v6059_v23, %v6050_v32  ;;  %v6076_v34 = vrot.slane %v5881_v20, %v12444_v50 }
 0x31d   :  { %v6153_v4 = vsel %vm6134_vm8, %v6120_v3, 0.0  ;;  %v6068_v31 = vsel %vm5941_vm7, %v6067_v36, %v6063_v12 }
 0x31e   :  { %6154 = vadd.xlane.f32.xlu1 %v6153_v4  ;;  %v6077_v48 = vsel %vm5941_vm7, %v6076_v34, %v6072_v51 }
 0x31f   :  { %v6121_v1 = vsel %vm371_vm0, %v6077_v48, %v6068_v31 }
 0x320   :  { %v6156_v25 = vsel %vm6134_vm8, %v6121_v1, 0.0 }
 0x321   :  { %6157 = vadd.xlane.f32.xlu0 %v6156_v25 }
 0x327   :  { %v12596_v63 = vpop.xlane.xlu1 %5834 }
 0x328   :  { %v5882_v28 = vmul.f32 %v12596_v63, %v12596_v63 }
 0x32a   :  { %v6081_v35 = vrot.slane %v5882_v28, %v12440_v15 }
 0x347   :  { %v12598_v47 = vpop.xlane.xlu0 %5836 }
 0x348   :  { %v5883_v53 = vmul.f32 %v12598_v47, %v12598_v47 }
 0x34a   :  { %v6085_v26 = vrot.slane %v5883_v53, %v12444_v50 }
 0x34c   :  { %v6086_v58 = vsel %vm5941_vm7, %v6085_v26, %v6081_v35 }
 0x34f   :  { %v12600_v49 = vpop.xlane.xlu1 %5838 }
 0x350   :  { %v5884_v18 = vmul.f32 %v12600_v49, %v12600_v49 }
 0x352   :  { %v12608_v44 = vpop.xlane.xlu0 %5840  ;;  %v6090_v54 = vrot.slane %v5884_v18, %v12440_v15 }
 0x353   :  { %v5885_v0 = vmul.f32 %v12608_v44, %v12608_v44 }
 0x355   :  { %v6094_v8 = vrot.slane %v5885_v0, %v12444_v50 }
 0x357   :  { %v6095_v12 = vsel %vm5941_vm7, %v6094_v8, %v6090_v54 }
 0x358   :  { %v6122_v36 = vsel %vm371_vm0, %v6095_v12, %v6086_v58 }
 0x359   :  { %v6159_v51 = vsel %vm6134_vm8, %v6122_v36, 0.0  ;;  %v6247_v36 = vrot.slane %v12228_v6, %v12440_v15  ;;  %v6265_v6 = vrot.slane %v12275_v40, %v12440_v15 }
 0x35a   :  { %6160 = vadd.xlane.f32.xlu1 %v6159_v51  ;;  %v6251_v51 = vrot.slane %v12234_v38, %v12444_v50  ;;  %v6269_v38 = vrot.slane %v12281_v56, %v12444_v50 }
 0x35c   :  { %v6270_v56 = vsel %vm5941_vm7, %v6269_v38, %v6265_v6 }
 0x371   :  { %v12620_v32 = vpop.xlane.xlu1 %5842 }
 0x372   :  { %v5886_v20 = vmul.f32 %v12620_v32, %v12620_v32 }
 0x374   :  { %v6099_v31 = vrot.slane %v5886_v20, %v12440_v15 }
 0x391   :  { %v12622_v23 = vpop.xlane.xlu0 %5844 }
 0x392   :  { %v5887_v4 = vmul.f32 %v12622_v23, %v12622_v23 }
 0x394   :  { %v6103_v25 = vrot.slane %v5887_v4, %v12444_v50  ;;  %v6242_v4 = vrot.slane %v12202_v7, %v12444_v50 }
 0x396   :  { %v6104_v54 = vsel %vm5941_vm7, %v6103_v25, %v6099_v31  ;;  %v6252_v25 = vsel %vm5941_vm7, %v6251_v51, %v6247_v36 }
 0x398   :  { %v12626_v3 = vpop.xlane.xlu1 %5846 }
 0x399   :  { %v5888_v34 = vmul.f32 %v12626_v3, %v12626_v3 }
 0x39b   :  { %v12633_v48 = vpop.xlane.xlu0 %5848  ;;  %v6108_v28 = vrot.slane %v5888_v34, %v12440_v15  ;;  %v6238_v34 = vrot.slane %v12213_v57, %v12440_v15  ;;  %v6256_v57 = vrot.slane %v12249_v2, %v12440_v15 }
 0x39c   :  { %v6137_v1 = vpop.xlane.xlu1 %6136  ;;  %v5889_v53 = vmul.f32 %v12633_v48, %v12633_v48 }
 0x39d   :  { %v6165_v18 = vadd.f32 1.0, %v6137_v1 }
 0x39e   :  { %v6112_v35 = vrot.slane %v5889_v53, %v12444_v50  ;;  %v6243_v53 = vsel %vm5941_vm7, %v6242_v4, %v6238_v34  ;;  %v12670_v34 = vsub.s32 1, %v12426_v21 }
 0x39f   :  { %9620 = vrcp.f32 %v6165_v18  ;;  %v6140_v26 = vpop.xlane.xlu0 %6139  ;;  %v6415_v7 = vsel %vm371_vm0, %v6252_v25, %v6243_v53  ;;  %v6274_v53 = vrot.slane %v14341_v42, %v12440_v15 }
 0x3a0   :  { %v6113_v0 = vsel %vm5941_vm7, %v6112_v35, %v6108_v28  ;;  %v6166_v8 = vadd.f32 1.0, %v6140_v26  ;;  %9622 = vrsqrt.f32 %v6137_v1  ;;  %v6143_v20 = vpop.xlane.xlu1 %6142  ;;  %14348 = vst [vmem:[#allocation48_spill] sm:$0xff] %v12670_v34 }
 0x3a1   :  { %v6123_v58 = vsel %vm371_vm0, %v6113_v0, %v6104_v54  ;;  %v6167_v31 = vadd.f32 1.0, %v6143_v20  ;;  %v6260_v0 = vrot.slane %v12260_v10, %v12444_v50  ;;  %v6283_v10 = vrot.slane %v14343_v16, %v12440_v15 }
 0x3a2   :  { %v6162_v12 = vsel %vm6134_vm8, %v6123_v58, 0.0  ;;  %9624 = vrcp.f32 %v6166_v8  ;;  %v12664_v58 = vsub.s32 0, %v12426_v21  ;;  %v6278_v21 = vrot.slane %v14342_v30, %v12444_v50 }
 0x3a3   :  { %6163 = vadd.xlane.f32.xlu0 %v6162_v12  ;;  %9626 = vrcp.f32 %v6167_v31  ;;  %v6146_v35 = vpop.xlane.xlu0 %6145  ;;  %v6261_v51 = vsel %vm5941_vm7, %v6260_v0, %v6256_v57  ;;  %v6287_v31 = vrot.slane %v14344_v11, %v12444_v50  ;;  %v6301_v57 = vrot.slane %v14347_v14, %v12440_v15 }
 0x3a4   :  { %9628 = vrsqrt.f32 %v6140_v26  ;;  %v6168_v12 = vadd.f32 1.0, %v6146_v35  ;;  %v6416_v2 = vsel %vm371_vm0, %v6270_v56, %v6261_v51  ;;  %v6305_v30 = vrot.slane %v12369_v9, %v12444_v50 }
 0x3a5   :  { %v6288_v16 = vsel %vm5941_vm7, %v6287_v31, %v6283_v10  ;;  %v6296_v14 = vrot.slane %v14346_v17, %v12444_v50  ;;  %v6319_v10 = vrot.slane %v12407_v33, %v12440_v15  ;;  %v6323_v17 = vrot.slane %v12417_v13, %v12444_v50 }
 0x3a6   :  { %9630 = vrcp.f32 %v6168_v12  ;;  %v6292_v12 = vrot.slane %v14345_v52, %v12440_v15  ;;  %v6314_v33 = vrot.slane %v12391_v55, %v12444_v50  ;;  %v6341_v55 = vrot.slane %v12475_v62, %v12444_v50 }
 0x3a7   :  { %9632 = vrsqrt.f32 %v6143_v20 }
 0x3a9   :  { %v9621_v28 = vpop.eup %9620 }
 0x3aa   :  { %v6176_v18 = vmul.f32 %v9621_v28, %v6137_v1  ;;  %v9623_v54 = vpop.eup %9622 }
 0x3ac   :  { %v6435_v8 = vmul.f32 %v6415_v7, %v6176_v18  ;;  %v9625_v40 = vpop.eup %9624 }
 0x3ad   :  { %v6178_v1 = vmul.f32 %v9625_v40, %v6140_v26  ;;  %v6149_v26 = vpop.xlane.xlu1 %6148  ;;  %v9627_v28 = vpop.eup %9626 }
 0x3ae   :  { %v6455_v36 = vmul.f32 %v9623_v54, %v6435_v8  ;;  %v9629_v38 = vpop.eup %9628  ;;  %v6169_v18 = vadd.f32 1.0, %v6149_v26  ;;  %v6180_v7 = vmul.f32 %v9627_v28, %v6143_v20  ;;  %v6279_v54 = vsel %vm5941_vm7, %v6278_v21, %v6274_v53  ;;  %v6152_v40 = vpop.xlane.xlu0 %6151 }
 0x3af   :  { %v6436_v25 = vmul.f32 %v6416_v2, %v6178_v1  ;;  %v6417_v42 = vsel %vm371_vm0, %v6288_v16, %v6279_v54  ;;  %v6170_v1 = vadd.f32 1.0, %v6152_v40  ;;  %v6310_v53 = vrot.slane %v12379_v39, %v12440_v15 }
 0x3b0   :  { %v6468_v4 = vrot.slane %v6455_v36, %v12664_v58  ;;  %v6479_v6 = vrot.slane %v6455_v36, %v12670_v34  ;;  %9634 = vrcp.f32 %v6169_v18  ;;  %v6437_v8 = vmul.f32 %v6417_v42, %v6180_v7  ;;  %v9631_v20 = vpop.eup %9630 }
 0x3b1   :  { %v6456_v11 = vmul.f32 %v9629_v38, %v6436_v25  ;;  %9636 = vrsqrt.f32 %v6146_v35  ;;  %v9633_v56 = vpop.eup %9632  ;;  %v6306_v36 = vsel %vm5941_vm7, %v6305_v30, %v6301_v57  ;;  %v6182_v51 = vmul.f32 %v9631_v20, %v6146_v35  ;;  %v6155_v25 = vpop.xlane.xlu1 %6154 }
 0x3b2   :  { %6470 = vbcast.lane.b32.xlu1 %v6468_v4, 256  ;;  %v6457_v9 = vmul.f32 %v9633_v56, %v6437_v8  ;;  %9638 = vrcp.f32 %v6170_v1  ;;  %v6324_v38 = vsel %vm5941_vm7, %v6323_v17, %v6319_v10  ;;  %v6315_v16 = vsel %vm5941_vm7, %v6314_v33, %v6310_v53  ;;  %v6158_v57 = vpop.xlane.xlu0 %6157 }
 0x3b3   :  { %v6490_v0 = vrot.slane %v6456_v11, %v12664_v58  ;;  %v6501_v2 = vrot.slane %v6456_v11, %v12670_v34  ;;  %9640 = vrsqrt.f32 %v6149_v26  ;;  %v6337_v11 = vrot.slane %v12464_v59, %v12440_v15 }
 0x3b4   :  { %v6512_v31 = vrot.slane %v6457_v9, %v12664_v58  ;;  %v6523_v7 = vrot.slane %v6457_v9, %v12670_v34  ;;  %v6419_v39 = vsel %vm371_vm0, %v6324_v38, %v6315_v16  ;;  %v6328_v30 = vrot.slane %v12436_v61, %v12440_v15 }
 0x3b5   :  { %v6332_v59 = vrot.slane %v12450_v27, %v12444_v50  ;;  %v6172_v8 = vadd.f32 1.0, %v6158_v57  ;;  %v6342_v20 = vsel %vm5941_vm7, %v6341_v55, %v6337_v11  ;;  %v6355_v1 = vrot.slane %v12518_v45, %v12440_v15 }
 0x3b6   :  { %6481 = vbcast.lane.b32.xlu1 %v6479_v6, 256  ;;  %v6359_v27 = vrot.slane %v12525_v19, %v12444_v50  ;;  %v6346_v9 = vrot.slane %v12490_v43, %v12440_v15  ;;  %v6377_v43 = vrot.slane %v12577_v41, %v12444_v50  ;;  %v6364_v53 = vrot.slane %v12542_v24, %v12440_v15 }
 0x3b7   :  { %v6368_v33 = vrot.slane %v12552_v22, %v12444_v50 }
 0x3b9   :  { %6474 = vbcast.lane.b32.xlu0 %v6468_v4, 264  ;;  %v6297_v4 = vsel %vm5941_vm7, %v6296_v14, %v6292_v12  ;;  %v6333_v14 = vsel %vm5941_vm7, %v6332_v59, %v6328_v30  ;;  %v6369_v38 = vsel %vm5941_vm7, %v6368_v33, %v6364_v53  ;;  %v6382_v30 = vrot.slane %v12596_v63, %v12440_v15 }
 0x3ba   :  { %6485 = vbcast.lane.b32.xlu1 %v6479_v6, 264  ;;  %v6418_v52 = vsel %vm371_vm0, %v6306_v36, %v6297_v4  ;;  %v9635_v28 = vpop.eup %9634  ;;  %v6171_v6 = vadd.f32 1.0, %v6155_v25  ;;  %v6420_v61 = vsel %vm371_vm0, %v6342_v20, %v6333_v14  ;;  %v6350_v4 = vrot.slane %v12501_v37, %v12444_v50 }
 0x3bb   :  { %v6438_v35 = vmul.f32 %v6418_v52, %v6182_v51  ;;  %v9637_v21 = vpop.eup %9636  ;;  %v6184_v18 = vmul.f32 %v9635_v28, %v6149_v26  ;;  %v6386_v59 = vrot.slane %v12598_v47, %v12444_v50 }
 0x3bc   :  { %9642 = vrcp.f32 %v6171_v6  ;;  %v9639_v42 = vpop.eup %9638  ;;  %v6351_v52 = vsel %vm5941_vm7, %v6350_v4, %v6346_v9 }
 0x3bd   :  { %6496 = vbcast.lane.b32.xlu0 %v6490_v0, 264  ;;  %v6458_v13 = vmul.f32 %v9637_v21, %v6438_v35  ;;  %v6439_v54 = vmul.f32 %v6419_v39, %v6184_v18  ;;  %9644 = vrsqrt.f32 %v6152_v40  ;;  %v6186_v12 = vmul.f32 %v9639_v42, %v6152_v40 }
 0x3be   :  { %6492 = vbcast.lane.b32.xlu1 %v6490_v0, 256  ;;  %v9641_v0 = vpop.eup %9640  ;;  %9646 = vrcp.f32 %v6172_v8  ;;  %v6395_v42 = vrot.slane %v12608_v44, %v12444_v50  ;;  %v6387_v20 = vsel %vm5941_vm7, %v6386_v59, %v6382_v30  ;;  %v14357_v59 = vld [vmem:[#allocation13_spill] sm:$0xff] }
 0x3bf   :  { %v6534_v26 = vrot.slane %v6458_v13, %v12664_v58  ;;  %v6459_v62 = vmul.f32 %v9641_v0, %v6439_v54  ;;  %v6545_v56 = vrot.slane %v6458_v13, %v12670_v34  ;;  %v6440_v40 = vmul.f32 %v6420_v61, %v6186_v12 }
 0x3c0   :  { %9648 = vrsqrt.f32 %v6155_v25 }
 0x3c1   :  { %6507 = vbcast.lane.b32.xlu0 %v6501_v2, 264  ;;  %v6556_v36 = vrot.slane %v6459_v62, %v12664_v58  ;;  %v6567_v17 = vrot.slane %v6459_v62, %v12670_v34  ;;  %9650 = vrsqrt.f32 %v6158_v57 }
 0x3c2   :  { %6503 = vbcast.lane.b32.xlu1 %v6501_v2, 256  ;;  %v6360_v2 = vsel %vm5941_vm7, %v6359_v27, %v6355_v1 }
 0x3c3   :  { %v6421_v35 = vsel %vm371_vm0, %v6360_v2, %v6351_v52  ;;  %v6413_v2 = vrot.slane %v12633_v48, %v12444_v50  ;;  %v6404_v52 = vrot.slane %v12622_v23, %v12444_v50 }
 0x3c5   :  { %6518 = vbcast.lane.b32.xlu0 %v6512_v31, 264 }
 0x3c6   :  { %6514 = vbcast.lane.b32.xlu1 %v6512_v31, 256  ;;  %v9643_v51 = vpop.eup %9642  ;;  %v6373_v31 = vrot.slane %v12566_v46, %v12440_v15 }
 0x3c7   :  { %v9645_v45 = vpop.eup %9644  ;;  %v6188_v10 = vmul.f32 %v9643_v51, %v6155_v25 }
 0x3c8   :  { %v6460_v19 = vmul.f32 %v9645_v45, %v6440_v40  ;;  %v9647_v28 = vpop.eup %9646  ;;  %v6378_v46 = vsel %vm5941_vm7, %v6377_v43, %v6373_v31  ;;  %v6409_v45 = vrot.slane %v12626_v3, %v12440_v15 }
 0x3c9   :  { %6529 = vbcast.lane.b32.xlu0 %v6523_v7, 264  ;;  %v6441_v25 = vmul.f32 %v6421_v35, %v6188_v10  ;;  %v6190_v6 = vmul.f32 %v9647_v28, %v6158_v57  ;;  %v6422_v13 = vsel %vm371_vm0, %v6378_v46, %v6369_v38  ;;  %v6391_v57 = vrot.slane %v12600_v49, %v12440_v15  ;;  %v14349_v46 = vld [vmem:[#allocation17_spill] sm:$0xff] }
 0x3ca   :  { %6525 = vbcast.lane.b32.xlu1 %v6523_v7, 256  ;;  %v6578_v37 = vrot.slane %v6460_v19, %v12664_v58  ;;  %v9649_v21 = vpop.eup %9648  ;;  %v6589_v18 = vrot.slane %v6460_v19, %v12670_v34  ;;  %v6400_v19 = vrot.slane %v12620_v32, %v12440_v15  ;;  %v6414_v31 = vsel %vm5941_vm7, %v6413_v2, %v6409_v45 }
 0x3cb   :  { %v6461_v41 = vmul.f32 %v9649_v21, %v6441_v25  ;;  %v6442_v24 = vmul.f32 %v6422_v13, %v6190_v6  ;;  %v9651_v7 = vpop.eup %9650  ;;  %v6396_v0 = vsel %vm5941_vm7, %v6395_v42, %v6391_v57  ;;  %v14356_v42 = vld [vmem:[#allocation21_spill] sm:$0xff] }
 0x3cc   :  { %v6423_v62 = vsel %vm371_vm0, %v6396_v0, %v6387_v20 }
 0x3cd   :  { %6540 = vbcast.lane.b32.xlu0 %v6534_v26, 264  ;;  %v6600_v16 = vrot.slane %v6461_v41, %v12664_v58  ;;  %v6462_v22 = vmul.f32 %v9651_v7, %v6442_v24  ;;  %v6611_v11 = vrot.slane %v6461_v41, %v12670_v34  ;;  %v14350_v41 = vld [vmem:[#allocation15_spill] sm:$0xff]  ;;  %v14352_v24 = vld [vmem:[#allocation12_spill] sm:$0xff] }
 0x3ce   :  { %6536 = vbcast.lane.b32.xlu1 %v6534_v26, 256 }
 0x3cf   :  { %v6622_v26 = vrot.slane %v6462_v22, %v12664_v58  ;;  %v6633_v54 = vrot.slane %v6462_v22, %v12670_v34  ;;  %v14353_v22 = vld [vmem:[#allocation11_spill] sm:$0xff] }
 0x3d1   :  { %6551 = vbcast.lane.b32.xlu0 %v6545_v56, 264 }
 0x3d2   :  { %6547 = vbcast.lane.b32.xlu1 %v6545_v56, 256 }
 0x3d5   :  { %6562 = vbcast.lane.b32.xlu0 %v6556_v36, 264 }
 0x3d6   :  { %6558 = vbcast.lane.b32.xlu1 %v6556_v36, 256 }
 0x3d9   :  { %6573 = vbcast.lane.b32.xlu0 %v6567_v17, 264 }
 0x3da   :  { %6569 = vbcast.lane.b32.xlu1 %v6567_v17, 256 }
 0x3dd   :  { %6584 = vbcast.lane.b32.xlu0 %v6578_v37, 264 }
 0x3de   :  { %6580 = vbcast.lane.b32.xlu1 %v6578_v37, 256  ;;  %v6405_v37 = vsel %vm5941_vm7, %v6404_v52, %v6400_v19 }
 0x3df   :  { %v6424_v3 = vsel %vm371_vm0, %v6414_v31, %v6405_v37 }
 0x3e1   :  { %6595 = vbcast.lane.b32.xlu0 %v6589_v18, 264 }
 0x3e2   :  { %6591 = vbcast.lane.b32.xlu1 %v6589_v18, 256  ;;  %v14351_v18 = vld [vmem:[#allocation18_spill] sm:$0xff] }
 0x3e5   :  { %6606 = vbcast.lane.b32.xlu0 %v6600_v16, 264 }
 0x3e6   :  { %6602 = vbcast.lane.b32.xlu1 %v6600_v16, 256 }
 0x3e7   :  { %v6161_v39 = vpop.xlane.xlu1 %6160 }
 0x3e8   :  { %v6173_v55 = vadd.f32 1.0, %v6161_v39 }
 0x3e9   :  { %6617 = vbcast.lane.b32.xlu0 %v6611_v11, 264 }
 0x3ea   :  { %6613 = vbcast.lane.b32.xlu1 %v6611_v11, 256  ;;  %9652 = vrcp.f32 %v6173_v55 }
 0x3eb   :  { %9654 = vrsqrt.f32 %v6161_v39 }
 0x3ed   :  { %6628 = vbcast.lane.b32.xlu0 %v6622_v26, 264 }
 0x3ee   :  { %6624 = vbcast.lane.b32.xlu1 %v6622_v26, 256  ;;  %v14355_v26 = vld [vmem:[#allocation16_spill] sm:$0xff] }
 0x3f1   :  { %6639 = vbcast.lane.b32.xlu0 %v6633_v54, 264 }
 0x3f2   :  { %6635 = vbcast.lane.b32.xlu1 %v6633_v54, 256 }
 0x3f4   :  { %v9653_v8 = vpop.eup %9652 }
 0x3f5   :  { %v6192_v12 = vmul.f32 %v9653_v8, %v6161_v39  ;;  %v9655_v14 = vpop.eup %9654  ;;  %v14354_v39 = vld [vmem:[#allocation14_spill] sm:$0xff] }
 0x3f7   :  { %v6443_v49 = vmul.f32 %v6423_v62, %v6192_v12  ;;  %v14358_v62 = vld [vmem:[#allocation19_spill] sm:$0xff] }
 0x3f9   :  { %v6463_v56 = vmul.f32 %v9655_v14, %v6443_v49  ;;  %v14359_v14 = vld [vmem:[#allocation22_spill] sm:$0xff] }
 0x3fb   :  { %v6644_v44 = vrot.slane %v6463_v56, %v12664_v58  ;;  %v6655_v63 = vrot.slane %v6463_v56, %v12670_v34 }
 0x3fd   :  { %6650 = vbcast.lane.b32.xlu0 %v6644_v44, 264  ;;  %6646 = vbcast.lane.b32.xlu1 %v6644_v44, 256 }
 0x401   :  { %6661 = vbcast.lane.b32.xlu0 %v6655_v63, 264  ;;  %6657 = vbcast.lane.b32.xlu1 %v6655_v63, 256 }
 0x424   :  { %v6471_v47 = vpop.permute.xlu1 %6470 }
 0x425   :  { %v6685_v7 = vmul.f32 %v6471_v47, %v14352_v24 }
 0x428   :  { %v6482_v1 = vpop.permute.xlu1 %6481 }
 0x429   :  { %v6687_v0 = vmul.f32 %v6482_v1, %v14357_v59 }
 0x42c   :  { %v6486_v61 = vpop.permute.xlu1 %6485 }
 0x42d   :  { %v6688_v55 = vmul.f32 %v6486_v61, %v14354_v39 }
 0x42f   :  { %v6732_v63 = vadd.f32 %v6688_v55, %v6687_v0 }
 0x430   :  { %v6493_v27 = vpop.permute.xlu1 %6492  ;;  %v6164_v36 = vpop.xlane.xlu0 %6163 }
 0x431   :  { %v6174_v40 = vadd.f32 1.0, %v6164_v36  ;;  %v6689_v38 = vmul.f32 %v6493_v27, %v14350_v41  ;;  %v14360_v27 = vld [vmem:[#allocation20_spill] sm:$0xff] }
 0x433   :  { %9656 = vrcp.f32 %v6174_v40 }
 0x434   :  { %v6504_v51 = vpop.permute.xlu1 %6503  ;;  %v6475_v9 = vpop.permute.xlu0 %6474  ;;  %9658 = vrsqrt.f32 %v6164_v36 }
 0x435   :  { %v6691_v32 = vmul.f32 %v6504_v51, %v14349_v46  ;;  %v6686_v11 = vmul.f32 %v6475_v9, %v14353_v22  ;;  %v14361_v51 = vld [vmem:[#allocation25_spill] sm:$0xff] }
 0x437   :  { %v6725_v47 = vadd.f32 %v6686_v11, %v6685_v7 }
 0x438   :  { %v6515_v4 = vpop.permute.xlu1 %6514  ;;  %v6497_v10 = vpop.permute.xlu0 %6496 }
 0x439   :  { %v6690_v54 = vmul.f32 %v6497_v10, %v14355_v26  ;;  %v6693_v49 = vmul.f32 %v6515_v4, %v14358_v62  ;;  %v14362_v10 = vld [vmem:[#allocation23_spill] sm:$0xff]  ;;  %v6733_v4 = vrot.slane %v6732_v63, 4 }
 0x43b   :  { %v6739_v12 = vadd.f32 %v6690_v54, %v6689_v38 }
 0x43c   :  { %v6526_v17 = vpop.permute.xlu1 %6525  ;;  %v6508_v35 = vpop.permute.xlu0 %6507 }
 0x43d   :  { %v9657_v43 = vpop.eup %9656  ;;  %v6692_v13 = vmul.f32 %v6508_v35, %v14351_v18  ;;  %v6695_v30 = vmul.f32 %v6526_v17, %v14356_v42  ;;  %v6740_v45 = vrot.slane %v6739_v12, 4  ;;  %v14363_v17 = vld [vmem:[#allocation26_spill] sm:$0xff]  ;;  %v6726_v35 = vrot.slane %v6725_v47, 4 }
 0x43e   :  { %v6194_v25 = vmul.f32 %v9657_v43, %v6164_v36  ;;  %v9659_v33 = vpop.eup %9658  ;;  %v14397_v42 = vld [vmem:[#allocation46_spill] sm:$0xff] }
 0x43f   :  { %v6746_v57 = vadd.f32 %v6692_v13, %v6691_v32  ;;  %v6741_v32 = vadd.f32 %v6740_v45, %v6739_v12  ;;  %v6734_v13 = vadd.f32 %v6733_v4, %v6732_v63  ;;  %v6727_v7 = vadd.f32 %v6726_v35, %v6725_v47  ;;  %v14369_v4 = vld [vmem:[#allocation31_spill] sm:$0xff] }
 0x440   :  { %v6537_v28 = vpop.permute.xlu1 %6536  ;;  %v6444_v53 = vmul.f32 %v6424_v3, %v6194_v25  ;;  %v6519_v48 = vpop.permute.xlu0 %6518  ;;  %v14364_v25 = vld [vmem:[#allocation24_spill] sm:$0xff] }
 0x441   :  { %v6747_v61 = vrot.slane %v6746_v57, 4  ;;  %v6694_v36 = vmul.f32 %v6519_v48, %v14360_v27  ;;  %v6697_v19 = vmul.f32 %v6537_v28, %v14362_v10  ;;  %v6728_v45 = vrot.slane %v6727_v7, 2 }
 0x442   :  { %v6464_v21 = vmul.f32 %v9659_v33, %v6444_v53  ;;  %v14365_v33 = vld [vmem:[#allocation27_spill] sm:$0xff] }
 0x443   :  { %v6753_v2 = vadd.f32 %v6694_v36, %v6693_v49  ;;  %v6748_v43 = vadd.f32 %v6747_v61, %v6746_v57  ;;  %v14367_v57 = vld [vmem:[#allocation29_spill] sm:$0xff]  ;;  %v6742_v49 = vrot.slane %v6741_v32, 2  ;;  %v6735_v61 = vrot.slane %v6734_v13, 2  ;;  %v14368_v36 = vld [vmem:[#allocation30_spill] sm:$0xff] }
 0x444   :  { %v6548_v6 = vpop.permute.xlu1 %6547  ;;  %v6666_v23 = vrot.slane %v6464_v21, %v12664_v58  ;;  %v6530_v16 = vpop.permute.xlu0 %6529  ;;  %v6677_v20 = vrot.slane %v6464_v21, %v12670_v34  ;;  %v6729_v34 = vadd.f32 %v6728_v45, %v6727_v7 }
 0x445   :  { %v6696_v56 = vmul.f32 %v6530_v16, %v14359_v14  ;;  %v6699_v9 = vmul.f32 %v6548_v6, %v14361_v51  ;;  %v6754_v6 = vrot.slane %v6753_v2, 4  ;;  %v14366_v16 = vld [vmem:[#allocation28_spill] sm:$0xff]  ;;  %v6749_v11 = vrot.slane %v6748_v43, 2  ;;  %v14398_v14 = vld [vmem:[#allocation45_spill] sm:$0xff] }
 0x446   :  { %6672 = vbcast.lane.b32.xlu0 %v6666_v23, 264  ;;  %6668 = vbcast.lane.b32.xlu1 %v6666_v23, 256  ;;  %v6743_v35 = vadd.f32 %v6742_v49, %v6741_v32  ;;  %v6730_v7 = vrot.slane %v6729_v34, 1 }
 0x447   :  { %v6760_v40 = vadd.f32 %v6696_v56, %v6695_v30  ;;  %v6755_v56 = vadd.f32 %v6754_v6, %v6753_v2  ;;  %v6750_v63 = vadd.f32 %v6749_v11, %v6748_v43  ;;  %v6736_v2 = vadd.f32 %v6735_v61, %v6734_v13  ;;  %v14372_v61 = vld [vmem:[#allocation34_spill] sm:$0xff] }
 0x448   :  { %v6559_v8 = vpop.permute.xlu1 %6558  ;;  %v6541_v44 = vpop.permute.xlu0 %6540  ;;  %v6744_v32 = vrot.slane %v6743_v35, 1 }
 0x449   :  { %v6761_v37 = vrot.slane %v6760_v40, 4  ;;  %v6698_v3 = vmul.f32 %v6541_v44, %v14364_v25  ;;  %v6701_v48 = vmul.f32 %v6559_v8, %v14365_v33  ;;  %v6751_v15 = vrot.slane %v6750_v63, 1 }
 0x44a   :  { %6683 = vbcast.lane.b32.xlu0 %v6677_v20, 264  ;;  %6679 = vbcast.lane.b32.xlu1 %v6677_v20, 256 }
 0x44b   :  { %v6767_v23 = vadd.f32 %v6698_v3, %v6697_v19  ;;  %v6762_v55 = vadd.f32 %v6761_v37, %v6760_v40  ;;  %v6756_v37 = vrot.slane %v6755_v56, 2  ;;  %v12804_v45 = vadd.f32 %v6751_v15, %v6750_v63 }
 0x44c   :  { %v6570_v1 = vpop.permute.xlu1 %6569  ;;  %v6552_v52 = vpop.permute.xlu0 %6551  ;;  %v12812_v63 = vadd.f32 %v6730_v7, %v6729_v34 }
 0x44d   :  { %v6700_v31 = vmul.f32 %v6552_v52, %v14363_v17  ;;  %v6703_v0 = vmul.f32 %v6570_v1, %v14367_v57  ;;  %v6768_v44 = vrot.slane %v6767_v23, 4  ;;  %v6763_v19 = vrot.slane %v6762_v55, 2  ;;  %14373 = vst [vmem:[#allocation49_spill] sm:$0xff] %v12804_v45  ;;  %v14388_v17 = vld [vmem:[#allocation40_spill] sm:$0xff] }
 0x44e   :  { %14378 = vst [vmem:[#allocation52_spill] sm:$0xff] %v12812_v63 }
 0x44f   :  { %v6774_v53 = vadd.f32 %v6700_v31, %v6699_v9  ;;  %v6769_v1 = vadd.f32 %v6768_v44, %v6767_v23  ;;  %v6764_v50 = vadd.f32 %v6763_v19, %v6762_v55 }
 0x450   :  { %v6581_v21 = vpop.permute.xlu1 %6580  ;;  %v6563_v38 = vpop.permute.xlu0 %6562 }
 0x451   :  { %v6702_v28 = vmul.f32 %v6563_v38, %v14366_v16  ;;  %v6775_v54 = vrot.slane %v6774_v53, 4  ;;  %v6705_v40 = vmul.f32 %v6581_v21, %v14369_v4  ;;  %v14370_v38 = vld [vmem:[#allocation32_spill] sm:$0xff]  ;;  %v6757_v21 = vadd.f32 %v6756_v37, %v6755_v56 }
 0x452   :  { %v6765_v19 = vrot.slane %v6764_v50, 1 }
 0x453   :  { %v6781_v30 = vadd.f32 %v6702_v28, %v6701_v48  ;;  %v6776_v52 = vadd.f32 %v6775_v54, %v6774_v53  ;;  %v14371_v53 = vld [vmem:[#allocation33_spill] sm:$0xff] }
 0x454   :  { %v6592_v20 = vpop.permute.xlu1 %6591  ;;  %v6574_v8 = vpop.permute.xlu0 %6573 }
 0x455   :  { %v6782_v12 = vrot.slane %v6781_v30, 4  ;;  %v6704_v9 = vmul.f32 %v6574_v8, %v14368_v36  ;;  %v6777_v8 = vrot.slane %v6776_v52, 2  ;;  %v6707_v54 = vmul.f32 %v6592_v20, %v14371_v53 }
 0x456   :  { %v6758_v53 = vrot.slane %v6757_v21, 1 }
 0x457   :  { %v6788_v47 = vadd.f32 %v6704_v9, %v6703_v0  ;;  %v6783_v3 = vadd.f32 %v6782_v12, %v6781_v30  ;;  %v6770_v9 = vrot.slane %v6769_v1, 2  ;;  %v6737_v30 = vrot.slane %v6736_v2, 1 }
 0x458   :  { %v6603_v31 = vpop.permute.xlu1 %6602  ;;  %v6585_v48 = vpop.permute.xlu0 %6584  ;;  %v6778_v55 = vadd.f32 %v6777_v8, %v6776_v52 }
 0x459   :  { %v6789_v6 = vrot.slane %v6788_v47, 4  ;;  %v6706_v28 = vmul.f32 %v6585_v48, %v14370_v38  ;;  %v6784_v49 = vrot.slane %v6783_v3, 2  ;;  %v14374_v48 = vld [vmem:[#allocation35_spill] sm:$0xff]  ;;  %v6771_v37 = vadd.f32 %v6770_v9, %v6769_v1 }
 0x45a   :  { %v6709_v56 = vmul.f32 %v6603_v31, %v14374_v48  ;;  %v12809_v36 = vadd.f32 %v6737_v30, %v6736_v2  ;;  %v12817_v31 = vadd.f32 %v6765_v19, %v6764_v50  ;;  %v14382_v50 = vld [vmem:[#allocation38_spill] sm:$0xff] }
 0x45b   :  { %v6790_v43 = vadd.f32 %v6789_v6, %v6788_v47  ;;  %v6795_v11 = vadd.f32 %v6706_v28, %v6705_v40  ;;  %v12807_v6 = vadd.f32 %v6744_v32, %v6743_v35  ;;  %v6785_v28 = vadd.f32 %v6784_v49, %v6783_v3 }
 0x45c   :  { %v6614_v0 = vpop.permute.xlu1 %6613  ;;  %v6596_v23 = vpop.permute.xlu0 %6595  ;;  %14376 = vst [vmem:[#allocation51_spill] sm:$0xff] %v12809_v36  ;;  %14379 = vst [vmem:[#allocation53_spill] sm:$0xff] %v12817_v31  ;;  %v6779_v35 = vrot.slane %v6778_v55, 1  ;;  %v6772_v32 = vrot.slane %v6771_v37, 1  ;;  %v6905_v34 = vsel %vm371_vm0, %v12809_v36, %v12812_v63 }
 0x45d   :  { %v6791_v13 = vrot.slane %v6790_v43, 2  ;;  %v6796_v44 = vrot.slane %v6795_v11, 4  ;;  %v6708_v12 = vmul.f32 %v6596_v23, %v14372_v61  ;;  %14375 = vst [vmem:[#allocation50_spill] sm:$0xff] %v12807_v6  ;;  %v14377_v61 = vld [vmem:[#allocation36_spill] sm:$0xff]  ;;  %v6906_v8 = vsel %vm371_vm0, %v12804_v45, %v12807_v6 }
 0x45e   :  { %v6786_v49 = vrot.slane %v6785_v28, 1 }
 0x45f   :  { %v6792_v47 = vadd.f32 %v6791_v13, %v6790_v43  ;;  %v6797_v40 = vadd.f32 %v6796_v44, %v6795_v11  ;;  %v6802_v20 = vadd.f32 %v6708_v12, %v6707_v54  ;;  %v14380_v43 = vld [vmem:[#allocation37_spill] sm:$0xff]  ;;  %v12820_v54 = vadd.f32 %v6758_v53, %v6757_v21 }
 0x460   :  { %v6607_v57 = vpop.permute.xlu0 %6606  ;;  %v6625_v15 = vpop.permute.xlu1 %6624  ;;  %v6711_v11 = vmul.f32 %v6614_v0, %v14380_v43  ;;  %v6929_v12 = vsel %vm6925_vm9, %v6906_v8, -inf  ;;  %v12830_v53 = vadd.f32 %v6779_v35, %v6778_v55 }
 0x461   :  { %v6798_v51 = vrot.slane %v6797_v40, 2  ;;  %v6803_v23 = vrot.slane %v6802_v20, 4  ;;  %v6710_v52 = vmul.f32 %v6607_v57, %v14377_v61  ;;  %v6793_v2 = vrot.slane %v6792_v47, 1  ;;  %14381 = vst [vmem:[#allocation54_spill] sm:$0xff] %v12820_v54 }
 0x462   :  { %v6907_v0 = vsel %vm371_vm0, %v12817_v31, %v12820_v54  ;;  %14383 = vst [vmem:[#allocation12_spill] sm:$0xff] %v12830_v53 }
 0x463   :  { %v6804_v1 = vadd.f32 %v6803_v23, %v6802_v20  ;;  %v6809_v3 = vadd.f32 %v6710_v52, %v6709_v56  ;;  %v6799_v9 = vadd.f32 %v6798_v51, %v6797_v40  ;;  %v14384_v51 = vld [vmem:[#allocation39_spill] sm:$0xff]  ;;  %v12833_v20 = vadd.f32 %v6793_v2, %v6792_v47 }
 0x464   :  { %v6618_v57 = vpop.permute.xlu0 %6617  ;;  %v6713_v21 = vmul.f32 %v6625_v15, %v14384_v51  ;;  %v6636_v56 = vpop.permute.xlu1 %6635  ;;  %v12835_v23 = vadd.f32 %v6772_v32, %v6771_v37  ;;  %v6926_v15 = vsel %vm6925_vm9, %v6905_v34, -inf  ;;  %v14389_v37 = vld [vmem:[#allocation41_spill] sm:$0xff] }
 0x465   :  { %v6805_v30 = vrot.slane %v6804_v1, 2  ;;  %v6810_v13 = vrot.slane %v6809_v3, 4  ;;  %v6712_v44 = vmul.f32 %v6618_v57, %v14382_v50  ;;  %14385 = vst [vmem:[#allocation11_spill] sm:$0xff] %v12833_v20  ;;  %v12837_v57 = vadd.f32 %v6786_v49, %v6785_v28 }
 0x466   :  { %14386 = vst [vmem:[#allocation60_spill] sm:$0xff] %v12835_v23  ;;  %v6800_v8 = vrot.slane %v6799_v9, 1  ;;  %v6908_v47 = vsel %vm371_vm0, %v12830_v53, %v12835_v23 }
 0x467   :  { %v6806_v7 = vadd.f32 %v6805_v30, %v6804_v1  ;;  %v6811_v19 = vadd.f32 %v6810_v13, %v6809_v3  ;;  %v6816_v40 = vadd.f32 %v6712_v44, %v6711_v11  ;;  %14387 = vst [vmem:[#allocation61_spill] sm:$0xff] %v12837_v57  ;;  %v6932_v1 = vsel %vm6925_vm9, %v6907_v0, -inf  ;;  %v14391_v44 = vld [vmem:[#allocation42_spill] sm:$0xff] }
 0x468   :  { %v6629_v52 = vpop.permute.xlu0 %6628  ;;  %v6715_v3 = vmul.f32 %v6636_v56, %v14389_v37  ;;  %v6909_v28 = vsel %vm371_vm0, %v12833_v20, %v12837_v57  ;;  %v12852_v0 = vadd.f32 %v6800_v8, %v6799_v9  ;;  %v6935_v56 = vsel %vm6925_vm9, %v6908_v47, -inf  ;;  %v14393_v9 = vld [vmem:[#allocation44_spill] sm:$0xff] }
 0x469   :  { %6930 = vmax.xlane.f32.xlu0 %v6929_v12  ;;  %v6812_v43 = vrot.slane %v6811_v19, 2  ;;  %v6817_v50 = vrot.slane %v6816_v40, 4  ;;  %v6714_v55 = vmul.f32 %v6629_v52, %v14388_v17  ;;  %v6807_v35 = vrot.slane %v6806_v7, 1 }
 0x46a   :  { %14392 = vst [vmem:[#allocation63_spill] sm:$0xff] %v12852_v0 }
 0x46b   :  { %v6818_v11 = vadd.f32 %v6817_v50, %v6816_v40  ;;  %v6823_v2 = vadd.f32 %v6714_v55, %v6713_v21  ;;  %v12849_v32 = vadd.f32 %v6807_v35, %v6806_v7  ;;  %v6813_v49 = vadd.f32 %v6812_v43, %v6811_v19 }
 0x46c   :  { %v6640_v30 = vpop.permute.xlu0 %6639  ;;  %v6938_v50 = vsel %vm6925_vm9, %v6909_v28, -inf }
 0x46d   :  { %14390 = vst [vmem:[#allocation62_spill] sm:$0xff] %v12849_v32  ;;  %6933 = vmax.xlane.f32.xlu0 %v6932_v1  ;;  %v6819_v34 = vrot.slane %v6818_v11, 2  ;;  %v6824_v13 = vrot.slane %v6823_v2, 4  ;;  %v6716_v12 = vmul.f32 %v6640_v30, %v14391_v44  ;;  %v6910_v43 = vsel %vm371_vm0, %v12849_v32, %v12852_v0 }
 0x46e   :  { %6927 = vmax.xlane.f32.xlu1 %v6926_v15  ;;  %v6814_v19 = vrot.slane %v6813_v49, 1  ;;  %v14394_v15 = vld [vmem:[#allocation43_spill] sm:$0xff]  ;;  %v6941_v47 = vsel %vm6925_vm9, %v6910_v43, -inf }
 0x46f   :  { %v6820_v40 = vadd.f32 %v6819_v34, %v6818_v11  ;;  %v6825_v52 = vadd.f32 %v6824_v13, %v6823_v2  ;;  %v6830_v37 = vadd.f32 %v6716_v12, %v6715_v3  ;;  %v6647_v7 = vpop.permute.xlu1 %6646 }
 0x470   :  { %v6651_v21 = vpop.permute.xlu0 %6650  ;;  %v6717_v1 = vmul.f32 %v6647_v7, %v14394_v15  ;;  %v12862_v13 = vadd.f32 %v6814_v19, %v6813_v49 }
 0x471   :  { %6936 = vmax.xlane.f32.xlu0 %v6935_v56  ;;  %v6826_v55 = vrot.slane %v6825_v52, 2  ;;  %v6831_v35 = vrot.slane %v6830_v37, 4  ;;  %v6718_v8 = vmul.f32 %v6651_v21, %v14393_v9  ;;  %v6821_v11 = vrot.slane %v6820_v40, 1 }
 0x472   :  { %6939 = vmax.xlane.f32.xlu1 %v6938_v50  ;;  %14395 = vst [vmem:[#allocation64_spill] sm:$0xff] %v12862_v13 }
 0x473   :  { %v6827_v28 = vadd.f32 %v6826_v55, %v6825_v52  ;;  %v6832_v3 = vadd.f32 %v6831_v35, %v6830_v37  ;;  %v6837_v2 = vadd.f32 %v6718_v8, %v6717_v1  ;;  %v6658_v34 = vpop.permute.xlu1 %6657  ;;  %v12864_v12 = vadd.f32 %v6821_v11, %v6820_v40 }
 0x474   :  { %v6662_v30 = vpop.permute.xlu0 %6661  ;;  %v6719_v7 = vmul.f32 %v6658_v34, %v14398_v14 }
 0x475   :  { %14396 = vst [vmem:[#allocation65_spill] sm:$0xff] %v12864_v12  ;;  %v6833_v56 = vrot.slane %v6832_v3, 2  ;;  %6942 = vmax.xlane.f32.xlu0 %v6941_v47  ;;  %v6838_v44 = vrot.slane %v6837_v2, 4  ;;  %v6720_v21 = vmul.f32 %v6662_v30, %v14397_v42  ;;  %v6911_v50 = vsel %vm371_vm0, %v12864_v12, %v12862_v13 }
 0x476   :  { %v6828_v52 = vrot.slane %v6827_v28, 1  ;;  %v6944_v49 = vsel %vm6925_vm9, %v6911_v50, -inf }
 0x477   :  { %v6834_v37 = vadd.f32 %v6833_v56, %v6832_v3  ;;  %v6839_v43 = vadd.f32 %v6838_v44, %v6837_v2  ;;  %v6844_v55 = vadd.f32 %v6720_v21, %v6719_v7  ;;  %6945 = vmax.xlane.f32.xlu1 %v6944_v49 }
 0x478   :  { %v12872_v47 = vadd.f32 %v6828_v52, %v6827_v28 }
 0x479   :  { %v6840_v40 = vrot.slane %v6839_v43, 2  ;;  %v6845_v19 = vrot.slane %v6844_v55, 4  ;;  %v6835_v35 = vrot.slane %v6834_v37, 1 }
 0x47a   :  { %14399 = vst [vmem:[#allocation66_spill] sm:$0xff] %v12872_v47 }
 0x47b   :  { %v6841_v8 = vadd.f32 %v6840_v40, %v6839_v43  ;;  %v6846_v1 = vadd.f32 %v6845_v19, %v6844_v55  ;;  %v12874_v11 = vadd.f32 %v6835_v35, %v6834_v37  ;;  %v14403_v55 = vld [vmem:[#allocation47_spill] sm:$0xff] }
 0x47d   :  { %14400 = vst [vmem:[#allocation67_spill] sm:$0xff] %v12874_v11  ;;  %v6847_v30 = vrot.slane %v6846_v1, 2  ;;  %v6912_v34 = vsel %vm371_vm0, %v12874_v11, %v12872_v47  ;;  %v6842_v2 = vrot.slane %v6841_v8, 1 }
 0x47e   :  { %v6947_v44 = vsel %vm6925_vm9, %v6912_v34, -inf }
 0x47f   :  { %v6848_v3 = vadd.f32 %v6847_v30, %v6846_v1  ;;  %6948 = vmax.xlane.f32.xlu0 %v6947_v44  ;;  %v12880_v21 = vadd.f32 %v6842_v2, %v6841_v8 }
 0x481   :  { %v6849_v56 = vrot.slane %v6848_v3, 1  ;;  %14401 = vst [vmem:[#allocation68_spill] sm:$0xff] %v12880_v21 }
 0x483   :  { %v12882_v7 = vadd.f32 %v6849_v56, %v6848_v3 }
 0x485   :  { %14402 = vst [vmem:[#allocation69_spill] sm:$0xff] %v12882_v7  ;;  %v6913_v28 = vsel %vm371_vm0, %v12882_v7, %v12880_v21 }
 0x486   :  { %v6950_v50 = vsel %vm6925_vm9, %v6913_v28, -inf }
 0x487   :  { %6951 = vmax.xlane.f32.xlu1 %v6950_v50 }
 0x4b8   :  { %v6673_v52 = vpop.permute.xlu0 %6672  ;;  %v6669_v37 = vpop.permute.xlu1 %6668 }
 0x4b9   :  { %v6722_v43 = vmul.f32 %v6673_v52, %v12413_v29  ;;  %v6721_v49 = vmul.f32 %v6669_v37, %v14403_v55 }
 0x4bb   :  { %v6851_v40 = vadd.f32 %v6722_v43, %v6721_v49 }
 0x4bc   :  { %v6684_v19 = vpop.permute.xlu0 %6683  ;;  %v6680_v35 = vpop.permute.xlu1 %6679 }
 0x4bd   :  { %v6852_v8 = vrot.slane %v6851_v40, 4  ;;  %v6724_v1 = vmul.f32 %v6684_v19, %v12466_v5  ;;  %v6723_v30 = vmul.f32 %v6680_v35, %v12452_v60 }
 0x4bf   :  { %v6853_v34 = vadd.f32 %v6852_v8, %v6851_v40  ;;  %v6858_v44 = vadd.f32 %v6724_v1, %v6723_v30 }
 0x4c1   :  { %v6854_v3 = vrot.slane %v6853_v34, 2  ;;  %v6859_v2 = vrot.slane %v6858_v44, 4 }
 0x4c3   :  { %v6855_v56 = vadd.f32 %v6854_v3, %v6853_v34  ;;  %v6860_v28 = vadd.f32 %v6859_v2, %v6858_v44 }
 0x4c5   :  { %v6861_v50 = vrot.slane %v6860_v28, 2  ;;  %v6856_v42 = vrot.slane %v6855_v56, 1 }
 0x4c7   :  { %v6862_v14 = vadd.f32 %v6861_v50, %v6860_v28  ;;  %v12892_v46 = vadd.f32 %v6856_v42, %v6855_v56 }
 0x4c9   :  { %v6863_v52 = vrot.slane %v6862_v14, 1  ;;  %14404 = vst [vmem:[#allocation70_spill] sm:$0xff] %v12892_v46 }
 0x4cb   :  { %v12894_v37 = vadd.f32 %v6863_v52, %v6862_v14 }
 0x4cd   :  { %14405 = vst [vmem:[#allocation71_spill] sm:$0xff] %v12894_v37  ;;  %v6914_v43 = vsel %vm371_vm0, %v12894_v37, %v12892_v46 }
 0x4ce   :  { %v6953_v49 = vsel %vm6925_vm9, %v6914_v43, -inf }
 0x4cf   :  { %6954 = vmax.xlane.f32.xlu0 %v6953_v49 }
 0x4f6   :  { %v6931_v40 = vpop.xlane.xlu0 %6930 }
 0x4f7   :  { %v6967_v19 = vrot.slane %v6931_v40, 1  ;;  %v6998_v35 = vsub.f32 %v12807_v6, %v6931_v40 }
 0x4f9   :  { %v6999_v8 = vsub.f32 %v12804_v45, %v6967_v19  ;;  %v7020_v1 = vmul.f32 1.442695, %v6998_v35 }
 0x4fa   :  { %v6934_v30 = vpop.xlane.xlu0 %6933 }
 0x4fb   :  { %v6928_v34 = vpop.xlane.xlu1 %6927  ;;  %v7022_v42 = vmul.f32 1.442695, %v6999_v8  ;;  %v6968_v44 = vrot.slane %v6934_v30, 1  ;;  %v7000_v14 = vsub.f32 %v12820_v54, %v6934_v30 }
 0x4fc   :  { %v6966_v3 = vrot.slane %v6928_v34, 1  ;;  %v6996_v2 = vsub.f32 %v12812_v63, %v6928_v34 }
 0x4fd   :  { %9660 = vpow2.f32 %v7022_v42  ;;  %v7001_v56 = vsub.f32 %v12817_v31, %v6968_v44  ;;  %v7024_v28 = vmul.f32 1.442695, %v7000_v14 }
 0x4fe   :  { %v6997_v50 = vsub.f32 %v12809_v36, %v6966_v3  ;;  %9662 = vpow2.f32 %v7020_v1  ;;  %v6937_v52 = vpop.xlane.xlu0 %6936  ;;  %v7016_v43 = vmul.f32 1.442695, %v6996_v2 }
 0x4ff   :  { %v7026_v49 = vmul.f32 1.442695, %v7001_v56  ;;  %v6969_v40 = vrot.slane %v6937_v52, 1  ;;  %v7002_v19 = vsub.f32 %v12835_v23, %v6937_v52  ;;  %v6940_v35 = vpop.xlane.xlu1 %6939  ;;  %9664 = vpow2.f32 %v7024_v28 }
 0x500   :  { %v7018_v8 = vmul.f32 1.442695, %v6997_v50  ;;  %v6970_v30 = vrot.slane %v6940_v35, 1  ;;  %v7004_v54 = vsub.f32 %v12837_v57, %v6940_v35 }
 0x501   :  { %9666 = vpow2.f32 %v7026_v49  ;;  %v7003_v34 = vsub.f32 %v12830_v53, %v6969_v40  ;;  %v7028_v1 = vmul.f32 1.442695, %v7002_v19 }
 0x502   :  { %9668 = vpow2.f32 %v7018_v8  ;;  %v7005_v42 = vsub.f32 %v12833_v20, %v6970_v30  ;;  %v6943_v44 = vpop.xlane.xlu0 %6942  ;;  %v7032_v56 = vmul.f32 1.442695, %v7004_v54 }
 0x503   :  { %v7030_v14 = vmul.f32 1.442695, %v7003_v34  ;;  %v6971_v3 = vrot.slane %v6943_v44, 1  ;;  %v7006_v2 = vsub.f32 %v12852_v0, %v6943_v44  ;;  %9670 = vpow2.f32 %v7016_v43 }
 0x504   :  { %v7034_v52 = vmul.f32 1.442695, %v7005_v42  ;;  %v6946_v50 = vpop.xlane.xlu1 %6945 }
 0x505   :  { %9672 = vpow2.f32 %v7030_v14  ;;  %v7007_v28 = vsub.f32 %v12849_v32, %v6971_v3  ;;  %v6972_v49 = vrot.slane %v6946_v50, 1  ;;  %v7008_v40 = vsub.f32 %v12862_v13, %v6946_v50 }
 0x506   :  { %9674 = vpow2.f32 %v7034_v52  ;;  %v7036_v8 = vmul.f32 1.442695, %v7006_v2 }
 0x507   :  { %v12913_v35 = vpop.eup %9660  ;;  %9676 = vpow2.f32 %v7028_v1  ;;  %v7038_v19 = vmul.f32 1.442695, %v7007_v28  ;;  %v7009_v54 = vsub.f32 %v12864_v12, %v6972_v49  ;;  %v7040_v44 = vmul.f32 1.442695, %v7008_v40 }
 0x508   :  { %v12915_v30 = vpop.eup %9662  ;;  %v7078_v34 = vrot.slane %v12913_v35, 7  ;;  %9678 = vpow2.f32 %v7032_v56 }
 0x509   :  { %9680 = vpow2.f32 %v7038_v19  ;;  %v12919_v43 = vpop.eup %9664  ;;  %v7042_v14 = vmul.f32 1.442695, %v7009_v54 }
 0x50a   :  { %v7079_v42 = vsel %vm371_vm0, %v7078_v34, %v12915_v30  ;;  %9682 = vpow2.f32 %v7036_v8 }
 0x50b   :  { %v12923_v3 = vpop.eup %9666  ;;  %v7109_v1 = vsel %vm6925_vm9, %v7079_v42, 0.0  ;;  %9684 = vpow2.f32 %v7042_v14 }
 0x50c   :  { %v12926_v2 = vpop.eup %9668  ;;  %7110 = vadd.xlane.f32.xlu0 %v7109_v1  ;;  %v7080_v56 = vrot.slane %v12923_v3, 7  ;;  %v6949_v52 = vpop.xlane.xlu0 %6948  ;;  %9686 = vpow2.f32 %v7040_v44 }
 0x50d   :  { %v7076_v28 = vrot.slane %v12926_v2, 7  ;;  %v6973_v50 = vrot.slane %v6949_v52, 1  ;;  %v7010_v49 = vsub.f32 %v12872_v47, %v6949_v52  ;;  %v12931_v19 = vpop.eup %9670 }
 0x50e   :  { %v7081_v34 = vsel %vm371_vm0, %v7080_v56, %v12919_v43 }
 0x50f   :  { %v12933_v40 = vpop.eup %9672  ;;  %v7077_v8 = vsel %vm371_vm0, %v7076_v28, %v12931_v19  ;;  %v7011_v54 = vsub.f32 %v12874_v11, %v6973_v50  ;;  %v7044_v47 = vmul.f32 1.442695, %v7010_v49  ;;  %v7112_v28 = vsel %vm6925_vm9, %v7081_v34, 0.0 }
 0x510   :  { %v12940_v42 = vpop.eup %9674  ;;  %v7106_v14 = vsel %vm6925_vm9, %v7077_v8, 0.0  ;;  %v7082_v1 = vrot.slane %v12933_v40, 7 }
 0x511   :  { %v12944_v52 = vpop.eup %9676  ;;  %7107 = vadd.xlane.f32.xlu1 %v7106_v14  ;;  %v7084_v44 = vrot.slane %v12940_v42, 7  ;;  %v7046_v12 = vmul.f32 1.442695, %v7011_v54 }
 0x512   :  { %v12947_v13 = vpop.eup %9678  ;;  %v7083_v56 = vsel %vm371_vm0, %v7082_v1, %v12944_v52 }
 0x513   :  { %v12952_v50 = vpop.eup %9680  ;;  %v7115_v8 = vsel %vm6925_vm9, %v7083_v56, 0.0  ;;  %v7085_v11 = vsel %vm371_vm0, %v7084_v44, %v12947_v13  ;;  %9688 = vpow2.f32 %v7046_v12 }
 0x514   :  { %7116 = vadd.xlane.f32.xlu0 %v7115_v8  ;;  %v7086_v14 = vrot.slane %v12952_v50, 7  ;;  %v6952_v49 = vpop.xlane.xlu1 %6951  ;;  %v12958_v54 = vpop.eup %9682  ;;  %9690 = vpow2.f32 %v7044_v47  ;;  %v7118_v0 = vsel %vm6925_vm9, %v7085_v11, 0.0 }
 0x515   :  { %7113 = vadd.xlane.f32.xlu1 %v7112_v28  ;;  %v6974_v34 = vrot.slane %v6952_v49, 1  ;;  %v7012_v32 = vsub.f32 %v12880_v21, %v6952_v49  ;;  %v12961_v1 = vpop.eup %9684 }
 0x516   :  { %v7087_v56 = vsel %vm371_vm0, %v7086_v14, %v12958_v54  ;;  %v7088_v8 = vrot.slane %v12961_v1, 7  ;;  %v12969_v20 = vpop.eup %9686 }
 0x517   :  { %v7121_v12 = vsel %vm6925_vm9, %v7087_v56, 0.0  ;;  %v7013_v44 = vsub.f32 %v12882_v7, %v6974_v34  ;;  %v7048_v47 = vmul.f32 1.442695, %v7012_v32 }
 0x518   :  { %7122 = vadd.xlane.f32.xlu0 %v7121_v12  ;;  %v7089_v49 = vsel %vm371_vm0, %v7088_v8, %v12969_v20 }
 0x519   :  { %7119 = vadd.xlane.f32.xlu1 %v7118_v0  ;;  %v7050_v28 = vmul.f32 1.442695, %v7013_v44  ;;  %v7124_v11 = vsel %vm6925_vm9, %v7089_v49, 0.0 }
 0x51b   :  { %9692 = vpow2.f32 %v7050_v28 }
 0x51c   :  { %9694 = vpow2.f32 %v7048_v47 }
 0x51d   :  { %v12974_v21 = vpop.eup %9688  ;;  %7125 = vadd.xlane.f32.xlu1 %v7124_v11 }
 0x51e   :  { %v7090_v14 = vrot.slane %v12974_v21, 7  ;;  %v12977_v34 = vpop.eup %9690 }
 0x520   :  { %v7091_v56 = vsel %vm371_vm0, %v7090_v14, %v12977_v34 }
 0x521   :  { %v7127_v32 = vsel %vm6925_vm9, %v7091_v56, 0.0 }
 0x522   :  { %7128 = vadd.xlane.f32.xlu0 %v7127_v32 }
 0x525   :  { %v12982_v0 = vpop.eup %9692 }
 0x526   :  { %v7092_v12 = vrot.slane %v12982_v0, 7  ;;  %v12985_v44 = vpop.eup %9694 }
 0x528   :  { %v7093_v8 = vsel %vm371_vm0, %v7092_v12, %v12985_v44 }
 0x529   :  { %v7130_v47 = vsel %vm6925_vm9, %v7093_v8, 0.0 }
 0x52a   :  { %7131 = vadd.xlane.f32.xlu1 %v7130_v47 }
 0x55c   :  { %v6955_v28 = vpop.xlane.xlu0 %6954 }
 0x55d   :  { %v6975_v49 = vrot.slane %v6955_v28, 1  ;;  %v7014_v11 = vsub.f32 %v12892_v46, %v6955_v28 }
 0x55f   :  { %v7015_v14 = vsub.f32 %v12894_v37, %v6975_v49  ;;  %v7052_v56 = vmul.f32 1.442695, %v7014_v11 }
 0x561   :  { %v7054_v32 = vmul.f32 1.442695, %v7015_v14 }
 0x563   :  { %9696 = vpow2.f32 %v7054_v32 }
 0x564   :  { %9698 = vpow2.f32 %v7052_v56 }
 0x56d   :  { %v12992_v7 = vpop.eup %9696 }
 0x56e   :  { %v7094_v57 = vrot.slane %v12992_v7, 7  ;;  %v12995_v53 = vpop.eup %9698 }
 0x570   :  { %v7095_v12 = vsel %vm371_vm0, %v7094_v57, %v12995_v53 }
 0x571   :  { %v7133_v8 = vsel %vm6925_vm9, %v7095_v12, 0.0 }
 0x572   :  { %7134 = vadd.xlane.f32.xlu0 %v7133_v8 }
 0x599   :  { %v7111_v47 = vpop.xlane.xlu0 %7110 }
 0x59a   :  { %9700 = vrcp.f32 %v7111_v47 }
 0x59e   :  { %v7108_v28 = vpop.xlane.xlu1 %7107 }
 0x59f   :  { %9702 = vrcp.f32 %v7108_v28 }
 0x5a1   :  { %v7117_v49 = vpop.xlane.xlu0 %7116 }
 0x5a2   :  { %v7114_v11 = vpop.xlane.xlu1 %7113  ;;  %9704 = vrcp.f32 %v7117_v49 }
 0x5a3   :  { %9706 = vrcp.f32 %v7114_v11 }
 0x5a4   :  { %v13000_v14 = vpop.eup %9700 }
 0x5a5   :  { %v7188_v32 = vmul.f32 %v13000_v14, %v12915_v30  ;;  %v7123_v37 = vpop.xlane.xlu0 %7122 }
 0x5a6   :  { %v7120_v56 = vpop.xlane.xlu1 %7119 }
 0x5a7   :  { %9708 = vrcp.f32 %v7120_v56  ;;  %v7217_v49 = vrot.slane %v7188_v32, %v12664_v58 }
 0x5a8   :  { %9710 = vrcp.f32 %v7123_v37 }
 0x5a9   :  { %v13004_v57 = vpop.eup %9702 }
 0x5aa   :  { %v7186_v12 = vmul.f32 %v13004_v57, %v12931_v19  ;;  %v7126_v8 = vpop.xlane.xlu1 %7125  ;;  %v7291_v19 = vmul.f32 %v7217_v49, %v14355_v26 }
 0x5ab   :  { %9712 = vrcp.f32 %v7126_v8 }
 0x5ac   :  { %v13008_v47 = vpop.eup %9704  ;;  %v7209_v28 = vrot.slane %v7186_v12, %v12664_v58  ;;  %v7290_v12 = vmul.f32 %v7217_v49, %v14350_v41 }
 0x5ad   :  { %v13012_v11 = vpop.eup %9706  ;;  %v7192_v37 = vmul.f32 %v13008_v47, %v12944_v52 }
 0x5ae   :  { %v7286_v56 = vmul.f32 %v7209_v28, %v14352_v24  ;;  %v7287_v30 = vmul.f32 %v7209_v28, %v14353_v22  ;;  %v7190_v46 = vmul.f32 %v13012_v11, %v12919_v43 }
 0x5af   :  { %v7129_v23 = vpop.xlane.xlu0 %7128  ;;  %v7233_v28 = vrot.slane %v7192_v37, %v12664_v58 }
 0x5b0   :  { %7326 = vadd.xlane.f32.xlu1 %v7286_v56  ;;  %7328 = vadd.xlane.f32.xlu0 %v7287_v30  ;;  %v7225_v32 = vrot.slane %v7190_v46, %v12664_v58  ;;  %9714 = vrcp.f32 %v7129_v23 }
 0x5b1   :  { %v13023_v31 = vpop.eup %9708  ;;  %v7299_v49 = vmul.f32 %v7233_v28, %v14364_v25  ;;  %v7298_v23 = vmul.f32 %v7233_v28, %v14362_v10 }
 0x5b2   :  { %v7295_v43 = vmul.f32 %v7225_v32, %v14360_v27  ;;  %v7294_v52 = vmul.f32 %v7225_v32, %v14358_v62  ;;  %v7194_v8 = vmul.f32 %v13023_v31, %v12947_v13  ;;  %v13030_v56 = vpop.eup %9710 }
 0x5b4   :  { %7336 = vadd.xlane.f32.xlu0 %v7291_v19  ;;  %7334 = vadd.xlane.f32.xlu1 %v7290_v12  ;;  %v7241_v37 = vrot.slane %v7194_v8, %v12664_v58  ;;  %v7196_v19 = vmul.f32 %v13030_v56, %v12958_v54 }
 0x5b5   :  { %v13033_v30 = vpop.eup %9712 }
 0x5b6   :  { %v7198_v13 = vmul.f32 %v13033_v30, %v12969_v20  ;;  %v7303_v12 = vmul.f32 %v7241_v37, %v14366_v16  ;;  %v7302_v32 = vmul.f32 %v7241_v37, %v14365_v33 }
 0x5b7   :  { %v7132_v46 = vpop.xlane.xlu1 %7131 }
 0x5b8   :  { %7344 = vadd.xlane.f32.xlu0 %v7295_v43  ;;  %7342 = vadd.xlane.f32.xlu1 %v7294_v52  ;;  %9716 = vrcp.f32 %v7132_v46  ;;  %v7249_v43 = vrot.slane %v7196_v19, %v12664_v58  ;;  %v7257_v28 = vrot.slane %v7198_v13, %v12664_v58 }
 0x5ba   :  { %v13044_v52 = vpop.eup %9714  ;;  %v7307_v54 = vmul.f32 %v7249_v43, %v14370_v38  ;;  %v7306_v8 = vmul.f32 %v7249_v43, %v14369_v4  ;;  %v7311_v46 = vmul.f32 %v7257_v28, %v14377_v61 }
 0x5bb   :  { %v7200_v20 = vmul.f32 %v13044_v52, %v12977_v34 }
 0x5bc   :  { %7352 = vadd.xlane.f32.xlu0 %v7299_v49  ;;  %7350 = vadd.xlane.f32.xlu1 %v7298_v23  ;;  %v7310_v23 = vmul.f32 %v7257_v28, %v14374_v48 }
 0x5bd   :  { %v7265_v37 = vrot.slane %v7200_v20, %v12664_v58 }
 0x5bf   :  { %v7315_v13 = vmul.f32 %v7265_v37, %v14388_v17 }
 0x5c0   :  { %7360 = vadd.xlane.f32.xlu0 %v7303_v12  ;;  %7358 = vadd.xlane.f32.xlu1 %v7302_v32  ;;  %v7314_v12 = vmul.f32 %v7265_v37, %v14384_v51 }
 0x5c2   :  { %v13051_v49 = vpop.eup %9716 }
 0x5c3   :  { %v7202_v19 = vmul.f32 %v13051_v49, %v12985_v44  ;;  %v7156_v44 = vrot.slane %v13004_v57, 1  ;;  %v7158_v57 = vrot.slane %v13012_v11, 1 }
 0x5c4   :  { %7368 = vadd.xlane.f32.xlu0 %v7307_v54  ;;  %7366 = vadd.xlane.f32.xlu1 %v7306_v8  ;;  %v7157_v8 = vrot.slane %v13000_v14, 1  ;;  %v7159_v14 = vrot.slane %v13008_v47, 1  ;;  %v7160_v47 = vrot.slane %v13023_v31, 1 }
 0x5c5   :  { %v7273_v34 = vrot.slane %v7202_v19, %v12664_v58 }
 0x5c6   :  { %v7189_v37 = vmul.f32 %v12913_v35, %v7157_v8  ;;  %v7191_v35 = vmul.f32 %v12923_v3, %v7158_v57  ;;  %v14410_v57 = vld [vmem:[#allocation25_spill] sm:$0xff] }
 0x5c7   :  { %v7319_v32 = vmul.f32 %v7273_v34, %v14393_v9  ;;  %v7318_v43 = vmul.f32 %v7273_v34, %v14394_v15  ;;  %v14422_v9 = vld [vmem:[#allocation57_spill] sm:$0xff] }
 0x5c8   :  { %7376 = vadd.xlane.f32.xlu0 %v7311_v46  ;;  %7374 = vadd.xlane.f32.xlu1 %v7310_v23  ;;  %v7187_v46 = vmul.f32 %v12926_v2, %v7156_v44  ;;  %v7221_v34 = vrot.slane %v7189_v37, %v12664_v58  ;;  %v7229_v44 = vrot.slane %v7191_v35, %v12664_v58  ;;  %v14412_v35 = vld [vmem:[#allocation29_spill] sm:$0xff] }
 0x5c9   :  { %v7195_v37 = vmul.f32 %v12940_v42, %v7160_v47  ;;  %v14414_v47 = vld [vmem:[#allocation33_spill] sm:$0xff] }
 0x5cc   :  { %7384 = vadd.xlane.f32.xlu0 %v7315_v13  ;;  %7382 = vadd.xlane.f32.xlu1 %v7314_v12  ;;  %v7213_v12 = vrot.slane %v7187_v46, %v12664_v58 }
 0x5ce   :  { %v7288_v2 = vmul.f32 %v7213_v12, %v14357_v59 }
 0x5d0   :  { %7392 = vadd.xlane.f32.xlu0 %v7319_v32  ;;  %7390 = vadd.xlane.f32.xlu1 %v7318_v43  ;;  %v7193_v32 = vmul.f32 %v12933_v40, %v7159_v14  ;;  %v7293_v43 = vmul.f32 %v7221_v34, %v14351_v18  ;;  %v7161_v40 = vrot.slane %v13030_v56, 1  ;;  %v7245_v14 = vrot.slane %v7195_v37, %v12664_v58  ;;  %v14416_v37 = vld [vmem:[#allocation37_spill] sm:$0xff] }
 0x5d2   :  { %v7237_v8 = vrot.slane %v7193_v32, %v12664_v58  ;;  %v7304_v56 = vmul.f32 %v7245_v14, %v14412_v35 }
 0x5d4   :  { %v7300_v31 = vmul.f32 %v7237_v8, %v14410_v57 }
 0x5ff   :  { %v7135_v28 = vpop.xlane.xlu0 %7134 }
 0x600   :  { %9718 = vrcp.f32 %v7135_v28  ;;  %v14406_v28 = vld [vmem:[#allocation17_spill] sm:$0xff] }
 0x601   :  { %v7292_v11 = vmul.f32 %v7221_v34, %v14406_v28  ;;  %v14411_v34 = vld [vmem:[#allocation30_spill] sm:$0xff] }
 0x602   :  { %v7305_v42 = vmul.f32 %v7245_v14, %v14411_v34 }
 0x60a   :  { %v13064_v54 = vpop.eup %9718 }
 0x60b   :  { %v7204_v20 = vmul.f32 %v13064_v54, %v12995_v53  ;;  %v7289_v53 = vmul.f32 %v7213_v12, %v14354_v39 }
 0x60d   :  { %v7281_v23 = vrot.slane %v7204_v20, %v12664_v58  ;;  %v14407_v20 = vld [vmem:[#allocation22_spill] sm:$0xff] }
 0x60e   :  { %v7297_v46 = vmul.f32 %v7229_v44, %v14407_v20 }
 0x60f   :  { %v7323_v19 = vmul.f32 %v7281_v23, %v12413_v29  ;;  %v7322_v13 = vmul.f32 %v7281_v23, %v14403_v55  ;;  %v14408_v23 = vld [vmem:[#allocation21_spill] sm:$0xff]  ;;  %v14421_v29 = vld [vmem:[#allocation56_spill] sm:$0xff] }
 0x610   :  { %v7296_v3 = vmul.f32 %v7229_v44, %v14408_v23 }
 0x611   :  { %7400 = vadd.xlane.f32.xlu0 %v7323_v19  ;;  %7398 = vadd.xlane.f32.xlu1 %v7322_v13  ;;  %v7162_v19 = vrot.slane %v13033_v30, 1  ;;  %v14409_v13 = vld [vmem:[#allocation26_spill] sm:$0xff]  ;;  %v7163_v30 = vrot.slane %v13044_v52, 1 }
 0x612   :  { %v7301_v12 = vmul.f32 %v7237_v8, %v14409_v13 }
 0x613   :  { %v7201_v8 = vmul.f32 %v12974_v21, %v7163_v30 }
 0x615   :  { %7332 = vadd.xlane.f32.xlu0 %v7289_v53  ;;  %7330 = vadd.xlane.f32.xlu1 %v7288_v2  ;;  %v7197_v53 = vmul.f32 %v12952_v50, %v7161_v40  ;;  %v7199_v2 = vmul.f32 %v12961_v1, %v7162_v19  ;;  %v7164_v1 = vrot.slane %v13051_v49, 1  ;;  %v7269_v52 = vrot.slane %v7201_v8, %v12664_v58 }
 0x617   :  { %v7253_v32 = vrot.slane %v7197_v53, %v12664_v58  ;;  %v7203_v19 = vmul.f32 %v12982_v0, %v7164_v1  ;;  %v14418_v53 = vld [vmem:[#allocation41_spill] sm:$0xff] }
 0x618   :  { %v7316_v21 = vmul.f32 %v7269_v52, %v14418_v53 }
 0x619   :  { %7340 = vadd.xlane.f32.xlu0 %v7293_v43  ;;  %7338 = vadd.xlane.f32.xlu1 %v7292_v11  ;;  %v7261_v43 = vrot.slane %v7199_v2, %v12664_v58  ;;  %v14413_v11 = vld [vmem:[#allocation34_spill] sm:$0xff]  ;;  %v7308_v50 = vmul.f32 %v7253_v32, %v14414_v47  ;;  %v7277_v49 = vrot.slane %v7203_v19, %v12664_v58 }
 0x61a   :  { %v7309_v44 = vmul.f32 %v7253_v32, %v14413_v11  ;;  %v14420_v32 = vld [vmem:[#allocation45_spill] sm:$0xff] }
 0x61b   :  { %v7312_v40 = vmul.f32 %v7261_v43, %v14416_v37  ;;  %v7320_v30 = vmul.f32 %v7277_v49, %v14420_v32 }
 0x61d   :  { %7348 = vadd.xlane.f32.xlu0 %v7297_v46  ;;  %7346 = vadd.xlane.f32.xlu1 %v7296_v3  ;;  %v14415_v46 = vld [vmem:[#allocation38_spill] sm:$0xff] }
 0x61e   :  { %v7313_v3 = vmul.f32 %v7261_v43, %v14415_v46 }
 0x621   :  { %7356 = vadd.xlane.f32.xlu0 %v7301_v12  ;;  %7354 = vadd.xlane.f32.xlu1 %v7300_v31  ;;  %v7165_v12 = vrot.slane %v13064_v54, 1  ;;  %v14417_v31 = vld [vmem:[#allocation42_spill] sm:$0xff] }
 0x622   :  { %v7317_v14 = vmul.f32 %v7269_v52, %v14417_v31 }
 0x623   :  { %v7205_v2 = vmul.f32 %v12992_v7, %v7165_v12 }
 0x625   :  { %7364 = vadd.xlane.f32.xlu0 %v7305_v42  ;;  %7362 = vadd.xlane.f32.xlu1 %v7304_v56  ;;  %v14419_v42 = vld [vmem:[#allocation46_spill] sm:$0xff]  ;;  %v7285_v0 = vrot.slane %v7205_v2, %v12664_v58 }
 0x626   :  { %v7321_v56 = vmul.f32 %v7277_v49, %v14419_v42 }
 0x627   :  { %v7325_v54 = vmul.f32 %v7285_v0, %v12466_v5  ;;  %v7324_v43 = vmul.f32 %v7285_v0, %v12452_v60 }
 0x629   :  { %7372 = vadd.xlane.f32.xlu0 %v7309_v44  ;;  %7370 = vadd.xlane.f32.xlu1 %v7308_v50 }
 0x62d   :  { %7380 = vadd.xlane.f32.xlu0 %v7313_v3  ;;  %7378 = vadd.xlane.f32.xlu1 %v7312_v40 }
 0x631   :  { %7388 = vadd.xlane.f32.xlu0 %v7317_v14  ;;  %7386 = vadd.xlane.f32.xlu1 %v7316_v21 }
 0x635   :  { %7396 = vadd.xlane.f32.xlu0 %v7321_v56  ;;  %7394 = vadd.xlane.f32.xlu1 %v7320_v30 }
 0x639   :  { %7404 = vadd.xlane.f32.xlu0 %v7325_v54  ;;  %7402 = vadd.xlane.f32.xlu1 %v7324_v43 }
 0x63d   :  { %v13120_v44 = vpop.xlane.xlu1 %7326  ;;  %v13122_v50 = vpop.xlane.xlu0 %7328 }
 0x63e   :  { %v7406_v43 = vmul.f32 %v13120_v44, %v13120_v44  ;;  %v7407_v55 = vmul.f32 %v13122_v50, %v13122_v50 }
 0x640   :  { %v7489_v32 = vrot.slane %v7406_v43, %v14421_v29  ;;  %v7493_v53 = vrot.slane %v7407_v55, %v14422_v9 }
 0x641   :  { %v13124_v7 = vpop.xlane.xlu1 %7334  ;;  %v13126_v8 = vpop.xlane.xlu0 %7336 }
 0x642   :  { %v7410_v31 = vmul.f32 %v13124_v7, %v13124_v7  ;;  %v7411_v37 = vmul.f32 %v13126_v8, %v13126_v8  ;;  %v7494_v4 = vsel %vm5941_vm7, %v7493_v53, %v7489_v32 }
 0x644   :  { %v7507_v55 = vrot.slane %v7410_v31, %v14421_v29  ;;  %v7511_v38 = vrot.slane %v7411_v37, %v14422_v9 }
 0x645   :  { %v13128_v1 = vpop.xlane.xlu1 %7342  ;;  %v13130_v3 = vpop.xlane.xlu0 %7344 }
 0x649   :  { %v13132_v40 = vpop.xlane.xlu1 %7350  ;;  %v13134_v52 = vpop.xlane.xlu0 %7352 }
 0x64a   :  { %v7418_v16 = vmul.f32 %v13132_v40, %v13132_v40  ;;  %v7419_v45 = vmul.f32 %v13134_v52, %v13134_v52 }
 0x64c   :  { %v7543_v13 = vrot.slane %v7418_v16, %v14421_v29 }
 0x64d   :  { %v13136_v19 = vpop.xlane.xlu1 %7358  ;;  %v13138_v12 = vpop.xlane.xlu0 %7360 }
 0x64e   :  { %v7423_v16 = vmul.f32 %v13138_v12, %v13138_v12 }
 0x651   :  { %v13140_v14 = vpop.xlane.xlu1 %7366  ;;  %v13142_v21 = vpop.xlane.xlu0 %7368 }
 0x655   :  { %v13144_v49 = vpop.xlane.xlu1 %7374  ;;  %v13146_v2 = vpop.xlane.xlu0 %7376 }
 0x659   :  { %v13148_v56 = vpop.xlane.xlu1 %7382  ;;  %v13150_v30 = vpop.xlane.xlu0 %7384 }
 0x65d   :  { %v13152_v0 = vpop.xlane.xlu1 %7390  ;;  %v13154_v54 = vpop.xlane.xlu0 %7392 }
 0x69e   :  { %v13158_v60 = vpop.xlane.xlu1 %7398  ;;  %v13160_v5 = vpop.xlane.xlu0 %7400 }
 0x6a2   :  { %v13165_v42 = vpop.xlane.xlu1 %7330  ;;  %v13167_v15 = vpop.xlane.xlu0 %7332 }
 0x6a3   :  { %v7408_v51 = vmul.f32 %v13165_v42, %v13165_v42  ;;  %v7409_v17 = vmul.f32 %v13167_v15, %v13167_v15 }
 0x6a5   :  { %v7498_v43 = vrot.slane %v7408_v51, %v14421_v29  ;;  %v7502_v46 = vrot.slane %v7409_v17, %v14422_v9  ;;  %v7414_v51 = vmul.f32 %v13128_v1, %v13128_v1  ;;  %v7415_v17 = vmul.f32 %v13130_v3, %v13130_v3 }
 0x6a6   :  { %v13180_v48 = vpop.xlane.xlu1 %7338  ;;  %v13182_v61 = vpop.xlane.xlu0 %7340 }
 0x6a7   :  { %v7412_v47 = vmul.f32 %v13180_v48, %v13180_v48  ;;  %v7413_v11 = vmul.f32 %v13182_v61, %v13182_v61  ;;  %v7503_v35 = vsel %vm5941_vm7, %v7502_v46, %v7498_v43 }
 0x6a8   :  { %v7666_v33 = vsel %vm371_vm0, %v7503_v35, %v7494_v4  ;;  %v7525_v4 = vrot.slane %v7414_v51, %v14421_v29  ;;  %v7529_v35 = vrot.slane %v7415_v17, %v14422_v9  ;;  %v7547_v51 = vrot.slane %v7419_v45, %v14422_v9 }
 0x6a9   :  { %v7516_v31 = vrot.slane %v7412_v47, %v14421_v29  ;;  %v7520_v34 = vrot.slane %v7413_v11, %v14422_v9  ;;  %v7686_v37 = vsel %vm6134_vm8, %v7666_v33, 0.0  ;;  %v7512_v47 = vsel %vm5941_vm7, %v7511_v38, %v7507_v55 }
 0x6aa   :  { %v13201_v53 = vpop.xlane.xlu1 %7346  ;;  %v13204_v32 = vpop.xlane.xlu0 %7348  ;;  %7687 = vadd.xlane.f32.xlu1 %v7686_v37  ;;  %v7422_v38 = vmul.f32 %v13136_v19, %v13136_v19  ;;  %v7530_v17 = vsel %vm5941_vm7, %v7529_v35, %v7525_v4  ;;  %v7548_v4 = vsel %vm5941_vm7, %v7547_v51, %v7543_v13  ;;  %v7565_v35 = vrot.slane %v7423_v16, %v14422_v9 }
 0x6ab   :  { %v7416_v46 = vmul.f32 %v13201_v53, %v13201_v53  ;;  %v7417_v11 = vmul.f32 %v13204_v32, %v13204_v32  ;;  %v7521_v33 = vsel %vm5941_vm7, %v7520_v34, %v7516_v31 }
 0x6ac   :  { %v7667_v57 = vsel %vm371_vm0, %v7521_v33, %v7512_v47  ;;  %v7561_v33 = vrot.slane %v7422_v38, %v14421_v29 }
 0x6ad   :  { %v7534_v43 = vrot.slane %v7416_v46, %v14421_v29  ;;  %v7538_v6 = vrot.slane %v7417_v11, %v14422_v9  ;;  %v7689_v10 = vsel %vm6134_vm8, %v7667_v57, 0.0 }
 0x6ae   :  { %v13220_v37 = vpop.xlane.xlu1 %7354  ;;  %v13223_v25 = vpop.xlane.xlu0 %7356  ;;  %7690 = vadd.xlane.f32.xlu0 %v7689_v10 }
 0x6af   :  { %v7420_v34 = vmul.f32 %v13220_v37, %v13220_v37  ;;  %v7421_v55 = vmul.f32 %v13223_v25, %v13223_v25  ;;  %v7539_v57 = vsel %vm5941_vm7, %v7538_v6, %v7534_v43  ;;  %v7426_v43 = vmul.f32 %v13140_v14, %v13140_v14 }
 0x6b0   :  { %v7668_v46 = vsel %vm371_vm0, %v7539_v57, %v7530_v17 }
 0x6b1   :  { %v7552_v31 = vrot.slane %v7420_v34, %v14421_v29  ;;  %v7556_v45 = vrot.slane %v7421_v55, %v14422_v9  ;;  %v7692_v10 = vsel %vm6134_vm8, %v7668_v46, 0.0  ;;  %v7427_v34 = vmul.f32 %v13142_v21, %v13142_v21 }
 0x6b2   :  { %v13239_v11 = vpop.xlane.xlu1 %7362  ;;  %v13242_v47 = vpop.xlane.xlu0 %7364  ;;  %7693 = vadd.xlane.f32.xlu1 %v7692_v10  ;;  %v7430_v46 = vmul.f32 %v13144_v49, %v13144_v49  ;;  %v7431_v10 = vmul.f32 %v13146_v2, %v13146_v2 }
 0x6b3   :  { %v7424_v36 = vmul.f32 %v13239_v11, %v13239_v11  ;;  %v7425_v6 = vmul.f32 %v13242_v47, %v13242_v47  ;;  %v7557_v55 = vsel %vm5941_vm7, %v7556_v45, %v7552_v31  ;;  %v7579_v45 = vrot.slane %v7426_v43, %v14421_v29 }
 0x6b4   :  { %v7669_v57 = vsel %vm371_vm0, %v7557_v55, %v7548_v4  ;;  %v7566_v4 = vsel %vm5941_vm7, %v7565_v35, %v7561_v33  ;;  %v7597_v20 = vrot.slane %v7430_v46, %v14421_v29  ;;  %v7601_v43 = vrot.slane %v7431_v10, %v14422_v9 }
 0x6b5   :  { %v7570_v38 = vrot.slane %v7424_v36, %v14421_v29  ;;  %v7574_v17 = vrot.slane %v7425_v6, %v14422_v9  ;;  %v7695_v51 = vsel %vm6134_vm8, %v7669_v57, 0.0  ;;  %v7583_v6 = vrot.slane %v7427_v34, %v14422_v9 }
 0x6b6   :  { %v13261_v13 = vpop.xlane.xlu1 %7370  ;;  %v13264_v16 = vpop.xlane.xlu0 %7372  ;;  %7696 = vadd.xlane.f32.xlu0 %v7695_v51  ;;  %v7434_v33 = vmul.f32 %v13148_v56, %v13148_v56 }
 0x6b7   :  { %v7428_v31 = vmul.f32 %v13261_v13, %v13261_v13  ;;  %v7429_v36 = vmul.f32 %v13264_v16, %v13264_v16  ;;  %v7575_v55 = vsel %vm5941_vm7, %v7574_v17, %v7570_v38  ;;  %v7435_v38 = vmul.f32 %v13150_v30, %v13150_v30 }
 0x6b8   :  { %v7670_v23 = vsel %vm371_vm0, %v7575_v55, %v7566_v4  ;;  %v7584_v17 = vsel %vm5941_vm7, %v7583_v6, %v7579_v45  ;;  %v7615_v55 = vrot.slane %v7434_v33, %v14421_v29  ;;  %v7602_v45 = vsel %vm5941_vm7, %v7601_v43, %v7597_v20 }
 0x6b9   :  { %v7588_v57 = vrot.slane %v7428_v31, %v14421_v29  ;;  %v7592_v63 = vrot.slane %v7429_v36, %v14422_v9  ;;  %v7698_v62 = vsel %vm6134_vm8, %v7670_v23, 0.0  ;;  %v7619_v6 = vrot.slane %v7435_v38, %v14422_v9 }
 0x6ba   :  { %v13280_v51 = vpop.xlane.xlu1 %7378  ;;  %v13283_v27 = vpop.xlane.xlu0 %7380  ;;  %7699 = vadd.xlane.f32.xlu1 %v7698_v62  ;;  %v7442_v38 = vmul.f32 %v13158_v60, %v13158_v60 }
 0x6bb   :  { %v7432_v35 = vmul.f32 %v13280_v51, %v13280_v51  ;;  %v7433_v34 = vmul.f32 %v13283_v27, %v13283_v27  ;;  %v7593_v23 = vsel %vm5941_vm7, %v7592_v63, %v7588_v57  ;;  %v7438_v57 = vmul.f32 %v13152_v0, %v13152_v0 }
 0x6bc   :  { %v7671_v31 = vsel %vm371_vm0, %v7593_v23, %v7584_v17 }
 0x6bd   :  { %v7606_v46 = vrot.slane %v7432_v35, %v14421_v29  ;;  %v7610_v10 = vrot.slane %v7433_v34, %v14422_v9  ;;  %v7701_v62 = vsel %vm6134_vm8, %v7671_v31, 0.0  ;;  %v7439_v35 = vmul.f32 %v13154_v54, %v13154_v54 }
 0x6be   :  { %v13299_v36 = vpop.xlane.xlu1 %7386  ;;  %v13302_v4 = vpop.xlane.xlu0 %7388  ;;  %7702 = vadd.xlane.f32.xlu0 %v7701_v62  ;;  %v7443_v62 = vmul.f32 %v13160_v5, %v13160_v5 }
 0x6bf   :  { %v7436_v28 = vmul.f32 %v13299_v36, %v13299_v36  ;;  %v7437_v63 = vmul.f32 %v13302_v4, %v13302_v4  ;;  %v7611_v34 = vsel %vm5941_vm7, %v7610_v10, %v7606_v46  ;;  %v7633_v10 = vrot.slane %v7438_v57, %v14421_v29 }
 0x6c0   :  { %v7672_v23 = vsel %vm371_vm0, %v7611_v34, %v7602_v45  ;;  %v7620_v45 = vsel %vm5941_vm7, %v7619_v6, %v7615_v55  ;;  %v7651_v57 = vrot.slane %v7442_v38, %v14421_v29 }
 0x6c1   :  { %v7624_v33 = vrot.slane %v7436_v28, %v14421_v29  ;;  %v7628_v17 = vrot.slane %v7437_v63, %v14422_v9  ;;  %v7704_v20 = vsel %vm6134_vm8, %v7672_v23, 0.0  ;;  %v7637_v63 = vrot.slane %v7439_v35, %v14422_v9 }
 0x6c2   :  { %v13319_v31 = vpop.xlane.xlu1 %7394  ;;  %v13322_v43 = vpop.xlane.xlu0 %7396  ;;  %7705 = vadd.xlane.f32.xlu1 %v7704_v20  ;;  %v7655_v35 = vrot.slane %v7443_v62, %v14422_v9 }
 0x6c3   :  { %v7440_v46 = vmul.f32 %v13319_v31, %v13319_v31  ;;  %v7441_v28 = vmul.f32 %v13322_v43, %v13322_v43  ;;  %v7629_v34 = vsel %vm5941_vm7, %v7628_v17, %v7624_v33  ;;  %v7638_v33 = vsel %vm5941_vm7, %v7637_v63, %v7633_v10 }
 0x6c4   :  { %v7673_v41 = vsel %vm371_vm0, %v7629_v34, %v7620_v45  ;;  %v7656_v62 = vsel %vm5941_vm7, %v7655_v35, %v7651_v57  ;;  %v7802_v57 = vrot.slane %v13167_v15, %v14422_v9 }
 0x6c5   :  { %v7642_v23 = vrot.slane %v7440_v46, %v14421_v29  ;;  %v7646_v18 = vrot.slane %v7441_v28, %v14422_v9  ;;  %v7707_v20 = vsel %vm6134_vm8, %v7673_v41, 0.0 }
 0x6c6   :  { %v13339_v26 = vpop.xlane.xlu1 %7402  ;;  %v13342_v39 = vpop.xlane.xlu0 %7404  ;;  %7708 = vadd.xlane.f32.xlu0 %v7707_v20 }
 0x6c7   :  { %v7444_v55 = vmul.f32 %v13339_v26, %v13339_v26  ;;  %v7445_v6 = vmul.f32 %v13342_v39, %v13342_v39  ;;  %v7647_v17 = vsel %vm5941_vm7, %v7646_v18, %v7642_v23 }
 0x6c8   :  { %v7674_v28 = vsel %vm371_vm0, %v7647_v17, %v7638_v33  ;;  %v7789_v33 = vrot.slane %v13120_v44, %v14421_v29  ;;  %v7793_v17 = vrot.slane %v13122_v50, %v14422_v9  ;;  %v7811_v44 = vrot.slane %v13126_v8, %v14422_v9 }
 0x6c9   :  { %v7660_v46 = vrot.slane %v7444_v55, %v14421_v29  ;;  %v7664_v41 = vrot.slane %v7445_v6, %v14422_v9  ;;  %v7710_v38 = vsel %vm6134_vm8, %v7674_v28, 0.0  ;;  %v7798_v55 = vrot.slane %v13165_v42, %v14421_v29 }
 0x6ca   :  { %7711 = vadd.xlane.f32.xlu1 %v7710_v38  ;;  %v7820_v42 = vrot.slane %v13182_v61, %v14422_v9  ;;  %v7807_v38 = vrot.slane %v13124_v7, %v14421_v29  ;;  %v7794_v50 = vsel %vm5941_vm7, %v7793_v17, %v7789_v33  ;;  %v7834_v61 = vrot.slane %v13201_v53, %v14421_v29 }
 0x6cb   :  { %v7665_v45 = vsel %vm5941_vm7, %v7664_v41, %v7660_v46  ;;  %v7803_v46 = vsel %vm5941_vm7, %v7802_v57, %v7798_v55  ;;  %v7816_v41 = vrot.slane %v13180_v48, %v14421_v29  ;;  %v7829_v57 = vrot.slane %v13130_v3, %v14422_v9 }
 0x6cc   :  { %v7675_v34 = vsel %vm371_vm0, %v7665_v45, %v7656_v62  ;;  %v7812_v8 = vsel %vm5941_vm7, %v7811_v44, %v7807_v38  ;;  %v7852_v3 = vrot.slane %v13220_v37, %v14421_v29  ;;  %v7847_v37 = vrot.slane %v13134_v52, %v14422_v9 }
 0x6cd   :  { %v7713_v20 = vsel %vm6134_vm8, %v7675_v34, 0.0  ;;  %v7966_v34 = vsel %vm371_vm0, %v7803_v46, %v7794_v50  ;;  %v7821_v48 = vsel %vm5941_vm7, %v7820_v42, %v7816_v41  ;;  %v7874_v52 = vrot.slane %v13242_v47, %v14422_v9 }
 0x6ce   :  { %7714 = vadd.xlane.f32.xlu0 %v7713_v20  ;;  %v7967_v17 = vsel %vm371_vm0, %v7821_v48, %v7812_v8 }
 0x737   :  { %v7688_v10 = vpop.xlane.xlu1 %7687 }
 0x738   :  { %v7716_v18 = vadd.f32 1.0, %v7688_v10 }
 0x73a   :  { %9720 = vrcp.f32 %v7716_v18  ;;  %v7838_v18 = vrot.slane %v13204_v32, %v14422_v9 }
 0x73b   :  { %v7691_v63 = vpop.xlane.xlu0 %7690  ;;  %9722 = vrsqrt.f32 %v7688_v10 }
 0x73c   :  { %v7717_v23 = vadd.f32 1.0, %v7691_v63  ;;  %v7839_v32 = vsel %vm5941_vm7, %v7838_v18, %v7834_v61 }
 0x73e   :  { %9724 = vrcp.f32 %v7717_v23 }
 0x73f   :  { %v7694_v35 = vpop.xlane.xlu1 %7693  ;;  %9726 = vrsqrt.f32 %v7691_v63 }
 0x740   :  { %v7718_v6 = vadd.f32 1.0, %v7694_v35 }
 0x742   :  { %9728 = vrcp.f32 %v7718_v6 }
 0x743   :  { %v7697_v28 = vpop.xlane.xlu0 %7696 }
 0x744   :  { %v9721_v15 = vpop.eup %9720  ;;  %v7719_v62 = vadd.f32 1.0, %v7697_v28 }
 0x745   :  { %v7727_v45 = vmul.f32 %v9721_v15, %v7688_v10  ;;  %v9723_v20 = vpop.eup %9722  ;;  %v7825_v10 = vrot.slane %v13128_v1, %v14421_v29 }
 0x746   :  { %9730 = vrcp.f32 %v7719_v62  ;;  %v7856_v62 = vrot.slane %v13223_v25, %v14422_v9 }
 0x747   :  { %v7986_v7 = vmul.f32 %v7966_v34, %v7727_v45  ;;  %v7700_v23 = vpop.xlane.xlu1 %7699  ;;  %9732 = vrsqrt.f32 %v7694_v35  ;;  %v7830_v38 = vsel %vm5941_vm7, %v7829_v57, %v7825_v10  ;;  %v14423_v34 = vld [vmem:[#allocation48_spill] sm:$0xff] }
 0x748   :  { %v9725_v55 = vpop.eup %9724  ;;  %v7720_v53 = vadd.f32 1.0, %v7700_v23  ;;  %v7857_v25 = vsel %vm5941_vm7, %v7856_v62, %v7852_v3 }
 0x749   :  { %v7729_v6 = vmul.f32 %v9725_v55, %v7691_v63  ;;  %v8006_v33 = vmul.f32 %v9723_v20, %v7986_v7  ;;  %v9727_v46 = vpop.eup %9726  ;;  %v7968_v63 = vsel %vm371_vm0, %v7839_v32, %v7830_v38  ;;  %v7865_v32 = vrot.slane %v13138_v12, %v14422_v9 }
 0x74a   :  { %9734 = vrcp.f32 %v7720_v53  ;;  %v7892_v12 = vrot.slane %v13264_v16, %v14422_v9 }
 0x74b   :  { %v7987_v41 = vmul.f32 %v7967_v17, %v7729_v6  ;;  %v8019_v42 = vrot.slane %v8006_v33, %v12664_v58  ;;  %v7703_v45 = vpop.xlane.xlu0 %7702  ;;  %v8030_v20 = vrot.slane %v8006_v33, %v14423_v34  ;;  %9736 = vrsqrt.f32 %v7697_v28 }
 0x74c   :  { %v9729_v15 = vpop.eup %9728  ;;  %v7721_v7 = vadd.f32 1.0, %v7703_v45 }
 0x74d   :  { %v7731_v44 = vmul.f32 %v9729_v15, %v7694_v35  ;;  %8021 = vbcast.lane.b32.xlu1 %v8019_v42, 256  ;;  %8025 = vbcast.lane.b32.xlu0 %v8019_v42, 264  ;;  %v8007_v1 = vmul.f32 %v9727_v46, %v7987_v41  ;;  %v7843_v35 = vrot.slane %v13132_v40, %v14421_v29 }
 0x74e   :  { %9738 = vrcp.f32 %v7721_v7  ;;  %v7870_v40 = vrot.slane %v13239_v11, %v14421_v29  ;;  %v7861_v46 = vrot.slane %v13136_v19, %v14421_v29  ;;  %v7888_v19 = vrot.slane %v13261_v13, %v14421_v29 }
 0x74f   :  { %v7988_v50 = vmul.f32 %v7968_v63, %v7731_v44  ;;  %v8041_v48 = vrot.slane %v8007_v1, %v12664_v58  ;;  %v8052_v8 = vrot.slane %v8007_v1, %v14423_v34  ;;  %v7848_v57 = vsel %vm5941_vm7, %v7847_v37, %v7843_v35  ;;  %v7706_v17 = vpop.xlane.xlu1 %7705 }
 0x750   :  { %v9731_v61 = vpop.eup %9730  ;;  %v7969_v6 = vsel %vm371_vm0, %v7857_v25, %v7848_v57  ;;  %9740 = vrsqrt.f32 %v7700_v23  ;;  %v7722_v42 = vadd.f32 1.0, %v7706_v17  ;;  %v7875_v11 = vsel %vm5941_vm7, %v7874_v52, %v7870_v40 }
 0x751   :  { %8032 = vbcast.lane.b32.xlu1 %v8030_v20, 256  ;;  %8047 = vbcast.lane.b32.xlu0 %v8041_v48, 264  ;;  %v9733_v18 = vpop.eup %9732  ;;  %v7733_v55 = vmul.f32 %v9731_v61, %v7697_v28  ;;  %v7866_v44 = vsel %vm5941_vm7, %v7865_v32, %v7861_v46  ;;  %v7893_v13 = vsel %vm5941_vm7, %v7892_v12, %v7888_v19 }
 0x752   :  { %v8008_v10 = vmul.f32 %v9733_v18, %v7988_v50  ;;  %v7970_v1 = vsel %vm371_vm0, %v7875_v11, %v7866_v44  ;;  %9742 = vrcp.f32 %v7722_v42  ;;  %v7879_v50 = vrot.slane %v13140_v14, %v14421_v29 }
 0x753   :  { %v7989_v33 = vmul.f32 %v7969_v6, %v7733_v55  ;;  %v7709_v63 = vpop.xlane.xlu0 %7708  ;;  %9744 = vrsqrt.f32 %v7703_v45  ;;  %v7906_v14 = vrot.slane %v13280_v51, %v14421_v29  ;;  %v7901_v57 = vrot.slane %v13146_v2, %v14422_v9 }
 0x754   :  { %v8063_v28 = vrot.slane %v8008_v10, %v12664_v58  ;;  %v9735_v53 = vpop.eup %9734  ;;  %v8074_v47 = vrot.slane %v8008_v10, %v14423_v34  ;;  %v7723_v61 = vadd.f32 1.0, %v7709_v63  ;;  %v7897_v10 = vrot.slane %v13144_v49, %v14421_v29 }
 0x755   :  { %8036 = vbcast.lane.b32.xlu1 %v8030_v20, 264  ;;  %8058 = vbcast.lane.b32.xlu0 %v8052_v8, 264  ;;  %v9737_v41 = vpop.eup %9736  ;;  %v7735_v15 = vmul.f32 %v9735_v53, %v7700_v23  ;;  %v7883_v20 = vrot.slane %v13142_v21, %v14422_v9  ;;  %v7910_v21 = vrot.slane %v13283_v27, %v14422_v9 }
 0x756   :  { %v8009_v38 = vmul.f32 %v9737_v41, %v7989_v33  ;;  %9746 = vrcp.f32 %v7723_v61  ;;  %v7924_v49 = vrot.slane %v13299_v36, %v14421_v29  ;;  %v7928_v2 = vrot.slane %v13302_v4, %v14422_v9 }
 0x757   :  { %v7990_v3 = vmul.f32 %v7970_v1, %v7735_v15  ;;  %v7884_v18 = vsel %vm5941_vm7, %v7883_v20, %v7879_v50  ;;  %v7712_v55 = vpop.xlane.xlu1 %7711  ;;  %9748 = vrsqrt.f32 %v7706_v17  ;;  %v7911_v51 = vsel %vm5941_vm7, %v7910_v21, %v7906_v14 }
 0x758   :  { %v8085_v23 = vrot.slane %v8009_v38, %v12664_v58  ;;  %v9739_v62 = vpop.eup %9738  ;;  %v8096_v16 = vrot.slane %v8009_v38, %v14423_v34  ;;  %v7971_v7 = vsel %vm371_vm0, %v7893_v13, %v7884_v18  ;;  %v7724_v40 = vadd.f32 1.0, %v7712_v55 }
 0x759   :  { %8069 = vbcast.lane.b32.xlu0 %v8063_v28, 264  ;;  %8043 = vbcast.lane.b32.xlu1 %v8041_v48, 256  ;;  %v7737_v35 = vmul.f32 %v9739_v62, %v7703_v45  ;;  %v7915_v42 = vrot.slane %v13148_v56, %v14421_v29  ;;  %v7919_v11 = vrot.slane %v13150_v30, %v14422_v9 }
 0x75a   :  { %v9741_v48 = vpop.eup %9740  ;;  %9750 = vrcp.f32 %v7724_v40  ;;  %v7929_v36 = vsel %vm5941_vm7, %v7928_v2, %v7924_v49  ;;  %v7942_v56 = vrot.slane %v13319_v31, %v14421_v29  ;;  %v7946_v30 = vrot.slane %v13322_v43, %v14422_v9 }
 0x75b   :  { %v8010_v37 = vmul.f32 %v9741_v48, %v7990_v3  ;;  %v7991_v25 = vmul.f32 %v7971_v7, %v7737_v35  ;;  %v7715_v32 = vpop.xlane.xlu0 %7714  ;;  %9752 = vrsqrt.f32 %v7709_v63  ;;  %v7920_v1 = vsel %vm5941_vm7, %v7919_v11, %v7915_v42 }
 0x75c   :  { %v7973_v19 = vsel %vm371_vm0, %v7929_v36, %v7920_v1  ;;  %v7937_v62 = vrot.slane %v13154_v54, %v14422_v9  ;;  %v7947_v20 = vsel %vm5941_vm7, %v7946_v30, %v7942_v56  ;;  %v7964_v54 = vrot.slane %v13342_v39, %v14422_v9  ;;  %v14426_v1 = vld [vmem:[#allocation15_spill] sm:$0xff] }
 0x75d   :  { %8080 = vbcast.lane.b32.xlu0 %v8074_v47, 264  ;;  %8054 = vbcast.lane.b32.xlu1 %v8052_v8, 256  ;;  %v8107_v45 = vrot.slane %v8010_v37, %v12664_v58  ;;  %v9743_v8 = vpop.eup %9742  ;;  %v8118_v27 = vrot.slane %v8010_v37, %v14423_v34  ;;  %v7951_v18 = vrot.slane %v13158_v60, %v14421_v29 }
 0x75e   :  { %v9745_v6 = vpop.eup %9744  ;;  %v7739_v52 = vmul.f32 %v9743_v8, %v7706_v17  ;;  %v7955_v7 = vrot.slane %v13160_v5, %v14422_v9 }
 0x75f   :  { %v8011_v33 = vmul.f32 %v9745_v6, %v7991_v25 }
 0x760   :  { %v9747_v41 = vpop.eup %9746 }
 0x761   :  { %8065 = vbcast.lane.b32.xlu1 %v8063_v28, 256  ;;  %8091 = vbcast.lane.b32.xlu0 %v8085_v23, 264  ;;  %v7902_v28 = vsel %vm5941_vm7, %v7901_v57, %v7897_v10  ;;  %v8129_v17 = vrot.slane %v8011_v33, %v12664_v58  ;;  %v9749_v15 = vpop.eup %9748  ;;  %v7741_v38 = vmul.f32 %v9747_v41, %v7709_v63 }
 0x762   :  { %v7972_v53 = vsel %vm371_vm0, %v7911_v51, %v7902_v28  ;;  %v8140_v4 = vrot.slane %v8011_v33, %v14423_v34 }
 0x763   :  { %v7992_v46 = vmul.f32 %v7972_v53, %v7739_v52  ;;  %v7993_v12 = vmul.f32 %v7973_v19, %v7741_v38  ;;  %v14425_v38 = vld [vmem:[#allocation16_spill] sm:$0xff] }
 0x764   :  { %v9751_v63 = vpop.eup %9750 }
 0x765   :  { %8076 = vbcast.lane.b32.xlu1 %v8074_v47, 256  ;;  %8102 = vbcast.lane.b32.xlu0 %v8096_v16, 264  ;;  %v7725_v47 = vadd.f32 1.0, %v7715_v32  ;;  %v8012_v44 = vmul.f32 %v9749_v15, %v7992_v46  ;;  %v9753_v50 = vpop.eup %9752  ;;  %v7743_v31 = vmul.f32 %v9751_v63, %v7712_v55 }
 0x766   :  { %v8013_v43 = vmul.f32 %v9753_v50, %v7993_v12 }
 0x767   :  { %9754 = vrcp.f32 %v7725_v47  ;;  %v8151_v3 = vrot.slane %v8012_v44, %v12664_v58  ;;  %v8162_v48 = vrot.slane %v8012_v44, %v14423_v34 }
 0x768   :  { %9756 = vrsqrt.f32 %v7712_v55  ;;  %v8184_v25 = vrot.slane %v8013_v43, %v14423_v34  ;;  %v7956_v55 = vsel %vm5941_vm7, %v7955_v7, %v7951_v18 }
 0x769   :  { %8113 = vbcast.lane.b32.xlu0 %v8107_v45, 264  ;;  %8087 = vbcast.lane.b32.xlu1 %v8085_v23, 256  ;;  %v7933_v23 = vrot.slane %v13152_v0, %v14421_v29  ;;  %v7960_v0 = vrot.slane %v13339_v26, %v14421_v29  ;;  %9758 = vrsqrt.f32 %v7715_v32 }
 0x76b   :  { %v7938_v61 = vsel %vm5941_vm7, %v7937_v62, %v7933_v23  ;;  %v7965_v21 = vsel %vm5941_vm7, %v7964_v54, %v7960_v0  ;;  %v14427_v62 = vld [vmem:[#allocation18_spill] sm:$0xff]  ;;  %v14429_v54 = vld [vmem:[#allocation20_spill] sm:$0xff] }
 0x76c   :  { %v7974_v13 = vsel %vm371_vm0, %v7947_v20, %v7938_v61 }
 0x76d   :  { %8124 = vbcast.lane.b32.xlu0 %v8118_v27, 264  ;;  %8098 = vbcast.lane.b32.xlu1 %v8096_v16, 256  ;;  %v7994_v35 = vmul.f32 %v7974_v13, %v7743_v31  ;;  %v8173_v16 = vrot.slane %v8013_v43, %v12664_v58  ;;  %v14428_v31 = vld [vmem:[#allocation17_spill] sm:$0xff] }
 0x771   :  { %8109 = vbcast.lane.b32.xlu1 %v8107_v45, 256  ;;  %8135 = vbcast.lane.b32.xlu0 %v8129_v17, 264  ;;  %v9755_v37 = vpop.eup %9754  ;;  %v7975_v45 = vsel %vm371_vm0, %v7965_v21, %v7956_v55  ;;  %v14430_v21 = vld [vmem:[#allocation19_spill] sm:$0xff] }
 0x772   :  { %v9757_v14 = vpop.eup %9756  ;;  %v7745_v26 = vmul.f32 %v9755_v37, %v7715_v32 }
 0x773   :  { %v8014_v39 = vmul.f32 %v9757_v14, %v7994_v35  ;;  %v9759_v5 = vpop.eup %9758 }
 0x774   :  { %v7995_v8 = vmul.f32 %v7975_v45, %v7745_v26 }
 0x775   :  { %8120 = vbcast.lane.b32.xlu1 %v8118_v27, 256  ;;  %8146 = vbcast.lane.b32.xlu0 %v8140_v4, 264  ;;  %v8195_v60 = vrot.slane %v8014_v39, %v12664_v58  ;;  %v8206_v10 = vrot.slane %v8014_v39, %v14423_v34 }
 0x776   :  { %v8015_v57 = vmul.f32 %v9759_v5, %v7995_v8 }
 0x778   :  { %v8217_v6 = vrot.slane %v8015_v57, %v12664_v58  ;;  %v8228_v40 = vrot.slane %v8015_v57, %v14423_v34  ;;  %v14424_v34 = vld [vmem:[#allocation14_spill] sm:$0xff] }
 0x779   :  { %8157 = vbcast.lane.b32.xlu0 %v8151_v3, 264  ;;  %8131 = vbcast.lane.b32.xlu1 %v8129_v17, 256  ;;  %v14431_v57 = vld [vmem:[#allocation22_spill] sm:$0xff] }
 0x77d   :  { %8168 = vbcast.lane.b32.xlu0 %v8162_v48, 264  ;;  %8142 = vbcast.lane.b32.xlu1 %v8140_v4, 256 }
 0x781   :  { %8153 = vbcast.lane.b32.xlu1 %v8151_v3, 256  ;;  %8179 = vbcast.lane.b32.xlu0 %v8173_v16, 264 }
 0x785   :  { %8164 = vbcast.lane.b32.xlu1 %v8162_v48, 256  ;;  %8190 = vbcast.lane.b32.xlu0 %v8184_v25, 264 }
 0x789   :  { %8201 = vbcast.lane.b32.xlu0 %v8195_v60, 264  ;;  %8175 = vbcast.lane.b32.xlu1 %v8173_v16, 256 }
 0x78d   :  { %8212 = vbcast.lane.b32.xlu0 %v8206_v10, 264  ;;  %8186 = vbcast.lane.b32.xlu1 %v8184_v25, 256 }
 0x791   :  { %8197 = vbcast.lane.b32.xlu1 %v8195_v60, 256  ;;  %8223 = vbcast.lane.b32.xlu0 %v8217_v6, 264 }
 0x795   :  { %8208 = vbcast.lane.b32.xlu1 %v8206_v10, 256  ;;  %8234 = vbcast.lane.b32.xlu0 %v8228_v40, 264 }
 0x799   :  { %8219 = vbcast.lane.b32.xlu1 %v8217_v6, 256 }
 0x79d   :  { %8230 = vbcast.lane.b32.xlu1 %v8228_v40, 256 }
 0x7bf   :  { %v8022_v51 = vpop.permute.xlu1 %8021  ;;  %v8026_v52 = vpop.permute.xlu0 %8025 }
 0x7c0   :  { %v8236_v27 = vmul.f32 %v8022_v51, %v14352_v24  ;;  %v8237_v33 = vmul.f32 %v8026_v52, %v14353_v22  ;;  %v14432_v51 = vld [vmem:[#allocation21_spill] sm:$0xff] }
 0x7c2   :  { %v8276_v28 = vadd.f32 %v8237_v33, %v8236_v27  ;;  %v14433_v33 = vld [vmem:[#allocation52_spill] sm:$0xff] }
 0x7c3   :  { %v8033_v53 = vpop.permute.xlu1 %8032  ;;  %v8048_v49 = vpop.permute.xlu0 %8047 }
 0x7c4   :  { %v8277_v2 = vrot.slane %v8276_v28, 4  ;;  %v8238_v41 = vmul.f32 %v8033_v53, %v14357_v59  ;;  %v8241_v4 = vmul.f32 %v8048_v49, %v14425_v38  ;;  %v14434_v53 = vld [vmem:[#allocation51_spill] sm:$0xff]  ;;  %v14475_v59 = vld [vmem:[#allocation66_spill] sm:$0xff] }
 0x7c6   :  { %v8278_v46 = vadd.f32 %v8277_v2, %v8276_v28 }
 0x7c7   :  { %v8037_v32 = vpop.permute.xlu1 %8036  ;;  %v8059_v17 = vpop.permute.xlu0 %8058 }
 0x7c8   :  { %v8239_v42 = vmul.f32 %v8037_v32, %v14424_v34  ;;  %v8279_v11 = vrot.slane %v8278_v46, 2  ;;  %v8243_v50 = vmul.f32 %v8059_v17, %v14427_v62  ;;  %v14435_v17 = vld [vmem:[#allocation24_spill] sm:$0xff] }
 0x7ca   :  { %v8283_v15 = vadd.f32 %v8239_v42, %v8238_v41  ;;  %v8280_v56 = vadd.f32 %v8279_v11, %v8278_v46 }
 0x7cb   :  { %v8044_v47 = vpop.permute.xlu1 %8043  ;;  %v8070_v36 = vpop.permute.xlu0 %8069 }
 0x7cc   :  { %v8284_v44 = vrot.slane %v8283_v15, 4  ;;  %v8240_v19 = vmul.f32 %v8044_v47, %v14426_v1  ;;  %v8281_v43 = vrot.slane %v8280_v56, 1  ;;  %v8245_v35 = vmul.f32 %v8070_v36, %v14429_v54 }
 0x7ce   :  { %v8285_v30 = vadd.f32 %v8284_v44, %v8283_v15  ;;  %v8290_v12 = vadd.f32 %v8241_v4, %v8240_v19  ;;  %v8282_v25 = vadd.f32 %v8281_v43, %v8280_v56  ;;  %v14436_v44 = vld [vmem:[#allocation23_spill] sm:$0xff]  ;;  %v14437_v43 = vld [vmem:[#allocation26_spill] sm:$0xff] }
 0x7cf   :  { %v8055_v3 = vpop.permute.xlu1 %8054  ;;  %v8081_v63 = vpop.permute.xlu0 %8080 }
 0x7d0   :  { %v8286_v23 = vrot.slane %v8285_v30, 2  ;;  %v8291_v20 = vrot.slane %v8290_v12, 4  ;;  %v8242_v48 = vmul.f32 %v8055_v3, %v14428_v31  ;;  %v8247_v6 = vmul.f32 %v8081_v63, %v14431_v57  ;;  %v14469_v57 = vld [vmem:[#allocation64_spill] sm:$0xff] }
 0x7d1   :  { %v13503_v28 = vadd.f32 %v8282_v25, %v14433_v33 }
 0x7d2   :  { %v8287_v61 = vadd.f32 %v8286_v23, %v8285_v30  ;;  %v8292_v13 = vadd.f32 %v8291_v20, %v8290_v12  ;;  %v8297_v0 = vadd.f32 %v8243_v50, %v8242_v48 }
 0x7d3   :  { %v8066_v16 = vpop.permute.xlu1 %8065  ;;  %v8092_v37 = vpop.permute.xlu0 %8091 }
 0x7d4   :  { %v8288_v18 = vrot.slane %v8287_v61, 1  ;;  %v8293_v7 = vrot.slane %v8292_v13, 2  ;;  %v8298_v14 = vrot.slane %v8297_v0, 4  ;;  %v8244_v26 = vmul.f32 %v8066_v16, %v14430_v21 }
 0x7d5   :  { %v8249_v41 = vmul.f32 %v8092_v37, %v14435_v17  ;;  %v14439_v37 = vld [vmem:[#allocation50_spill] sm:$0xff] }
 0x7d6   :  { %v8294_v39 = vadd.f32 %v8293_v7, %v8292_v13  ;;  %v8299_v55 = vadd.f32 %v8298_v14, %v8297_v0  ;;  %v8304_v45 = vadd.f32 %v8245_v35, %v8244_v26  ;;  %v8289_v8 = vadd.f32 %v8288_v18, %v8287_v61  ;;  %v14438_v0 = vld [vmem:[#allocation25_spill] sm:$0xff] }
 0x7d7   :  { %v8077_v60 = vpop.permute.xlu1 %8076  ;;  %v8103_v5 = vpop.permute.xlu0 %8102  ;;  %v14440_v7 = vld [vmem:[#allocation49_spill] sm:$0xff] }
 0x7d8   :  { %v8300_v10 = vrot.slane %v8299_v55, 2  ;;  %v8305_v40 = vrot.slane %v8304_v45, 4  ;;  %v8246_v52 = vmul.f32 %v8077_v60, %v14432_v51  ;;  %v8295_v27 = vrot.slane %v8294_v39, 1 }
 0x7d9   :  { %v13506_v49 = vadd.f32 %v8289_v8, %v14434_v53  ;;  %v8251_v61 = vmul.f32 %v8103_v5, %v14437_v43 }
 0x7da   :  { %v8301_v2 = vadd.f32 %v8300_v10, %v8299_v55  ;;  %v8306_v46 = vadd.f32 %v8305_v40, %v8304_v45  ;;  %v8311_v32 = vadd.f32 %v8247_v6, %v8246_v52  ;;  %v8296_v30 = vadd.f32 %v8295_v27, %v8294_v39  ;;  %v14441_v55 = vld [vmem:[#allocation28_spill] sm:$0xff]  ;;  %v14442_v52 = vld [vmem:[#allocation27_spill] sm:$0xff] }
 0x7db   :  { %v8088_v42 = vpop.permute.xlu1 %8087  ;;  %v8114_v11 = vpop.permute.xlu0 %8113  ;;  %v8456_v15 = vsel %vm371_vm0, %v13506_v49, %v13503_v28 }
 0x7dc   :  { %v8302_v47 = vrot.slane %v8301_v2, 1  ;;  %v8307_v36 = vrot.slane %v8306_v46, 2  ;;  %v8312_v4 = vrot.slane %v8311_v32, 4  ;;  %v8248_v19 = vmul.f32 %v8088_v42, %v14436_v44 }
 0x7dd   :  { %v8476_v56 = vsel %vm6925_vm9, %v8456_v15, -inf  ;;  %v13517_v18 = vadd.f32 %v8296_v30, %v14439_v37  ;;  %v8253_v45 = vmul.f32 %v8114_v11, %v14441_v55 }
 0x7de   :  { %v8308_v12 = vadd.f32 %v8307_v36, %v8306_v46  ;;  %v8313_v3 = vadd.f32 %v8312_v4, %v8311_v32  ;;  %v8318_v63 = vadd.f32 %v8249_v41, %v8248_v19  ;;  %8477 = vmax.xlane.f32.xlu1 %v8476_v56  ;;  %v8303_v23 = vadd.f32 %v8302_v47, %v8301_v2  ;;  %v14443_v47 = vld [vmem:[#allocation30_spill] sm:$0xff]  ;;  %v14444_v19 = vld [vmem:[#allocation29_spill] sm:$0xff] }
 0x7df   :  { %v8099_v50 = vpop.permute.xlu1 %8098  ;;  %v8125_v20 = vpop.permute.xlu0 %8124 }
 0x7e0   :  { %v8314_v48 = vrot.slane %v8313_v3, 2  ;;  %v8319_v13 = vrot.slane %v8318_v63, 4  ;;  %v8250_v35 = vmul.f32 %v8099_v50, %v14438_v0  ;;  %v8309_v16 = vrot.slane %v8308_v12, 1  ;;  %v14463_v0 = vld [vmem:[#allocation63_spill] sm:$0xff] }
 0x7e1   :  { %v13520_v14 = vadd.f32 %v8303_v23, %v14440_v7  ;;  %v8255_v36 = vmul.f32 %v8125_v20, %v14443_v47  ;;  %v14446_v23 = vld [vmem:[#allocation53_spill] sm:$0xff] }
 0x7e2   :  { %v8315_v26 = vadd.f32 %v8314_v48, %v8313_v3  ;;  %v8320_v25 = vadd.f32 %v8319_v13, %v8318_v63  ;;  %v8325_v39 = vadd.f32 %v8251_v61, %v8250_v35  ;;  %v8310_v53 = vadd.f32 %v8309_v16, %v8308_v12  ;;  %v14445_v3 = vld [vmem:[#allocation54_spill] sm:$0xff]  ;;  %v14447_v13 = vld [vmem:[#allocation32_spill] sm:$0xff] }
 0x7e3   :  { %v8110_v8 = vpop.permute.xlu1 %8109  ;;  %v8136_v60 = vpop.permute.xlu0 %8135  ;;  %v8457_v5 = vsel %vm371_vm0, %v13520_v14, %v13517_v18 }
 0x7e4   :  { %v8316_v10 = vrot.slane %v8315_v26, 1  ;;  %v8321_v6 = vrot.slane %v8320_v25, 2  ;;  %v8326_v40 = vrot.slane %v8325_v39, 4  ;;  %v8252_v27 = vmul.f32 %v8110_v8, %v14442_v52 }
 0x7e5   :  { %v8479_v33 = vsel %vm6925_vm9, %v8457_v5, -inf  ;;  %v13531_v63 = vadd.f32 %v8310_v53, %v14445_v3  ;;  %v8257_v35 = vmul.f32 %v8136_v60, %v14447_v13 }
 0x7e6   :  { %v8317_v2 = vadd.f32 %v8316_v10, %v8315_v26  ;;  %v8322_v46 = vadd.f32 %v8321_v6, %v8320_v25  ;;  %v8327_v32 = vadd.f32 %v8326_v40, %v8325_v39  ;;  %v8332_v41 = vadd.f32 %v8253_v45, %v8252_v27  ;;  %8480 = vmax.xlane.f32.xlu0 %v8479_v33  ;;  %v14448_v39 = vld [vmem:[#allocation31_spill] sm:$0xff] }
 0x7e7   :  { %v8121_v42 = vpop.permute.xlu1 %8120  ;;  %v8147_v11 = vpop.permute.xlu0 %8146 }
 0x7e8   :  { %v8328_v15 = vrot.slane %v8327_v32, 2  ;;  %v8333_v4 = vrot.slane %v8332_v41, 4  ;;  %v8254_v56 = vmul.f32 %v8121_v42, %v14444_v19  ;;  %v8323_v30 = vrot.slane %v8322_v46, 1  ;;  %v14450_v42 = vld [vmem:[#allocation33_spill] sm:$0xff] }
 0x7e9   :  { %v13534_v50 = vadd.f32 %v8317_v2, %v14446_v23  ;;  %v14449_v2 = vld [vmem:[#allocation34_spill] sm:$0xff] }
 0x7ea   :  { %v8329_v12 = vadd.f32 %v8328_v15, %v8327_v32  ;;  %v8334_v48 = vadd.f32 %v8333_v4, %v8332_v41  ;;  %v8339_v61 = vadd.f32 %v8255_v36, %v8254_v56  ;;  %v8324_v8 = vadd.f32 %v8323_v30, %v8322_v46  ;;  %v14451_v4 = vld [vmem:[#allocation60_spill] sm:$0xff] }
 0x7eb   :  { %v8132_v16 = vpop.permute.xlu1 %8131  ;;  %v8158_v37 = vpop.permute.xlu0 %8157  ;;  %v8458_v20 = vsel %vm371_vm0, %v13534_v50, %v13531_v63  ;;  %v8259_v32 = vmul.f32 %v8147_v11, %v14449_v2  ;;  %v14452_v46 = vld [vmem:[#allocation12_spill] sm:$0xff] }
 0x7ec   :  { %v8330_v7 = vrot.slane %v8329_v12, 1  ;;  %v8335_v26 = vrot.slane %v8334_v48, 2  ;;  %v8340_v25 = vrot.slane %v8339_v61, 4  ;;  %v8256_v45 = vmul.f32 %v8132_v16, %v14448_v39 }
 0x7ed   :  { %v8482_v5 = vsel %vm6925_vm9, %v8458_v20, -inf  ;;  %v13545_v56 = vadd.f32 %v8324_v8, %v14451_v4 }
 0x7ee   :  { %v8331_v10 = vadd.f32 %v8330_v7, %v8329_v12  ;;  %v8336_v6 = vadd.f32 %v8335_v26, %v8334_v48  ;;  %v8341_v40 = vadd.f32 %v8340_v25, %v8339_v61  ;;  %v8346_v27 = vadd.f32 %v8257_v35, %v8256_v45  ;;  %8483 = vmax.xlane.f32.xlu0 %v8482_v5  ;;  %v14453_v48 = vld [vmem:[#allocation36_spill] sm:$0xff]  ;;  %v14454_v25 = vld [vmem:[#allocation35_spill] sm:$0xff] }
 0x7ef   :  { %v8143_v60 = vpop.permute.xlu1 %8142  ;;  %v8169_v33 = vpop.permute.xlu0 %8168  ;;  %v8261_v61 = vmul.f32 %v8158_v37, %v14453_v48 }
 0x7f0   :  { %v8342_v53 = vrot.slane %v8341_v40, 2  ;;  %v8347_v41 = vrot.slane %v8346_v27, 4  ;;  %v8258_v15 = vmul.f32 %v8143_v60, %v14450_v42  ;;  %v8337_v36 = vrot.slane %v8336_v6, 1  ;;  %v14457_v42 = vld [vmem:[#allocation61_spill] sm:$0xff] }
 0x7f1   :  { %v13548_v30 = vadd.f32 %v8331_v10, %v14452_v46  ;;  %v14456_v46 = vld [vmem:[#allocation37_spill] sm:$0xff] }
 0x7f2   :  { %v8343_v3 = vadd.f32 %v8342_v53, %v8341_v40  ;;  %v8348_v23 = vadd.f32 %v8347_v41, %v8346_v27  ;;  %v8353_v12 = vadd.f32 %v8259_v32, %v8258_v15  ;;  %v8338_v8 = vadd.f32 %v8337_v36, %v8336_v6  ;;  %v14455_v41 = vld [vmem:[#allocation38_spill] sm:$0xff]  ;;  %v14458_v6 = vld [vmem:[#allocation11_spill] sm:$0xff] }
 0x7f3   :  { %v8154_v35 = vpop.permute.xlu1 %8153  ;;  %v8180_v16 = vpop.permute.xlu0 %8179  ;;  %v8459_v11 = vsel %vm371_vm0, %v13548_v30, %v13545_v56  ;;  %v8263_v15 = vmul.f32 %v8169_v33, %v14455_v41 }
 0x7f4   :  { %v8344_v20 = vrot.slane %v8343_v3, 1  ;;  %v8349_v7 = vrot.slane %v8348_v23, 2  ;;  %v8354_v26 = vrot.slane %v8353_v12, 4  ;;  %v8260_v45 = vmul.f32 %v8154_v35, %v14454_v25 }
 0x7f5   :  { %v8485_v5 = vsel %vm6925_vm9, %v8459_v11, -inf  ;;  %v13559_v2 = vadd.f32 %v8338_v8, %v14457_v42 }
 0x7f6   :  { %v8345_v10 = vadd.f32 %v8344_v20, %v8343_v3  ;;  %v8350_v40 = vadd.f32 %v8349_v7, %v8348_v23  ;;  %v8355_v27 = vadd.f32 %v8354_v26, %v8353_v12  ;;  %v8360_v60 = vadd.f32 %v8261_v61, %v8260_v45  ;;  %8486 = vmax.xlane.f32.xlu0 %v8485_v5  ;;  %v14459_v61 = vld [vmem:[#allocation40_spill] sm:$0xff]  ;;  %v14460_v5 = vld [vmem:[#allocation39_spill] sm:$0xff] }
 0x7f7   :  { %v8165_v37 = vpop.permute.xlu1 %8164  ;;  %v8191_v53 = vpop.permute.xlu0 %8190  ;;  %v8265_v35 = vmul.f32 %v8180_v16, %v14459_v61 }
 0x7f8   :  { %v8356_v32 = vrot.slane %v8355_v27, 2  ;;  %v8361_v4 = vrot.slane %v8360_v60, 4  ;;  %v8262_v9 = vmul.f32 %v8165_v37, %v14456_v46  ;;  %v8351_v29 = vrot.slane %v8350_v40, 1  ;;  %v14462_v46 = vld [vmem:[#allocation41_spill] sm:$0xff] }
 0x7f9   :  { %v13562_v36 = vadd.f32 %v8345_v10, %v14458_v6 }
 0x7fa   :  { %v8357_v3 = vadd.f32 %v8356_v32, %v8355_v27  ;;  %v8362_v23 = vadd.f32 %v8361_v4, %v8360_v60  ;;  %v8367_v12 = vadd.f32 %v8263_v15, %v8262_v9  ;;  %v8352_v8 = vadd.f32 %v8351_v29, %v8350_v40  ;;  %v14461_v15 = vld [vmem:[#allocation42_spill] sm:$0xff] }
 0x7fb   :  { %v8176_v11 = vpop.permute.xlu1 %8175  ;;  %v8202_v20 = vpop.permute.xlu0 %8201  ;;  %v8460_v33 = vsel %vm371_vm0, %v13562_v36, %v13559_v2  ;;  %v8267_v4 = vmul.f32 %v8191_v53, %v14461_v15  ;;  %v14464_v29 = vld [vmem:[#allocation62_spill] sm:$0xff] }
 0x7fc   :  { %v8358_v7 = vrot.slane %v8357_v3, 1  ;;  %v8363_v26 = vrot.slane %v8362_v23, 2  ;;  %v8368_v45 = vrot.slane %v8367_v12, 4  ;;  %v8264_v42 = vmul.f32 %v8176_v11, %v14460_v5 }
 0x7fd   :  { %v8488_v10 = vsel %vm6925_vm9, %v8460_v33, -inf  ;;  %v13573_v43 = vadd.f32 %v8352_v8, %v14463_v0 }
 0x7fe   :  { %v8359_v37 = vadd.f32 %v8358_v7, %v8357_v3  ;;  %v8364_v27 = vadd.f32 %v8363_v26, %v8362_v23  ;;  %v8369_v60 = vadd.f32 %v8368_v45, %v8367_v12  ;;  %v8374_v9 = vadd.f32 %v8265_v35, %v8264_v42  ;;  %8489 = vmax.xlane.f32.xlu1 %v8488_v10  ;;  %v14465_v35 = vld [vmem:[#allocation44_spill] sm:$0xff]  ;;  %v14466_v42 = vld [vmem:[#allocation43_spill] sm:$0xff] }
 0x7ff   :  { %v8187_v16 = vpop.permute.xlu1 %8186  ;;  %v8213_v19 = vpop.permute.xlu0 %8212  ;;  %v8269_v11 = vmul.f32 %v8202_v20, %v14465_v35 }
 0x800   :  { %v8370_v32 = vrot.slane %v8369_v60, 2  ;;  %v8375_v6 = vrot.slane %v8374_v9, 4  ;;  %v8266_v41 = vmul.f32 %v8187_v16, %v14462_v46  ;;  %v8365_v47 = vrot.slane %v8364_v27, 1  ;;  %v14468_v46 = vld [vmem:[#allocation45_spill] sm:$0xff] }
 0x801   :  { %v13576_v40 = vadd.f32 %v8359_v37, %v14464_v29 }
 0x802   :  { %v8371_v3 = vadd.f32 %v8370_v32, %v8369_v60  ;;  %v8376_v23 = vadd.f32 %v8375_v6, %v8374_v9  ;;  %v8381_v12 = vadd.f32 %v8267_v4, %v8266_v41  ;;  %v8366_v0 = vadd.f32 %v8365_v47, %v8364_v27  ;;  %v14467_v4 = vld [vmem:[#allocation46_spill] sm:$0xff]  ;;  %v14470_v47 = vld [vmem:[#allocation65_spill] sm:$0xff] }
 0x803   :  { %v8198_v33 = vpop.permute.xlu1 %8197  ;;  %v8461_v53 = vsel %vm371_vm0, %v13576_v40, %v13573_v43  ;;  %v8224_v41 = vpop.permute.xlu0 %8223  ;;  %v8271_v6 = vmul.f32 %v8213_v19, %v14467_v4  ;;  %v14474_v4 = vld [vmem:[#allocation58_spill] sm:$0xff] }
 0x804   :  { %v8372_v7 = vrot.slane %v8371_v3, 1  ;;  %v8377_v26 = vrot.slane %v8376_v23, 2  ;;  %v8382_v45 = vrot.slane %v8381_v12, 4  ;;  %v8268_v10 = vmul.f32 %v8198_v33, %v14466_v42 }
 0x805   :  { %v8491_v8 = vsel %vm6925_vm9, %v8461_v53, -inf  ;;  %v13587_v31 = vadd.f32 %v8366_v0, %v14469_v57 }
 0x806   :  { %v8373_v37 = vadd.f32 %v8372_v7, %v8371_v3  ;;  %v8378_v16 = vadd.f32 %v8377_v26, %v8376_v23  ;;  %v8383_v60 = vadd.f32 %v8382_v45, %v8381_v12  ;;  %v8388_v9 = vadd.f32 %v8269_v11, %v8268_v10  ;;  %8492 = vmax.xlane.f32.xlu0 %v8491_v8  ;;  %v14471_v11 = vld [vmem:[#allocation55_spill] sm:$0xff] }
 0x807   :  { %v8209_v20 = vpop.permute.xlu1 %8208  ;;  %v8273_v33 = vmul.f32 %v8224_v41, %v14471_v11  ;;  %v8235_v10 = vpop.permute.xlu0 %8234  ;;  %v14472_v8 = vld [vmem:[#allocation47_spill] sm:$0xff] }
 0x808   :  { %v8384_v32 = vrot.slane %v8383_v60, 2  ;;  %v8389_v29 = vrot.slane %v8388_v9, 4  ;;  %v8270_v15 = vmul.f32 %v8209_v20, %v14468_v46  ;;  %v8379_v51 = vrot.slane %v8378_v16, 1  ;;  %v14473_v41 = vld [vmem:[#allocation59_spill] sm:$0xff] }
 0x809   :  { %v13590_v27 = vadd.f32 %v8373_v37, %v14470_v47 }
 0x80a   :  { %v8385_v3 = vadd.f32 %v8384_v32, %v8383_v60  ;;  %v8390_v23 = vadd.f32 %v8389_v29, %v8388_v9  ;;  %v8395_v12 = vadd.f32 %v8271_v6, %v8270_v15  ;;  %v8380_v0 = vadd.f32 %v8379_v51, %v8378_v16 }
 0x80b   :  { %v8220_v53 = vpop.permute.xlu1 %8219  ;;  %v8462_v19 = vsel %vm371_vm0, %v13590_v27, %v13587_v31  ;;  %v8275_v32 = vmul.f32 %v8235_v10, %v14473_v41 }
 0x80c   :  { %v8386_v7 = vrot.slane %v8385_v3, 1  ;;  %v8391_v26 = vrot.slane %v8390_v23, 2  ;;  %v8396_v45 = vrot.slane %v8395_v12, 4  ;;  %v8272_v57 = vmul.f32 %v8220_v53, %v14472_v8  ;;  %v14476_v53 = vld [vmem:[#allocation67_spill] sm:$0xff] }
 0x80d   :  { %v8494_v37 = vsel %vm6925_vm9, %v8462_v19, -inf  ;;  %v13601_v34 = vadd.f32 %v8380_v0, %v14475_v59 }
 0x80e   :  { %v8387_v20 = vadd.f32 %v8386_v7, %v8385_v3  ;;  %v8392_v60 = vadd.f32 %v8391_v26, %v8390_v23  ;;  %v8397_v9 = vadd.f32 %v8396_v45, %v8395_v12  ;;  %v8402_v15 = vadd.f32 %v8273_v33, %v8272_v57  ;;  %8495 = vmax.xlane.f32.xlu1 %v8494_v37 }
 0x80f   :  { %v8231_v6 = vpop.permute.xlu1 %8230 }
 0x810   :  { %v8393_v29 = vrot.slane %v8392_v60, 1  ;;  %v8398_v47 = vrot.slane %v8397_v9, 2  ;;  %v8403_v46 = vrot.slane %v8402_v15, 4  ;;  %v8274_v62 = vmul.f32 %v8231_v6, %v14474_v4 }
 0x811   :  { %v13604_v51 = vadd.f32 %v8387_v20, %v14476_v53  ;;  %v14477_v20 = vld [vmem:[#allocation68_spill] sm:$0xff]  ;;  %v14479_v53 = vld [vmem:[#allocation70_spill] sm:$0xff] }
 0x812   :  { %v8399_v16 = vadd.f32 %v8398_v47, %v8397_v9  ;;  %v8404_v3 = vadd.f32 %v8403_v46, %v8402_v15  ;;  %v8409_v23 = vadd.f32 %v8275_v32, %v8274_v62  ;;  %v8394_v12 = vadd.f32 %v8393_v29, %v8392_v60  ;;  %v14478_v62 = vld [vmem:[#allocation69_spill] sm:$0xff] }
 0x813   :  { %v8463_v33 = vsel %vm371_vm0, %v13604_v51, %v13601_v34 }
 0x814   :  { %v8400_v19 = vrot.slane %v8399_v16, 1  ;;  %v8405_v7 = vrot.slane %v8404_v3, 2  ;;  %v8410_v26 = vrot.slane %v8409_v23, 4  ;;  %v8497_v45 = vsel %vm6925_vm9, %v8463_v33, -inf }
 0x815   :  { %8498 = vmax.xlane.f32.xlu0 %v8497_v45  ;;  %v13611_v9 = vadd.f32 %v8394_v12, %v14477_v20 }
 0x816   :  { %v8401_v10 = vadd.f32 %v8400_v19, %v8399_v16  ;;  %v8406_v59 = vadd.f32 %v8405_v7, %v8404_v3  ;;  %v8411_v57 = vadd.f32 %v8410_v26, %v8409_v23  ;;  %v14480_v3 = vld [vmem:[#allocation71_spill] sm:$0xff] }
 0x818   :  { %v8407_v0 = vrot.slane %v8406_v59, 1  ;;  %v8412_v37 = vrot.slane %v8411_v57, 2  ;;  %v13614_v46 = vadd.f32 %v8401_v10, %v14478_v62 }
 0x81a   :  { %v8413_v60 = vadd.f32 %v8412_v37, %v8411_v57  ;;  %v8464_v15 = vsel %vm371_vm0, %v13614_v46, %v13611_v9  ;;  %v8408_v6 = vadd.f32 %v8407_v0, %v8406_v59 }
 0x81b   :  { %v8500_v32 = vsel %vm6925_vm9, %v8464_v15, -inf }
 0x81c   :  { %v8414_v29 = vrot.slane %v8413_v60, 1  ;;  %8501 = vmax.xlane.f32.xlu1 %v8500_v32  ;;  %v13621_v16 = vadd.f32 %v8408_v6, %v14479_v53 }
 0x81e   :  { %v8415_v47 = vadd.f32 %v8414_v29, %v8413_v60 }
 0x820   :  { %v13624_v23 = vadd.f32 %v8415_v47, %v14480_v3 }
 0x822   :  { %v8465_v12 = vsel %vm371_vm0, %v13624_v23, %v13621_v16 }
 0x823   :  { %v8503_v33 = vsel %vm6925_vm9, %v8465_v12, -inf }
 0x824   :  { %8504 = vmax.xlane.f32.xlu0 %v8503_v33 }
 0x86b   :  { %v8478_v19 = vpop.xlane.xlu1 %8477 }
 0x86c   :  { %v8516_v7 = vrot.slane %v8478_v19, 1  ;;  %v8546_v26 = vsub.f32 %v13503_v28, %v8478_v19 }
 0x86e   :  { %v8547_v45 = vsub.f32 %v13506_v49, %v8516_v7  ;;  %v8566_v10 = vmul.f32 1.442695, %v8546_v26 }
 0x870   :  { %v8568_v59 = vmul.f32 1.442695, %v8547_v45 }
 0x872   :  { %9760 = vpow2.f32 %v8568_v59 }
 0x873   :  { %v8481_v57 = vpop.xlane.xlu0 %8480  ;;  %9762 = vpow2.f32 %v8566_v10 }
 0x874   :  { %v8517_v0 = vrot.slane %v8481_v57, 1  ;;  %v8548_v37 = vsub.f32 %v13517_v18, %v8481_v57 }
 0x876   :  { %v8549_v20 = vsub.f32 %v13520_v14, %v8517_v0  ;;  %v8570_v62 = vmul.f32 1.442695, %v8548_v37 }
 0x878   :  { %v8572_v60 = vmul.f32 1.442695, %v8549_v20 }
 0x87a   :  { %9764 = vpow2.f32 %v8572_v60 }
 0x87b   :  { %v8484_v15 = vpop.xlane.xlu0 %8483  ;;  %9766 = vpow2.f32 %v8570_v62 }
 0x87c   :  { %v13634_v32 = vpop.eup %9760  ;;  %v8518_v28 = vrot.slane %v8484_v15, 1  ;;  %v8550_v49 = vsub.f32 %v13531_v63, %v8484_v15 }
 0x87d   :  { %v8626_v6 = vrot.slane %v13634_v32, 7  ;;  %v13638_v29 = vpop.eup %9762 }
 0x87e   :  { %v8551_v47 = vsub.f32 %v13534_v50, %v8518_v28  ;;  %v8574_v14 = vmul.f32 1.442695, %v8550_v49 }
 0x87f   :  { %v8627_v18 = vsel %vm371_vm0, %v8626_v6, %v13638_v29 }
 0x880   :  { %v8576_v53 = vmul.f32 1.442695, %v8551_v47  ;;  %v8656_v3 = vsel %vm6925_vm9, %v8627_v18, 0.0 }
 0x881   :  { %8657 = vadd.xlane.f32.xlu1 %v8656_v3 }
 0x882   :  { %9768 = vpow2.f32 %v8576_v53 }
 0x883   :  { %v8487_v12 = vpop.xlane.xlu0 %8486  ;;  %9770 = vpow2.f32 %v8574_v14 }
 0x884   :  { %v13644_v33 = vpop.eup %9764  ;;  %v8519_v63 = vrot.slane %v8487_v12, 1  ;;  %v8552_v19 = vsub.f32 %v13545_v56, %v8487_v12 }
 0x885   :  { %v8628_v7 = vrot.slane %v13644_v33, 7  ;;  %v13648_v26 = vpop.eup %9766 }
 0x886   :  { %v8553_v50 = vsub.f32 %v13548_v30, %v8519_v63  ;;  %v8578_v10 = vmul.f32 1.442695, %v8552_v19 }
 0x887   :  { %v8629_v45 = vsel %vm371_vm0, %v8628_v7, %v13648_v26 }
 0x888   :  { %v8580_v59 = vmul.f32 1.442695, %v8553_v50  ;;  %v8659_v57 = vsel %vm6925_vm9, %v8629_v45, 0.0 }
 0x889   :  { %8660 = vadd.xlane.f32.xlu0 %v8659_v57 }
 0x88a   :  { %9772 = vpow2.f32 %v8580_v59 }
 0x88b   :  { %v8490_v0 = vpop.xlane.xlu1 %8489  ;;  %9774 = vpow2.f32 %v8578_v10 }
 0x88c   :  { %v13654_v37 = vpop.eup %9768  ;;  %v8520_v56 = vrot.slane %v8490_v0, 1  ;;  %v8554_v20 = vsub.f32 %v13559_v2, %v8490_v0 }
 0x88d   :  { %v8630_v62 = vrot.slane %v13654_v37, 7  ;;  %v13658_v60 = vpop.eup %9770 }
 0x88e   :  { %v8555_v30 = vsub.f32 %v13562_v36, %v8520_v56  ;;  %v8582_v28 = vmul.f32 1.442695, %v8554_v20 }
 0x88f   :  { %v8631_v15 = vsel %vm371_vm0, %v8630_v62, %v13658_v60 }
 0x890   :  { %v8584_v49 = vmul.f32 1.442695, %v8555_v30  ;;  %v8662_v6 = vsel %vm6925_vm9, %v8631_v15, 0.0 }
 0x891   :  { %8663 = vadd.xlane.f32.xlu1 %v8662_v6 }
 0x892   :  { %9776 = vpow2.f32 %v8584_v49 }
 0x893   :  { %v8493_v47 = vpop.xlane.xlu0 %8492  ;;  %9778 = vpow2.f32 %v8582_v28 }
 0x894   :  { %v13664_v18 = vpop.eup %9772  ;;  %v8521_v2 = vrot.slane %v8493_v47, 1  ;;  %v8556_v14 = vsub.f32 %v13573_v43, %v8493_v47 }
 0x895   :  { %v8632_v53 = vrot.slane %v13664_v18, 7  ;;  %v13668_v3 = vpop.eup %9774 }
 0x896   :  { %v8557_v36 = vsub.f32 %v13576_v40, %v8521_v2  ;;  %v8586_v63 = vmul.f32 1.442695, %v8556_v14 }
 0x897   :  { %v8633_v12 = vsel %vm371_vm0, %v8632_v53, %v13668_v3 }
 0x898   :  { %v8588_v19 = vmul.f32 1.442695, %v8557_v36  ;;  %v8665_v7 = vsel %vm6925_vm9, %v8633_v12, 0.0 }
 0x899   :  { %8666 = vadd.xlane.f32.xlu0 %v8665_v7 }
 0x89a   :  { %9780 = vpow2.f32 %v8588_v19 }
 0x89b   :  { %v8496_v50 = vpop.xlane.xlu1 %8495  ;;  %9782 = vpow2.f32 %v8586_v63 }
 0x89c   :  { %v13674_v45 = vpop.eup %9776  ;;  %v8522_v43 = vrot.slane %v8496_v50, 1  ;;  %v8558_v10 = vsub.f32 %v13587_v31, %v8496_v50 }
 0x89d   :  { %v8634_v59 = vrot.slane %v13674_v45, 7  ;;  %v13678_v57 = vpop.eup %9778 }
 0x89e   :  { %v8559_v40 = vsub.f32 %v13590_v27, %v8522_v43  ;;  %v8590_v56 = vmul.f32 1.442695, %v8558_v10 }
 0x89f   :  { %v8635_v0 = vsel %vm371_vm0, %v8634_v59, %v13678_v57 }
 0x8a0   :  { %v8592_v20 = vmul.f32 1.442695, %v8559_v40  ;;  %v8668_v62 = vsel %vm6925_vm9, %v8635_v0, 0.0 }
 0x8a1   :  { %8669 = vadd.xlane.f32.xlu1 %v8668_v62 }
 0x8a2   :  { %9784 = vpow2.f32 %v8592_v20  ;;  %v8499_v30 = vpop.xlane.xlu0 %8498 }
 0x8a3   :  { %v8523_v15 = vrot.slane %v8499_v30, 1  ;;  %v8560_v28 = vsub.f32 %v13601_v34, %v8499_v30  ;;  %9786 = vpow2.f32 %v8590_v56 }
 0x8a4   :  { %v13685_v31 = vpop.eup %9780 }
 0x8a5   :  { %v8561_v49 = vsub.f32 %v13604_v51, %v8523_v15  ;;  %v8636_v27 = vrot.slane %v13685_v31, 7  ;;  %v13689_v6 = vpop.eup %9782  ;;  %v8594_v47 = vmul.f32 1.442695, %v8560_v28 }
 0x8a7   :  { %v8596_v2 = vmul.f32 1.442695, %v8561_v49  ;;  %v8637_v14 = vsel %vm371_vm0, %v8636_v27, %v13689_v6 }
 0x8a8   :  { %v8671_v53 = vsel %vm6925_vm9, %v8637_v14, 0.0 }
 0x8a9   :  { %9788 = vpow2.f32 %v8596_v2  ;;  %8672 = vadd.xlane.f32.xlu0 %v8671_v53  ;;  %v8502_v36 = vpop.xlane.xlu1 %8501 }
 0x8aa   :  { %v8524_v34 = vrot.slane %v8502_v36, 1  ;;  %v8562_v12 = vsub.f32 %v13611_v9, %v8502_v36  ;;  %9790 = vpow2.f32 %v8594_v47 }
 0x8ac   :  { %v13695_v63 = vpop.eup %9784  ;;  %v8563_v51 = vsub.f32 %v13614_v46, %v8524_v34  ;;  %v8598_v50 = vmul.f32 1.442695, %v8562_v12 }
 0x8ad   :  { %v8638_v19 = vrot.slane %v13695_v63, 7  ;;  %v13699_v7 = vpop.eup %9786 }
 0x8ae   :  { %v8600_v43 = vmul.f32 1.442695, %v8563_v51 }
 0x8af   :  { %v8639_v10 = vsel %vm371_vm0, %v8638_v19, %v13699_v7 }
 0x8b0   :  { %9792 = vpow2.f32 %v8600_v43  ;;  %v8674_v59 = vsel %vm6925_vm9, %v8639_v10, 0.0 }
 0x8b1   :  { %8675 = vadd.xlane.f32.xlu1 %v8674_v59  ;;  %v8505_v40 = vpop.xlane.xlu0 %8504  ;;  %9794 = vpow2.f32 %v8598_v50 }
 0x8b2   :  { %v8525_v9 = vrot.slane %v8505_v40, 1  ;;  %v8564_v0 = vsub.f32 %v13621_v16, %v8505_v40 }
 0x8b3   :  { %v13705_v56 = vpop.eup %9788 }
 0x8b4   :  { %v8565_v46 = vsub.f32 %v13624_v23, %v8525_v9  ;;  %v8640_v20 = vrot.slane %v13705_v56, 7  ;;  %v13709_v62 = vpop.eup %9790  ;;  %v8602_v30 = vmul.f32 1.442695, %v8564_v0 }
 0x8b6   :  { %v8604_v15 = vmul.f32 1.442695, %v8565_v46  ;;  %v8641_v28 = vsel %vm371_vm0, %v8640_v20, %v13709_v62 }
 0x8b7   :  { %v8677_v49 = vsel %vm6925_vm9, %v8641_v28, 0.0 }
 0x8b8   :  { %9796 = vpow2.f32 %v8604_v15  ;;  %8678 = vadd.xlane.f32.xlu0 %v8677_v49 }
 0x8b9   :  { %9798 = vpow2.f32 %v8602_v30 }
 0x8ba   :  { %v13714_v27 = vpop.eup %9792 }
 0x8bb   :  { %v8642_v16 = vrot.slane %v13714_v27, 7  ;;  %v13717_v47 = vpop.eup %9794 }
 0x8bd   :  { %v8643_v23 = vsel %vm371_vm0, %v8642_v16, %v13717_v47 }
 0x8be   :  { %v8680_v2 = vsel %vm6925_vm9, %v8643_v23, 0.0 }
 0x8bf   :  { %8681 = vadd.xlane.f32.xlu1 %v8680_v2 }
 0x8c2   :  { %v13722_v14 = vpop.eup %9796 }
 0x8c3   :  { %v8644_v53 = vrot.slane %v13722_v14, 7  ;;  %v13725_v36 = vpop.eup %9798 }
 0x8c5   :  { %v8645_v34 = vsel %vm371_vm0, %v8644_v53, %v13725_v36 }
 0x8c6   :  { %v8683_v12 = vsel %vm6925_vm9, %v8645_v34, 0.0 }
 0x8c7   :  { %8684 = vadd.xlane.f32.xlu0 %v8683_v12 }
 0x90e   :  { %v8658_v51 = vpop.xlane.xlu1 %8657 }
 0x90f   :  { %9800 = vrcp.f32 %v8658_v51 }
 0x916   :  { %v8661_v19 = vpop.xlane.xlu0 %8660 }
 0x917   :  { %9802 = vrcp.f32 %v8661_v19 }
 0x919   :  { %v13730_v50 = vpop.eup %9800 }
 0x91a   :  { %v8736_v43 = vmul.f32 %v13730_v50, %v13638_v29 }
 0x91c   :  { %v8759_v10 = vrot.slane %v8736_v43, %v12664_v58 }
 0x91e   :  { %v8664_v59 = vpop.xlane.xlu1 %8663  ;;  %v8836_v40 = vmul.f32 %v8759_v10, %v14352_v24  ;;  %v8837_v9 = vmul.f32 %v8759_v10, %v14353_v22 }
 0x91f   :  { %9804 = vrcp.f32 %v8664_v59 }
 0x920   :  { %8876 = vadd.xlane.f32.xlu1 %v8836_v40  ;;  %8878 = vadd.xlane.f32.xlu0 %v8837_v9 }
 0x921   :  { %v13737_v0 = vpop.eup %9802 }
 0x922   :  { %v8738_v46 = vmul.f32 %v13737_v0, %v13648_v26 }
 0x924   :  { %v8767_v20 = vrot.slane %v8738_v46, %v12664_v58 }
 0x926   :  { %v8667_v30 = vpop.xlane.xlu0 %8666  ;;  %v8841_v29 = vmul.f32 %v8767_v20, %v14425_v38  ;;  %v8840_v15 = vmul.f32 %v8767_v20, %v14426_v1 }
 0x927   :  { %9806 = vrcp.f32 %v8667_v30 }
 0x928   :  { %8886 = vadd.xlane.f32.xlu0 %v8841_v29  ;;  %8884 = vadd.xlane.f32.xlu1 %v8840_v15 }
 0x929   :  { %v13744_v24 = vpop.eup %9804 }
 0x92a   :  { %v8740_v22 = vmul.f32 %v13744_v24, %v13658_v60 }
 0x92c   :  { %v8775_v28 = vrot.slane %v8740_v22, %v12664_v58  ;;  %v8706_v22 = vrot.slane %v13730_v50, 1 }
 0x92e   :  { %v8670_v49 = vpop.xlane.xlu1 %8669  ;;  %v8845_v26 = vmul.f32 %v8775_v28, %v14429_v54  ;;  %v8844_v16 = vmul.f32 %v8775_v28, %v14430_v21  ;;  %v8737_v28 = vmul.f32 %v13634_v32, %v8706_v22 }
 0x92f   :  { %9808 = vrcp.f32 %v8670_v49  ;;  %v8707_v49 = vrot.slane %v13737_v0, 1 }
 0x930   :  { %8894 = vadd.xlane.f32.xlu0 %v8845_v26  ;;  %8892 = vadd.xlane.f32.xlu1 %v8844_v16  ;;  %v8708_v26 = vrot.slane %v13744_v24, 1  ;;  %v8763_v50 = vrot.slane %v8737_v28, %v12664_v58 }
 0x931   :  { %v13751_v38 = vpop.eup %9806  ;;  %v8739_v16 = vmul.f32 %v13644_v33, %v8707_v49  ;;  %v14495_v49 = vld [vmem:[#allocation42_spill] sm:$0xff] }
 0x932   :  { %v8742_v1 = vmul.f32 %v13751_v38, %v13668_v3  ;;  %v8709_v24 = vrot.slane %v13751_v38, 1 }
 0x934   :  { %v8783_v23 = vrot.slane %v8742_v1, %v12664_v58  ;;  %v14481_v1 = vld [vmem:[#allocation14_spill] sm:$0xff] }
 0x935   :  { %v8839_v32 = vmul.f32 %v8763_v50, %v14481_v1 }
 0x936   :  { %v8673_v2 = vpop.xlane.xlu0 %8672  ;;  %v8849_v60 = vmul.f32 %v8783_v23, %v14435_v17  ;;  %v8848_v53 = vmul.f32 %v8783_v23, %v14436_v44  ;;  %v14482_v23 = vld [vmem:[#allocation13_spill] sm:$0xff] }
 0x937   :  { %9810 = vrcp.f32 %v8673_v2  ;;  %v8838_v0 = vmul.f32 %v8763_v50, %v14482_v23  ;;  %v8771_v2 = vrot.slane %v8739_v16, %v12664_v58  ;;  %v14498_v16 = vld [vmem:[#allocation45_spill] sm:$0xff] }
 0x938   :  { %8902 = vadd.xlane.f32.xlu0 %v8849_v60  ;;  %8900 = vadd.xlane.f32.xlu1 %v8848_v53  ;;  %v14484_v53 = vld [vmem:[#allocation17_spill] sm:$0xff] }
 0x939   :  { %v13758_v54 = vpop.eup %9808  ;;  %v8842_v33 = vmul.f32 %v8771_v2, %v14484_v53 }
 0x93a   :  { %v8744_v21 = vmul.f32 %v13758_v54, %v13678_v57 }
 0x93c   :  { %v8791_v34 = vrot.slane %v8744_v21, %v12664_v58  ;;  %v8743_v21 = vmul.f32 %v13664_v18, %v8709_v24 }
 0x93e   :  { %v8676_v12 = vpop.xlane.xlu1 %8675  ;;  %v8853_v3 = vmul.f32 %v8791_v34, %v14441_v55  ;;  %v8852_v51 = vmul.f32 %v8791_v34, %v14442_v52  ;;  %v14485_v34 = vld [vmem:[#allocation22_spill] sm:$0xff]  ;;  %v8787_v38 = vrot.slane %v8743_v21, %v12664_v58 }
 0x93f   :  { %9812 = vrcp.f32 %v8676_v12 }
 0x940   :  { %8910 = vadd.xlane.f32.xlu0 %v8853_v3  ;;  %8908 = vadd.xlane.f32.xlu1 %v8852_v51  ;;  %v14486_v3 = vld [vmem:[#allocation21_spill] sm:$0xff] }
 0x941   :  { %v13765_v17 = vpop.eup %9810 }
 0x942   :  { %v8746_v44 = vmul.f32 %v13765_v17, %v13689_v6 }
 0x944   :  { %v8799_v19 = vrot.slane %v8746_v44, %v12664_v58 }
 0x945   :  { %v8679_v43 = vpop.xlane.xlu0 %8678 }
 0x946   :  { %9814 = vrcp.f32 %v8679_v43  ;;  %v8857_v57 = vmul.f32 %v8799_v19, %v14447_v13  ;;  %v8856_v10 = vmul.f32 %v8799_v19, %v14448_v39  ;;  %v8711_v19 = vrot.slane %v13765_v17, 1 }
 0x948   :  { %8918 = vadd.xlane.f32.xlu0 %v8857_v57  ;;  %8916 = vadd.xlane.f32.xlu1 %v8856_v10  ;;  %v14487_v57 = vld [vmem:[#allocation26_spill] sm:$0xff]  ;;  %v14488_v10 = vld [vmem:[#allocation25_spill] sm:$0xff] }
 0x949   :  { %v13772_v55 = vpop.eup %9812  ;;  %v8851_v18 = vmul.f32 %v8787_v38, %v14487_v57 }
 0x94a   :  { %v8748_v52 = vmul.f32 %v13772_v55, %v13699_v7  ;;  %v8712_v43 = vrot.slane %v13772_v55, 1 }
 0x94c   :  { %v8682_v59 = vpop.xlane.xlu1 %8681  ;;  %v8807_v40 = vrot.slane %v8748_v52, %v12664_v58 }
 0x94d   :  { %9816 = vrcp.f32 %v8682_v59  ;;  %v8747_v59 = vmul.f32 %v13685_v31, %v8711_v19 }
 0x94e   :  { %v8861_v6 = vmul.f32 %v8807_v40, %v14453_v48  ;;  %v8860_v9 = vmul.f32 %v8807_v40, %v14454_v25  ;;  %v8749_v40 = vmul.f32 %v13695_v63, %v8712_v43 }
 0x950   :  { %v13779_v46 = vpop.eup %9814  ;;  %8926 = vadd.xlane.f32.xlu0 %v8861_v6  ;;  %8924 = vadd.xlane.f32.xlu1 %v8860_v9  ;;  %v14489_v6 = vld [vmem:[#allocation30_spill] sm:$0xff]  ;;  %v14490_v9 = vld [vmem:[#allocation29_spill] sm:$0xff] }
 0x951   :  { %v8750_v13 = vmul.f32 %v13779_v46, %v13709_v62  ;;  %v8713_v55 = vrot.slane %v13779_v46, 1 }
 0x953   :  { %v8815_v39 = vrot.slane %v8750_v13, %v12664_v58  ;;  %v8803_v13 = vrot.slane %v8747_v59, %v12664_v58 }
 0x954   :  { %v8685_v20 = vpop.xlane.xlu0 %8684 }
 0x955   :  { %9818 = vrcp.f32 %v8685_v20  ;;  %v8865_v7 = vmul.f32 %v8815_v39, %v14459_v61  ;;  %v8864_v30 = vmul.f32 %v8815_v39, %v14460_v5  ;;  %v8811_v39 = vrot.slane %v8749_v40, %v12664_v58  ;;  %v14491_v20 = vld [vmem:[#allocation34_spill] sm:$0xff] }
 0x957   :  { %v13786_v29 = vpop.eup %9816  ;;  %8934 = vadd.xlane.f32.xlu0 %v8865_v7  ;;  %8932 = vadd.xlane.f32.xlu1 %v8864_v30  ;;  %v8859_v7 = vmul.f32 %v8803_v13, %v14491_v20  ;;  %v14492_v30 = vld [vmem:[#allocation33_spill] sm:$0xff] }
 0x958   :  { %v8752_v48 = vmul.f32 %v13786_v29, %v13717_v47  ;;  %v8858_v31 = vmul.f32 %v8803_v13, %v14492_v30  ;;  %v8714_v63 = vrot.slane %v13786_v29, 1 }
 0x95a   :  { %v8823_v25 = vrot.slane %v8752_v48, %v12664_v58  ;;  %v8751_v48 = vmul.f32 %v13705_v56, %v8713_v55 }
 0x95c   :  { %v8869_v15 = vmul.f32 %v8823_v25, %v14465_v35  ;;  %v8868_v62 = vmul.f32 %v8823_v25, %v14466_v42  ;;  %v14493_v25 = vld [vmem:[#allocation38_spill] sm:$0xff]  ;;  %v8819_v46 = vrot.slane %v8751_v48, %v12664_v58 }
 0x95e   :  { %8942 = vadd.xlane.f32.xlu0 %v8869_v15  ;;  %8940 = vadd.xlane.f32.xlu1 %v8868_v62  ;;  %v8863_v15 = vmul.f32 %v8811_v39, %v14493_v25  ;;  %v14494_v62 = vld [vmem:[#allocation37_spill] sm:$0xff] }
 0x95f   :  { %v13794_v61 = vpop.eup %9818  ;;  %v8862_v22 = vmul.f32 %v8811_v39, %v14494_v62 }
 0x960   :  { %v8754_v5 = vmul.f32 %v13794_v61, %v13725_v36  ;;  %v8741_v36 = vmul.f32 %v13654_v37, %v8708_v26  ;;  %v8710_v37 = vrot.slane %v13758_v54, 1  ;;  %v8850_v54 = vmul.f32 %v8787_v38, %v14488_v10  ;;  %v14496_v26 = vld [vmem:[#allocation41_spill] sm:$0xff] }
 0x961   :  { %v8715_v28 = vrot.slane %v13794_v61, 1  ;;  %v8866_v56 = vmul.f32 %v8819_v46, %v14496_v26 }
 0x962   :  { %v8831_v47 = vrot.slane %v8754_v5, %v12664_v58  ;;  %v8745_v44 = vmul.f32 %v13674_v45, %v8710_v37  ;;  %v8753_v5 = vmul.f32 %v13714_v27, %v8714_v63 }
 0x964   :  { %v8873_v35 = vmul.f32 %v8831_v47, %v14471_v11  ;;  %v8872_v42 = vmul.f32 %v8831_v47, %v14472_v8  ;;  %v8779_v11 = vrot.slane %v8741_v36, %v12664_v58  ;;  %v14483_v8 = vld [vmem:[#allocation18_spill] sm:$0xff]  ;;  %v8795_v52 = vrot.slane %v8745_v44, %v12664_v58 }
 0x965   :  { %v8843_v60 = vmul.f32 %v8771_v2, %v14483_v8  ;;  %v8867_v47 = vmul.f32 %v8819_v46, %v14495_v49  ;;  %v8827_v29 = vrot.slane %v8753_v5, %v12664_v58  ;;  %v14500_v2 = vld [vmem:[#allocation57_spill] sm:$0xff] }
 0x966   :  { %8950 = vadd.xlane.f32.xlu0 %v8873_v35  ;;  %8948 = vadd.xlane.f32.xlu1 %v8872_v42  ;;  %v8847_v12 = vmul.f32 %v8779_v11, %v14485_v34  ;;  %v8846_v51 = vmul.f32 %v8779_v11, %v14486_v3  ;;  %v8855_v45 = vmul.f32 %v8795_v52, %v14489_v6  ;;  %v14497_v42 = vld [vmem:[#allocation46_spill] sm:$0xff] }
 0x967   :  { %v8854_v17 = vmul.f32 %v8795_v52, %v14490_v9  ;;  %v8755_v35 = vmul.f32 %v13722_v14, %v8715_v28  ;;  %v8871_v50 = vmul.f32 %v8827_v29, %v14497_v42  ;;  %v8870_v36 = vmul.f32 %v8827_v29, %v14498_v16 }
 0x969   :  { %v8835_v27 = vrot.slane %v8755_v35, %v12664_v58 }
 0x96a   :  { %8882 = vadd.xlane.f32.xlu0 %v8839_v32  ;;  %8880 = vadd.xlane.f32.xlu1 %v8838_v0  ;;  %v14499_v0 = vld [vmem:[#allocation56_spill] sm:$0xff] }
 0x96b   :  { %v8875_v61 = vmul.f32 %v8835_v27, %v14473_v41  ;;  %v8874_v1 = vmul.f32 %v8835_v27, %v14474_v4 }
 0x96e   :  { %8890 = vadd.xlane.f32.xlu0 %v8843_v60  ;;  %8888 = vadd.xlane.f32.xlu1 %v8842_v33 }
 0x972   :  { %8898 = vadd.xlane.f32.xlu0 %v8847_v12  ;;  %8896 = vadd.xlane.f32.xlu1 %v8846_v51 }
 0x976   :  { %8906 = vadd.xlane.f32.xlu0 %v8851_v18  ;;  %8904 = vadd.xlane.f32.xlu1 %v8850_v54 }
 0x97a   :  { %8914 = vadd.xlane.f32.xlu0 %v8855_v45  ;;  %8912 = vadd.xlane.f32.xlu1 %v8854_v17 }
 0x97e   :  { %8922 = vadd.xlane.f32.xlu0 %v8859_v7  ;;  %8920 = vadd.xlane.f32.xlu1 %v8858_v31 }
 0x982   :  { %8930 = vadd.xlane.f32.xlu0 %v8863_v15  ;;  %8928 = vadd.xlane.f32.xlu1 %v8862_v22 }
 0x986   :  { %8938 = vadd.xlane.f32.xlu0 %v8867_v47  ;;  %8936 = vadd.xlane.f32.xlu1 %v8866_v56 }
 0x98a   :  { %8946 = vadd.xlane.f32.xlu0 %v8871_v50  ;;  %8944 = vadd.xlane.f32.xlu1 %v8870_v36 }
 0x98e   :  { %8954 = vadd.xlane.f32.xlu0 %v8875_v61  ;;  %8952 = vadd.xlane.f32.xlu1 %v8874_v1 }
 0x9ad   :  { %v8877_v32 = vpop.xlane.xlu1 %8876  ;;  %v8879_v23 = vpop.xlane.xlu0 %8878 }
 0x9ae   :  { %v9339_v14 = vrot.slane %v8877_v32, %v14499_v0  ;;  %v9343_v24 = vrot.slane %v8879_v23, %v14500_v2  ;;  %v8956_v22 = vmul.f32 %v8877_v32, %v8877_v32  ;;  %v8957_v46 = vmul.f32 %v8879_v23, %v8879_v23 }
 0x9b0   :  { %v13853_v11 = vsel %vm5941_vm7, %v9343_v24, %v9339_v14  ;;  %v9039_v26 = vrot.slane %v8956_v22, %v14499_v0  ;;  %v9043_v56 = vrot.slane %v8957_v46, %v14500_v2 }
 0x9b2   :  { %v9044_v24 = vsel %vm5941_vm7, %v9043_v56, %v9039_v26 }
 0x9b5   :  { %v8885_v8 = vpop.xlane.xlu1 %8884  ;;  %v8887_v60 = vpop.xlane.xlu0 %8886 }
 0x9b6   :  { %v9357_v58 = vrot.slane %v8885_v8, %v14499_v0  ;;  %v9361_v53 = vrot.slane %v8887_v60, %v14500_v2  ;;  %v8960_v35 = vmul.f32 %v8885_v8, %v8885_v8  ;;  %v8961_v42 = vmul.f32 %v8887_v60, %v8887_v60 }
 0x9b8   :  { %v13858_v41 = vsel %vm5941_vm7, %v9361_v53, %v9357_v58  ;;  %v9057_v58 = vrot.slane %v8960_v35, %v14499_v0  ;;  %v9061_v8 = vrot.slane %v8961_v42, %v14500_v2 }
 0x9bd   :  { %v8893_v4 = vpop.xlane.xlu1 %8892  ;;  %v13860_v33 = vpop.xlane.xlu0 %8894 }
 0x9be   :  { %v9375_v21 = vrot.slane %v8893_v4, %v14499_v0  ;;  %v9379_v37 = vrot.slane %v13860_v33, %v14500_v2  ;;  %v8964_v60 = vmul.f32 %v8893_v4, %v8893_v4 }
 0x9c0   :  { %v13866_v34 = vsel %vm5941_vm7, %v9379_v37, %v9375_v21 }
 0x9c5   :  { %v8901_v12 = vpop.xlane.xlu1 %8900  ;;  %v8903_v3 = vpop.xlane.xlu0 %8902 }
 0x9c6   :  { %v9393_v51 = vrot.slane %v8901_v12, %v14499_v0  ;;  %v9397_v38 = vrot.slane %v8903_v3, %v14500_v2 }
 0x9c8   :  { %v13871_v44 = vsel %vm5941_vm7, %v9397_v38, %v9393_v51 }
 0x9cd   :  { %v13873_v19 = vpop.xlane.xlu1 %8908  ;;  %v13875_v43 = vpop.xlane.xlu0 %8910 }
 0x9ce   :  { %v9411_v57 = vrot.slane %v13873_v19, %v14499_v0  ;;  %v9415_v18 = vrot.slane %v13875_v43, %v14500_v2 }
 0x9d0   :  { %v13882_v10 = vsel %vm5941_vm7, %v9415_v18, %v9411_v57 }
 0x9d5   :  { %v13884_v54 = vpop.xlane.xlu1 %8916  ;;  %v13886_v52 = vpop.xlane.xlu0 %8918 }
 0x9d6   :  { %v9429_v59 = vrot.slane %v13884_v54, %v14499_v0  ;;  %v9433_v40 = vrot.slane %v13886_v52, %v14500_v2 }
 0x9d8   :  { %v13893_v6 = vsel %vm5941_vm7, %v9433_v40, %v9429_v59  ;;  %v8965_v59 = vmul.f32 %v13860_v33, %v13860_v33  ;;  %v8968_v40 = vmul.f32 %v8901_v12, %v8901_v12  ;;  %v9062_v33 = vsel %vm5941_vm7, %v9061_v8, %v9057_v58 }
 0x9da   :  { %v9079_v56 = vrot.slane %v8965_v59, %v14500_v2  ;;  %v9093_v35 = vrot.slane %v8968_v40, %v14499_v0 }
 0x9dd   :  { %v13895_v45 = vpop.xlane.xlu1 %8924  ;;  %v13897_v9 = vpop.xlane.xlu0 %8926 }
 0x9de   :  { %v9447_v17 = vrot.slane %v13895_v45, %v14499_v0  ;;  %v9451_v13 = vrot.slane %v13897_v9, %v14500_v2 }
 0x9e0   :  { %v13904_v55 = vsel %vm5941_vm7, %v9451_v13, %v9447_v17  ;;  %v8969_v17 = vmul.f32 %v8903_v3, %v8903_v3 }
 0x9e2   :  { %v9097_v42 = vrot.slane %v8969_v17, %v14500_v2 }
 0x9e4   :  { %v13906_v39 = vpop.xlane.xlu1 %8932  ;;  %v13908_v20 = vpop.xlane.xlu0 %8934 }
 0x9e5   :  { %v9465_v7 = vrot.slane %v13906_v39, %v14499_v0  ;;  %v9469_v30 = vrot.slane %v13908_v20, %v14500_v2 }
 0x9e7   :  { %v13915_v31 = vsel %vm5941_vm7, %v9469_v30, %v9465_v7 }
 0x9eb   :  { %v13917_v48 = vpop.xlane.xlu1 %8940  ;;  %v13919_v63 = vpop.xlane.xlu0 %8942 }
 0x9ec   :  { %v9483_v25 = vrot.slane %v13917_v48, %v14499_v0  ;;  %v9487_v15 = vrot.slane %v13919_v63, %v14500_v2 }
 0x9ee   :  { %v13926_v62 = vsel %vm5941_vm7, %v9487_v15, %v9483_v25  ;;  %v9075_v25 = vrot.slane %v8964_v60, %v14499_v0 }
 0x9f3   :  { %v13928_v5 = vpop.xlane.xlu1 %8948  ;;  %v13930_v28 = vpop.xlane.xlu0 %8950 }
 0x9f4   :  { %v9501_v49 = vrot.slane %v13928_v5, %v14499_v0  ;;  %v9505_v47 = vrot.slane %v13930_v28, %v14500_v2 }
 0x9f6   :  { %v13939_v29 = vsel %vm5941_vm7, %v9505_v47, %v9501_v49 }
 0x9f7   :  { %v8881_v50 = vpop.xlane.xlu1 %8880  ;;  %v8883_v16 = vpop.xlane.xlu0 %8882 }
 0x9f8   :  { %v8958_v36 = vmul.f32 %v8881_v50, %v8881_v50  ;;  %v9348_v27 = vrot.slane %v8881_v50, %v14499_v0  ;;  %v8959_v61 = vmul.f32 %v8883_v16, %v8883_v16  ;;  %v9352_v1 = vrot.slane %v8883_v16, %v14500_v2 }
 0x9fa   :  { %v9048_v32 = vrot.slane %v8958_v36, %v14499_v0  ;;  %v9052_v23 = vrot.slane %v8959_v61, %v14500_v2  ;;  %v9353_v14 = vsel %vm5941_vm7, %v9352_v1, %v9348_v27  ;;  %v8972_v61 = vmul.f32 %v13873_v19, %v13873_v19 }
 0x9fb   :  { %v8889_v53 = vpop.xlane.xlu1 %8888  ;;  %v8891_v21 = vpop.xlane.xlu0 %8890  ;;  %v13951_v37 = vsel %vm371_vm0, %v9353_v14, %v13853_v11  ;;  %v8973_v1 = vmul.f32 %v13875_v43, %v13875_v43  ;;  %v9080_v19 = vsel %vm5941_vm7, %v9079_v56, %v9075_v25  ;;  %v9098_v43 = vsel %vm5941_vm7, %v9097_v42, %v9093_v35 }
 0x9fc   :  { %v8962_v51 = vmul.f32 %v8889_v53, %v8889_v53  ;;  %v9366_v38 = vrot.slane %v8889_v53, %v14499_v0  ;;  %v8963_v57 = vmul.f32 %v8891_v21, %v8891_v21  ;;  %v9370_v18 = vrot.slane %v8891_v21, %v14500_v2 }
 0x9fd   :  { %v9053_v13 = vsel %vm5941_vm7, %v9052_v23, %v9048_v32  ;;  %v9115_v59 = vrot.slane %v8973_v1, %v14500_v2 }
 0x9fe   :  { %v9066_v4 = vrot.slane %v8962_v51, %v14499_v0  ;;  %v9070_v7 = vrot.slane %v8963_v57, %v14500_v2  ;;  %v9371_v11 = vsel %vm5941_vm7, %v9370_v18, %v9366_v38  ;;  %v9216_v30 = vsel %vm371_vm0, %v9053_v13, %v9044_v24 }
 0x9ff   :  { %v8897_v15 = vpop.xlane.xlu1 %8896  ;;  %v9236_v22 = vsel %vm6134_vm8, %v9216_v30, 0.0  ;;  %v8899_v46 = vpop.xlane.xlu0 %8898  ;;  %v13967_v12 = vsel %vm371_vm0, %v9371_v11, %v13858_v41  ;;  %v9111_v18 = vrot.slane %v8972_v61, %v14499_v0 }
 0xa00   :  { %v8966_v3 = vmul.f32 %v8897_v15, %v8897_v15  ;;  %v9384_v49 = vrot.slane %v8897_v15, %v14499_v0  ;;  %9237 = vadd.xlane.f32.xlu1 %v9236_v22  ;;  %v8967_v47 = vmul.f32 %v8899_v46, %v8899_v46  ;;  %v9388_v26 = vrot.slane %v8899_v46, %v14500_v2 }
 0xa01   :  { %v9071_v50 = vsel %vm5941_vm7, %v9070_v7, %v9066_v4  ;;  %v8976_v15 = vmul.f32 %v13884_v54, %v13884_v54  ;;  %v8977_v22 = vmul.f32 %v13886_v52, %v13886_v52  ;;  %v8980_v46 = vmul.f32 %v13895_v45, %v13895_v45 }
 0xa02   :  { %v9084_v16 = vrot.slane %v8966_v3, %v14499_v0  ;;  %v9088_v41 = vrot.slane %v8967_v47, %v14500_v2  ;;  %v9389_v36 = vsel %vm5941_vm7, %v9388_v26, %v9384_v49  ;;  %v9217_v27 = vsel %vm371_vm0, %v9071_v50, %v9062_v33 }
 0xa03   :  { %v8905_v32 = vpop.xlane.xlu1 %8904  ;;  %v9239_v23 = vsel %vm6134_vm8, %v9217_v27, 0.0  ;;  %v8907_v14 = vpop.xlane.xlu0 %8906  ;;  %v13986_v24 = vsel %vm371_vm0, %v9389_v36, %v13866_v34  ;;  %v8981_v26 = vmul.f32 %v13897_v9, %v13897_v9  ;;  %v9116_v35 = vsel %vm5941_vm7, %v9115_v59, %v9111_v18 }
 0xa04   :  { %v8970_v58 = vmul.f32 %v8905_v32, %v8905_v32  ;;  %v9402_v8 = vrot.slane %v8905_v32, %v14499_v0  ;;  %9240 = vadd.xlane.f32.xlu0 %v9239_v23  ;;  %v8971_v60 = vmul.f32 %v8907_v14, %v8907_v14  ;;  %v9406_v53 = vrot.slane %v8907_v14, %v14500_v2 }
 0xa05   :  { %v9089_v21 = vsel %vm5941_vm7, %v9088_v41, %v9084_v16  ;;  %v9129_v36 = vrot.slane %v8976_v15, %v14499_v0  ;;  %v9133_v9 = vrot.slane %v8977_v22, %v14500_v2  ;;  %v9147_v27 = vrot.slane %v8980_v46, %v14499_v0 }
 0xa06   :  { %v9102_v51 = vrot.slane %v8970_v58, %v14499_v0  ;;  %v9106_v38 = vrot.slane %v8971_v60, %v14500_v2  ;;  %v9407_v34 = vsel %vm5941_vm7, %v9406_v53, %v9402_v8  ;;  %v9218_v57 = vsel %vm371_vm0, %v9089_v21, %v9080_v19 }
 0xa07   :  { %v8913_v40 = vpop.xlane.xlu1 %8912  ;;  %v9242_v17 = vsel %vm6134_vm8, %v9218_v57, 0.0  ;;  %v8915_v13 = vpop.xlane.xlu0 %8914  ;;  %v14002_v4 = vsel %vm371_vm0, %v9407_v34, %v13871_v44  ;;  %v9151_v14 = vrot.slane %v8981_v26, %v14500_v2  ;;  %v8984_v58 = vmul.f32 %v13906_v39, %v13906_v39 }
 0xa08   :  { %v8974_v7 = vmul.f32 %v8913_v40, %v8913_v40  ;;  %v9420_v11 = vrot.slane %v8913_v40, %v14499_v0  ;;  %9243 = vadd.xlane.f32.xlu1 %v9242_v17  ;;  %v8975_v30 = vmul.f32 %v8915_v13, %v8915_v13  ;;  %v9424_v25 = vrot.slane %v8915_v13, %v14500_v2 }
 0xa09   :  { %v9107_v33 = vsel %vm5941_vm7, %v9106_v38, %v9102_v51  ;;  %v8985_v34 = vmul.f32 %v13908_v20, %v13908_v20  ;;  %v9134_v39 = vsel %vm5941_vm7, %v9133_v9, %v9129_v36  ;;  %v9165_v17 = vrot.slane %v8984_v58, %v14499_v0 }
 0xa0a   :  { %v9120_v44 = vrot.slane %v8974_v7, %v14499_v0  ;;  %v9124_v3 = vrot.slane %v8975_v30, %v14500_v2  ;;  %v9425_v49 = vsel %vm5941_vm7, %v9424_v25, %v9420_v11  ;;  %v9219_v47 = vsel %vm371_vm0, %v9107_v33, %v9098_v43 }
 0xa0b   :  { %v8921_v54 = vpop.xlane.xlu1 %8920  ;;  %v9245_v56 = vsel %vm6134_vm8, %v9219_v47, 0.0  ;;  %v8923_v52 = vpop.xlane.xlu0 %8922  ;;  %v14023_v45 = vsel %vm371_vm0, %v9425_v49, %v13882_v10  ;;  %v9152_v20 = vsel %vm5941_vm7, %v9151_v14, %v9147_v27  ;;  %v9169_v33 = vrot.slane %v8985_v34, %v14500_v2 }
 0xa0c   :  { %v8978_v42 = vmul.f32 %v8921_v54, %v8921_v54  ;;  %v9438_v50 = vrot.slane %v8921_v54, %v14499_v0  ;;  %9246 = vadd.xlane.f32.xlu0 %v9245_v56  ;;  %v8979_v16 = vmul.f32 %v8923_v52, %v8923_v52  ;;  %v9442_v41 = vrot.slane %v8923_v52, %v14500_v2 }
 0xa0d   :  { %v9125_v61 = vsel %vm5941_vm7, %v9124_v3, %v9120_v44  ;;  %v8988_v44 = vmul.f32 %v13917_v48, %v13917_v48  ;;  %v8989_v3 = vmul.f32 %v13919_v63, %v13919_v63  ;;  %v8992_v56 = vmul.f32 %v13928_v5, %v13928_v5 }
 0xa0e   :  { %v9138_v1 = vrot.slane %v8978_v42, %v14499_v0  ;;  %v9142_v10 = vrot.slane %v8979_v16, %v14500_v2  ;;  %v9443_v32 = vsel %vm5941_vm7, %v9442_v41, %v9438_v50  ;;  %v9220_v23 = vsel %vm371_vm0, %v9125_v61, %v9116_v35 }
 0xa0f   :  { %v8929_v8 = vpop.xlane.xlu1 %8928  ;;  %v9248_v60 = vsel %vm6134_vm8, %v9220_v23, 0.0  ;;  %v8931_v53 = vpop.xlane.xlu0 %8930  ;;  %v14041_v19 = vsel %vm371_vm0, %v9443_v32, %v13893_v6  ;;  %v8993_v52 = vmul.f32 %v13930_v28, %v13930_v28  ;;  %v9183_v5 = vrot.slane %v8988_v44, %v14499_v0 }
 0xa10   :  { %v8982_v21 = vmul.f32 %v8929_v8, %v8929_v8  ;;  %v9456_v43 = vrot.slane %v8929_v8, %v14499_v0  ;;  %9249 = vadd.xlane.f32.xlu1 %v9248_v60  ;;  %v8983_v51 = vmul.f32 %v8931_v53, %v8931_v53  ;;  %v9460_v38 = vrot.slane %v8931_v53, %v14500_v2 }
 0xa11   :  { %v9143_v57 = vsel %vm5941_vm7, %v9142_v10, %v9138_v1  ;;  %v9187_v9 = vrot.slane %v8989_v3, %v14500_v2  ;;  %v9170_v28 = vsel %vm5941_vm7, %v9169_v33, %v9165_v17  ;;  %v9201_v8 = vrot.slane %v8992_v56, %v14499_v0 }
 0xa12   :  { %v9156_v18 = vrot.slane %v8982_v21, %v14499_v0  ;;  %v9160_v59 = vrot.slane %v8983_v51, %v14500_v2  ;;  %v9461_v6 = vsel %vm5941_vm7, %v9460_v38, %v9456_v43  ;;  %v9221_v40 = vsel %vm371_vm0, %v9143_v57, %v9134_v39 }
 0xa13   :  { %v8937_v13 = vpop.xlane.xlu1 %8936  ;;  %v9251_v7 = vsel %vm6134_vm8, %v9221_v40, 0.0  ;;  %v8939_v11 = vpop.xlane.xlu0 %8938  ;;  %v14058_v30 = vsel %vm371_vm0, %v9461_v6, %v13904_v55  ;;  %v9205_v60 = vrot.slane %v8993_v52, %v14500_v2  ;;  %v9188_v43 = vsel %vm5941_vm7, %v9187_v9, %v9183_v5 }
 0xa14   :  { %v8986_v25 = vmul.f32 %v8937_v13, %v8937_v13  ;;  %v9474_v15 = vrot.slane %v8937_v13, %v14499_v0  ;;  %9252 = vadd.xlane.f32.xlu0 %v9251_v7  ;;  %v8987_v22 = vmul.f32 %v8939_v11, %v8939_v11  ;;  %v9478_v46 = vrot.slane %v8939_v11, %v14500_v2 }
 0xa15   :  { %v9161_v49 = vsel %vm5941_vm7, %v9160_v59, %v9156_v18  ;;  %v9206_v57 = vsel %vm5941_vm7, %v9205_v60, %v9201_v8 }
 0xa16   :  { %v9174_v55 = vrot.slane %v8986_v25, %v14499_v0  ;;  %v9178_v47 = vrot.slane %v8987_v22, %v14500_v2  ;;  %v9479_v26 = vsel %vm5941_vm7, %v9478_v46, %v9474_v15  ;;  %v9222_v54 = vsel %vm371_vm0, %v9161_v49, %v9152_v20 }
 0xa17   :  { %v8945_v48 = vpop.xlane.xlu1 %8944  ;;  %v9254_v35 = vsel %vm6134_vm8, %v9222_v54, 0.0  ;;  %v8947_v63 = vpop.xlane.xlu0 %8946  ;;  %v14079_v42 = vsel %vm371_vm0, %v9479_v26, %v13915_v31 }
 0xa18   :  { %v8990_v50 = vmul.f32 %v8945_v48, %v8945_v48  ;;  %v9492_v16 = vrot.slane %v8945_v48, %v14499_v0  ;;  %9255 = vadd.xlane.f32.xlu1 %v9254_v35  ;;  %v8991_v41 = vmul.f32 %v8947_v63, %v8947_v63  ;;  %v9496_v36 = vrot.slane %v8947_v63, %v14500_v2 }
 0xa19   :  { %v9179_v27 = vsel %vm5941_vm7, %v9178_v47, %v9174_v55 }
 0xa1a   :  { %v9192_v61 = vrot.slane %v8990_v50, %v14499_v0  ;;  %v9196_v31 = vrot.slane %v8991_v41, %v14500_v2  ;;  %v9497_v1 = vsel %vm5941_vm7, %v9496_v36, %v9492_v16  ;;  %v9223_v10 = vsel %vm371_vm0, %v9179_v27, %v9170_v28 }
 0xa1b   :  { %v14091_v32 = vpop.xlane.xlu1 %8952  ;;  %v9257_v23 = vsel %vm6134_vm8, %v9223_v10, 0.0  ;;  %v14094_v14 = vpop.xlane.xlu0 %8954  ;;  %v14098_v58 = vsel %vm371_vm0, %v9497_v1, %v13926_v62 }
 0xa1c   :  { %v8994_v53 = vmul.f32 %v14091_v32, %v14091_v32  ;;  %9258 = vadd.xlane.f32.xlu0 %v9257_v23  ;;  %v8995_v21 = vmul.f32 %v14094_v14, %v14094_v14  ;;  %v9197_v51 = vsel %vm5941_vm7, %v9196_v31, %v9192_v61 }
 0xa1d   :  { %v9224_v34 = vsel %vm371_vm0, %v9197_v51, %v9188_v43 }
 0xa1e   :  { %v9210_v38 = vrot.slane %v8994_v53, %v14499_v0  ;;  %v9214_v62 = vrot.slane %v8995_v21, %v14500_v2  ;;  %v9260_v39 = vsel %vm6134_vm8, %v9224_v34, 0.0 }
 0xa1f   :  { %9261 = vadd.xlane.f32.xlu1 %v9260_v39 }
 0xa20   :  { %v9215_v18 = vsel %vm5941_vm7, %v9214_v62, %v9210_v38 }
 0xa21   :  { %v9225_v59 = vsel %vm371_vm0, %v9215_v18, %v9206_v57 }
 0xa22   :  { %v9263_v6 = vsel %vm6134_vm8, %v9225_v59, 0.0 }
 0xa23   :  { %9264 = vadd.xlane.f32.xlu0 %v9263_v6 }
 0xa8d   :  { %v9238_v40 = vpop.xlane.xlu1 %9237 }
 0xa8e   :  { %v9266_v17 = vadd.f32 1.0, %v9238_v40 }
 0xa90   :  { %9820 = vrcp.f32 %v9266_v17 }
 0xa91   :  { %v9241_v13 = vpop.xlane.xlu0 %9240  ;;  %9822 = vrsqrt.f32 %v9238_v40 }
 0xa92   :  { %v9267_v7 = vadd.f32 1.0, %v9241_v13 }
 0xa94   :  { %9824 = vrcp.f32 %v9267_v7 }
 0xa95   :  { %v9244_v11 = vpop.xlane.xlu1 %9243  ;;  %9826 = vrsqrt.f32 %v9241_v13 }
 0xa96   :  { %v9268_v20 = vadd.f32 1.0, %v9244_v11 }
 0xa98   :  { %9828 = vrcp.f32 %v9268_v20 }
 0xa99   :  { %v9247_v25 = vpop.xlane.xlu0 %9246  ;;  %9830 = vrsqrt.f32 %v9244_v11 }
 0xa9a   :  { %v9821_v15 = vpop.eup %9820  ;;  %v9269_v22 = vadd.f32 1.0, %v9247_v25 }
 0xa9b   :  { %v9277_v46 = vmul.f32 %v9821_v15, %v9238_v40  ;;  %v9823_v33 = vpop.eup %9822 }
 0xa9c   :  { %9832 = vrcp.f32 %v9269_v22 }
 0xa9d   :  { %v9536_v44 = vmul.f32 %v13951_v37, %v9277_v46  ;;  %v9250_v3 = vpop.xlane.xlu1 %9249  ;;  %9834 = vrsqrt.f32 %v9247_v25 }
 0xa9e   :  { %v9825_v49 = vpop.eup %9824  ;;  %v9270_v55 = vadd.f32 1.0, %v9250_v3 }
 0xa9f   :  { %v9556_v47 = vmul.f32 %v9823_v33, %v9536_v44  ;;  %v9279_v26 = vmul.f32 %v9825_v49, %v9241_v13  ;;  %v9827_v54 = vpop.eup %9826  ;;  %v9510_v13 = vrot.slane %v14091_v32, %v14499_v0 }
 0xaa0   :  { %9836 = vrcp.f32 %v9270_v55 }
 0xaa1   :  { %9566 = vst.msk [vmem:[#allocation7] sm:$0x3] %vm6134_vm8, %v9556_v47  ;;  %v9537_v56 = vmul.f32 %v13967_v12, %v9279_v26  ;;  %v9253_v52 = vpop.xlane.xlu0 %9252  ;;  %9838 = vrsqrt.f32 %v9250_v3 }
 0xaa2   :  { %v9829_v48 = vpop.eup %9828  ;;  %v9271_v35 = vadd.f32 1.0, %v9253_v52 }
 0xaa3   :  { %v9557_v63 = vmul.f32 %v9827_v54, %v9537_v56  ;;  %v9281_v50 = vmul.f32 %v9829_v48, %v9244_v11  ;;  %v9831_v37 = vpop.eup %9830 }
 0xaa4   :  { %9840 = vrcp.f32 %v9271_v35 }
 0xaa5   :  { %9567 = vst.msk [vmem:[#allocation7 + $0x2] sm:$0x3] %vm6134_vm8, %v9557_v63  ;;  %v9538_v16 = vmul.f32 %v13986_v24, %v9281_v50  ;;  %v9256_v41 = vpop.xlane.xlu1 %9255  ;;  %9842 = vrsqrt.f32 %v9253_v52 }
 0xaa6   :  { %v9833_v36 = vpop.eup %9832  ;;  %v9272_v5 = vadd.f32 1.0, %v9256_v41 }
 0xaa7   :  { %v9558_v9 = vmul.f32 %v9831_v37, %v9538_v16  ;;  %v9283_v28 = vmul.f32 %v9833_v36, %v9247_v25  ;;  %v9835_v12 = vpop.eup %9834 }
 0xaa8   :  { %9844 = vrcp.f32 %v9272_v5 }
 0xaa9   :  { %9568 = vst.msk [vmem:[#allocation7 + $0x4] sm:$0x3] %vm6134_vm8, %v9558_v9  ;;  %v9539_v27 = vmul.f32 %v14002_v4, %v9283_v28  ;;  %v9259_v61 = vpop.xlane.xlu0 %9258  ;;  %9846 = vrsqrt.f32 %v9256_v41 }
 0xaaa   :  { %v9837_v31 = vpop.eup %9836  ;;  %v9273_v1 = vadd.f32 1.0, %v9259_v61 }
 0xaab   :  { %v9559_v10 = vmul.f32 %v9835_v12, %v9539_v27  ;;  %v9285_v23 = vmul.f32 %v9837_v31, %v9250_v3  ;;  %v9839_v24 = vpop.eup %9838 }
 0xaac   :  { %9848 = vrcp.f32 %v9273_v1  ;;  %v9262_v60 = vpop.xlane.xlu1 %9261 }
 0xaad   :  { %9569 = vst.msk [vmem:[#allocation7 + $0x6] sm:$0x3] %vm6134_vm8, %v9559_v10  ;;  %v9540_v8 = vmul.f32 %v14023_v45, %v9285_v23  ;;  %v9274_v21 = vadd.f32 1.0, %v9262_v60  ;;  %9850 = vrsqrt.f32 %v9259_v61 }
 0xaae   :  { %v9841_v53 = vpop.eup %9840 }
 0xaaf   :  { %v9560_v43 = vmul.f32 %v9839_v24, %v9540_v8  ;;  %v9287_v51 = vmul.f32 %v9841_v53, %v9253_v52  ;;  %9852 = vrcp.f32 %v9274_v21  ;;  %v9843_v38 = vpop.eup %9842 }
 0xab0   :  { %v9265_v4 = vpop.xlane.xlu0 %9264 }
 0xab1   :  { %9570 = vst.msk [vmem:[#allocation7 + $0x8] sm:$0x3] %vm6134_vm8, %v9560_v43  ;;  %v9541_v62 = vmul.f32 %v14041_v19, %v9287_v51  ;;  %v9275_v34 = vadd.f32 1.0, %v9265_v4  ;;  %v9514_v19 = vrot.slane %v14094_v14, %v14500_v2 }
 0xab2   :  { %v9845_v39 = vpop.eup %9844 }
 0xab3   :  { %v9561_v57 = vmul.f32 %v9843_v38, %v9541_v62  ;;  %v9289_v18 = vmul.f32 %v9845_v39, %v9256_v41  ;;  %9854 = vrcp.f32 %v9275_v34  ;;  %v9847_v45 = vpop.eup %9846 }
 0xab4   :  { %9856 = vrsqrt.f32 %v9262_v60 }
 0xab5   :  { %9571 = vst.msk [vmem:[#allocation7 + $0xa] sm:$0x3] %vm6134_vm8, %v9561_v57  ;;  %v9542_v59 = vmul.f32 %v14058_v30, %v9289_v18  ;;  %9858 = vrsqrt.f32 %v9265_v4  ;;  %v9515_v30 = vsel %vm5941_vm7, %v9514_v19, %v9510_v13 }
 0xab6   :  { %v9849_v6 = vpop.eup %9848  ;;  %v9525_v2 = vsel %vm371_vm0, %v9515_v30, %v13939_v29 }
 0xab7   :  { %v9562_v40 = vmul.f32 %v9847_v45, %v9542_v59  ;;  %v9291_v17 = vmul.f32 %v9849_v6, %v9259_v61  ;;  %v9851_v7 = vpop.eup %9850 }
 0xab9   :  { %9572 = vst.msk [vmem:[#allocation7 + $0xc] sm:$0x3] %vm6134_vm8, %v9562_v40  ;;  %v9543_v11 = vmul.f32 %v14079_v42, %v9291_v17  ;;  %v9853_v20 = vpop.eup %9852 }
 0xaba   :  { %v9293_v15 = vmul.f32 %v9853_v20, %v9262_v60 }
 0xabb   :  { %v9563_v25 = vmul.f32 %v9851_v7, %v9543_v11 }
 0xabc   :  { %v9544_v46 = vmul.f32 %v14098_v58, %v9293_v15 }
 0xabd   :  { %v9855_v22 = vpop.eup %9854  ;;  %9573 = vst.msk [vmem:[#allocation7 + $0xe] sm:$0x3] %vm6134_vm8, %v9563_v25 }
 0xabe   :  { %v9857_v33 = vpop.eup %9856  ;;  %v9295_v0 = vmul.f32 %v9855_v22, %v9265_v4 }
 0xabf   :  { %v9564_v32 = vmul.f32 %v9857_v33, %v9544_v46  ;;  %v9859_v42 = vpop.eup %9858 }
 0xac0   :  { %v9545_v14 = vmul.f32 %v9525_v2, %v9295_v0 }
 0xac1   :  { %9574 = vst.msk [vmem:[#allocation7 + $0x10] sm:$0x3] %vm6134_vm8, %v9564_v32 }
 0xac2   :  { %v9565_v44 = vmul.f32 %v9859_v42, %v9545_v14 }
 0xac4   :  { %9575 = vst.msk [vmem:[#allocation7 + $0x12] sm:$0x3] %vm6134_vm8, %v9565_v44 }
 0xac5   :  { %9995 = shalt.err (!%p9992_p6)
}
 0xac6   :  { %s9996_s10 = scalar_lea.hbm %s14156_s2, 320 }
 0xac7   :  { %p9997_p7 = scmp.ne.s32.totalorder %s14156_s2, %s9996_s10  ;;  %p10000_p8 = scmp.lt.u32.totalorder %s9996_s10, %s14156_s2 }
 0xac9   :  { %p10002_p9 = pnand %p10000_p8, %p9997_p7 }
 0xacb   :  { %10005 = shalt.err (!%p10002_p9)
}
 0xacc   :  { %s10018_s15 = smov 32   ;;  %s10019_s16 = smov 2  }
 0xacd   :  { %9587 = dma.vmem_to_hbm [thread:$0]  %s9582_s6, 320, %s14156_s2, [#allocation4], %s10018_s15, %s10018_s15, %s10019_s16  }
 0xace   :  { %10010 = dma.done.wait [#allocation4], 320  }
 0xacf   :  { %10011 = vsyncadd [#allocation4], 4294966976 }
 0xad0   :  { %9591 = vsyncpa [#allocation3], 1 }
 0xad1   :  { %9592 = vsyncpa [#allocation6], 1 }
 0xad2   :  { %9593 = vsyncpa [#allocation4], 1 }

</bundles_post_ra>
